<compile_context>
chip_gen: v7x
topology: tpu7x:2x2x1
jax: 0.10.0
libtpu: 0.0.40
codegen_flags: <defaults>
</compile_context>

<pallas_src>
import functools
import math

import jax
import jax.numpy as jnp
from jax.experimental import pallas as pl
from jax.experimental.pallas import tpu as pltpu  # noqa: F401  (no grid needed)

# ----------------------------- model config -----------------------------
VOCAB = 16
D_MODEL = 32
N_HEADS = 4
D_HEAD = D_MODEL // N_HEADS
D_FF = 64
N_LAYERS = 2
EPS = 1e-6
NEG_INF = -1e9
ATTN_SCALE = 1.0 / math.sqrt(D_HEAD)


# ----------------------------- in-kernel helpers -----------------------------
def _layer_norm(x, g, b):
    mu = jnp.mean(x, axis=-1, keepdims=True)
    var = jnp.mean(jnp.square(x - mu), axis=-1, keepdims=True)
    return (x - mu) * jax.lax.rsqrt(var + EPS) * g + b


def _attend_heads(q, kv, bias, wo):
    """q: [Lq, D]; kv: [Lk, 2D] (K then V); bias broadcastable to [Lq, Lk].

    Heads are static lane slices; the concat-over-heads is folded into the
    output projection (acc += o_h @ W_o[h*Dh:(h+1)*Dh, :]).
    """
    acc = jnp.zeros((q.shape[0], D_MODEL), jnp.float32)
    for h in range(N_HEADS):
        lo, hi = h * D_HEAD, (h + 1) * D_HEAD
        qh = q[:, lo:hi]
        kh = kv[:, lo:hi]
        vh = kv[:, D_MODEL + lo:D_MODEL + hi]
        s = jax.lax.dot_general(qh, kh, (((1,), (1,)), ((), ())),
                                preferred_element_type=jnp.float32) * ATTN_SCALE
        s = s + bias
        s = s - jnp.max(s, axis=-1, keepdims=True)
        p = jnp.exp(s)
        p = p * pl.reciprocal(jnp.sum(p, axis=-1, keepdims=True), approx=True)
        oh = jnp.dot(p, vh, preferred_element_type=jnp.float32)          # [Lq, Dh]
        acc = acc + jnp.dot(oh, wo[lo:hi, :],
                            preferred_element_type=jnp.float32)          # [Lq, D]
    return acc


def _self_attention(x, biases, L, B, wqkv, bqkv, wo, bo):
    """x: [B*L, D] (batch folded into rows); biases: list of B per-batch biases."""
    qkv = jnp.dot(x, wqkv, preferred_element_type=jnp.float32) + bqkv    # [B*L, 3D]
    outs = []
    for b in range(B):
        blk = qkv[b * L:(b + 1) * L]                                     # [L, 3D]
        outs.append(_attend_heads(blk[:, :D_MODEL], blk[:, D_MODEL:],
                                  biases[b], wo))
    return jnp.concatenate(outs, axis=0) + bo                            # [B*L, D]


def _cross_attention(x, mem, biases, Lq, Lk, B, wq, bq, wkv, bkv, wo, bo):
    q = jnp.dot(x, wq, preferred_element_type=jnp.float32) + bq          # [B*Lq, D]
    kv = jnp.dot(mem, wkv, preferred_element_type=jnp.float32) + bkv     # [B*Lk, 2D]
    outs = []
    for b in range(B):
        outs.append(_attend_heads(q[b * Lq:(b + 1) * Lq],
                                  kv[b * Lk:(b + 1) * Lk],
                                  biases[b], wo))
    return jnp.concatenate(outs, axis=0) + bo                            # [B*Lq, D]


def _ffn(x, w1, b1, w2, b2):
    h = jnp.maximum(jnp.dot(x, w1, preferred_element_type=jnp.float32) + b1, 0.0)
    return jnp.dot(h, w2, preferred_element_type=jnp.float32) + b2


# ----------------------------- fused forward kernel -----------------------------
def _fused_forward_kernel(treedef, B, LS, LT,
                          x_src_ref, x_tgt_ref, src_m_ref, tgt_m_ref, *rest):
    param_refs, o_ref = rest[:-1], rest[-1]
    P = jax.tree_util.tree_unflatten(treedef, list(param_refs))

    x = x_src_ref[...].astype(jnp.float32)                   # [B*LS, D]
    y = x_tgt_ref[...].astype(jnp.float32)                   # [B*LT, D]

    # Compact masks -> per-batch additive bias, built in-kernel.
    src_bias = [jnp.where(src_m_ref[b] > 0, 0.0, NEG_INF) for b in range(B)]  # [1, LS]
    tgt_bias = [jnp.where(tgt_m_ref[b] > 0, 0.0, NEG_INF) for b in range(B)]  # [LT, LT]

    # ---------------- encoder (residual sublayers) ----------------
    enc = P["enc"]
    for l in range(N_LAYERS):
        xn = _layer_norm(x, enc["ln1_g"][l], enc["ln1_b"][l])   # LN once, reused for q/k/v
        x = x + _self_attention(xn, src_bias, LS, B,
                                enc["wqkv"][l], enc["bqkv"][l],
                                enc["wo"][l], enc["bo"][l])
        xn = _layer_norm(x, enc["ln2_g"][l], enc["ln2_b"][l])
        x = x + _ffn(xn, enc["w1"][l], enc["b1"][l], enc["w2"][l], enc["b2"][l])
    memory = _layer_norm(x, P["enc_norm_g"][...], P["enc_norm_b"][...])

    # ---------------- decoder ----------------
    dec = P["dec"]
    for l in range(N_LAYERS):
        yn = _layer_norm(y, dec["ln1_g"][l], dec["ln1_b"][l])
        y = y + _self_attention(yn, tgt_bias, LT, B,
                                dec["wqkv"][l], dec["bqkv"][l],
                                dec["wo_s"][l], dec["bo_s"][l])
        yn = _layer_norm(y, dec["ln2_g"][l], dec["ln2_b"][l])
        y = y + _cross_attention(yn, memory, src_bias, LT, LS, B,
                                 dec["wq_c"][l], dec["bq_c"][l],
                                 dec["wkv_c"][l], dec["bkv_c"][l],
                                 dec["wo_c"][l], dec["bo_c"][l])
        yn = _layer_norm(y, dec["ln3_g"][l], dec["ln3_b"][l])
        y = y + _ffn(yn, dec["w1"][l], dec["b1"][l], dec["w2"][l], dec["b2"][l])
    out = _layer_norm(y, P["dec_norm_g"][...], P["dec_norm_b"][...])

    o_ref[...] = out.astype(o_ref.dtype)


# ----------------------------- wrapper -----------------------------
def encoder_decoder_forward(params, src, tgt, src_mask, tgt_mask):
    """Mirrors EncoderDecoder.forward(src, tgt, src_mask, tgt_mask)."""
    B, LS = src.shape
    LT = tgt.shape[1]

    # Embedding (* sqrt(d_model)) + positional encoding kept as XLA glue
    # (token gather); batch is folded into the row dim for the kernel.
    x_src = (params["src_emb"][src] * math.sqrt(D_MODEL)
             + params["pe"][None, :LS, :]).reshape(B * LS, D_MODEL)
    x_tgt = (params["tgt_emb"][tgt] * math.sqrt(D_MODEL)
             + params["pe"][None, :LT, :]).reshape(B * LT, D_MODEL)

    flat_w, treedef = jax.tree_util.tree_flatten(params["weights"])

    # No grid: the whole (tiny) problem fits comfortably in VMEM; every
    # operand is a whole-array VMEM ref, DMA'd exactly once.
    out = pl.pallas_call(
        functools.partial(_fused_forward_kernel, treedef, B, LS, LT),
        out_shape=jax.ShapeDtypeStruct((B * LT, D_MODEL), jnp.float32),
    )(x_src, x_tgt,
      src_mask.astype(jnp.int32), tgt_mask.astype(jnp.int32),
      *flat_w)

    return out.reshape(B, LT, D_MODEL)


# ----------------------------- params -----------------------------
def positional_encoding(max_len, d_model):
    pos = jnp.arange(max_len, dtype=jnp.float32)[:, None]
    div = jnp.exp(jnp.arange(0, d_model, 2, dtype=jnp.float32)
                  * (-math.log(10000.0) / d_model))
    pe = jnp.zeros((max_len, d_model), jnp.float32)
    pe = pe.at[:, 0::2].set(jnp.sin(pos * div))
    pe = pe.at[:, 1::2].set(jnp.cos(pos * div))
    return pe


def _glorot(key, shape):
    lim = math.sqrt(6.0 / (shape[0] + shape[1]))
    return jax.random.uniform(key, shape, jnp.float32, -lim, lim)


def _init_enc_layer(key):
    ks = jax.random.split(key, 6)
    return {
        "wqkv": jnp.concatenate([_glorot(ks[0], (D_MODEL, D_MODEL)),
                                 _glorot(ks[1], (D_MODEL, D_MODEL)),
                                 _glorot(ks[2], (D_MODEL, D_MODEL))], axis=1),
        "bqkv": jnp.zeros((1, 3 * D_MODEL), jnp.float32),
        "wo": _glorot(ks[3], (D_MODEL, D_MODEL)),
        "bo": jnp.zeros((1, D_MODEL), jnp.float32),
        "w1": _glorot(ks[4], (D_MODEL, D_FF)),
        "b1": jnp.zeros((1, D_FF), jnp.float32),
        "w2": _glorot(ks[5], (D_FF, D_MODEL)),
        "b2": jnp.zeros((1, D_MODEL), jnp.float32),
        "ln1_g": jnp.ones((1, D_MODEL), jnp.float32),
        "ln1_b": jnp.zeros((1, D_MODEL), jnp.float32),
        "ln2_g": jnp.ones((1, D_MODEL), jnp.float32),
        "ln2_b": jnp.zeros((1, D_MODEL), jnp.float32),
    }


def _init_dec_layer(key):
    ks = jax.random.split(key, 10)
    return {
        "wqkv": jnp.concatenate([_glorot(ks[0], (D_MODEL, D_MODEL)),
                                 _glorot(ks[1], (D_MODEL, D_MODEL)),
                                 _glorot(ks[2], (D_MODEL, D_MODEL))], axis=1),
        "bqkv": jnp.zeros((1, 3 * D_MODEL), jnp.float32),
        "wo_s": _glorot(ks[3], (D_MODEL, D_MODEL)),
        "bo_s": jnp.zeros((1, D_MODEL), jnp.float32),
        "wq_c": _glorot(ks[4], (D_MODEL, D_MODEL)),
        "bq_c": jnp.zeros((1, D_MODEL), jnp.float32),
        "wkv_c": jnp.concatenate([_glorot(ks[5], (D_MODEL, D_MODEL)),
                                  _glorot(ks[6], (D_MODEL, D_MODEL))], axis=1),
        "bkv_c": jnp.zeros((1, 2 * D_MODEL), jnp.float32),
        "wo_c": _glorot(ks[7], (D_MODEL, D_MODEL)),
        "bo_c": jnp.zeros((1, D_MODEL), jnp.float32),
        "w1": _glorot(ks[8], (D_MODEL, D_FF)),
        "b1": jnp.zeros((1, D_FF), jnp.float32),
        "w2": _glorot(ks[9], (D_FF, D_MODEL)),
        "b2": jnp.zeros((1, D_MODEL), jnp.float32),
        "ln1_g": jnp.ones((1, D_MODEL), jnp.float32),
        "ln1_b": jnp.zeros((1, D_MODEL), jnp.float32),
        "ln2_g": jnp.ones((1, D_MODEL), jnp.float32),
        "ln2_b": jnp.zeros((1, D_MODEL), jnp.float32),
        "ln3_g": jnp.ones((1, D_MODEL), jnp.float32),
        "ln3_b": jnp.zeros((1, D_MODEL), jnp.float32),
    }


def init_params(key, max_len=64):
    k_src, k_tgt, k_enc, k_dec = jax.random.split(key, 4)
    enc_layers = [_init_enc_layer(k) for k in jax.random.split(k_enc, N_LAYERS)]
    dec_layers = [_init_dec_layer(k) for k in jax.random.split(k_dec, N_LAYERS)]
    stack = lambda layers: jax.tree_util.tree_map(
        lambda *xs: jnp.stack(xs, axis=0), *layers)
    weights = {
        "enc": stack(enc_layers),
        "dec": stack(dec_layers),
        "enc_norm_g": jnp.ones((1, D_MODEL), jnp.float32),
        "enc_norm_b": jnp.zeros((1, D_MODEL), jnp.float32),
        "dec_norm_g": jnp.ones((1, D_MODEL), jnp.float32),
        "dec_norm_b": jnp.zeros((1, D_MODEL), jnp.float32),
    }
    return {
        "src_emb": jax.random.normal(k_src, (VOCAB, D_MODEL), jnp.float32) * 0.02,
        "tgt_emb": jax.random.normal(k_tgt, (VOCAB, D_MODEL), jnp.float32) * 0.02,
        "pe": positional_encoding(max_len, D_MODEL),
        "weights": weights,
    }


# ----------------------------- main -----------------------------
if __name__ == "__main__":
    key = jax.random.PRNGKey(0)
    pk, sk, tk = jax.random.split(key, 3)

    B, LS, LT = 2, 8, 8
    params = init_params(pk)

    src = jax.random.randint(sk, (B, LS), 1, VOCAB, dtype=jnp.int32)
    tgt = jax.random.randint(tk, (B, LT), 1, VOCAB, dtype=jnp.int32)

    # src_mask: [B, 1, LS]  (pad mask); tgt_mask: [B, LT, LT] (pad & causal)
    src_mask = (src != 0)[:, None, :].astype(jnp.int32)
    causal = jnp.tril(jnp.ones((LT, LT), jnp.int32))
    tgt_mask = (tgt != 0)[:, None, :].astype(jnp.int32) & causal[None, :, :]

    fwd = jax.jit(encoder_decoder_forward)
    out = fwd(params, src, tgt, src_mask, tgt_mask)
    out = jax.block_until_ready(out)

    assert out.shape == (B, LT, D_MODEL), out.shape
    assert bool(jnp.all(jnp.isfinite(out)))
    print("KERNEL_OK")
</pallas_src>

<mosaic_0001>
module attributes {stable_mosaic.version = 11 : i64} {
  func.func @_fused_forward_kernel(%arg0: memref<16x32xf32, #tpu.memory_space<vmem>>, %arg1: memref<16x32xf32, #tpu.memory_space<vmem>>, %arg2: memref<2x1x8xi32, #tpu.memory_space<vmem>>, %arg3: memref<2x8x8xi32, #tpu.memory_space<vmem>>, %arg4: memref<2x1x64xf32, #tpu.memory_space<vmem>>, %arg5: memref<2x1x32xf32, #tpu.memory_space<vmem>>, %arg6: memref<2x1x64xf32, #tpu.memory_space<vmem>>, %arg7: memref<2x1x32xf32, #tpu.memory_space<vmem>>, %arg8: memref<2x1x32xf32, #tpu.memory_space<vmem>>, %arg9: memref<2x1x32xf32, #tpu.memory_space<vmem>>, %arg10: memref<2x1x96xf32, #tpu.memory_space<vmem>>, %arg11: memref<2x1x32xf32, #tpu.memory_space<vmem>>, %arg12: memref<2x1x32xf32, #tpu.memory_space<vmem>>, %arg13: memref<2x1x32xf32, #tpu.memory_space<vmem>>, %arg14: memref<2x1x32xf32, #tpu.memory_space<vmem>>, %arg15: memref<2x1x32xf32, #tpu.memory_space<vmem>>, %arg16: memref<2x1x32xf32, #tpu.memory_space<vmem>>, %arg17: memref<2x32x64xf32, #tpu.memory_space<vmem>>, %arg18: memref<2x64x32xf32, #tpu.memory_space<vmem>>, %arg19: memref<2x32x64xf32, #tpu.memory_space<vmem>>, %arg20: memref<2x32x32xf32, #tpu.memory_space<vmem>>, %arg21: memref<2x32x32xf32, #tpu.memory_space<vmem>>, %arg22: memref<2x32x32xf32, #tpu.memory_space<vmem>>, %arg23: memref<2x32x96xf32, #tpu.memory_space<vmem>>, %arg24: memref<1x32xf32, #tpu.memory_space<vmem>>, %arg25: memref<1x32xf32, #tpu.memory_space<vmem>>, %arg26: memref<2x1x64xf32, #tpu.memory_space<vmem>>, %arg27: memref<2x1x32xf32, #tpu.memory_space<vmem>>, %arg28: memref<2x1x32xf32, #tpu.memory_space<vmem>>, %arg29: memref<2x1x96xf32, #tpu.memory_space<vmem>>, %arg30: memref<2x1x32xf32, #tpu.memory_space<vmem>>, %arg31: memref<2x1x32xf32, #tpu.memory_space<vmem>>, %arg32: memref<2x1x32xf32, #tpu.memory_space<vmem>>, %arg33: memref<2x1x32xf32, #tpu.memory_space<vmem>>, %arg34: memref<2x32x64xf32, #tpu.memory_space<vmem>>, %arg35: memref<2x64x32xf32, #tpu.memory_space<vmem>>, %arg36: memref<2x32x32xf32, #tpu.memory_space<vmem>>, %arg37: memref<2x32x96xf32, #tpu.memory_space<vmem>>, %arg38: memref<1x32xf32, #tpu.memory_space<vmem>>, %arg39: memref<1x32xf32, #tpu.memory_space<vmem>>, %arg40: memref<16x32xf32, #tpu.memory_space<vmem>>) attributes {dimension_semantics = [], scalar_prefetch = 0 : i64, scratch_operands = 0 : i64, tpu.core_type = #tpu.core_type<tc>} {
    %c0 = arith.constant 0 : index
    %c0_0 = arith.constant 0 : index
    %0 = vector.load %arg0[%c0, %c0_0] : memref<16x32xf32, #tpu.memory_space<vmem>>, vector<16x32xf32>
    %c0_1 = arith.constant 0 : index
    %c0_2 = arith.constant 0 : index
    %1 = vector.load %arg1[%c0_1, %c0_2] : memref<16x32xf32, #tpu.memory_space<vmem>>, vector<16x32xf32>
    %c0_3 = arith.constant 0 : index
    %c0_4 = arith.constant 0 : index
    %c0_5 = arith.constant 0 : index
    %2 = vector.load %arg2[%c0_3, %c0_4, %c0_5] : memref<2x1x8xi32, #tpu.memory_space<vmem>>, vector<1x1x8xi32>
    %3 = vector.shape_cast %2 : vector<1x1x8xi32> to vector<1x8xi32>
    %c0_i32 = arith.constant 0 : i32
    %4 = vector.broadcast %c0_i32 : i32 to vector<1x8xi32>
    %5 = arith.cmpi sgt, %3, %4 : vector<1x8xi32>
    %cst = arith.constant 0.000000e+00 : f32
    %cst_6 = arith.constant -1.000000e+09 : f32
    %6 = vector.broadcast %cst : f32 to vector<1x8xf32>
    %7 = vector.broadcast %cst_6 : f32 to vector<1x8xf32>
    %8 = arith.select %5, %6, %7 : vector<1x8xi1>, vector<1x8xf32>
    %c1 = arith.constant 1 : index
    %c0_7 = arith.constant 0 : index
    %c0_8 = arith.constant 0 : index
    %9 = vector.load %arg2[%c1, %c0_7, %c0_8] : memref<2x1x8xi32, #tpu.memory_space<vmem>>, vector<1x1x8xi32>
    %10 = vector.shape_cast %9 : vector<1x1x8xi32> to vector<1x8xi32>
    %c0_i32_9 = arith.constant 0 : i32
    %11 = vector.broadcast %c0_i32_9 : i32 to vector<1x8xi32>
    %12 = arith.cmpi sgt, %10, %11 : vector<1x8xi32>
    %cst_10 = arith.constant 0.000000e+00 : f32
    %cst_11 = arith.constant -1.000000e+09 : f32
    %13 = vector.broadcast %cst_10 : f32 to vector<1x8xf32>
    %14 = vector.broadcast %cst_11 : f32 to vector<1x8xf32>
    %15 = arith.select %12, %13, %14 : vector<1x8xi1>, vector<1x8xf32>
    %c0_12 = arith.constant 0 : index
    %c0_13 = arith.constant 0 : index
    %c0_14 = arith.constant 0 : index
    %16 = vector.load %arg3[%c0_12, %c0_13, %c0_14] : memref<2x8x8xi32, #tpu.memory_space<vmem>>, vector<1x8x8xi32>
    %17 = vector.shape_cast %16 : vector<1x8x8xi32> to vector<8x8xi32>
    %c0_i32_15 = arith.constant 0 : i32
    %18 = vector.broadcast %c0_i32_15 : i32 to vector<8x8xi32>
    %19 = arith.cmpi sgt, %17, %18 : vector<8x8xi32>
    %cst_16 = arith.constant 0.000000e+00 : f32
    %cst_17 = arith.constant -1.000000e+09 : f32
    %20 = vector.broadcast %cst_16 : f32 to vector<8x8xf32>
    %21 = vector.broadcast %cst_17 : f32 to vector<8x8xf32>
    %22 = arith.select %19, %20, %21 : vector<8x8xi1>, vector<8x8xf32>
    %c1_18 = arith.constant 1 : index
    %c0_19 = arith.constant 0 : index
    %c0_20 = arith.constant 0 : index
    %23 = vector.load %arg3[%c1_18, %c0_19, %c0_20] : memref<2x8x8xi32, #tpu.memory_space<vmem>>, vector<1x8x8xi32>
    %24 = vector.shape_cast %23 : vector<1x8x8xi32> to vector<8x8xi32>
    %c0_i32_21 = arith.constant 0 : i32
    %25 = vector.broadcast %c0_i32_21 : i32 to vector<8x8xi32>
    %26 = arith.cmpi sgt, %24, %25 : vector<8x8xi32>
    %cst_22 = arith.constant 0.000000e+00 : f32
    %cst_23 = arith.constant -1.000000e+09 : f32
    %27 = vector.broadcast %cst_22 : f32 to vector<8x8xf32>
    %28 = vector.broadcast %cst_23 : f32 to vector<8x8xf32>
    %29 = arith.select %26, %27, %28 : vector<8x8xi1>, vector<8x8xf32>
    %c0_24 = arith.constant 0 : index
    %c0_25 = arith.constant 0 : index
    %c0_26 = arith.constant 0 : index
    %30 = vector.load %arg31[%c0_24, %c0_25, %c0_26] : memref<2x1x32xf32, #tpu.memory_space<vmem>>, vector<1x1x32xf32>
    %31 = vector.shape_cast %30 : vector<1x1x32xf32> to vector<1x32xf32>
    %c0_27 = arith.constant 0 : index
    %c0_28 = arith.constant 0 : index
    %c0_29 = arith.constant 0 : index
    %32 = vector.load %arg30[%c0_27, %c0_28, %c0_29] : memref<2x1x32xf32, #tpu.memory_space<vmem>>, vector<1x1x32xf32>
    %33 = vector.shape_cast %32 : vector<1x1x32xf32> to vector<1x32xf32>
    %cst_30 = arith.constant dense<0.000000e+00> : vector<16xf32>
    %34 = vector.multi_reduction <add>, %0, %cst_30 [1] : vector<16x32xf32> to vector<16xf32>
    %35 = vector.shape_cast %34 : vector<16xf32> to vector<16x1xf32>
    %cst_31 = arith.constant 3.200000e+01 : f32
    %36 = vector.broadcast %cst_31 : f32 to vector<16x1xf32>
    %37 = arith.divf %35, %36 : vector<16x1xf32>
    %38 = vector.broadcast %37 : vector<16x1xf32> to vector<16x32xf32>
    %39 = arith.subf %0, %38 : vector<16x32xf32>
    %40 = arith.mulf %39, %39 : vector<16x32xf32>
    %cst_32 = arith.constant dense<0.000000e+00> : vector<16xf32>
    %41 = vector.multi_reduction <add>, %40, %cst_32 [1] : vector<16x32xf32> to vector<16xf32>
    %42 = vector.shape_cast %41 : vector<16xf32> to vector<16x1xf32>
    %cst_33 = arith.constant 3.200000e+01 : f32
    %43 = vector.broadcast %cst_33 : f32 to vector<16x1xf32>
    %44 = arith.divf %42, %43 : vector<16x1xf32>
    %45 = vector.broadcast %37 : vector<16x1xf32> to vector<16x32xf32>
    %46 = arith.subf %0, %45 : vector<16x32xf32>
    %cst_34 = arith.constant 9.99999997E-7 : f32
    %47 = vector.broadcast %cst_34 : f32 to vector<16x1xf32>
    %48 = arith.addf %44, %47 : vector<16x1xf32>
    %49 = math.rsqrt %48 : vector<16x1xf32>
    %50 = vector.broadcast %49 : vector<16x1xf32> to vector<16x32xf32>
    %51 = arith.mulf %46, %50 : vector<16x32xf32>
    %52 = vector.broadcast %31 : vector<1x32xf32> to vector<16x32xf32>
    %53 = arith.mulf %51, %52 : vector<16x32xf32>
    %54 = vector.broadcast %33 : vector<1x32xf32> to vector<16x32xf32>
    %55 = arith.addf %53, %54 : vector<16x32xf32>
    %c0_35 = arith.constant 0 : index
    %c0_36 = arith.constant 0 : index
    %c0_37 = arith.constant 0 : index
    %56 = vector.load %arg37[%c0_35, %c0_36, %c0_37] : memref<2x32x96xf32, #tpu.memory_space<vmem>>, vector<1x32x96xf32>
    %57 = vector.shape_cast %56 : vector<1x32x96xf32> to vector<32x96xf32>
    %c0_38 = arith.constant 0 : index
    %c0_39 = arith.constant 0 : index
    %c0_40 = arith.constant 0 : index
    %58 = vector.load %arg29[%c0_38, %c0_39, %c0_40] : memref<2x1x96xf32, #tpu.memory_space<vmem>>, vector<1x1x96xf32>
    %59 = vector.shape_cast %58 : vector<1x1x96xf32> to vector<1x96xf32>
    %c0_41 = arith.constant 0 : index
    %c0_42 = arith.constant 0 : index
    %c0_43 = arith.constant 0 : index
    %60 = vector.load %arg36[%c0_41, %c0_42, %c0_43] : memref<2x32x32xf32, #tpu.memory_space<vmem>>, vector<1x32x32xf32>
    %61 = vector.shape_cast %60 : vector<1x32x32xf32> to vector<32x32xf32>
    %c0_44 = arith.constant 0 : index
    %c0_45 = arith.constant 0 : index
    %c0_46 = arith.constant 0 : index
    %62 = vector.load %arg28[%c0_44, %c0_45, %c0_46] : memref<2x1x32xf32, #tpu.memory_space<vmem>>, vector<1x1x32xf32>
    %63 = vector.shape_cast %62 : vector<1x1x32xf32> to vector<1x32xf32>
    %cst_47 = arith.constant dense<0.000000e+00> : vector<16x96xf32>
    %64 = tpu.matmul %55, %57, %cst_47 {dimension_numbers = #tpu.dot_dimension_numbers<[1], [0], [0], [1], [0, 0, 1, 1], [], []>} : vector<16x32xf32>, vector<32x96xf32>, vector<16x96xf32> -> vector<16x96xf32>
    %65 = vector.broadcast %59 : vector<1x96xf32> to vector<16x96xf32>
    %66 = arith.addf %64, %65 : vector<16x96xf32>
    %67 = vector.extract_strided_slice %66 {offsets = [0, 0], sizes = [8, 96], strides = [1, 1]} : vector<16x96xf32> to vector<8x96xf32>
    %68 = vector.extract_strided_slice %67 {offsets = [0, 0], sizes = [8, 32], strides = [1, 1]} : vector<8x96xf32> to vector<8x32xf32>
    %69 = vector.extract_strided_slice %67 {offsets = [0, 32], sizes = [8, 64], strides = [1, 1]} : vector<8x96xf32> to vector<8x64xf32>
    %cst_48 = arith.constant 0.000000e+00 : f32
    %70 = vector.broadcast %cst_48 : f32 to vector<8x32xf32>
    %71 = vector.extract_strided_slice %68 {offsets = [0, 0], sizes = [8, 8], strides = [1, 1]} : vector<8x32xf32> to vector<8x8xf32>
    %72 = vector.extract_strided_slice %69 {offsets = [0, 0], sizes = [8, 8], strides = [1, 1]} : vector<8x64xf32> to vector<8x8xf32>
    %73 = vector.extract_strided_slice %69 {offsets = [0, 32], sizes = [8, 8], strides = [1, 1]} : vector<8x64xf32> to vector<8x8xf32>
    %cst_49 = arith.constant dense<0.000000e+00> : vector<8x8xf32>
    %74 = tpu.matmul %71, %72, %cst_49 {dimension_numbers = #tpu.dot_dimension_numbers<[1], [1], [0], [0], [0, 0, 1, 0], [], []>} : vector<8x8xf32>, vector<8x8xf32>, vector<8x8xf32> -> vector<8x8xf32>
    %cst_50 = arith.constant 0.353553385 : f32
    %75 = vector.broadcast %cst_50 : f32 to vector<8x8xf32>
    %76 = arith.mulf %74, %75 : vector<8x8xf32>
    %77 = vector.broadcast %8 : vector<1x8xf32> to vector<8x8xf32>
    %78 = arith.addf %76, %77 : vector<8x8xf32>
    %cst_51 = arith.constant dense<0xFF800000> : vector<8xf32>
    %79 = vector.multi_reduction <maximumf>, %78, %cst_51 [1] : vector<8x8xf32> to vector<8xf32>
    %80 = vector.shape_cast %79 : vector<8xf32> to vector<8x1xf32>
    %81 = vector.broadcast %80 : vector<8x1xf32> to vector<8x8xf32>
    %82 = arith.subf %78, %81 : vector<8x8xf32>
    %83 = math.exp %82 : vector<8x8xf32>
    %cst_52 = arith.constant dense<0.000000e+00> : vector<8xf32>
    %84 = vector.multi_reduction <add>, %83, %cst_52 [1] : vector<8x8xf32> to vector<8xf32>
    %85 = vector.shape_cast %84 : vector<8xf32> to vector<8x1xf32>
    %86 = tpu.reciprocal %85 {approx = true} : vector<8x1xf32> -> vector<8x1xf32>
    %87 = vector.broadcast %86 : vector<8x1xf32> to vector<8x8xf32>
    %88 = arith.mulf %83, %87 : vector<8x8xf32>
    %cst_53 = arith.constant dense<0.000000e+00> : vector<8x8xf32>
    %89 = tpu.matmul %88, %73, %cst_53 {dimension_numbers = #tpu.dot_dimension_numbers<[1], [0], [0], [1], [0, 0, 1, 1], [], []>} : vector<8x8xf32>, vector<8x8xf32>, vector<8x8xf32> -> vector<8x8xf32>
    %90 = vector.extract_strided_slice %61 {offsets = [0, 0], sizes = [8, 32], strides = [1, 1]} : vector<32x32xf32> to vector<8x32xf32>
    %cst_54 = arith.constant dense<0.000000e+00> : vector<8x32xf32>
    %91 = tpu.matmul %89, %90, %cst_54 {dimension_numbers = #tpu.dot_dimension_numbers<[1], [0], [0], [1], [0, 0, 1, 1], [], []>} : vector<8x8xf32>, vector<8x32xf32>, vector<8x32xf32> -> vector<8x32xf32>
    %92 = arith.addf %70, %91 : vector<8x32xf32>
    %93 = vector.extract_strided_slice %68 {offsets = [0, 8], sizes = [8, 8], strides = [1, 1]} : vector<8x32xf32> to vector<8x8xf32>
    %94 = vector.extract_strided_slice %69 {offsets = [0, 8], sizes = [8, 8], strides = [1, 1]} : vector<8x64xf32> to vector<8x8xf32>
    %95 = vector.extract_strided_slice %69 {offsets = [0, 40], sizes = [8, 8], strides = [1, 1]} : vector<8x64xf32> to vector<8x8xf32>
    %cst_55 = arith.constant dense<0.000000e+00> : vector<8x8xf32>
    %96 = tpu.matmul %93, %94, %cst_55 {dimension_numbers = #tpu.dot_dimension_numbers<[1], [1], [0], [0], [0, 0, 1, 0], [], []>} : vector<8x8xf32>, vector<8x8xf32>, vector<8x8xf32> -> vector<8x8xf32>
    %cst_56 = arith.constant 0.353553385 : f32
    %97 = vector.broadcast %cst_56 : f32 to vector<8x8xf32>
    %98 = arith.mulf %96, %97 : vector<8x8xf32>
    %99 = vector.broadcast %8 : vector<1x8xf32> to vector<8x8xf32>
    %100 = arith.addf %98, %99 : vector<8x8xf32>
    %cst_57 = arith.constant dense<0xFF800000> : vector<8xf32>
    %101 = vector.multi_reduction <maximumf>, %100, %cst_57 [1] : vector<8x8xf32> to vector<8xf32>
    %102 = vector.shape_cast %101 : vector<8xf32> to vector<8x1xf32>
    %103 = vector.broadcast %102 : vector<8x1xf32> to vector<8x8xf32>
    %104 = arith.subf %100, %103 : vector<8x8xf32>
    %105 = math.exp %104 : vector<8x8xf32>
    %cst_58 = arith.constant dense<0.000000e+00> : vector<8xf32>
    %106 = vector.multi_reduction <add>, %105, %cst_58 [1] : vector<8x8xf32> to vector<8xf32>
    %107 = vector.shape_cast %106 : vector<8xf32> to vector<8x1xf32>
    %108 = tpu.reciprocal %107 {approx = true} : vector<8x1xf32> -> vector<8x1xf32>
    %109 = vector.broadcast %108 : vector<8x1xf32> to vector<8x8xf32>
    %110 = arith.mulf %105, %109 : vector<8x8xf32>
    %cst_59 = arith.constant dense<0.000000e+00> : vector<8x8xf32>
    %111 = tpu.matmul %110, %95, %cst_59 {dimension_numbers = #tpu.dot_dimension_numbers<[1], [0], [0], [1], [0, 0, 1, 1], [], []>} : vector<8x8xf32>, vector<8x8xf32>, vector<8x8xf32> -> vector<8x8xf32>
    %112 = vector.extract_strided_slice %61 {offsets = [8, 0], sizes = [8, 32], strides = [1, 1]} : vector<32x32xf32> to vector<8x32xf32>
    %cst_60 = arith.constant dense<0.000000e+00> : vector<8x32xf32>
    %113 = tpu.matmul %111, %112, %cst_60 {dimension_numbers = #tpu.dot_dimension_numbers<[1], [0], [0], [1], [0, 0, 1, 1], [], []>} : vector<8x8xf32>, vector<8x32xf32>, vector<8x32xf32> -> vector<8x32xf32>
    %114 = arith.addf %92, %113 : vector<8x32xf32>
    %115 = vector.extract_strided_slice %68 {offsets = [0, 16], sizes = [8, 8], strides = [1, 1]} : vector<8x32xf32> to vector<8x8xf32>
    %116 = vector.extract_strided_slice %69 {offsets = [0, 16], sizes = [8, 8], strides = [1, 1]} : vector<8x64xf32> to vector<8x8xf32>
    %117 = vector.extract_strided_slice %69 {offsets = [0, 48], sizes = [8, 8], strides = [1, 1]} : vector<8x64xf32> to vector<8x8xf32>
    %cst_61 = arith.constant dense<0.000000e+00> : vector<8x8xf32>
    %118 = tpu.matmul %115, %116, %cst_61 {dimension_numbers = #tpu.dot_dimension_numbers<[1], [1], [0], [0], [0, 0, 1, 0], [], []>} : vector<8x8xf32>, vector<8x8xf32>, vector<8x8xf32> -> vector<8x8xf32>
    %cst_62 = arith.constant 0.353553385 : f32
    %119 = vector.broadcast %cst_62 : f32 to vector<8x8xf32>
    %120 = arith.mulf %118, %119 : vector<8x8xf32>
    %121 = vector.broadcast %8 : vector<1x8xf32> to vector<8x8xf32>
    %122 = arith.addf %120, %121 : vector<8x8xf32>
    %cst_63 = arith.constant dense<0xFF800000> : vector<8xf32>
    %123 = vector.multi_reduction <maximumf>, %122, %cst_63 [1] : vector<8x8xf32> to vector<8xf32>
    %124 = vector.shape_cast %123 : vector<8xf32> to vector<8x1xf32>
    %125 = vector.broadcast %124 : vector<8x1xf32> to vector<8x8xf32>
    %126 = arith.subf %122, %125 : vector<8x8xf32>
    %127 = math.exp %126 : vector<8x8xf32>
    %cst_64 = arith.constant dense<0.000000e+00> : vector<8xf32>
    %128 = vector.multi_reduction <add>, %127, %cst_64 [1] : vector<8x8xf32> to vector<8xf32>
    %129 = vector.shape_cast %128 : vector<8xf32> to vector<8x1xf32>
    %130 = tpu.reciprocal %129 {approx = true} : vector<8x1xf32> -> vector<8x1xf32>
    %131 = vector.broadcast %130 : vector<8x1xf32> to vector<8x8xf32>
    %132 = arith.mulf %127, %131 : vector<8x8xf32>
    %cst_65 = arith.constant dense<0.000000e+00> : vector<8x8xf32>
    %133 = tpu.matmul %132, %117, %cst_65 {dimension_numbers = #tpu.dot_dimension_numbers<[1], [0], [0], [1], [0, 0, 1, 1], [], []>} : vector<8x8xf32>, vector<8x8xf32>, vector<8x8xf32> -> vector<8x8xf32>
    %134 = vector.extract_strided_slice %61 {offsets = [16, 0], sizes = [8, 32], strides = [1, 1]} : vector<32x32xf32> to vector<8x32xf32>
    %cst_66 = arith.constant dense<0.000000e+00> : vector<8x32xf32>
    %135 = tpu.matmul %133, %134, %cst_66 {dimension_numbers = #tpu.dot_dimension_numbers<[1], [0], [0], [1], [0, 0, 1, 1], [], []>} : vector<8x8xf32>, vector<8x32xf32>, vector<8x32xf32> -> vector<8x32xf32>
    %136 = arith.addf %114, %135 : vector<8x32xf32>
    %137 = vector.extract_strided_slice %68 {offsets = [0, 24], sizes = [8, 8], strides = [1, 1]} : vector<8x32xf32> to vector<8x8xf32>
    %138 = vector.extract_strided_slice %69 {offsets = [0, 24], sizes = [8, 8], strides = [1, 1]} : vector<8x64xf32> to vector<8x8xf32>
    %139 = vector.extract_strided_slice %69 {offsets = [0, 56], sizes = [8, 8], strides = [1, 1]} : vector<8x64xf32> to vector<8x8xf32>
    %cst_67 = arith.constant dense<0.000000e+00> : vector<8x8xf32>
    %140 = tpu.matmul %137, %138, %cst_67 {dimension_numbers = #tpu.dot_dimension_numbers<[1], [1], [0], [0], [0, 0, 1, 0], [], []>} : vector<8x8xf32>, vector<8x8xf32>, vector<8x8xf32> -> vector<8x8xf32>
    %cst_68 = arith.constant 0.353553385 : f32
    %141 = vector.broadcast %cst_68 : f32 to vector<8x8xf32>
    %142 = arith.mulf %140, %141 : vector<8x8xf32>
    %143 = vector.broadcast %8 : vector<1x8xf32> to vector<8x8xf32>
    %144 = arith.addf %142, %143 : vector<8x8xf32>
    %cst_69 = arith.constant dense<0xFF800000> : vector<8xf32>
    %145 = vector.multi_reduction <maximumf>, %144, %cst_69 [1] : vector<8x8xf32> to vector<8xf32>
    %146 = vector.shape_cast %145 : vector<8xf32> to vector<8x1xf32>
    %147 = vector.broadcast %146 : vector<8x1xf32> to vector<8x8xf32>
    %148 = arith.subf %144, %147 : vector<8x8xf32>
    %149 = math.exp %148 : vector<8x8xf32>
    %cst_70 = arith.constant dense<0.000000e+00> : vector<8xf32>
    %150 = vector.multi_reduction <add>, %149, %cst_70 [1] : vector<8x8xf32> to vector<8xf32>
    %151 = vector.shape_cast %150 : vector<8xf32> to vector<8x1xf32>
    %152 = tpu.reciprocal %151 {approx = true} : vector<8x1xf32> -> vector<8x1xf32>
    %153 = vector.broadcast %152 : vector<8x1xf32> to vector<8x8xf32>
    %154 = arith.mulf %149, %153 : vector<8x8xf32>
    %cst_71 = arith.constant dense<0.000000e+00> : vector<8x8xf32>
    %155 = tpu.matmul %154, %139, %cst_71 {dimension_numbers = #tpu.dot_dimension_numbers<[1], [0], [0], [1], [0, 0, 1, 1], [], []>} : vector<8x8xf32>, vector<8x8xf32>, vector<8x8xf32> -> vector<8x8xf32>
    %156 = vector.extract_strided_slice %61 {offsets = [24, 0], sizes = [8, 32], strides = [1, 1]} : vector<32x32xf32> to vector<8x32xf32>
    %cst_72 = arith.constant dense<0.000000e+00> : vector<8x32xf32>
    %157 = tpu.matmul %155, %156, %cst_72 {dimension_numbers = #tpu.dot_dimension_numbers<[1], [0], [0], [1], [0, 0, 1, 1], [], []>} : vector<8x8xf32>, vector<8x32xf32>, vector<8x32xf32> -> vector<8x32xf32>
    %158 = arith.addf %136, %157 : vector<8x32xf32>
    %159 = vector.extract_strided_slice %66 {offsets = [8, 0], sizes = [8, 96], strides = [1, 1]} : vector<16x96xf32> to vector<8x96xf32>
    %160 = vector.extract_strided_slice %159 {offsets = [0, 0], sizes = [8, 32], strides = [1, 1]} : vector<8x96xf32> to vector<8x32xf32>
    %161 = vector.extract_strided_slice %159 {offsets = [0, 32], sizes = [8, 64], strides = [1, 1]} : vector<8x96xf32> to vector<8x64xf32>
    %cst_73 = arith.constant 0.000000e+00 : f32
    %162 = vector.broadcast %cst_73 : f32 to vector<8x32xf32>
    %163 = vector.extract_strided_slice %160 {offsets = [0, 0], sizes = [8, 8], strides = [1, 1]} : vector<8x32xf32> to vector<8x8xf32>
    %164 = vector.extract_strided_slice %161 {offsets = [0, 0], sizes = [8, 8], strides = [1, 1]} : vector<8x64xf32> to vector<8x8xf32>
    %165 = vector.extract_strided_slice %161 {offsets = [0, 32], sizes = [8, 8], strides = [1, 1]} : vector<8x64xf32> to vector<8x8xf32>
    %cst_74 = arith.constant dense<0.000000e+00> : vector<8x8xf32>
    %166 = tpu.matmul %163, %164, %cst_74 {dimension_numbers = #tpu.dot_dimension_numbers<[1], [1], [0], [0], [0, 0, 1, 0], [], []>} : vector<8x8xf32>, vector<8x8xf32>, vector<8x8xf32> -> vector<8x8xf32>
    %cst_75 = arith.constant 0.353553385 : f32
    %167 = vector.broadcast %cst_75 : f32 to vector<8x8xf32>
    %168 = arith.mulf %166, %167 : vector<8x8xf32>
    %169 = vector.broadcast %15 : vector<1x8xf32> to vector<8x8xf32>
    %170 = arith.addf %168, %169 : vector<8x8xf32>
    %cst_76 = arith.constant dense<0xFF800000> : vector<8xf32>
    %171 = vector.multi_reduction <maximumf>, %170, %cst_76 [1] : vector<8x8xf32> to vector<8xf32>
    %172 = vector.shape_cast %171 : vector<8xf32> to vector<8x1xf32>
    %173 = vector.broadcast %172 : vector<8x1xf32> to vector<8x8xf32>
    %174 = arith.subf %170, %173 : vector<8x8xf32>
    %175 = math.exp %174 : vector<8x8xf32>
    %cst_77 = arith.constant dense<0.000000e+00> : vector<8xf32>
    %176 = vector.multi_reduction <add>, %175, %cst_77 [1] : vector<8x8xf32> to vector<8xf32>
    %177 = vector.shape_cast %176 : vector<8xf32> to vector<8x1xf32>
    %178 = tpu.reciprocal %177 {approx = true} : vector<8x1xf32> -> vector<8x1xf32>
    %179 = vector.broadcast %178 : vector<8x1xf32> to vector<8x8xf32>
    %180 = arith.mulf %175, %179 : vector<8x8xf32>
    %cst_78 = arith.constant dense<0.000000e+00> : vector<8x8xf32>
    %181 = tpu.matmul %180, %165, %cst_78 {dimension_numbers = #tpu.dot_dimension_numbers<[1], [0], [0], [1], [0, 0, 1, 1], [], []>} : vector<8x8xf32>, vector<8x8xf32>, vector<8x8xf32> -> vector<8x8xf32>
    %182 = vector.extract_strided_slice %61 {offsets = [0, 0], sizes = [8, 32], strides = [1, 1]} : vector<32x32xf32> to vector<8x32xf32>
    %cst_79 = arith.constant dense<0.000000e+00> : vector<8x32xf32>
    %183 = tpu.matmul %181, %182, %cst_79 {dimension_numbers = #tpu.dot_dimension_numbers<[1], [0], [0], [1], [0, 0, 1, 1], [], []>} : vector<8x8xf32>, vector<8x32xf32>, vector<8x32xf32> -> vector<8x32xf32>
    %184 = arith.addf %162, %183 : vector<8x32xf32>
    %185 = vector.extract_strided_slice %160 {offsets = [0, 8], sizes = [8, 8], strides = [1, 1]} : vector<8x32xf32> to vector<8x8xf32>
    %186 = vector.extract_strided_slice %161 {offsets = [0, 8], sizes = [8, 8], strides = [1, 1]} : vector<8x64xf32> to vector<8x8xf32>
    %187 = vector.extract_strided_slice %161 {offsets = [0, 40], sizes = [8, 8], strides = [1, 1]} : vector<8x64xf32> to vector<8x8xf32>
    %cst_80 = arith.constant dense<0.000000e+00> : vector<8x8xf32>
    %188 = tpu.matmul %185, %186, %cst_80 {dimension_numbers = #tpu.dot_dimension_numbers<[1], [1], [0], [0], [0, 0, 1, 0], [], []>} : vector<8x8xf32>, vector<8x8xf32>, vector<8x8xf32> -> vector<8x8xf32>
    %cst_81 = arith.constant 0.353553385 : f32
    %189 = vector.broadcast %cst_81 : f32 to vector<8x8xf32>
    %190 = arith.mulf %188, %189 : vector<8x8xf32>
    %191 = vector.broadcast %15 : vector<1x8xf32> to vector<8x8xf32>
    %192 = arith.addf %190, %191 : vector<8x8xf32>
    %cst_82 = arith.constant dense<0xFF800000> : vector<8xf32>
    %193 = vector.multi_reduction <maximumf>, %192, %cst_82 [1] : vector<8x8xf32> to vector<8xf32>
    %194 = vector.shape_cast %193 : vector<8xf32> to vector<8x1xf32>
    %195 = vector.broadcast %194 : vector<8x1xf32> to vector<8x8xf32>
    %196 = arith.subf %192, %195 : vector<8x8xf32>
    %197 = math.exp %196 : vector<8x8xf32>
    %cst_83 = arith.constant dense<0.000000e+00> : vector<8xf32>
    %198 = vector.multi_reduction <add>, %197, %cst_83 [1] : vector<8x8xf32> to vector<8xf32>
    %199 = vector.shape_cast %198 : vector<8xf32> to vector<8x1xf32>
    %200 = tpu.reciprocal %199 {approx = true} : vector<8x1xf32> -> vector<8x1xf32>
    %201 = vector.broadcast %200 : vector<8x1xf32> to vector<8x8xf32>
    %202 = arith.mulf %197, %201 : vector<8x8xf32>
    %cst_84 = arith.constant dense<0.000000e+00> : vector<8x8xf32>
    %203 = tpu.matmul %202, %187, %cst_84 {dimension_numbers = #tpu.dot_dimension_numbers<[1], [0], [0], [1], [0, 0, 1, 1], [], []>} : vector<8x8xf32>, vector<8x8xf32>, vector<8x8xf32> -> vector<8x8xf32>
    %204 = vector.extract_strided_slice %61 {offsets = [8, 0], sizes = [8, 32], strides = [1, 1]} : vector<32x32xf32> to vector<8x32xf32>
    %cst_85 = arith.constant dense<0.000000e+00> : vector<8x32xf32>
    %205 = tpu.matmul %203, %204, %cst_85 {dimension_numbers = #tpu.dot_dimension_numbers<[1], [0], [0], [1], [0, 0, 1, 1], [], []>} : vector<8x8xf32>, vector<8x32xf32>, vector<8x32xf32> -> vector<8x32xf32>
    %206 = arith.addf %184, %205 : vector<8x32xf32>
    %207 = vector.extract_strided_slice %160 {offsets = [0, 16], sizes = [8, 8], strides = [1, 1]} : vector<8x32xf32> to vector<8x8xf32>
    %208 = vector.extract_strided_slice %161 {offsets = [0, 16], sizes = [8, 8], strides = [1, 1]} : vector<8x64xf32> to vector<8x8xf32>
    %209 = vector.extract_strided_slice %161 {offsets = [0, 48], sizes = [8, 8], strides = [1, 1]} : vector<8x64xf32> to vector<8x8xf32>
    %cst_86 = arith.constant dense<0.000000e+00> : vector<8x8xf32>
    %210 = tpu.matmul %207, %208, %cst_86 {dimension_numbers = #tpu.dot_dimension_numbers<[1], [1], [0], [0], [0, 0, 1, 0], [], []>} : vector<8x8xf32>, vector<8x8xf32>, vector<8x8xf32> -> vector<8x8xf32>
    %cst_87 = arith.constant 0.353553385 : f32
    %211 = vector.broadcast %cst_87 : f32 to vector<8x8xf32>
    %212 = arith.mulf %210, %211 : vector<8x8xf32>
    %213 = vector.broadcast %15 : vector<1x8xf32> to vector<8x8xf32>
    %214 = arith.addf %212, %213 : vector<8x8xf32>
    %cst_88 = arith.constant dense<0xFF800000> : vector<8xf32>
    %215 = vector.multi_reduction <maximumf>, %214, %cst_88 [1] : vector<8x8xf32> to vector<8xf32>
    %216 = vector.shape_cast %215 : vector<8xf32> to vector<8x1xf32>
    %217 = vector.broadcast %216 : vector<8x1xf32> to vector<8x8xf32>
    %218 = arith.subf %214, %217 : vector<8x8xf32>
    %219 = math.exp %218 : vector<8x8xf32>
    %cst_89 = arith.constant dense<0.000000e+00> : vector<8xf32>
    %220 = vector.multi_reduction <add>, %219, %cst_89 [1] : vector<8x8xf32> to vector<8xf32>
    %221 = vector.shape_cast %220 : vector<8xf32> to vector<8x1xf32>
    %222 = tpu.reciprocal %221 {approx = true} : vector<8x1xf32> -> vector<8x1xf32>
    %223 = vector.broadcast %222 : vector<8x1xf32> to vector<8x8xf32>
    %224 = arith.mulf %219, %223 : vector<8x8xf32>
    %cst_90 = arith.constant dense<0.000000e+00> : vector<8x8xf32>
    %225 = tpu.matmul %224, %209, %cst_90 {dimension_numbers = #tpu.dot_dimension_numbers<[1], [0], [0], [1], [0, 0, 1, 1], [], []>} : vector<8x8xf32>, vector<8x8xf32>, vector<8x8xf32> -> vector<8x8xf32>
    %226 = vector.extract_strided_slice %61 {offsets = [16, 0], sizes = [8, 32], strides = [1, 1]} : vector<32x32xf32> to vector<8x32xf32>
    %cst_91 = arith.constant dense<0.000000e+00> : vector<8x32xf32>
    %227 = tpu.matmul %225, %226, %cst_91 {dimension_numbers = #tpu.dot_dimension_numbers<[1], [0], [0], [1], [0, 0, 1, 1], [], []>} : vector<8x8xf32>, vector<8x32xf32>, vector<8x32xf32> -> vector<8x32xf32>
    %228 = arith.addf %206, %227 : vector<8x32xf32>
    %229 = vector.extract_strided_slice %160 {offsets = [0, 24], sizes = [8, 8], strides = [1, 1]} : vector<8x32xf32> to vector<8x8xf32>
    %230 = vector.extract_strided_slice %161 {offsets = [0, 24], sizes = [8, 8], strides = [1, 1]} : vector<8x64xf32> to vector<8x8xf32>
    %231 = vector.extract_strided_slice %161 {offsets = [0, 56], sizes = [8, 8], strides = [1, 1]} : vector<8x64xf32> to vector<8x8xf32>
    %cst_92 = arith.constant dense<0.000000e+00> : vector<8x8xf32>
    %232 = tpu.matmul %229, %230, %cst_92 {dimension_numbers = #tpu.dot_dimension_numbers<[1], [1], [0], [0], [0, 0, 1, 0], [], []>} : vector<8x8xf32>, vector<8x8xf32>, vector<8x8xf32> -> vector<8x8xf32>
    %cst_93 = arith.constant 0.353553385 : f32
    %233 = vector.broadcast %cst_93 : f32 to vector<8x8xf32>
    %234 = arith.mulf %232, %233 : vector<8x8xf32>
    %235 = vector.broadcast %15 : vector<1x8xf32> to vector<8x8xf32>
    %236 = arith.addf %234, %235 : vector<8x8xf32>
    %cst_94 = arith.constant dense<0xFF800000> : vector<8xf32>
    %237 = vector.multi_reduction <maximumf>, %236, %cst_94 [1] : vector<8x8xf32> to vector<8xf32>
    %238 = vector.shape_cast %237 : vector<8xf32> to vector<8x1xf32>
    %239 = vector.broadcast %238 : vector<8x1xf32> to vector<8x8xf32>
    %240 = arith.subf %236, %239 : vector<8x8xf32>
    %241 = math.exp %240 : vector<8x8xf32>
    %cst_95 = arith.constant dense<0.000000e+00> : vector<8xf32>
    %242 = vector.multi_reduction <add>, %241, %cst_95 [1] : vector<8x8xf32> to vector<8xf32>
    %243 = vector.shape_cast %242 : vector<8xf32> to vector<8x1xf32>
    %244 = tpu.reciprocal %243 {approx = true} : vector<8x1xf32> -> vector<8x1xf32>
    %245 = vector.broadcast %244 : vector<8x1xf32> to vector<8x8xf32>
    %246 = arith.mulf %241, %245 : vector<8x8xf32>
    %cst_96 = arith.constant dense<0.000000e+00> : vector<8x8xf32>
    %247 = tpu.matmul %246, %231, %cst_96 {dimension_numbers = #tpu.dot_dimension_numbers<[1], [0], [0], [1], [0, 0, 1, 1], [], []>} : vector<8x8xf32>, vector<8x8xf32>, vector<8x8xf32> -> vector<8x8xf32>
    %248 = vector.extract_strided_slice %61 {offsets = [24, 0], sizes = [8, 32], strides = [1, 1]} : vector<32x32xf32> to vector<8x32xf32>
    %cst_97 = arith.constant dense<0.000000e+00> : vector<8x32xf32>
    %249 = tpu.matmul %247, %248, %cst_97 {dimension_numbers = #tpu.dot_dimension_numbers<[1], [0], [0], [1], [0, 0, 1, 1], [], []>} : vector<8x8xf32>, vector<8x32xf32>, vector<8x32xf32> -> vector<8x32xf32>
    %250 = arith.addf %228, %249 : vector<8x32xf32>
    %251 = tpu.concatenate %158, %250 in 0 : vector<8x32xf32>, vector<8x32xf32> -> vector<16x32xf32>
    %252 = vector.broadcast %63 : vector<1x32xf32> to vector<16x32xf32>
    %253 = arith.addf %251, %252 : vector<16x32xf32>
    %254 = arith.addf %0, %253 : vector<16x32xf32>
    %c0_98 = arith.constant 0 : index
    %c0_99 = arith.constant 0 : index
    %c0_100 = arith.constant 0 : index
    %255 = vector.load %arg33[%c0_98, %c0_99, %c0_100] : memref<2x1x32xf32, #tpu.memory_space<vmem>>, vector<1x1x32xf32>
    %256 = vector.shape_cast %255 : vector<1x1x32xf32> to vector<1x32xf32>
    %c0_101 = arith.constant 0 : index
    %c0_102 = arith.constant 0 : index
    %c0_103 = arith.constant 0 : index
    %257 = vector.load %arg32[%c0_101, %c0_102, %c0_103] : memref<2x1x32xf32, #tpu.memory_space<vmem>>, vector<1x1x32xf32>
    %258 = vector.shape_cast %257 : vector<1x1x32xf32> to vector<1x32xf32>
    %cst_104 = arith.constant dense<0.000000e+00> : vector<16xf32>
    %259 = vector.multi_reduction <add>, %254, %cst_104 [1] : vector<16x32xf32> to vector<16xf32>
    %260 = vector.shape_cast %259 : vector<16xf32> to vector<16x1xf32>
    %cst_105 = arith.constant 3.200000e+01 : f32
    %261 = vector.broadcast %cst_105 : f32 to vector<16x1xf32>
    %262 = arith.divf %260, %261 : vector<16x1xf32>
    %263 = vector.broadcast %262 : vector<16x1xf32> to vector<16x32xf32>
    %264 = arith.subf %254, %263 : vector<16x32xf32>
    %265 = arith.mulf %264, %264 : vector<16x32xf32>
    %cst_106 = arith.constant dense<0.000000e+00> : vector<16xf32>
    %266 = vector.multi_reduction <add>, %265, %cst_106 [1] : vector<16x32xf32> to vector<16xf32>
    %267 = vector.shape_cast %266 : vector<16xf32> to vector<16x1xf32>
    %cst_107 = arith.constant 3.200000e+01 : f32
    %268 = vector.broadcast %cst_107 : f32 to vector<16x1xf32>
    %269 = arith.divf %267, %268 : vector<16x1xf32>
    %270 = vector.broadcast %262 : vector<16x1xf32> to vector<16x32xf32>
    %271 = arith.subf %254, %270 : vector<16x32xf32>
    %cst_108 = arith.constant 9.99999997E-7 : f32
    %272 = vector.broadcast %cst_108 : f32 to vector<16x1xf32>
    %273 = arith.addf %269, %272 : vector<16x1xf32>
    %274 = math.rsqrt %273 : vector<16x1xf32>
    %275 = vector.broadcast %274 : vector<16x1xf32> to vector<16x32xf32>
    %276 = arith.mulf %271, %275 : vector<16x32xf32>
    %277 = vector.broadcast %256 : vector<1x32xf32> to vector<16x32xf32>
    %278 = arith.mulf %276, %277 : vector<16x32xf32>
    %279 = vector.broadcast %258 : vector<1x32xf32> to vector<16x32xf32>
    %280 = arith.addf %278, %279 : vector<16x32xf32>
    %c0_109 = arith.constant 0 : index
    %c0_110 = arith.constant 0 : index
    %c0_111 = arith.constant 0 : index
    %281 = vector.load %arg34[%c0_109, %c0_110, %c0_111] : memref<2x32x64xf32, #tpu.memory_space<vmem>>, vector<1x32x64xf32>
    %282 = vector.shape_cast %281 : vector<1x32x64xf32> to vector<32x64xf32>
    %c0_112 = arith.constant 0 : index
    %c0_113 = arith.constant 0 : index
    %c0_114 = arith.constant 0 : index
    %283 = vector.load %arg26[%c0_112, %c0_113, %c0_114] : memref<2x1x64xf32, #tpu.memory_space<vmem>>, vector<1x1x64xf32>
    %284 = vector.shape_cast %283 : vector<1x1x64xf32> to vector<1x64xf32>
    %c0_115 = arith.constant 0 : index
    %c0_116 = arith.constant 0 : index
    %c0_117 = arith.constant 0 : index
    %285 = vector.load %arg35[%c0_115, %c0_116, %c0_117] : memref<2x64x32xf32, #tpu.memory_space<vmem>>, vector<1x64x32xf32>
    %286 = vector.shape_cast %285 : vector<1x64x32xf32> to vector<64x32xf32>
    %c0_118 = arith.constant 0 : index
    %c0_119 = arith.constant 0 : index
    %c0_120 = arith.constant 0 : index
    %287 = vector.load %arg27[%c0_118, %c0_119, %c0_120] : memref<2x1x32xf32, #tpu.memory_space<vmem>>, vector<1x1x32xf32>
    %288 = vector.shape_cast %287 : vector<1x1x32xf32> to vector<1x32xf32>
    %cst_121 = arith.constant dense<0.000000e+00> : vector<16x64xf32>
    %289 = tpu.matmul %280, %282, %cst_121 {dimension_numbers = #tpu.dot_dimension_numbers<[1], [0], [0], [1], [0, 0, 1, 1], [], []>} : vector<16x32xf32>, vector<32x64xf32>, vector<16x64xf32> -> vector<16x64xf32>
    %290 = vector.broadcast %284 : vector<1x64xf32> to vector<16x64xf32>
    %291 = arith.addf %289, %290 : vector<16x64xf32>
    %cst_122 = arith.constant 0.000000e+00 : f32
    %292 = vector.broadcast %cst_122 : f32 to vector<16x64xf32>
    %293 = arith.maximumf %291, %292 : vector<16x64xf32>
    %cst_123 = arith.constant dense<0.000000e+00> : vector<16x32xf32>
    %294 = tpu.matmul %293, %286, %cst_123 {dimension_numbers = #tpu.dot_dimension_numbers<[1], [0], [0], [1], [0, 0, 1, 1], [], []>} : vector<16x64xf32>, vector<64x32xf32>, vector<16x32xf32> -> vector<16x32xf32>
    %295 = vector.broadcast %288 : vector<1x32xf32> to vector<16x32xf32>
    %296 = arith.addf %294, %295 : vector<16x32xf32>
    %297 = arith.addf %254, %296 : vector<16x32xf32>
    %c1_124 = arith.constant 1 : index
    %c0_125 = arith.constant 0 : index
    %c0_126 = arith.constant 0 : index
    %298 = vector.load %arg31[%c1_124, %c0_125, %c0_126] : memref<2x1x32xf32, #tpu.memory_space<vmem>>, vector<1x1x32xf32>
    %299 = vector.shape_cast %298 : vector<1x1x32xf32> to vector<1x32xf32>
    %c1_127 = arith.constant 1 : index
    %c0_128 = arith.constant 0 : index
    %c0_129 = arith.constant 0 : index
    %300 = vector.load %arg30[%c1_127, %c0_128, %c0_129] : memref<2x1x32xf32, #tpu.memory_space<vmem>>, vector<1x1x32xf32>
    %301 = vector.shape_cast %300 : vector<1x1x32xf32> to vector<1x32xf32>
    %cst_130 = arith.constant dense<0.000000e+00> : vector<16xf32>
    %302 = vector.multi_reduction <add>, %297, %cst_130 [1] : vector<16x32xf32> to vector<16xf32>
    %303 = vector.shape_cast %302 : vector<16xf32> to vector<16x1xf32>
    %cst_131 = arith.constant 3.200000e+01 : f32
    %304 = vector.broadcast %cst_131 : f32 to vector<16x1xf32>
    %305 = arith.divf %303, %304 : vector<16x1xf32>
    %306 = vector.broadcast %305 : vector<16x1xf32> to vector<16x32xf32>
    %307 = arith.subf %297, %306 : vector<16x32xf32>
    %308 = arith.mulf %307, %307 : vector<16x32xf32>
    %cst_132 = arith.constant dense<0.000000e+00> : vector<16xf32>
    %309 = vector.multi_reduction <add>, %308, %cst_132 [1] : vector<16x32xf32> to vector<16xf32>
    %310 = vector.shape_cast %309 : vector<16xf32> to vector<16x1xf32>
    %cst_133 = arith.constant 3.200000e+01 : f32
    %311 = vector.broadcast %cst_133 : f32 to vector<16x1xf32>
    %312 = arith.divf %310, %311 : vector<16x1xf32>
    %313 = vector.broadcast %305 : vector<16x1xf32> to vector<16x32xf32>
    %314 = arith.subf %297, %313 : vector<16x32xf32>
    %cst_134 = arith.constant 9.99999997E-7 : f32
    %315 = vector.broadcast %cst_134 : f32 to vector<16x1xf32>
    %316 = arith.addf %312, %315 : vector<16x1xf32>
    %317 = math.rsqrt %316 : vector<16x1xf32>
    %318 = vector.broadcast %317 : vector<16x1xf32> to vector<16x32xf32>
    %319 = arith.mulf %314, %318 : vector<16x32xf32>
    %320 = vector.broadcast %299 : vector<1x32xf32> to vector<16x32xf32>
    %321 = arith.mulf %319, %320 : vector<16x32xf32>
    %322 = vector.broadcast %301 : vector<1x32xf32> to vector<16x32xf32>
    %323 = arith.addf %321, %322 : vector<16x32xf32>
    %c1_135 = arith.constant 1 : index
    %c0_136 = arith.constant 0 : index
    %c0_137 = arith.constant 0 : index
    %324 = vector.load %arg37[%c1_135, %c0_136, %c0_137] : memref<2x32x96xf32, #tpu.memory_space<vmem>>, vector<1x32x96xf32>
    %325 = vector.shape_cast %324 : vector<1x32x96xf32> to vector<32x96xf32>
    %c1_138 = arith.constant 1 : index
    %c0_139 = arith.constant 0 : index
    %c0_140 = arith.constant 0 : index
    %326 = vector.load %arg29[%c1_138, %c0_139, %c0_140] : memref<2x1x96xf32, #tpu.memory_space<vmem>>, vector<1x1x96xf32>
    %327 = vector.shape_cast %326 : vector<1x1x96xf32> to vector<1x96xf32>
    %c1_141 = arith.constant 1 : index
    %c0_142 = arith.constant 0 : index
    %c0_143 = arith.constant 0 : index
    %328 = vector.load %arg36[%c1_141, %c0_142, %c0_143] : memref<2x32x32xf32, #tpu.memory_space<vmem>>, vector<1x32x32xf32>
    %329 = vector.shape_cast %328 : vector<1x32x32xf32> to vector<32x32xf32>
    %c1_144 = arith.constant 1 : index
    %c0_145 = arith.constant 0 : index
    %c0_146 = arith.constant 0 : index
    %330 = vector.load %arg28[%c1_144, %c0_145, %c0_146] : memref<2x1x32xf32, #tpu.memory_space<vmem>>, vector<1x1x32xf32>
    %331 = vector.shape_cast %330 : vector<1x1x32xf32> to vector<1x32xf32>
    %cst_147 = arith.constant dense<0.000000e+00> : vector<16x96xf32>
    %332 = tpu.matmul %323, %325, %cst_147 {dimension_numbers = #tpu.dot_dimension_numbers<[1], [0], [0], [1], [0, 0, 1, 1], [], []>} : vector<16x32xf32>, vector<32x96xf32>, vector<16x96xf32> -> vector<16x96xf32>
    %333 = vector.broadcast %327 : vector<1x96xf32> to vector<16x96xf32>
    %334 = arith.addf %332, %333 : vector<16x96xf32>
    %335 = vector.extract_strided_slice %334 {offsets = [0, 0], sizes = [8, 96], strides = [1, 1]} : vector<16x96xf32> to vector<8x96xf32>
    %336 = vector.extract_strided_slice %335 {offsets = [0, 0], sizes = [8, 32], strides = [1, 1]} : vector<8x96xf32> to vector<8x32xf32>
    %337 = vector.extract_strided_slice %335 {offsets = [0, 32], sizes = [8, 64], strides = [1, 1]} : vector<8x96xf32> to vector<8x64xf32>
    %cst_148 = arith.constant 0.000000e+00 : f32
    %338 = vector.broadcast %cst_148 : f32 to vector<8x32xf32>
    %339 = vector.extract_strided_slice %336 {offsets = [0, 0], sizes = [8, 8], strides = [1, 1]} : vector<8x32xf32> to vector<8x8xf32>
    %340 = vector.extract_strided_slice %337 {offsets = [0, 0], sizes = [8, 8], strides = [1, 1]} : vector<8x64xf32> to vector<8x8xf32>
    %341 = vector.extract_strided_slice %337 {offsets = [0, 32], sizes = [8, 8], strides = [1, 1]} : vector<8x64xf32> to vector<8x8xf32>
    %cst_149 = arith.constant dense<0.000000e+00> : vector<8x8xf32>
    %342 = tpu.matmul %339, %340, %cst_149 {dimension_numbers = #tpu.dot_dimension_numbers<[1], [1], [0], [0], [0, 0, 1, 0], [], []>} : vector<8x8xf32>, vector<8x8xf32>, vector<8x8xf32> -> vector<8x8xf32>
    %cst_150 = arith.constant 0.353553385 : f32
    %343 = vector.broadcast %cst_150 : f32 to vector<8x8xf32>
    %344 = arith.mulf %342, %343 : vector<8x8xf32>
    %345 = vector.broadcast %8 : vector<1x8xf32> to vector<8x8xf32>
    %346 = arith.addf %344, %345 : vector<8x8xf32>
    %cst_151 = arith.constant dense<0xFF800000> : vector<8xf32>
    %347 = vector.multi_reduction <maximumf>, %346, %cst_151 [1] : vector<8x8xf32> to vector<8xf32>
    %348 = vector.shape_cast %347 : vector<8xf32> to vector<8x1xf32>
    %349 = vector.broadcast %348 : vector<8x1xf32> to vector<8x8xf32>
    %350 = arith.subf %346, %349 : vector<8x8xf32>
    %351 = math.exp %350 : vector<8x8xf32>
    %cst_152 = arith.constant dense<0.000000e+00> : vector<8xf32>
    %352 = vector.multi_reduction <add>, %351, %cst_152 [1] : vector<8x8xf32> to vector<8xf32>
    %353 = vector.shape_cast %352 : vector<8xf32> to vector<8x1xf32>
    %354 = tpu.reciprocal %353 {approx = true} : vector<8x1xf32> -> vector<8x1xf32>
    %355 = vector.broadcast %354 : vector<8x1xf32> to vector<8x8xf32>
    %356 = arith.mulf %351, %355 : vector<8x8xf32>
    %cst_153 = arith.constant dense<0.000000e+00> : vector<8x8xf32>
    %357 = tpu.matmul %356, %341, %cst_153 {dimension_numbers = #tpu.dot_dimension_numbers<[1], [0], [0], [1], [0, 0, 1, 1], [], []>} : vector<8x8xf32>, vector<8x8xf32>, vector<8x8xf32> -> vector<8x8xf32>
    %358 = vector.extract_strided_slice %329 {offsets = [0, 0], sizes = [8, 32], strides = [1, 1]} : vector<32x32xf32> to vector<8x32xf32>
    %cst_154 = arith.constant dense<0.000000e+00> : vector<8x32xf32>
    %359 = tpu.matmul %357, %358, %cst_154 {dimension_numbers = #tpu.dot_dimension_numbers<[1], [0], [0], [1], [0, 0, 1, 1], [], []>} : vector<8x8xf32>, vector<8x32xf32>, vector<8x32xf32> -> vector<8x32xf32>
    %360 = arith.addf %338, %359 : vector<8x32xf32>
    %361 = vector.extract_strided_slice %336 {offsets = [0, 8], sizes = [8, 8], strides = [1, 1]} : vector<8x32xf32> to vector<8x8xf32>
    %362 = vector.extract_strided_slice %337 {offsets = [0, 8], sizes = [8, 8], strides = [1, 1]} : vector<8x64xf32> to vector<8x8xf32>
    %363 = vector.extract_strided_slice %337 {offsets = [0, 40], sizes = [8, 8], strides = [1, 1]} : vector<8x64xf32> to vector<8x8xf32>
    %cst_155 = arith.constant dense<0.000000e+00> : vector<8x8xf32>
    %364 = tpu.matmul %361, %362, %cst_155 {dimension_numbers = #tpu.dot_dimension_numbers<[1], [1], [0], [0], [0, 0, 1, 0], [], []>} : vector<8x8xf32>, vector<8x8xf32>, vector<8x8xf32> -> vector<8x8xf32>
    %cst_156 = arith.constant 0.353553385 : f32
    %365 = vector.broadcast %cst_156 : f32 to vector<8x8xf32>
    %366 = arith.mulf %364, %365 : vector<8x8xf32>
    %367 = vector.broadcast %8 : vector<1x8xf32> to vector<8x8xf32>
    %368 = arith.addf %366, %367 : vector<8x8xf32>
    %cst_157 = arith.constant dense<0xFF800000> : vector<8xf32>
    %369 = vector.multi_reduction <maximumf>, %368, %cst_157 [1] : vector<8x8xf32> to vector<8xf32>
    %370 = vector.shape_cast %369 : vector<8xf32> to vector<8x1xf32>
    %371 = vector.broadcast %370 : vector<8x1xf32> to vector<8x8xf32>
    %372 = arith.subf %368, %371 : vector<8x8xf32>
    %373 = math.exp %372 : vector<8x8xf32>
    %cst_158 = arith.constant dense<0.000000e+00> : vector<8xf32>
    %374 = vector.multi_reduction <add>, %373, %cst_158 [1] : vector<8x8xf32> to vector<8xf32>
    %375 = vector.shape_cast %374 : vector<8xf32> to vector<8x1xf32>
    %376 = tpu.reciprocal %375 {approx = true} : vector<8x1xf32> -> vector<8x1xf32>
    %377 = vector.broadcast %376 : vector<8x1xf32> to vector<8x8xf32>
    %378 = arith.mulf %373, %377 : vector<8x8xf32>
    %cst_159 = arith.constant dense<0.000000e+00> : vector<8x8xf32>
    %379 = tpu.matmul %378, %363, %cst_159 {dimension_numbers = #tpu.dot_dimension_numbers<[1], [0], [0], [1], [0, 0, 1, 1], [], []>} : vector<8x8xf32>, vector<8x8xf32>, vector<8x8xf32> -> vector<8x8xf32>
    %380 = vector.extract_strided_slice %329 {offsets = [8, 0], sizes = [8, 32], strides = [1, 1]} : vector<32x32xf32> to vector<8x32xf32>
    %cst_160 = arith.constant dense<0.000000e+00> : vector<8x32xf32>
    %381 = tpu.matmul %379, %380, %cst_160 {dimension_numbers = #tpu.dot_dimension_numbers<[1], [0], [0], [1], [0, 0, 1, 1], [], []>} : vector<8x8xf32>, vector<8x32xf32>, vector<8x32xf32> -> vector<8x32xf32>
    %382 = arith.addf %360, %381 : vector<8x32xf32>
    %383 = vector.extract_strided_slice %336 {offsets = [0, 16], sizes = [8, 8], strides = [1, 1]} : vector<8x32xf32> to vector<8x8xf32>
    %384 = vector.extract_strided_slice %337 {offsets = [0, 16], sizes = [8, 8], strides = [1, 1]} : vector<8x64xf32> to vector<8x8xf32>
    %385 = vector.extract_strided_slice %337 {offsets = [0, 48], sizes = [8, 8], strides = [1, 1]} : vector<8x64xf32> to vector<8x8xf32>
    %cst_161 = arith.constant dense<0.000000e+00> : vector<8x8xf32>
    %386 = tpu.matmul %383, %384, %cst_161 {dimension_numbers = #tpu.dot_dimension_numbers<[1], [1], [0], [0], [0, 0, 1, 0], [], []>} : vector<8x8xf32>, vector<8x8xf32>, vector<8x8xf32> -> vector<8x8xf32>
    %cst_162 = arith.constant 0.353553385 : f32
    %387 = vector.broadcast %cst_162 : f32 to vector<8x8xf32>
    %388 = arith.mulf %386, %387 : vector<8x8xf32>
    %389 = vector.broadcast %8 : vector<1x8xf32> to vector<8x8xf32>
    %390 = arith.addf %388, %389 : vector<8x8xf32>
    %cst_163 = arith.constant dense<0xFF800000> : vector<8xf32>
    %391 = vector.multi_reduction <maximumf>, %390, %cst_163 [1] : vector<8x8xf32> to vector<8xf32>
    %392 = vector.shape_cast %391 : vector<8xf32> to vector<8x1xf32>
    %393 = vector.broadcast %392 : vector<8x1xf32> to vector<8x8xf32>
    %394 = arith.subf %390, %393 : vector<8x8xf32>
    %395 = math.exp %394 : vector<8x8xf32>
    %cst_164 = arith.constant dense<0.000000e+00> : vector<8xf32>
    %396 = vector.multi_reduction <add>, %395, %cst_164 [1] : vector<8x8xf32> to vector<8xf32>
    %397 = vector.shape_cast %396 : vector<8xf32> to vector<8x1xf32>
    %398 = tpu.reciprocal %397 {approx = true} : vector<8x1xf32> -> vector<8x1xf32>
    %399 = vector.broadcast %398 : vector<8x1xf32> to vector<8x8xf32>
    %400 = arith.mulf %395, %399 : vector<8x8xf32>
    %cst_165 = arith.constant dense<0.000000e+00> : vector<8x8xf32>
    %401 = tpu.matmul %400, %385, %cst_165 {dimension_numbers = #tpu.dot_dimension_numbers<[1], [0], [0], [1], [0, 0, 1, 1], [], []>} : vector<8x8xf32>, vector<8x8xf32>, vector<8x8xf32> -> vector<8x8xf32>
    %402 = vector.extract_strided_slice %329 {offsets = [16, 0], sizes = [8, 32], strides = [1, 1]} : vector<32x32xf32> to vector<8x32xf32>
    %cst_166 = arith.constant dense<0.000000e+00> : vector<8x32xf32>
    %403 = tpu.matmul %401, %402, %cst_166 {dimension_numbers = #tpu.dot_dimension_numbers<[1], [0], [0], [1], [0, 0, 1, 1], [], []>} : vector<8x8xf32>, vector<8x32xf32>, vector<8x32xf32> -> vector<8x32xf32>
    %404 = arith.addf %382, %403 : vector<8x32xf32>
    %405 = vector.extract_strided_slice %336 {offsets = [0, 24], sizes = [8, 8], strides = [1, 1]} : vector<8x32xf32> to vector<8x8xf32>
    %406 = vector.extract_strided_slice %337 {offsets = [0, 24], sizes = [8, 8], strides = [1, 1]} : vector<8x64xf32> to vector<8x8xf32>
    %407 = vector.extract_strided_slice %337 {offsets = [0, 56], sizes = [8, 8], strides = [1, 1]} : vector<8x64xf32> to vector<8x8xf32>
    %cst_167 = arith.constant dense<0.000000e+00> : vector<8x8xf32>
    %408 = tpu.matmul %405, %406, %cst_167 {dimension_numbers = #tpu.dot_dimension_numbers<[1], [1], [0], [0], [0, 0, 1, 0], [], []>} : vector<8x8xf32>, vector<8x8xf32>, vector<8x8xf32> -> vector<8x8xf32>
    %cst_168 = arith.constant 0.353553385 : f32
    %409 = vector.broadcast %cst_168 : f32 to vector<8x8xf32>
    %410 = arith.mulf %408, %409 : vector<8x8xf32>
    %411 = vector.broadcast %8 : vector<1x8xf32> to vector<8x8xf32>
    %412 = arith.addf %410, %411 : vector<8x8xf32>
    %cst_169 = arith.constant dense<0xFF800000> : vector<8xf32>
    %413 = vector.multi_reduction <maximumf>, %412, %cst_169 [1] : vector<8x8xf32> to vector<8xf32>
    %414 = vector.shape_cast %413 : vector<8xf32> to vector<8x1xf32>
    %415 = vector.broadcast %414 : vector<8x1xf32> to vector<8x8xf32>
    %416 = arith.subf %412, %415 : vector<8x8xf32>
    %417 = math.exp %416 : vector<8x8xf32>
    %cst_170 = arith.constant dense<0.000000e+00> : vector<8xf32>
    %418 = vector.multi_reduction <add>, %417, %cst_170 [1] : vector<8x8xf32> to vector<8xf32>
    %419 = vector.shape_cast %418 : vector<8xf32> to vector<8x1xf32>
    %420 = tpu.reciprocal %419 {approx = true} : vector<8x1xf32> -> vector<8x1xf32>
    %421 = vector.broadcast %420 : vector<8x1xf32> to vector<8x8xf32>
    %422 = arith.mulf %417, %421 : vector<8x8xf32>
    %cst_171 = arith.constant dense<0.000000e+00> : vector<8x8xf32>
    %423 = tpu.matmul %422, %407, %cst_171 {dimension_numbers = #tpu.dot_dimension_numbers<[1], [0], [0], [1], [0, 0, 1, 1], [], []>} : vector<8x8xf32>, vector<8x8xf32>, vector<8x8xf32> -> vector<8x8xf32>
    %424 = vector.extract_strided_slice %329 {offsets = [24, 0], sizes = [8, 32], strides = [1, 1]} : vector<32x32xf32> to vector<8x32xf32>
    %cst_172 = arith.constant dense<0.000000e+00> : vector<8x32xf32>
    %425 = tpu.matmul %423, %424, %cst_172 {dimension_numbers = #tpu.dot_dimension_numbers<[1], [0], [0], [1], [0, 0, 1, 1], [], []>} : vector<8x8xf32>, vector<8x32xf32>, vector<8x32xf32> -> vector<8x32xf32>
    %426 = arith.addf %404, %425 : vector<8x32xf32>
    %427 = vector.extract_strided_slice %334 {offsets = [8, 0], sizes = [8, 96], strides = [1, 1]} : vector<16x96xf32> to vector<8x96xf32>
    %428 = vector.extract_strided_slice %427 {offsets = [0, 0], sizes = [8, 32], strides = [1, 1]} : vector<8x96xf32> to vector<8x32xf32>
    %429 = vector.extract_strided_slice %427 {offsets = [0, 32], sizes = [8, 64], strides = [1, 1]} : vector<8x96xf32> to vector<8x64xf32>
    %cst_173 = arith.constant 0.000000e+00 : f32
    %430 = vector.broadcast %cst_173 : f32 to vector<8x32xf32>
    %431 = vector.extract_strided_slice %428 {offsets = [0, 0], sizes = [8, 8], strides = [1, 1]} : vector<8x32xf32> to vector<8x8xf32>
    %432 = vector.extract_strided_slice %429 {offsets = [0, 0], sizes = [8, 8], strides = [1, 1]} : vector<8x64xf32> to vector<8x8xf32>
    %433 = vector.extract_strided_slice %429 {offsets = [0, 32], sizes = [8, 8], strides = [1, 1]} : vector<8x64xf32> to vector<8x8xf32>
    %cst_174 = arith.constant dense<0.000000e+00> : vector<8x8xf32>
    %434 = tpu.matmul %431, %432, %cst_174 {dimension_numbers = #tpu.dot_dimension_numbers<[1], [1], [0], [0], [0, 0, 1, 0], [], []>} : vector<8x8xf32>, vector<8x8xf32>, vector<8x8xf32> -> vector<8x8xf32>
    %cst_175 = arith.constant 0.353553385 : f32
    %435 = vector.broadcast %cst_175 : f32 to vector<8x8xf32>
    %436 = arith.mulf %434, %435 : vector<8x8xf32>
    %437 = vector.broadcast %15 : vector<1x8xf32> to vector<8x8xf32>
    %438 = arith.addf %436, %437 : vector<8x8xf32>
    %cst_176 = arith.constant dense<0xFF800000> : vector<8xf32>
    %439 = vector.multi_reduction <maximumf>, %438, %cst_176 [1] : vector<8x8xf32> to vector<8xf32>
    %440 = vector.shape_cast %439 : vector<8xf32> to vector<8x1xf32>
    %441 = vector.broadcast %440 : vector<8x1xf32> to vector<8x8xf32>
    %442 = arith.subf %438, %441 : vector<8x8xf32>
    %443 = math.exp %442 : vector<8x8xf32>
    %cst_177 = arith.constant dense<0.000000e+00> : vector<8xf32>
    %444 = vector.multi_reduction <add>, %443, %cst_177 [1] : vector<8x8xf32> to vector<8xf32>
    %445 = vector.shape_cast %444 : vector<8xf32> to vector<8x1xf32>
    %446 = tpu.reciprocal %445 {approx = true} : vector<8x1xf32> -> vector<8x1xf32>
    %447 = vector.broadcast %446 : vector<8x1xf32> to vector<8x8xf32>
    %448 = arith.mulf %443, %447 : vector<8x8xf32>
    %cst_178 = arith.constant dense<0.000000e+00> : vector<8x8xf32>
    %449 = tpu.matmul %448, %433, %cst_178 {dimension_numbers = #tpu.dot_dimension_numbers<[1], [0], [0], [1], [0, 0, 1, 1], [], []>} : vector<8x8xf32>, vector<8x8xf32>, vector<8x8xf32> -> vector<8x8xf32>
    %450 = vector.extract_strided_slice %329 {offsets = [0, 0], sizes = [8, 32], strides = [1, 1]} : vector<32x32xf32> to vector<8x32xf32>
    %cst_179 = arith.constant dense<0.000000e+00> : vector<8x32xf32>
    %451 = tpu.matmul %449, %450, %cst_179 {dimension_numbers = #tpu.dot_dimension_numbers<[1], [0], [0], [1], [0, 0, 1, 1], [], []>} : vector<8x8xf32>, vector<8x32xf32>, vector<8x32xf32> -> vector<8x32xf32>
    %452 = arith.addf %430, %451 : vector<8x32xf32>
    %453 = vector.extract_strided_slice %428 {offsets = [0, 8], sizes = [8, 8], strides = [1, 1]} : vector<8x32xf32> to vector<8x8xf32>
    %454 = vector.extract_strided_slice %429 {offsets = [0, 8], sizes = [8, 8], strides = [1, 1]} : vector<8x64xf32> to vector<8x8xf32>
    %455 = vector.extract_strided_slice %429 {offsets = [0, 40], sizes = [8, 8], strides = [1, 1]} : vector<8x64xf32> to vector<8x8xf32>
    %cst_180 = arith.constant dense<0.000000e+00> : vector<8x8xf32>
    %456 = tpu.matmul %453, %454, %cst_180 {dimension_numbers = #tpu.dot_dimension_numbers<[1], [1], [0], [0], [0, 0, 1, 0], [], []>} : vector<8x8xf32>, vector<8x8xf32>, vector<8x8xf32> -> vector<8x8xf32>
    %cst_181 = arith.constant 0.353553385 : f32
    %457 = vector.broadcast %cst_181 : f32 to vector<8x8xf32>
    %458 = arith.mulf %456, %457 : vector<8x8xf32>
    %459 = vector.broadcast %15 : vector<1x8xf32> to vector<8x8xf32>
    %460 = arith.addf %458, %459 : vector<8x8xf32>
    %cst_182 = arith.constant dense<0xFF800000> : vector<8xf32>
    %461 = vector.multi_reduction <maximumf>, %460, %cst_182 [1] : vector<8x8xf32> to vector<8xf32>
    %462 = vector.shape_cast %461 : vector<8xf32> to vector<8x1xf32>
    %463 = vector.broadcast %462 : vector<8x1xf32> to vector<8x8xf32>
    %464 = arith.subf %460, %463 : vector<8x8xf32>
    %465 = math.exp %464 : vector<8x8xf32>
    %cst_183 = arith.constant dense<0.000000e+00> : vector<8xf32>
    %466 = vector.multi_reduction <add>, %465, %cst_183 [1] : vector<8x8xf32> to vector<8xf32>
    %467 = vector.shape_cast %466 : vector<8xf32> to vector<8x1xf32>
    %468 = tpu.reciprocal %467 {approx = true} : vector<8x1xf32> -> vector<8x1xf32>
    %469 = vector.broadcast %468 : vector<8x1xf32> to vector<8x8xf32>
    %470 = arith.mulf %465, %469 : vector<8x8xf32>
    %cst_184 = arith.constant dense<0.000000e+00> : vector<8x8xf32>
    %471 = tpu.matmul %470, %455, %cst_184 {dimension_numbers = #tpu.dot_dimension_numbers<[1], [0], [0], [1], [0, 0, 1, 1], [], []>} : vector<8x8xf32>, vector<8x8xf32>, vector<8x8xf32> -> vector<8x8xf32>
    %472 = vector.extract_strided_slice %329 {offsets = [8, 0], sizes = [8, 32], strides = [1, 1]} : vector<32x32xf32> to vector<8x32xf32>
    %cst_185 = arith.constant dense<0.000000e+00> : vector<8x32xf32>
    %473 = tpu.matmul %471, %472, %cst_185 {dimension_numbers = #tpu.dot_dimension_numbers<[1], [0], [0], [1], [0, 0, 1, 1], [], []>} : vector<8x8xf32>, vector<8x32xf32>, vector<8x32xf32> -> vector<8x32xf32>
    %474 = arith.addf %452, %473 : vector<8x32xf32>
    %475 = vector.extract_strided_slice %428 {offsets = [0, 16], sizes = [8, 8], strides = [1, 1]} : vector<8x32xf32> to vector<8x8xf32>
    %476 = vector.extract_strided_slice %429 {offsets = [0, 16], sizes = [8, 8], strides = [1, 1]} : vector<8x64xf32> to vector<8x8xf32>
    %477 = vector.extract_strided_slice %429 {offsets = [0, 48], sizes = [8, 8], strides = [1, 1]} : vector<8x64xf32> to vector<8x8xf32>
    %cst_186 = arith.constant dense<0.000000e+00> : vector<8x8xf32>
    %478 = tpu.matmul %475, %476, %cst_186 {dimension_numbers = #tpu.dot_dimension_numbers<[1], [1], [0], [0], [0, 0, 1, 0], [], []>} : vector<8x8xf32>, vector<8x8xf32>, vector<8x8xf32> -> vector<8x8xf32>
    %cst_187 = arith.constant 0.353553385 : f32
    %479 = vector.broadcast %cst_187 : f32 to vector<8x8xf32>
    %480 = arith.mulf %478, %479 : vector<8x8xf32>
    %481 = vector.broadcast %15 : vector<1x8xf32> to vector<8x8xf32>
    %482 = arith.addf %480, %481 : vector<8x8xf32>
    %cst_188 = arith.constant dense<0xFF800000> : vector<8xf32>
    %483 = vector.multi_reduction <maximumf>, %482, %cst_188 [1] : vector<8x8xf32> to vector<8xf32>
    %484 = vector.shape_cast %483 : vector<8xf32> to vector<8x1xf32>
    %485 = vector.broadcast %484 : vector<8x1xf32> to vector<8x8xf32>
    %486 = arith.subf %482, %485 : vector<8x8xf32>
    %487 = math.exp %486 : vector<8x8xf32>
    %cst_189 = arith.constant dense<0.000000e+00> : vector<8xf32>
    %488 = vector.multi_reduction <add>, %487, %cst_189 [1] : vector<8x8xf32> to vector<8xf32>
    %489 = vector.shape_cast %488 : vector<8xf32> to vector<8x1xf32>
    %490 = tpu.reciprocal %489 {approx = true} : vector<8x1xf32> -> vector<8x1xf32>
    %491 = vector.broadcast %490 : vector<8x1xf32> to vector<8x8xf32>
    %492 = arith.mulf %487, %491 : vector<8x8xf32>
    %cst_190 = arith.constant dense<0.000000e+00> : vector<8x8xf32>
    %493 = tpu.matmul %492, %477, %cst_190 {dimension_numbers = #tpu.dot_dimension_numbers<[1], [0], [0], [1], [0, 0, 1, 1], [], []>} : vector<8x8xf32>, vector<8x8xf32>, vector<8x8xf32> -> vector<8x8xf32>
    %494 = vector.extract_strided_slice %329 {offsets = [16, 0], sizes = [8, 32], strides = [1, 1]} : vector<32x32xf32> to vector<8x32xf32>
    %cst_191 = arith.constant dense<0.000000e+00> : vector<8x32xf32>
    %495 = tpu.matmul %493, %494, %cst_191 {dimension_numbers = #tpu.dot_dimension_numbers<[1], [0], [0], [1], [0, 0, 1, 1], [], []>} : vector<8x8xf32>, vector<8x32xf32>, vector<8x32xf32> -> vector<8x32xf32>
    %496 = arith.addf %474, %495 : vector<8x32xf32>
    %497 = vector.extract_strided_slice %428 {offsets = [0, 24], sizes = [8, 8], strides = [1, 1]} : vector<8x32xf32> to vector<8x8xf32>
    %498 = vector.extract_strided_slice %429 {offsets = [0, 24], sizes = [8, 8], strides = [1, 1]} : vector<8x64xf32> to vector<8x8xf32>
    %499 = vector.extract_strided_slice %429 {offsets = [0, 56], sizes = [8, 8], strides = [1, 1]} : vector<8x64xf32> to vector<8x8xf32>
    %cst_192 = arith.constant dense<0.000000e+00> : vector<8x8xf32>
    %500 = tpu.matmul %497, %498, %cst_192 {dimension_numbers = #tpu.dot_dimension_numbers<[1], [1], [0], [0], [0, 0, 1, 0], [], []>} : vector<8x8xf32>, vector<8x8xf32>, vector<8x8xf32> -> vector<8x8xf32>
    %cst_193 = arith.constant 0.353553385 : f32
    %501 = vector.broadcast %cst_193 : f32 to vector<8x8xf32>
    %502 = arith.mulf %500, %501 : vector<8x8xf32>
    %503 = vector.broadcast %15 : vector<1x8xf32> to vector<8x8xf32>
    %504 = arith.addf %502, %503 : vector<8x8xf32>
    %cst_194 = arith.constant dense<0xFF800000> : vector<8xf32>
    %505 = vector.multi_reduction <maximumf>, %504, %cst_194 [1] : vector<8x8xf32> to vector<8xf32>
    %506 = vector.shape_cast %505 : vector<8xf32> to vector<8x1xf32>
    %507 = vector.broadcast %506 : vector<8x1xf32> to vector<8x8xf32>
    %508 = arith.subf %504, %507 : vector<8x8xf32>
    %509 = math.exp %508 : vector<8x8xf32>
    %cst_195 = arith.constant dense<0.000000e+00> : vector<8xf32>
    %510 = vector.multi_reduction <add>, %509, %cst_195 [1] : vector<8x8xf32> to vector<8xf32>
    %511 = vector.shape_cast %510 : vector<8xf32> to vector<8x1xf32>
    %512 = tpu.reciprocal %511 {approx = true} : vector<8x1xf32> -> vector<8x1xf32>
    %513 = vector.broadcast %512 : vector<8x1xf32> to vector<8x8xf32>
    %514 = arith.mulf %509, %513 : vector<8x8xf32>
    %cst_196 = arith.constant dense<0.000000e+00> : vector<8x8xf32>
    %515 = tpu.matmul %514, %499, %cst_196 {dimension_numbers = #tpu.dot_dimension_numbers<[1], [0], [0], [1], [0, 0, 1, 1], [], []>} : vector<8x8xf32>, vector<8x8xf32>, vector<8x8xf32> -> vector<8x8xf32>
    %516 = vector.extract_strided_slice %329 {offsets = [24, 0], sizes = [8, 32], strides = [1, 1]} : vector<32x32xf32> to vector<8x32xf32>
    %cst_197 = arith.constant dense<0.000000e+00> : vector<8x32xf32>
    %517 = tpu.matmul %515, %516, %cst_197 {dimension_numbers = #tpu.dot_dimension_numbers<[1], [0], [0], [1], [0, 0, 1, 1], [], []>} : vector<8x8xf32>, vector<8x32xf32>, vector<8x32xf32> -> vector<8x32xf32>
    %518 = arith.addf %496, %517 : vector<8x32xf32>
    %519 = tpu.concatenate %426, %518 in 0 : vector<8x32xf32>, vector<8x32xf32> -> vector<16x32xf32>
    %520 = vector.broadcast %331 : vector<1x32xf32> to vector<16x32xf32>
    %521 = arith.addf %519, %520 : vector<16x32xf32>
    %522 = arith.addf %297, %521 : vector<16x32xf32>
    %c1_198 = arith.constant 1 : index
    %c0_199 = arith.constant 0 : index
    %c0_200 = arith.constant 0 : index
    %523 = vector.load %arg33[%c1_198, %c0_199, %c0_200] : memref<2x1x32xf32, #tpu.memory_space<vmem>>, vector<1x1x32xf32>
    %524 = vector.shape_cast %523 : vector<1x1x32xf32> to vector<1x32xf32>
    %c1_201 = arith.constant 1 : index
    %c0_202 = arith.constant 0 : index
    %c0_203 = arith.constant 0 : index
    %525 = vector.load %arg32[%c1_201, %c0_202, %c0_203] : memref<2x1x32xf32, #tpu.memory_space<vmem>>, vector<1x1x32xf32>
    %526 = vector.shape_cast %525 : vector<1x1x32xf32> to vector<1x32xf32>
    %cst_204 = arith.constant dense<0.000000e+00> : vector<16xf32>
    %527 = vector.multi_reduction <add>, %522, %cst_204 [1] : vector<16x32xf32> to vector<16xf32>
    %528 = vector.shape_cast %527 : vector<16xf32> to vector<16x1xf32>
    %cst_205 = arith.constant 3.200000e+01 : f32
    %529 = vector.broadcast %cst_205 : f32 to vector<16x1xf32>
    %530 = arith.divf %528, %529 : vector<16x1xf32>
    %531 = vector.broadcast %530 : vector<16x1xf32> to vector<16x32xf32>
    %532 = arith.subf %522, %531 : vector<16x32xf32>
    %533 = arith.mulf %532, %532 : vector<16x32xf32>
    %cst_206 = arith.constant dense<0.000000e+00> : vector<16xf32>
    %534 = vector.multi_reduction <add>, %533, %cst_206 [1] : vector<16x32xf32> to vector<16xf32>
    %535 = vector.shape_cast %534 : vector<16xf32> to vector<16x1xf32>
    %cst_207 = arith.constant 3.200000e+01 : f32
    %536 = vector.broadcast %cst_207 : f32 to vector<16x1xf32>
    %537 = arith.divf %535, %536 : vector<16x1xf32>
    %538 = vector.broadcast %530 : vector<16x1xf32> to vector<16x32xf32>
    %539 = arith.subf %522, %538 : vector<16x32xf32>
    %cst_208 = arith.constant 9.99999997E-7 : f32
    %540 = vector.broadcast %cst_208 : f32 to vector<16x1xf32>
    %541 = arith.addf %537, %540 : vector<16x1xf32>
    %542 = math.rsqrt %541 : vector<16x1xf32>
    %543 = vector.broadcast %542 : vector<16x1xf32> to vector<16x32xf32>
    %544 = arith.mulf %539, %543 : vector<16x32xf32>
    %545 = vector.broadcast %524 : vector<1x32xf32> to vector<16x32xf32>
    %546 = arith.mulf %544, %545 : vector<16x32xf32>
    %547 = vector.broadcast %526 : vector<1x32xf32> to vector<16x32xf32>
    %548 = arith.addf %546, %547 : vector<16x32xf32>
    %c1_209 = arith.constant 1 : index
    %c0_210 = arith.constant 0 : index
    %c0_211 = arith.constant 0 : index
    %549 = vector.load %arg34[%c1_209, %c0_210, %c0_211] : memref<2x32x64xf32, #tpu.memory_space<vmem>>, vector<1x32x64xf32>
    %550 = vector.shape_cast %549 : vector<1x32x64xf32> to vector<32x64xf32>
    %c1_212 = arith.constant 1 : index
    %c0_213 = arith.constant 0 : index
    %c0_214 = arith.constant 0 : index
    %551 = vector.load %arg26[%c1_212, %c0_213, %c0_214] : memref<2x1x64xf32, #tpu.memory_space<vmem>>, vector<1x1x64xf32>
    %552 = vector.shape_cast %551 : vector<1x1x64xf32> to vector<1x64xf32>
    %c1_215 = arith.constant 1 : index
    %c0_216 = arith.constant 0 : index
    %c0_217 = arith.constant 0 : index
    %553 = vector.load %arg35[%c1_215, %c0_216, %c0_217] : memref<2x64x32xf32, #tpu.memory_space<vmem>>, vector<1x64x32xf32>
    %554 = vector.shape_cast %553 : vector<1x64x32xf32> to vector<64x32xf32>
    %c1_218 = arith.constant 1 : index
    %c0_219 = arith.constant 0 : index
    %c0_220 = arith.constant 0 : index
    %555 = vector.load %arg27[%c1_218, %c0_219, %c0_220] : memref<2x1x32xf32, #tpu.memory_space<vmem>>, vector<1x1x32xf32>
    %556 = vector.shape_cast %555 : vector<1x1x32xf32> to vector<1x32xf32>
    %cst_221 = arith.constant dense<0.000000e+00> : vector<16x64xf32>
    %557 = tpu.matmul %548, %550, %cst_221 {dimension_numbers = #tpu.dot_dimension_numbers<[1], [0], [0], [1], [0, 0, 1, 1], [], []>} : vector<16x32xf32>, vector<32x64xf32>, vector<16x64xf32> -> vector<16x64xf32>
    %558 = vector.broadcast %552 : vector<1x64xf32> to vector<16x64xf32>
    %559 = arith.addf %557, %558 : vector<16x64xf32>
    %cst_222 = arith.constant 0.000000e+00 : f32
    %560 = vector.broadcast %cst_222 : f32 to vector<16x64xf32>
    %561 = arith.maximumf %559, %560 : vector<16x64xf32>
    %cst_223 = arith.constant dense<0.000000e+00> : vector<16x32xf32>
    %562 = tpu.matmul %561, %554, %cst_223 {dimension_numbers = #tpu.dot_dimension_numbers<[1], [0], [0], [1], [0, 0, 1, 1], [], []>} : vector<16x64xf32>, vector<64x32xf32>, vector<16x32xf32> -> vector<16x32xf32>
    %563 = vector.broadcast %556 : vector<1x32xf32> to vector<16x32xf32>
    %564 = arith.addf %562, %563 : vector<16x32xf32>
    %565 = arith.addf %522, %564 : vector<16x32xf32>
    %c0_224 = arith.constant 0 : index
    %c0_225 = arith.constant 0 : index
    %566 = vector.load %arg39[%c0_224, %c0_225] : memref<1x32xf32, #tpu.memory_space<vmem>>, vector<1x32xf32>
    %c0_226 = arith.constant 0 : index
    %c0_227 = arith.constant 0 : index
    %567 = vector.load %arg38[%c0_226, %c0_227] : memref<1x32xf32, #tpu.memory_space<vmem>>, vector<1x32xf32>
    %cst_228 = arith.constant dense<0.000000e+00> : vector<16xf32>
    %568 = vector.multi_reduction <add>, %565, %cst_228 [1] : vector<16x32xf32> to vector<16xf32>
    %569 = vector.shape_cast %568 : vector<16xf32> to vector<16x1xf32>
    %cst_229 = arith.constant 3.200000e+01 : f32
    %570 = vector.broadcast %cst_229 : f32 to vector<16x1xf32>
    %571 = arith.divf %569, %570 : vector<16x1xf32>
    %572 = vector.broadcast %571 : vector<16x1xf32> to vector<16x32xf32>
    %573 = arith.subf %565, %572 : vector<16x32xf32>
    %574 = arith.mulf %573, %573 : vector<16x32xf32>
    %cst_230 = arith.constant dense<0.000000e+00> : vector<16xf32>
    %575 = vector.multi_reduction <add>, %574, %cst_230 [1] : vector<16x32xf32> to vector<16xf32>
    %576 = vector.shape_cast %575 : vector<16xf32> to vector<16x1xf32>
    %cst_231 = arith.constant 3.200000e+01 : f32
    %577 = vector.broadcast %cst_231 : f32 to vector<16x1xf32>
    %578 = arith.divf %576, %577 : vector<16x1xf32>
    %579 = vector.broadcast %571 : vector<16x1xf32> to vector<16x32xf32>
    %580 = arith.subf %565, %579 : vector<16x32xf32>
    %cst_232 = arith.constant 9.99999997E-7 : f32
    %581 = vector.broadcast %cst_232 : f32 to vector<16x1xf32>
    %582 = arith.addf %578, %581 : vector<16x1xf32>
    %583 = math.rsqrt %582 : vector<16x1xf32>
    %584 = vector.broadcast %583 : vector<16x1xf32> to vector<16x32xf32>
    %585 = arith.mulf %580, %584 : vector<16x32xf32>
    %586 = vector.broadcast %566 : vector<1x32xf32> to vector<16x32xf32>
    %587 = arith.mulf %585, %586 : vector<16x32xf32>
    %588 = vector.broadcast %567 : vector<1x32xf32> to vector<16x32xf32>
    %589 = arith.addf %587, %588 : vector<16x32xf32>
    %c0_233 = arith.constant 0 : index
    %c0_234 = arith.constant 0 : index
    %c0_235 = arith.constant 0 : index
    %590 = vector.load %arg12[%c0_233, %c0_234, %c0_235] : memref<2x1x32xf32, #tpu.memory_space<vmem>>, vector<1x1x32xf32>
    %591 = vector.shape_cast %590 : vector<1x1x32xf32> to vector<1x32xf32>
    %c0_236 = arith.constant 0 : index
    %c0_237 = arith.constant 0 : index
    %c0_238 = arith.constant 0 : index
    %592 = vector.load %arg11[%c0_236, %c0_237, %c0_238] : memref<2x1x32xf32, #tpu.memory_space<vmem>>, vector<1x1x32xf32>
    %593 = vector.shape_cast %592 : vector<1x1x32xf32> to vector<1x32xf32>
    %cst_239 = arith.constant dense<0.000000e+00> : vector<16xf32>
    %594 = vector.multi_reduction <add>, %1, %cst_239 [1] : vector<16x32xf32> to vector<16xf32>
    %595 = vector.shape_cast %594 : vector<16xf32> to vector<16x1xf32>
    %cst_240 = arith.constant 3.200000e+01 : f32
    %596 = vector.broadcast %cst_240 : f32 to vector<16x1xf32>
    %597 = arith.divf %595, %596 : vector<16x1xf32>
    %598 = vector.broadcast %597 : vector<16x1xf32> to vector<16x32xf32>
    %599 = arith.subf %1, %598 : vector<16x32xf32>
    %600 = arith.mulf %599, %599 : vector<16x32xf32>
    %cst_241 = arith.constant dense<0.000000e+00> : vector<16xf32>
    %601 = vector.multi_reduction <add>, %600, %cst_241 [1] : vector<16x32xf32> to vector<16xf32>
    %602 = vector.shape_cast %601 : vector<16xf32> to vector<16x1xf32>
    %cst_242 = arith.constant 3.200000e+01 : f32
    %603 = vector.broadcast %cst_242 : f32 to vector<16x1xf32>
    %604 = arith.divf %602, %603 : vector<16x1xf32>
    %605 = vector.broadcast %597 : vector<16x1xf32> to vector<16x32xf32>
    %606 = arith.subf %1, %605 : vector<16x32xf32>
    %cst_243 = arith.constant 9.99999997E-7 : f32
    %607 = vector.broadcast %cst_243 : f32 to vector<16x1xf32>
    %608 = arith.addf %604, %607 : vector<16x1xf32>
    %609 = math.rsqrt %608 : vector<16x1xf32>
    %610 = vector.broadcast %609 : vector<16x1xf32> to vector<16x32xf32>
    %611 = arith.mulf %606, %610 : vector<16x32xf32>
    %612 = vector.broadcast %591 : vector<1x32xf32> to vector<16x32xf32>
    %613 = arith.mulf %611, %612 : vector<16x32xf32>
    %614 = vector.broadcast %593 : vector<1x32xf32> to vector<16x32xf32>
    %615 = arith.addf %613, %614 : vector<16x32xf32>
    %c0_244 = arith.constant 0 : index
    %c0_245 = arith.constant 0 : index
    %c0_246 = arith.constant 0 : index
    %616 = vector.load %arg23[%c0_244, %c0_245, %c0_246] : memref<2x32x96xf32, #tpu.memory_space<vmem>>, vector<1x32x96xf32>
    %617 = vector.shape_cast %616 : vector<1x32x96xf32> to vector<32x96xf32>
    %c0_247 = arith.constant 0 : index
    %c0_248 = arith.constant 0 : index
    %c0_249 = arith.constant 0 : index
    %618 = vector.load %arg10[%c0_247, %c0_248, %c0_249] : memref<2x1x96xf32, #tpu.memory_space<vmem>>, vector<1x1x96xf32>
    %619 = vector.shape_cast %618 : vector<1x1x96xf32> to vector<1x96xf32>
    %c0_250 = arith.constant 0 : index
    %c0_251 = arith.constant 0 : index
    %c0_252 = arith.constant 0 : index
    %620 = vector.load %arg21[%c0_250, %c0_251, %c0_252] : memref<2x32x32xf32, #tpu.memory_space<vmem>>, vector<1x32x32xf32>
    %621 = vector.shape_cast %620 : vector<1x32x32xf32> to vector<32x32xf32>
    %c0_253 = arith.constant 0 : index
    %c0_254 = arith.constant 0 : index
    %c0_255 = arith.constant 0 : index
    %622 = vector.load %arg8[%c0_253, %c0_254, %c0_255] : memref<2x1x32xf32, #tpu.memory_space<vmem>>, vector<1x1x32xf32>
    %623 = vector.shape_cast %622 : vector<1x1x32xf32> to vector<1x32xf32>
    %cst_256 = arith.constant dense<0.000000e+00> : vector<16x96xf32>
    %624 = tpu.matmul %615, %617, %cst_256 {dimension_numbers = #tpu.dot_dimension_numbers<[1], [0], [0], [1], [0, 0, 1, 1], [], []>} : vector<16x32xf32>, vector<32x96xf32>, vector<16x96xf32> -> vector<16x96xf32>
    %625 = vector.broadcast %619 : vector<1x96xf32> to vector<16x96xf32>
    %626 = arith.addf %624, %625 : vector<16x96xf32>
    %627 = vector.extract_strided_slice %626 {offsets = [0, 0], sizes = [8, 96], strides = [1, 1]} : vector<16x96xf32> to vector<8x96xf32>
    %628 = vector.extract_strided_slice %627 {offsets = [0, 0], sizes = [8, 32], strides = [1, 1]} : vector<8x96xf32> to vector<8x32xf32>
    %629 = vector.extract_strided_slice %627 {offsets = [0, 32], sizes = [8, 64], strides = [1, 1]} : vector<8x96xf32> to vector<8x64xf32>
    %cst_257 = arith.constant 0.000000e+00 : f32
    %630 = vector.broadcast %cst_257 : f32 to vector<8x32xf32>
    %631 = vector.extract_strided_slice %628 {offsets = [0, 0], sizes = [8, 8], strides = [1, 1]} : vector<8x32xf32> to vector<8x8xf32>
    %632 = vector.extract_strided_slice %629 {offsets = [0, 0], sizes = [8, 8], strides = [1, 1]} : vector<8x64xf32> to vector<8x8xf32>
    %633 = vector.extract_strided_slice %629 {offsets = [0, 32], sizes = [8, 8], strides = [1, 1]} : vector<8x64xf32> to vector<8x8xf32>
    %cst_258 = arith.constant dense<0.000000e+00> : vector<8x8xf32>
    %634 = tpu.matmul %631, %632, %cst_258 {dimension_numbers = #tpu.dot_dimension_numbers<[1], [1], [0], [0], [0, 0, 1, 0], [], []>} : vector<8x8xf32>, vector<8x8xf32>, vector<8x8xf32> -> vector<8x8xf32>
    %cst_259 = arith.constant 0.353553385 : f32
    %635 = vector.broadcast %cst_259 : f32 to vector<8x8xf32>
    %636 = arith.mulf %634, %635 : vector<8x8xf32>
    %637 = arith.addf %636, %22 : vector<8x8xf32>
    %cst_260 = arith.constant dense<0xFF800000> : vector<8xf32>
    %638 = vector.multi_reduction <maximumf>, %637, %cst_260 [1] : vector<8x8xf32> to vector<8xf32>
    %639 = vector.shape_cast %638 : vector<8xf32> to vector<8x1xf32>
    %640 = vector.broadcast %639 : vector<8x1xf32> to vector<8x8xf32>
    %641 = arith.subf %637, %640 : vector<8x8xf32>
    %642 = math.exp %641 : vector<8x8xf32>
    %cst_261 = arith.constant dense<0.000000e+00> : vector<8xf32>
    %643 = vector.multi_reduction <add>, %642, %cst_261 [1] : vector<8x8xf32> to vector<8xf32>
    %644 = vector.shape_cast %643 : vector<8xf32> to vector<8x1xf32>
    %645 = tpu.reciprocal %644 {approx = true} : vector<8x1xf32> -> vector<8x1xf32>
    %646 = vector.broadcast %645 : vector<8x1xf32> to vector<8x8xf32>
    %647 = arith.mulf %642, %646 : vector<8x8xf32>
    %cst_262 = arith.constant dense<0.000000e+00> : vector<8x8xf32>
    %648 = tpu.matmul %647, %633, %cst_262 {dimension_numbers = #tpu.dot_dimension_numbers<[1], [0], [0], [1], [0, 0, 1, 1], [], []>} : vector<8x8xf32>, vector<8x8xf32>, vector<8x8xf32> -> vector<8x8xf32>
    %649 = vector.extract_strided_slice %621 {offsets = [0, 0], sizes = [8, 32], strides = [1, 1]} : vector<32x32xf32> to vector<8x32xf32>
    %cst_263 = arith.constant dense<0.000000e+00> : vector<8x32xf32>
    %650 = tpu.matmul %648, %649, %cst_263 {dimension_numbers = #tpu.dot_dimension_numbers<[1], [0], [0], [1], [0, 0, 1, 1], [], []>} : vector<8x8xf32>, vector<8x32xf32>, vector<8x32xf32> -> vector<8x32xf32>
    %651 = arith.addf %630, %650 : vector<8x32xf32>
    %652 = vector.extract_strided_slice %628 {offsets = [0, 8], sizes = [8, 8], strides = [1, 1]} : vector<8x32xf32> to vector<8x8xf32>
    %653 = vector.extract_strided_slice %629 {offsets = [0, 8], sizes = [8, 8], strides = [1, 1]} : vector<8x64xf32> to vector<8x8xf32>
    %654 = vector.extract_strided_slice %629 {offsets = [0, 40], sizes = [8, 8], strides = [1, 1]} : vector<8x64xf32> to vector<8x8xf32>
    %cst_264 = arith.constant dense<0.000000e+00> : vector<8x8xf32>
    %655 = tpu.matmul %652, %653, %cst_264 {dimension_numbers = #tpu.dot_dimension_numbers<[1], [1], [0], [0], [0, 0, 1, 0], [], []>} : vector<8x8xf32>, vector<8x8xf32>, vector<8x8xf32> -> vector<8x8xf32>
    %cst_265 = arith.constant 0.353553385 : f32
    %656 = vector.broadcast %cst_265 : f32 to vector<8x8xf32>
    %657 = arith.mulf %655, %656 : vector<8x8xf32>
    %658 = arith.addf %657, %22 : vector<8x8xf32>
    %cst_266 = arith.constant dense<0xFF800000> : vector<8xf32>
    %659 = vector.multi_reduction <maximumf>, %658, %cst_266 [1] : vector<8x8xf32> to vector<8xf32>
    %660 = vector.shape_cast %659 : vector<8xf32> to vector<8x1xf32>
    %661 = vector.broadcast %660 : vector<8x1xf32> to vector<8x8xf32>
    %662 = arith.subf %658, %661 : vector<8x8xf32>
    %663 = math.exp %662 : vector<8x8xf32>
    %cst_267 = arith.constant dense<0.000000e+00> : vector<8xf32>
    %664 = vector.multi_reduction <add>, %663, %cst_267 [1] : vector<8x8xf32> to vector<8xf32>
    %665 = vector.shape_cast %664 : vector<8xf32> to vector<8x1xf32>
    %666 = tpu.reciprocal %665 {approx = true} : vector<8x1xf32> -> vector<8x1xf32>
    %667 = vector.broadcast %666 : vector<8x1xf32> to vector<8x8xf32>
    %668 = arith.mulf %663, %667 : vector<8x8xf32>
    %cst_268 = arith.constant dense<0.000000e+00> : vector<8x8xf32>
    %669 = tpu.matmul %668, %654, %cst_268 {dimension_numbers = #tpu.dot_dimension_numbers<[1], [0], [0], [1], [0, 0, 1, 1], [], []>} : vector<8x8xf32>, vector<8x8xf32>, vector<8x8xf32> -> vector<8x8xf32>
    %670 = vector.extract_strided_slice %621 {offsets = [8, 0], sizes = [8, 32], strides = [1, 1]} : vector<32x32xf32> to vector<8x32xf32>
    %cst_269 = arith.constant dense<0.000000e+00> : vector<8x32xf32>
    %671 = tpu.matmul %669, %670, %cst_269 {dimension_numbers = #tpu.dot_dimension_numbers<[1], [0], [0], [1], [0, 0, 1, 1], [], []>} : vector<8x8xf32>, vector<8x32xf32>, vector<8x32xf32> -> vector<8x32xf32>
    %672 = arith.addf %651, %671 : vector<8x32xf32>
    %673 = vector.extract_strided_slice %628 {offsets = [0, 16], sizes = [8, 8], strides = [1, 1]} : vector<8x32xf32> to vector<8x8xf32>
    %674 = vector.extract_strided_slice %629 {offsets = [0, 16], sizes = [8, 8], strides = [1, 1]} : vector<8x64xf32> to vector<8x8xf32>
    %675 = vector.extract_strided_slice %629 {offsets = [0, 48], sizes = [8, 8], strides = [1, 1]} : vector<8x64xf32> to vector<8x8xf32>
    %cst_270 = arith.constant dense<0.000000e+00> : vector<8x8xf32>
    %676 = tpu.matmul %673, %674, %cst_270 {dimension_numbers = #tpu.dot_dimension_numbers<[1], [1], [0], [0], [0, 0, 1, 0], [], []>} : vector<8x8xf32>, vector<8x8xf32>, vector<8x8xf32> -> vector<8x8xf32>
    %cst_271 = arith.constant 0.353553385 : f32
    %677 = vector.broadcast %cst_271 : f32 to vector<8x8xf32>
    %678 = arith.mulf %676, %677 : vector<8x8xf32>
    %679 = arith.addf %678, %22 : vector<8x8xf32>
    %cst_272 = arith.constant dense<0xFF800000> : vector<8xf32>
    %680 = vector.multi_reduction <maximumf>, %679, %cst_272 [1] : vector<8x8xf32> to vector<8xf32>
    %681 = vector.shape_cast %680 : vector<8xf32> to vector<8x1xf32>
    %682 = vector.broadcast %681 : vector<8x1xf32> to vector<8x8xf32>
    %683 = arith.subf %679, %682 : vector<8x8xf32>
    %684 = math.exp %683 : vector<8x8xf32>
    %cst_273 = arith.constant dense<0.000000e+00> : vector<8xf32>
    %685 = vector.multi_reduction <add>, %684, %cst_273 [1] : vector<8x8xf32> to vector<8xf32>
    %686 = vector.shape_cast %685 : vector<8xf32> to vector<8x1xf32>
    %687 = tpu.reciprocal %686 {approx = true} : vector<8x1xf32> -> vector<8x1xf32>
    %688 = vector.broadcast %687 : vector<8x1xf32> to vector<8x8xf32>
    %689 = arith.mulf %684, %688 : vector<8x8xf32>
    %cst_274 = arith.constant dense<0.000000e+00> : vector<8x8xf32>
    %690 = tpu.matmul %689, %675, %cst_274 {dimension_numbers = #tpu.dot_dimension_numbers<[1], [0], [0], [1], [0, 0, 1, 1], [], []>} : vector<8x8xf32>, vector<8x8xf32>, vector<8x8xf32> -> vector<8x8xf32>
    %691 = vector.extract_strided_slice %621 {offsets = [16, 0], sizes = [8, 32], strides = [1, 1]} : vector<32x32xf32> to vector<8x32xf32>
    %cst_275 = arith.constant dense<0.000000e+00> : vector<8x32xf32>
    %692 = tpu.matmul %690, %691, %cst_275 {dimension_numbers = #tpu.dot_dimension_numbers<[1], [0], [0], [1], [0, 0, 1, 1], [], []>} : vector<8x8xf32>, vector<8x32xf32>, vector<8x32xf32> -> vector<8x32xf32>
    %693 = arith.addf %672, %692 : vector<8x32xf32>
    %694 = vector.extract_strided_slice %628 {offsets = [0, 24], sizes = [8, 8], strides = [1, 1]} : vector<8x32xf32> to vector<8x8xf32>
    %695 = vector.extract_strided_slice %629 {offsets = [0, 24], sizes = [8, 8], strides = [1, 1]} : vector<8x64xf32> to vector<8x8xf32>
    %696 = vector.extract_strided_slice %629 {offsets = [0, 56], sizes = [8, 8], strides = [1, 1]} : vector<8x64xf32> to vector<8x8xf32>
    %cst_276 = arith.constant dense<0.000000e+00> : vector<8x8xf32>
    %697 = tpu.matmul %694, %695, %cst_276 {dimension_numbers = #tpu.dot_dimension_numbers<[1], [1], [0], [0], [0, 0, 1, 0], [], []>} : vector<8x8xf32>, vector<8x8xf32>, vector<8x8xf32> -> vector<8x8xf32>
    %cst_277 = arith.constant 0.353553385 : f32
    %698 = vector.broadcast %cst_277 : f32 to vector<8x8xf32>
    %699 = arith.mulf %697, %698 : vector<8x8xf32>
    %700 = arith.addf %699, %22 : vector<8x8xf32>
    %cst_278 = arith.constant dense<0xFF800000> : vector<8xf32>
    %701 = vector.multi_reduction <maximumf>, %700, %cst_278 [1] : vector<8x8xf32> to vector<8xf32>
    %702 = vector.shape_cast %701 : vector<8xf32> to vector<8x1xf32>
    %703 = vector.broadcast %702 : vector<8x1xf32> to vector<8x8xf32>
    %704 = arith.subf %700, %703 : vector<8x8xf32>
    %705 = math.exp %704 : vector<8x8xf32>
    %cst_279 = arith.constant dense<0.000000e+00> : vector<8xf32>
    %706 = vector.multi_reduction <add>, %705, %cst_279 [1] : vector<8x8xf32> to vector<8xf32>
    %707 = vector.shape_cast %706 : vector<8xf32> to vector<8x1xf32>
    %708 = tpu.reciprocal %707 {approx = true} : vector<8x1xf32> -> vector<8x1xf32>
    %709 = vector.broadcast %708 : vector<8x1xf32> to vector<8x8xf32>
    %710 = arith.mulf %705, %709 : vector<8x8xf32>
    %cst_280 = arith.constant dense<0.000000e+00> : vector<8x8xf32>
    %711 = tpu.matmul %710, %696, %cst_280 {dimension_numbers = #tpu.dot_dimension_numbers<[1], [0], [0], [1], [0, 0, 1, 1], [], []>} : vector<8x8xf32>, vector<8x8xf32>, vector<8x8xf32> -> vector<8x8xf32>
    %712 = vector.extract_strided_slice %621 {offsets = [24, 0], sizes = [8, 32], strides = [1, 1]} : vector<32x32xf32> to vector<8x32xf32>
    %cst_281 = arith.constant dense<0.000000e+00> : vector<8x32xf32>
    %713 = tpu.matmul %711, %712, %cst_281 {dimension_numbers = #tpu.dot_dimension_numbers<[1], [0], [0], [1], [0, 0, 1, 1], [], []>} : vector<8x8xf32>, vector<8x32xf32>, vector<8x32xf32> -> vector<8x32xf32>
    %714 = arith.addf %693, %713 : vector<8x32xf32>
    %715 = vector.extract_strided_slice %626 {offsets = [8, 0], sizes = [8, 96], strides = [1, 1]} : vector<16x96xf32> to vector<8x96xf32>
    %716 = vector.extract_strided_slice %715 {offsets = [0, 0], sizes = [8, 32], strides = [1, 1]} : vector<8x96xf32> to vector<8x32xf32>
    %717 = vector.extract_strided_slice %715 {offsets = [0, 32], sizes = [8, 64], strides = [1, 1]} : vector<8x96xf32> to vector<8x64xf32>
    %cst_282 = arith.constant 0.000000e+00 : f32
    %718 = vector.broadcast %cst_282 : f32 to vector<8x32xf32>
    %719 = vector.extract_strided_slice %716 {offsets = [0, 0], sizes = [8, 8], strides = [1, 1]} : vector<8x32xf32> to vector<8x8xf32>
    %720 = vector.extract_strided_slice %717 {offsets = [0, 0], sizes = [8, 8], strides = [1, 1]} : vector<8x64xf32> to vector<8x8xf32>
    %721 = vector.extract_strided_slice %717 {offsets = [0, 32], sizes = [8, 8], strides = [1, 1]} : vector<8x64xf32> to vector<8x8xf32>
    %cst_283 = arith.constant dense<0.000000e+00> : vector<8x8xf32>
    %722 = tpu.matmul %719, %720, %cst_283 {dimension_numbers = #tpu.dot_dimension_numbers<[1], [1], [0], [0], [0, 0, 1, 0], [], []>} : vector<8x8xf32>, vector<8x8xf32>, vector<8x8xf32> -> vector<8x8xf32>
    %cst_284 = arith.constant 0.353553385 : f32
    %723 = vector.broadcast %cst_284 : f32 to vector<8x8xf32>
    %724 = arith.mulf %722, %723 : vector<8x8xf32>
    %725 = arith.addf %724, %29 : vector<8x8xf32>
    %cst_285 = arith.constant dense<0xFF800000> : vector<8xf32>
    %726 = vector.multi_reduction <maximumf>, %725, %cst_285 [1] : vector<8x8xf32> to vector<8xf32>
    %727 = vector.shape_cast %726 : vector<8xf32> to vector<8x1xf32>
    %728 = vector.broadcast %727 : vector<8x1xf32> to vector<8x8xf32>
    %729 = arith.subf %725, %728 : vector<8x8xf32>
    %730 = math.exp %729 : vector<8x8xf32>
    %cst_286 = arith.constant dense<0.000000e+00> : vector<8xf32>
    %731 = vector.multi_reduction <add>, %730, %cst_286 [1] : vector<8x8xf32> to vector<8xf32>
    %732 = vector.shape_cast %731 : vector<8xf32> to vector<8x1xf32>
    %733 = tpu.reciprocal %732 {approx = true} : vector<8x1xf32> -> vector<8x1xf32>
    %734 = vector.broadcast %733 : vector<8x1xf32> to vector<8x8xf32>
    %735 = arith.mulf %730, %734 : vector<8x8xf32>
    %cst_287 = arith.constant dense<0.000000e+00> : vector<8x8xf32>
    %736 = tpu.matmul %735, %721, %cst_287 {dimension_numbers = #tpu.dot_dimension_numbers<[1], [0], [0], [1], [0, 0, 1, 1], [], []>} : vector<8x8xf32>, vector<8x8xf32>, vector<8x8xf32> -> vector<8x8xf32>
    %737 = vector.extract_strided_slice %621 {offsets = [0, 0], sizes = [8, 32], strides = [1, 1]} : vector<32x32xf32> to vector<8x32xf32>
    %cst_288 = arith.constant dense<0.000000e+00> : vector<8x32xf32>
    %738 = tpu.matmul %736, %737, %cst_288 {dimension_numbers = #tpu.dot_dimension_numbers<[1], [0], [0], [1], [0, 0, 1, 1], [], []>} : vector<8x8xf32>, vector<8x32xf32>, vector<8x32xf32> -> vector<8x32xf32>
    %739 = arith.addf %718, %738 : vector<8x32xf32>
    %740 = vector.extract_strided_slice %716 {offsets = [0, 8], sizes = [8, 8], strides = [1, 1]} : vector<8x32xf32> to vector<8x8xf32>
    %741 = vector.extract_strided_slice %717 {offsets = [0, 8], sizes = [8, 8], strides = [1, 1]} : vector<8x64xf32> to vector<8x8xf32>
    %742 = vector.extract_strided_slice %717 {offsets = [0, 40], sizes = [8, 8], strides = [1, 1]} : vector<8x64xf32> to vector<8x8xf32>
    %cst_289 = arith.constant dense<0.000000e+00> : vector<8x8xf32>
    %743 = tpu.matmul %740, %741, %cst_289 {dimension_numbers = #tpu.dot_dimension_numbers<[1], [1], [0], [0], [0, 0, 1, 0], [], []>} : vector<8x8xf32>, vector<8x8xf32>, vector<8x8xf32> -> vector<8x8xf32>
    %cst_290 = arith.constant 0.353553385 : f32
    %744 = vector.broadcast %cst_290 : f32 to vector<8x8xf32>
    %745 = arith.mulf %743, %744 : vector<8x8xf32>
    %746 = arith.addf %745, %29 : vector<8x8xf32>
    %cst_291 = arith.constant dense<0xFF800000> : vector<8xf32>
    %747 = vector.multi_reduction <maximumf>, %746, %cst_291 [1] : vector<8x8xf32> to vector<8xf32>
    %748 = vector.shape_cast %747 : vector<8xf32> to vector<8x1xf32>
    %749 = vector.broadcast %748 : vector<8x1xf32> to vector<8x8xf32>
    %750 = arith.subf %746, %749 : vector<8x8xf32>
    %751 = math.exp %750 : vector<8x8xf32>
    %cst_292 = arith.constant dense<0.000000e+00> : vector<8xf32>
    %752 = vector.multi_reduction <add>, %751, %cst_292 [1] : vector<8x8xf32> to vector<8xf32>
    %753 = vector.shape_cast %752 : vector<8xf32> to vector<8x1xf32>
    %754 = tpu.reciprocal %753 {approx = true} : vector<8x1xf32> -> vector<8x1xf32>
    %755 = vector.broadcast %754 : vector<8x1xf32> to vector<8x8xf32>
    %756 = arith.mulf %751, %755 : vector<8x8xf32>
    %cst_293 = arith.constant dense<0.000000e+00> : vector<8x8xf32>
    %757 = tpu.matmul %756, %742, %cst_293 {dimension_numbers = #tpu.dot_dimension_numbers<[1], [0], [0], [1], [0, 0, 1, 1], [], []>} : vector<8x8xf32>, vector<8x8xf32>, vector<8x8xf32> -> vector<8x8xf32>
    %758 = vector.extract_strided_slice %621 {offsets = [8, 0], sizes = [8, 32], strides = [1, 1]} : vector<32x32xf32> to vector<8x32xf32>
    %cst_294 = arith.constant dense<0.000000e+00> : vector<8x32xf32>
    %759 = tpu.matmul %757, %758, %cst_294 {dimension_numbers = #tpu.dot_dimension_numbers<[1], [0], [0], [1], [0, 0, 1, 1], [], []>} : vector<8x8xf32>, vector<8x32xf32>, vector<8x32xf32> -> vector<8x32xf32>
    %760 = arith.addf %739, %759 : vector<8x32xf32>
    %761 = vector.extract_strided_slice %716 {offsets = [0, 16], sizes = [8, 8], strides = [1, 1]} : vector<8x32xf32> to vector<8x8xf32>
    %762 = vector.extract_strided_slice %717 {offsets = [0, 16], sizes = [8, 8], strides = [1, 1]} : vector<8x64xf32> to vector<8x8xf32>
    %763 = vector.extract_strided_slice %717 {offsets = [0, 48], sizes = [8, 8], strides = [1, 1]} : vector<8x64xf32> to vector<8x8xf32>
    %cst_295 = arith.constant dense<0.000000e+00> : vector<8x8xf32>
    %764 = tpu.matmul %761, %762, %cst_295 {dimension_numbers = #tpu.dot_dimension_numbers<[1], [1], [0], [0], [0, 0, 1, 0], [], []>} : vector<8x8xf32>, vector<8x8xf32>, vector<8x8xf32> -> vector<8x8xf32>
    %cst_296 = arith.constant 0.353553385 : f32
    %765 = vector.broadcast %cst_296 : f32 to vector<8x8xf32>
    %766 = arith.mulf %764, %765 : vector<8x8xf32>
    %767 = arith.addf %766, %29 : vector<8x8xf32>
    %cst_297 = arith.constant dense<0xFF800000> : vector<8xf32>
    %768 = vector.multi_reduction <maximumf>, %767, %cst_297 [1] : vector<8x8xf32> to vector<8xf32>
    %769 = vector.shape_cast %768 : vector<8xf32> to vector<8x1xf32>
    %770 = vector.broadcast %769 : vector<8x1xf32> to vector<8x8xf32>
    %771 = arith.subf %767, %770 : vector<8x8xf32>
    %772 = math.exp %771 : vector<8x8xf32>
    %cst_298 = arith.constant dense<0.000000e+00> : vector<8xf32>
    %773 = vector.multi_reduction <add>, %772, %cst_298 [1] : vector<8x8xf32> to vector<8xf32>
    %774 = vector.shape_cast %773 : vector<8xf32> to vector<8x1xf32>
    %775 = tpu.reciprocal %774 {approx = true} : vector<8x1xf32> -> vector<8x1xf32>
    %776 = vector.broadcast %775 : vector<8x1xf32> to vector<8x8xf32>
    %777 = arith.mulf %772, %776 : vector<8x8xf32>
    %cst_299 = arith.constant dense<0.000000e+00> : vector<8x8xf32>
    %778 = tpu.matmul %777, %763, %cst_299 {dimension_numbers = #tpu.dot_dimension_numbers<[1], [0], [0], [1], [0, 0, 1, 1], [], []>} : vector<8x8xf32>, vector<8x8xf32>, vector<8x8xf32> -> vector<8x8xf32>
    %779 = vector.extract_strided_slice %621 {offsets = [16, 0], sizes = [8, 32], strides = [1, 1]} : vector<32x32xf32> to vector<8x32xf32>
    %cst_300 = arith.constant dense<0.000000e+00> : vector<8x32xf32>
    %780 = tpu.matmul %778, %779, %cst_300 {dimension_numbers = #tpu.dot_dimension_numbers<[1], [0], [0], [1], [0, 0, 1, 1], [], []>} : vector<8x8xf32>, vector<8x32xf32>, vector<8x32xf32> -> vector<8x32xf32>
    %781 = arith.addf %760, %780 : vector<8x32xf32>
    %782 = vector.extract_strided_slice %716 {offsets = [0, 24], sizes = [8, 8], strides = [1, 1]} : vector<8x32xf32> to vector<8x8xf32>
    %783 = vector.extract_strided_slice %717 {offsets = [0, 24], sizes = [8, 8], strides = [1, 1]} : vector<8x64xf32> to vector<8x8xf32>
    %784 = vector.extract_strided_slice %717 {offsets = [0, 56], sizes = [8, 8], strides = [1, 1]} : vector<8x64xf32> to vector<8x8xf32>
    %cst_301 = arith.constant dense<0.000000e+00> : vector<8x8xf32>
    %785 = tpu.matmul %782, %783, %cst_301 {dimension_numbers = #tpu.dot_dimension_numbers<[1], [1], [0], [0], [0, 0, 1, 0], [], []>} : vector<8x8xf32>, vector<8x8xf32>, vector<8x8xf32> -> vector<8x8xf32>
    %cst_302 = arith.constant 0.353553385 : f32
    %786 = vector.broadcast %cst_302 : f32 to vector<8x8xf32>
    %787 = arith.mulf %785, %786 : vector<8x8xf32>
    %788 = arith.addf %787, %29 : vector<8x8xf32>
    %cst_303 = arith.constant dense<0xFF800000> : vector<8xf32>
    %789 = vector.multi_reduction <maximumf>, %788, %cst_303 [1] : vector<8x8xf32> to vector<8xf32>
    %790 = vector.shape_cast %789 : vector<8xf32> to vector<8x1xf32>
    %791 = vector.broadcast %790 : vector<8x1xf32> to vector<8x8xf32>
    %792 = arith.subf %788, %791 : vector<8x8xf32>
    %793 = math.exp %792 : vector<8x8xf32>
    %cst_304 = arith.constant dense<0.000000e+00> : vector<8xf32>
    %794 = vector.multi_reduction <add>, %793, %cst_304 [1] : vector<8x8xf32> to vector<8xf32>
    %795 = vector.shape_cast %794 : vector<8xf32> to vector<8x1xf32>
    %796 = tpu.reciprocal %795 {approx = true} : vector<8x1xf32> -> vector<8x1xf32>
    %797 = vector.broadcast %796 : vector<8x1xf32> to vector<8x8xf32>
    %798 = arith.mulf %793, %797 : vector<8x8xf32>
    %cst_305 = arith.constant dense<0.000000e+00> : vector<8x8xf32>
    %799 = tpu.matmul %798, %784, %cst_305 {dimension_numbers = #tpu.dot_dimension_numbers<[1], [0], [0], [1], [0, 0, 1, 1], [], []>} : vector<8x8xf32>, vector<8x8xf32>, vector<8x8xf32> -> vector<8x8xf32>
    %800 = vector.extract_strided_slice %621 {offsets = [24, 0], sizes = [8, 32], strides = [1, 1]} : vector<32x32xf32> to vector<8x32xf32>
    %cst_306 = arith.constant dense<0.000000e+00> : vector<8x32xf32>
    %801 = tpu.matmul %799, %800, %cst_306 {dimension_numbers = #tpu.dot_dimension_numbers<[1], [0], [0], [1], [0, 0, 1, 1], [], []>} : vector<8x8xf32>, vector<8x32xf32>, vector<8x32xf32> -> vector<8x32xf32>
    %802 = arith.addf %781, %801 : vector<8x32xf32>
    %803 = tpu.concatenate %714, %802 in 0 : vector<8x32xf32>, vector<8x32xf32> -> vector<16x32xf32>
    %804 = vector.broadcast %623 : vector<1x32xf32> to vector<16x32xf32>
    %805 = arith.addf %803, %804 : vector<16x32xf32>
    %806 = arith.addf %1, %805 : vector<16x32xf32>
    %c0_307 = arith.constant 0 : index
    %c0_308 = arith.constant 0 : index
    %c0_309 = arith.constant 0 : index
    %807 = vector.load %arg14[%c0_307, %c0_308, %c0_309] : memref<2x1x32xf32, #tpu.memory_space<vmem>>, vector<1x1x32xf32>
    %808 = vector.shape_cast %807 : vector<1x1x32xf32> to vector<1x32xf32>
    %c0_310 = arith.constant 0 : index
    %c0_311 = arith.constant 0 : index
    %c0_312 = arith.constant 0 : index
    %809 = vector.load %arg13[%c0_310, %c0_311, %c0_312] : memref<2x1x32xf32, #tpu.memory_space<vmem>>, vector<1x1x32xf32>
    %810 = vector.shape_cast %809 : vector<1x1x32xf32> to vector<1x32xf32>
    %cst_313 = arith.constant dense<0.000000e+00> : vector<16xf32>
    %811 = vector.multi_reduction <add>, %806, %cst_313 [1] : vector<16x32xf32> to vector<16xf32>
    %812 = vector.shape_cast %811 : vector<16xf32> to vector<16x1xf32>
    %cst_314 = arith.constant 3.200000e+01 : f32
    %813 = vector.broadcast %cst_314 : f32 to vector<16x1xf32>
    %814 = arith.divf %812, %813 : vector<16x1xf32>
    %815 = vector.broadcast %814 : vector<16x1xf32> to vector<16x32xf32>
    %816 = arith.subf %806, %815 : vector<16x32xf32>
    %817 = arith.mulf %816, %816 : vector<16x32xf32>
    %cst_315 = arith.constant dense<0.000000e+00> : vector<16xf32>
    %818 = vector.multi_reduction <add>, %817, %cst_315 [1] : vector<16x32xf32> to vector<16xf32>
    %819 = vector.shape_cast %818 : vector<16xf32> to vector<16x1xf32>
    %cst_316 = arith.constant 3.200000e+01 : f32
    %820 = vector.broadcast %cst_316 : f32 to vector<16x1xf32>
    %821 = arith.divf %819, %820 : vector<16x1xf32>
    %822 = vector.broadcast %814 : vector<16x1xf32> to vector<16x32xf32>
    %823 = arith.subf %806, %822 : vector<16x32xf32>
    %cst_317 = arith.constant 9.99999997E-7 : f32
    %824 = vector.broadcast %cst_317 : f32 to vector<16x1xf32>
    %825 = arith.addf %821, %824 : vector<16x1xf32>
    %826 = math.rsqrt %825 : vector<16x1xf32>
    %827 = vector.broadcast %826 : vector<16x1xf32> to vector<16x32xf32>
    %828 = arith.mulf %823, %827 : vector<16x32xf32>
    %829 = vector.broadcast %808 : vector<1x32xf32> to vector<16x32xf32>
    %830 = arith.mulf %828, %829 : vector<16x32xf32>
    %831 = vector.broadcast %810 : vector<1x32xf32> to vector<16x32xf32>
    %832 = arith.addf %830, %831 : vector<16x32xf32>
    %c0_318 = arith.constant 0 : index
    %c0_319 = arith.constant 0 : index
    %c0_320 = arith.constant 0 : index
    %833 = vector.load %arg22[%c0_318, %c0_319, %c0_320] : memref<2x32x32xf32, #tpu.memory_space<vmem>>, vector<1x32x32xf32>
    %834 = vector.shape_cast %833 : vector<1x32x32xf32> to vector<32x32xf32>
    %c0_321 = arith.constant 0 : index
    %c0_322 = arith.constant 0 : index
    %c0_323 = arith.constant 0 : index
    %835 = vector.load %arg9[%c0_321, %c0_322, %c0_323] : memref<2x1x32xf32, #tpu.memory_space<vmem>>, vector<1x1x32xf32>
    %836 = vector.shape_cast %835 : vector<1x1x32xf32> to vector<1x32xf32>
    %c0_324 = arith.constant 0 : index
    %c0_325 = arith.constant 0 : index
    %c0_326 = arith.constant 0 : index
    %837 = vector.load %arg19[%c0_324, %c0_325, %c0_326] : memref<2x32x64xf32, #tpu.memory_space<vmem>>, vector<1x32x64xf32>
    %838 = vector.shape_cast %837 : vector<1x32x64xf32> to vector<32x64xf32>
    %c0_327 = arith.constant 0 : index
    %c0_328 = arith.constant 0 : index
    %c0_329 = arith.constant 0 : index
    %839 = vector.load %arg6[%c0_327, %c0_328, %c0_329] : memref<2x1x64xf32, #tpu.memory_space<vmem>>, vector<1x1x64xf32>
    %840 = vector.shape_cast %839 : vector<1x1x64xf32> to vector<1x64xf32>
    %c0_330 = arith.constant 0 : index
    %c0_331 = arith.constant 0 : index
    %c0_332 = arith.constant 0 : index
    %841 = vector.load %arg20[%c0_330, %c0_331, %c0_332] : memref<2x32x32xf32, #tpu.memory_space<vmem>>, vector<1x32x32xf32>
    %842 = vector.shape_cast %841 : vector<1x32x32xf32> to vector<32x32xf32>
    %c0_333 = arith.constant 0 : index
    %c0_334 = arith.constant 0 : index
    %c0_335 = arith.constant 0 : index
    %843 = vector.load %arg7[%c0_333, %c0_334, %c0_335] : memref<2x1x32xf32, #tpu.memory_space<vmem>>, vector<1x1x32xf32>
    %844 = vector.shape_cast %843 : vector<1x1x32xf32> to vector<1x32xf32>
    %cst_336 = arith.constant dense<0.000000e+00> : vector<16x32xf32>
    %845 = tpu.matmul %832, %834, %cst_336 {dimension_numbers = #tpu.dot_dimension_numbers<[1], [0], [0], [1], [0, 0, 1, 1], [], []>} : vector<16x32xf32>, vector<32x32xf32>, vector<16x32xf32> -> vector<16x32xf32>
    %846 = vector.broadcast %836 : vector<1x32xf32> to vector<16x32xf32>
    %847 = arith.addf %845, %846 : vector<16x32xf32>
    %cst_337 = arith.constant dense<0.000000e+00> : vector<16x64xf32>
    %848 = tpu.matmul %589, %838, %cst_337 {dimension_numbers = #tpu.dot_dimension_numbers<[1], [0], [0], [1], [0, 0, 1, 1], [], []>} : vector<16x32xf32>, vector<32x64xf32>, vector<16x64xf32> -> vector<16x64xf32>
    %849 = vector.broadcast %840 : vector<1x64xf32> to vector<16x64xf32>
    %850 = arith.addf %848, %849 : vector<16x64xf32>
    %851 = vector.extract_strided_slice %847 {offsets = [0, 0], sizes = [8, 32], strides = [1, 1]} : vector<16x32xf32> to vector<8x32xf32>
    %852 = vector.extract_strided_slice %850 {offsets = [0, 0], sizes = [8, 64], strides = [1, 1]} : vector<16x64xf32> to vector<8x64xf32>
    %cst_338 = arith.constant 0.000000e+00 : f32
    %853 = vector.broadcast %cst_338 : f32 to vector<8x32xf32>
    %854 = vector.extract_strided_slice %851 {offsets = [0, 0], sizes = [8, 8], strides = [1, 1]} : vector<8x32xf32> to vector<8x8xf32>
    %855 = vector.extract_strided_slice %852 {offsets = [0, 0], sizes = [8, 8], strides = [1, 1]} : vector<8x64xf32> to vector<8x8xf32>
    %856 = vector.extract_strided_slice %852 {offsets = [0, 32], sizes = [8, 8], strides = [1, 1]} : vector<8x64xf32> to vector<8x8xf32>
    %cst_339 = arith.constant dense<0.000000e+00> : vector<8x8xf32>
    %857 = tpu.matmul %854, %855, %cst_339 {dimension_numbers = #tpu.dot_dimension_numbers<[1], [1], [0], [0], [0, 0, 1, 0], [], []>} : vector<8x8xf32>, vector<8x8xf32>, vector<8x8xf32> -> vector<8x8xf32>
    %cst_340 = arith.constant 0.353553385 : f32
    %858 = vector.broadcast %cst_340 : f32 to vector<8x8xf32>
    %859 = arith.mulf %857, %858 : vector<8x8xf32>
    %860 = vector.broadcast %8 : vector<1x8xf32> to vector<8x8xf32>
    %861 = arith.addf %859, %860 : vector<8x8xf32>
    %cst_341 = arith.constant dense<0xFF800000> : vector<8xf32>
    %862 = vector.multi_reduction <maximumf>, %861, %cst_341 [1] : vector<8x8xf32> to vector<8xf32>
    %863 = vector.shape_cast %862 : vector<8xf32> to vector<8x1xf32>
    %864 = vector.broadcast %863 : vector<8x1xf32> to vector<8x8xf32>
    %865 = arith.subf %861, %864 : vector<8x8xf32>
    %866 = math.exp %865 : vector<8x8xf32>
    %cst_342 = arith.constant dense<0.000000e+00> : vector<8xf32>
    %867 = vector.multi_reduction <add>, %866, %cst_342 [1] : vector<8x8xf32> to vector<8xf32>
    %868 = vector.shape_cast %867 : vector<8xf32> to vector<8x1xf32>
    %869 = tpu.reciprocal %868 {approx = true} : vector<8x1xf32> -> vector<8x1xf32>
    %870 = vector.broadcast %869 : vector<8x1xf32> to vector<8x8xf32>
    %871 = arith.mulf %866, %870 : vector<8x8xf32>
    %cst_343 = arith.constant dense<0.000000e+00> : vector<8x8xf32>
    %872 = tpu.matmul %871, %856, %cst_343 {dimension_numbers = #tpu.dot_dimension_numbers<[1], [0], [0], [1], [0, 0, 1, 1], [], []>} : vector<8x8xf32>, vector<8x8xf32>, vector<8x8xf32> -> vector<8x8xf32>
    %873 = vector.extract_strided_slice %842 {offsets = [0, 0], sizes = [8, 32], strides = [1, 1]} : vector<32x32xf32> to vector<8x32xf32>
    %cst_344 = arith.constant dense<0.000000e+00> : vector<8x32xf32>
    %874 = tpu.matmul %872, %873, %cst_344 {dimension_numbers = #tpu.dot_dimension_numbers<[1], [0], [0], [1], [0, 0, 1, 1], [], []>} : vector<8x8xf32>, vector<8x32xf32>, vector<8x32xf32> -> vector<8x32xf32>
    %875 = arith.addf %853, %874 : vector<8x32xf32>
    %876 = vector.extract_strided_slice %851 {offsets = [0, 8], sizes = [8, 8], strides = [1, 1]} : vector<8x32xf32> to vector<8x8xf32>
    %877 = vector.extract_strided_slice %852 {offsets = [0, 8], sizes = [8, 8], strides = [1, 1]} : vector<8x64xf32> to vector<8x8xf32>
    %878 = vector.extract_strided_slice %852 {offsets = [0, 40], sizes = [8, 8], strides = [1, 1]} : vector<8x64xf32> to vector<8x8xf32>
    %cst_345 = arith.constant dense<0.000000e+00> : vector<8x8xf32>
    %879 = tpu.matmul %876, %877, %cst_345 {dimension_numbers = #tpu.dot_dimension_numbers<[1], [1], [0], [0], [0, 0, 1, 0], [], []>} : vector<8x8xf32>, vector<8x8xf32>, vector<8x8xf32> -> vector<8x8xf32>
    %cst_346 = arith.constant 0.353553385 : f32
    %880 = vector.broadcast %cst_346 : f32 to vector<8x8xf32>
    %881 = arith.mulf %879, %880 : vector<8x8xf32>
    %882 = vector.broadcast %8 : vector<1x8xf32> to vector<8x8xf32>
    %883 = arith.addf %881, %882 : vector<8x8xf32>
    %cst_347 = arith.constant dense<0xFF800000> : vector<8xf32>
    %884 = vector.multi_reduction <maximumf>, %883, %cst_347 [1] : vector<8x8xf32> to vector<8xf32>
    %885 = vector.shape_cast %884 : vector<8xf32> to vector<8x1xf32>
    %886 = vector.broadcast %885 : vector<8x1xf32> to vector<8x8xf32>
    %887 = arith.subf %883, %886 : vector<8x8xf32>
    %888 = math.exp %887 : vector<8x8xf32>
    %cst_348 = arith.constant dense<0.000000e+00> : vector<8xf32>
    %889 = vector.multi_reduction <add>, %888, %cst_348 [1] : vector<8x8xf32> to vector<8xf32>
    %890 = vector.shape_cast %889 : vector<8xf32> to vector<8x1xf32>
    %891 = tpu.reciprocal %890 {approx = true} : vector<8x1xf32> -> vector<8x1xf32>
    %892 = vector.broadcast %891 : vector<8x1xf32> to vector<8x8xf32>
    %893 = arith.mulf %888, %892 : vector<8x8xf32>
    %cst_349 = arith.constant dense<0.000000e+00> : vector<8x8xf32>
    %894 = tpu.matmul %893, %878, %cst_349 {dimension_numbers = #tpu.dot_dimension_numbers<[1], [0], [0], [1], [0, 0, 1, 1], [], []>} : vector<8x8xf32>, vector<8x8xf32>, vector<8x8xf32> -> vector<8x8xf32>
    %895 = vector.extract_strided_slice %842 {offsets = [8, 0], sizes = [8, 32], strides = [1, 1]} : vector<32x32xf32> to vector<8x32xf32>
    %cst_350 = arith.constant dense<0.000000e+00> : vector<8x32xf32>
    %896 = tpu.matmul %894, %895, %cst_350 {dimension_numbers = #tpu.dot_dimension_numbers<[1], [0], [0], [1], [0, 0, 1, 1], [], []>} : vector<8x8xf32>, vector<8x32xf32>, vector<8x32xf32> -> vector<8x32xf32>
    %897 = arith.addf %875, %896 : vector<8x32xf32>
    %898 = vector.extract_strided_slice %851 {offsets = [0, 16], sizes = [8, 8], strides = [1, 1]} : vector<8x32xf32> to vector<8x8xf32>
    %899 = vector.extract_strided_slice %852 {offsets = [0, 16], sizes = [8, 8], strides = [1, 1]} : vector<8x64xf32> to vector<8x8xf32>
    %900 = vector.extract_strided_slice %852 {offsets = [0, 48], sizes = [8, 8], strides = [1, 1]} : vector<8x64xf32> to vector<8x8xf32>
    %cst_351 = arith.constant dense<0.000000e+00> : vector<8x8xf32>
    %901 = tpu.matmul %898, %899, %cst_351 {dimension_numbers = #tpu.dot_dimension_numbers<[1], [1], [0], [0], [0, 0, 1, 0], [], []>} : vector<8x8xf32>, vector<8x8xf32>, vector<8x8xf32> -> vector<8x8xf32>
    %cst_352 = arith.constant 0.353553385 : f32
    %902 = vector.broadcast %cst_352 : f32 to vector<8x8xf32>
    %903 = arith.mulf %901, %902 : vector<8x8xf32>
    %904 = vector.broadcast %8 : vector<1x8xf32> to vector<8x8xf32>
    %905 = arith.addf %903, %904 : vector<8x8xf32>
    %cst_353 = arith.constant dense<0xFF800000> : vector<8xf32>
    %906 = vector.multi_reduction <maximumf>, %905, %cst_353 [1] : vector<8x8xf32> to vector<8xf32>
    %907 = vector.shape_cast %906 : vector<8xf32> to vector<8x1xf32>
    %908 = vector.broadcast %907 : vector<8x1xf32> to vector<8x8xf32>
    %909 = arith.subf %905, %908 : vector<8x8xf32>
    %910 = math.exp %909 : vector<8x8xf32>
    %cst_354 = arith.constant dense<0.000000e+00> : vector<8xf32>
    %911 = vector.multi_reduction <add>, %910, %cst_354 [1] : vector<8x8xf32> to vector<8xf32>
    %912 = vector.shape_cast %911 : vector<8xf32> to vector<8x1xf32>
    %913 = tpu.reciprocal %912 {approx = true} : vector<8x1xf32> -> vector<8x1xf32>
    %914 = vector.broadcast %913 : vector<8x1xf32> to vector<8x8xf32>
    %915 = arith.mulf %910, %914 : vector<8x8xf32>
    %cst_355 = arith.constant dense<0.000000e+00> : vector<8x8xf32>
    %916 = tpu.matmul %915, %900, %cst_355 {dimension_numbers = #tpu.dot_dimension_numbers<[1], [0], [0], [1], [0, 0, 1, 1], [], []>} : vector<8x8xf32>, vector<8x8xf32>, vector<8x8xf32> -> vector<8x8xf32>
    %917 = vector.extract_strided_slice %842 {offsets = [16, 0], sizes = [8, 32], strides = [1, 1]} : vector<32x32xf32> to vector<8x32xf32>
    %cst_356 = arith.constant dense<0.000000e+00> : vector<8x32xf32>
    %918 = tpu.matmul %916, %917, %cst_356 {dimension_numbers = #tpu.dot_dimension_numbers<[1], [0], [0], [1], [0, 0, 1, 1], [], []>} : vector<8x8xf32>, vector<8x32xf32>, vector<8x32xf32> -> vector<8x32xf32>
    %919 = arith.addf %897, %918 : vector<8x32xf32>
    %920 = vector.extract_strided_slice %851 {offsets = [0, 24], sizes = [8, 8], strides = [1, 1]} : vector<8x32xf32> to vector<8x8xf32>
    %921 = vector.extract_strided_slice %852 {offsets = [0, 24], sizes = [8, 8], strides = [1, 1]} : vector<8x64xf32> to vector<8x8xf32>
    %922 = vector.extract_strided_slice %852 {offsets = [0, 56], sizes = [8, 8], strides = [1, 1]} : vector<8x64xf32> to vector<8x8xf32>
    %cst_357 = arith.constant dense<0.000000e+00> : vector<8x8xf32>
    %923 = tpu.matmul %920, %921, %cst_357 {dimension_numbers = #tpu.dot_dimension_numbers<[1], [1], [0], [0], [0, 0, 1, 0], [], []>} : vector<8x8xf32>, vector<8x8xf32>, vector<8x8xf32> -> vector<8x8xf32>
    %cst_358 = arith.constant 0.353553385 : f32
    %924 = vector.broadcast %cst_358 : f32 to vector<8x8xf32>
    %925 = arith.mulf %923, %924 : vector<8x8xf32>
    %926 = vector.broadcast %8 : vector<1x8xf32> to vector<8x8xf32>
    %927 = arith.addf %925, %926 : vector<8x8xf32>
    %cst_359 = arith.constant dense<0xFF800000> : vector<8xf32>
    %928 = vector.multi_reduction <maximumf>, %927, %cst_359 [1] : vector<8x8xf32> to vector<8xf32>
    %929 = vector.shape_cast %928 : vector<8xf32> to vector<8x1xf32>
    %930 = vector.broadcast %929 : vector<8x1xf32> to vector<8x8xf32>
    %931 = arith.subf %927, %930 : vector<8x8xf32>
    %932 = math.exp %931 : vector<8x8xf32>
    %cst_360 = arith.constant dense<0.000000e+00> : vector<8xf32>
    %933 = vector.multi_reduction <add>, %932, %cst_360 [1] : vector<8x8xf32> to vector<8xf32>
    %934 = vector.shape_cast %933 : vector<8xf32> to vector<8x1xf32>
    %935 = tpu.reciprocal %934 {approx = true} : vector<8x1xf32> -> vector<8x1xf32>
    %936 = vector.broadcast %935 : vector<8x1xf32> to vector<8x8xf32>
    %937 = arith.mulf %932, %936 : vector<8x8xf32>
    %cst_361 = arith.constant dense<0.000000e+00> : vector<8x8xf32>
    %938 = tpu.matmul %937, %922, %cst_361 {dimension_numbers = #tpu.dot_dimension_numbers<[1], [0], [0], [1], [0, 0, 1, 1], [], []>} : vector<8x8xf32>, vector<8x8xf32>, vector<8x8xf32> -> vector<8x8xf32>
    %939 = vector.extract_strided_slice %842 {offsets = [24, 0], sizes = [8, 32], strides = [1, 1]} : vector<32x32xf32> to vector<8x32xf32>
    %cst_362 = arith.constant dense<0.000000e+00> : vector<8x32xf32>
    %940 = tpu.matmul %938, %939, %cst_362 {dimension_numbers = #tpu.dot_dimension_numbers<[1], [0], [0], [1], [0, 0, 1, 1], [], []>} : vector<8x8xf32>, vector<8x32xf32>, vector<8x32xf32> -> vector<8x32xf32>
    %941 = arith.addf %919, %940 : vector<8x32xf32>
    %942 = vector.extract_strided_slice %847 {offsets = [8, 0], sizes = [8, 32], strides = [1, 1]} : vector<16x32xf32> to vector<8x32xf32>
    %943 = vector.extract_strided_slice %850 {offsets = [8, 0], sizes = [8, 64], strides = [1, 1]} : vector<16x64xf32> to vector<8x64xf32>
    %cst_363 = arith.constant 0.000000e+00 : f32
    %944 = vector.broadcast %cst_363 : f32 to vector<8x32xf32>
    %945 = vector.extract_strided_slice %942 {offsets = [0, 0], sizes = [8, 8], strides = [1, 1]} : vector<8x32xf32> to vector<8x8xf32>
    %946 = vector.extract_strided_slice %943 {offsets = [0, 0], sizes = [8, 8], strides = [1, 1]} : vector<8x64xf32> to vector<8x8xf32>
    %947 = vector.extract_strided_slice %943 {offsets = [0, 32], sizes = [8, 8], strides = [1, 1]} : vector<8x64xf32> to vector<8x8xf32>
    %cst_364 = arith.constant dense<0.000000e+00> : vector<8x8xf32>
    %948 = tpu.matmul %945, %946, %cst_364 {dimension_numbers = #tpu.dot_dimension_numbers<[1], [1], [0], [0], [0, 0, 1, 0], [], []>} : vector<8x8xf32>, vector<8x8xf32>, vector<8x8xf32> -> vector<8x8xf32>
    %cst_365 = arith.constant 0.353553385 : f32
    %949 = vector.broadcast %cst_365 : f32 to vector<8x8xf32>
    %950 = arith.mulf %948, %949 : vector<8x8xf32>
    %951 = vector.broadcast %15 : vector<1x8xf32> to vector<8x8xf32>
    %952 = arith.addf %950, %951 : vector<8x8xf32>
    %cst_366 = arith.constant dense<0xFF800000> : vector<8xf32>
    %953 = vector.multi_reduction <maximumf>, %952, %cst_366 [1] : vector<8x8xf32> to vector<8xf32>
    %954 = vector.shape_cast %953 : vector<8xf32> to vector<8x1xf32>
    %955 = vector.broadcast %954 : vector<8x1xf32> to vector<8x8xf32>
    %956 = arith.subf %952, %955 : vector<8x8xf32>
    %957 = math.exp %956 : vector<8x8xf32>
    %cst_367 = arith.constant dense<0.000000e+00> : vector<8xf32>
    %958 = vector.multi_reduction <add>, %957, %cst_367 [1] : vector<8x8xf32> to vector<8xf32>
    %959 = vector.shape_cast %958 : vector<8xf32> to vector<8x1xf32>
    %960 = tpu.reciprocal %959 {approx = true} : vector<8x1xf32> -> vector<8x1xf32>
    %961 = vector.broadcast %960 : vector<8x1xf32> to vector<8x8xf32>
    %962 = arith.mulf %957, %961 : vector<8x8xf32>
    %cst_368 = arith.constant dense<0.000000e+00> : vector<8x8xf32>
    %963 = tpu.matmul %962, %947, %cst_368 {dimension_numbers = #tpu.dot_dimension_numbers<[1], [0], [0], [1], [0, 0, 1, 1], [], []>} : vector<8x8xf32>, vector<8x8xf32>, vector<8x8xf32> -> vector<8x8xf32>
    %964 = vector.extract_strided_slice %842 {offsets = [0, 0], sizes = [8, 32], strides = [1, 1]} : vector<32x32xf32> to vector<8x32xf32>
    %cst_369 = arith.constant dense<0.000000e+00> : vector<8x32xf32>
    %965 = tpu.matmul %963, %964, %cst_369 {dimension_numbers = #tpu.dot_dimension_numbers<[1], [0], [0], [1], [0, 0, 1, 1], [], []>} : vector<8x8xf32>, vector<8x32xf32>, vector<8x32xf32> -> vector<8x32xf32>
    %966 = arith.addf %944, %965 : vector<8x32xf32>
    %967 = vector.extract_strided_slice %942 {offsets = [0, 8], sizes = [8, 8], strides = [1, 1]} : vector<8x32xf32> to vector<8x8xf32>
    %968 = vector.extract_strided_slice %943 {offsets = [0, 8], sizes = [8, 8], strides = [1, 1]} : vector<8x64xf32> to vector<8x8xf32>
    %969 = vector.extract_strided_slice %943 {offsets = [0, 40], sizes = [8, 8], strides = [1, 1]} : vector<8x64xf32> to vector<8x8xf32>
    %cst_370 = arith.constant dense<0.000000e+00> : vector<8x8xf32>
    %970 = tpu.matmul %967, %968, %cst_370 {dimension_numbers = #tpu.dot_dimension_numbers<[1], [1], [0], [0], [0, 0, 1, 0], [], []>} : vector<8x8xf32>, vector<8x8xf32>, vector<8x8xf32> -> vector<8x8xf32>
    %cst_371 = arith.constant 0.353553385 : f32
    %971 = vector.broadcast %cst_371 : f32 to vector<8x8xf32>
    %972 = arith.mulf %970, %971 : vector<8x8xf32>
    %973 = vector.broadcast %15 : vector<1x8xf32> to vector<8x8xf32>
    %974 = arith.addf %972, %973 : vector<8x8xf32>
    %cst_372 = arith.constant dense<0xFF800000> : vector<8xf32>
    %975 = vector.multi_reduction <maximumf>, %974, %cst_372 [1] : vector<8x8xf32> to vector<8xf32>
    %976 = vector.shape_cast %975 : vector<8xf32> to vector<8x1xf32>
    %977 = vector.broadcast %976 : vector<8x1xf32> to vector<8x8xf32>
    %978 = arith.subf %974, %977 : vector<8x8xf32>
    %979 = math.exp %978 : vector<8x8xf32>
    %cst_373 = arith.constant dense<0.000000e+00> : vector<8xf32>
    %980 = vector.multi_reduction <add>, %979, %cst_373 [1] : vector<8x8xf32> to vector<8xf32>
    %981 = vector.shape_cast %980 : vector<8xf32> to vector<8x1xf32>
    %982 = tpu.reciprocal %981 {approx = true} : vector<8x1xf32> -> vector<8x1xf32>
    %983 = vector.broadcast %982 : vector<8x1xf32> to vector<8x8xf32>
    %984 = arith.mulf %979, %983 : vector<8x8xf32>
    %cst_374 = arith.constant dense<0.000000e+00> : vector<8x8xf32>
    %985 = tpu.matmul %984, %969, %cst_374 {dimension_numbers = #tpu.dot_dimension_numbers<[1], [0], [0], [1], [0, 0, 1, 1], [], []>} : vector<8x8xf32>, vector<8x8xf32>, vector<8x8xf32> -> vector<8x8xf32>
    %986 = vector.extract_strided_slice %842 {offsets = [8, 0], sizes = [8, 32], strides = [1, 1]} : vector<32x32xf32> to vector<8x32xf32>
    %cst_375 = arith.constant dense<0.000000e+00> : vector<8x32xf32>
    %987 = tpu.matmul %985, %986, %cst_375 {dimension_numbers = #tpu.dot_dimension_numbers<[1], [0], [0], [1], [0, 0, 1, 1], [], []>} : vector<8x8xf32>, vector<8x32xf32>, vector<8x32xf32> -> vector<8x32xf32>
    %988 = arith.addf %966, %987 : vector<8x32xf32>
    %989 = vector.extract_strided_slice %942 {offsets = [0, 16], sizes = [8, 8], strides = [1, 1]} : vector<8x32xf32> to vector<8x8xf32>
    %990 = vector.extract_strided_slice %943 {offsets = [0, 16], sizes = [8, 8], strides = [1, 1]} : vector<8x64xf32> to vector<8x8xf32>
    %991 = vector.extract_strided_slice %943 {offsets = [0, 48], sizes = [8, 8], strides = [1, 1]} : vector<8x64xf32> to vector<8x8xf32>
    %cst_376 = arith.constant dense<0.000000e+00> : vector<8x8xf32>
    %992 = tpu.matmul %989, %990, %cst_376 {dimension_numbers = #tpu.dot_dimension_numbers<[1], [1], [0], [0], [0, 0, 1, 0], [], []>} : vector<8x8xf32>, vector<8x8xf32>, vector<8x8xf32> -> vector<8x8xf32>
    %cst_377 = arith.constant 0.353553385 : f32
    %993 = vector.broadcast %cst_377 : f32 to vector<8x8xf32>
    %994 = arith.mulf %992, %993 : vector<8x8xf32>
    %995 = vector.broadcast %15 : vector<1x8xf32> to vector<8x8xf32>
    %996 = arith.addf %994, %995 : vector<8x8xf32>
    %cst_378 = arith.constant dense<0xFF800000> : vector<8xf32>
    %997 = vector.multi_reduction <maximumf>, %996, %cst_378 [1] : vector<8x8xf32> to vector<8xf32>
    %998 = vector.shape_cast %997 : vector<8xf32> to vector<8x1xf32>
    %999 = vector.broadcast %998 : vector<8x1xf32> to vector<8x8xf32>
    %1000 = arith.subf %996, %999 : vector<8x8xf32>
    %1001 = math.exp %1000 : vector<8x8xf32>
    %cst_379 = arith.constant dense<0.000000e+00> : vector<8xf32>
    %1002 = vector.multi_reduction <add>, %1001, %cst_379 [1] : vector<8x8xf32> to vector<8xf32>
    %1003 = vector.shape_cast %1002 : vector<8xf32> to vector<8x1xf32>
    %1004 = tpu.reciprocal %1003 {approx = true} : vector<8x1xf32> -> vector<8x1xf32>
    %1005 = vector.broadcast %1004 : vector<8x1xf32> to vector<8x8xf32>
    %1006 = arith.mulf %1001, %1005 : vector<8x8xf32>
    %cst_380 = arith.constant dense<0.000000e+00> : vector<8x8xf32>
    %1007 = tpu.matmul %1006, %991, %cst_380 {dimension_numbers = #tpu.dot_dimension_numbers<[1], [0], [0], [1], [0, 0, 1, 1], [], []>} : vector<8x8xf32>, vector<8x8xf32>, vector<8x8xf32> -> vector<8x8xf32>
    %1008 = vector.extract_strided_slice %842 {offsets = [16, 0], sizes = [8, 32], strides = [1, 1]} : vector<32x32xf32> to vector<8x32xf32>
    %cst_381 = arith.constant dense<0.000000e+00> : vector<8x32xf32>
    %1009 = tpu.matmul %1007, %1008, %cst_381 {dimension_numbers = #tpu.dot_dimension_numbers<[1], [0], [0], [1], [0, 0, 1, 1], [], []>} : vector<8x8xf32>, vector<8x32xf32>, vector<8x32xf32> -> vector<8x32xf32>
    %1010 = arith.addf %988, %1009 : vector<8x32xf32>
    %1011 = vector.extract_strided_slice %942 {offsets = [0, 24], sizes = [8, 8], strides = [1, 1]} : vector<8x32xf32> to vector<8x8xf32>
    %1012 = vector.extract_strided_slice %943 {offsets = [0, 24], sizes = [8, 8], strides = [1, 1]} : vector<8x64xf32> to vector<8x8xf32>
    %1013 = vector.extract_strided_slice %943 {offsets = [0, 56], sizes = [8, 8], strides = [1, 1]} : vector<8x64xf32> to vector<8x8xf32>
    %cst_382 = arith.constant dense<0.000000e+00> : vector<8x8xf32>
    %1014 = tpu.matmul %1011, %1012, %cst_382 {dimension_numbers = #tpu.dot_dimension_numbers<[1], [1], [0], [0], [0, 0, 1, 0], [], []>} : vector<8x8xf32>, vector<8x8xf32>, vector<8x8xf32> -> vector<8x8xf32>
    %cst_383 = arith.constant 0.353553385 : f32
    %1015 = vector.broadcast %cst_383 : f32 to vector<8x8xf32>
    %1016 = arith.mulf %1014, %1015 : vector<8x8xf32>
    %1017 = vector.broadcast %15 : vector<1x8xf32> to vector<8x8xf32>
    %1018 = arith.addf %1016, %1017 : vector<8x8xf32>
    %cst_384 = arith.constant dense<0xFF800000> : vector<8xf32>
    %1019 = vector.multi_reduction <maximumf>, %1018, %cst_384 [1] : vector<8x8xf32> to vector<8xf32>
    %1020 = vector.shape_cast %1019 : vector<8xf32> to vector<8x1xf32>
    %1021 = vector.broadcast %1020 : vector<8x1xf32> to vector<8x8xf32>
    %1022 = arith.subf %1018, %1021 : vector<8x8xf32>
    %1023 = math.exp %1022 : vector<8x8xf32>
    %cst_385 = arith.constant dense<0.000000e+00> : vector<8xf32>
    %1024 = vector.multi_reduction <add>, %1023, %cst_385 [1] : vector<8x8xf32> to vector<8xf32>
    %1025 = vector.shape_cast %1024 : vector<8xf32> to vector<8x1xf32>
    %1026 = tpu.reciprocal %1025 {approx = true} : vector<8x1xf32> -> vector<8x1xf32>
    %1027 = vector.broadcast %1026 : vector<8x1xf32> to vector<8x8xf32>
    %1028 = arith.mulf %1023, %1027 : vector<8x8xf32>
    %cst_386 = arith.constant dense<0.000000e+00> : vector<8x8xf32>
    %1029 = tpu.matmul %1028, %1013, %cst_386 {dimension_numbers = #tpu.dot_dimension_numbers<[1], [0], [0], [1], [0, 0, 1, 1], [], []>} : vector<8x8xf32>, vector<8x8xf32>, vector<8x8xf32> -> vector<8x8xf32>
    %1030 = vector.extract_strided_slice %842 {offsets = [24, 0], sizes = [8, 32], strides = [1, 1]} : vector<32x32xf32> to vector<8x32xf32>
    %cst_387 = arith.constant dense<0.000000e+00> : vector<8x32xf32>
    %1031 = tpu.matmul %1029, %1030, %cst_387 {dimension_numbers = #tpu.dot_dimension_numbers<[1], [0], [0], [1], [0, 0, 1, 1], [], []>} : vector<8x8xf32>, vector<8x32xf32>, vector<8x32xf32> -> vector<8x32xf32>
    %1032 = arith.addf %1010, %1031 : vector<8x32xf32>
    %1033 = tpu.concatenate %941, %1032 in 0 : vector<8x32xf32>, vector<8x32xf32> -> vector<16x32xf32>
    %1034 = vector.broadcast %844 : vector<1x32xf32> to vector<16x32xf32>
    %1035 = arith.addf %1033, %1034 : vector<16x32xf32>
    %1036 = arith.addf %806, %1035 : vector<16x32xf32>
    %c0_388 = arith.constant 0 : index
    %c0_389 = arith.constant 0 : index
    %c0_390 = arith.constant 0 : index
    %1037 = vector.load %arg16[%c0_388, %c0_389, %c0_390] : memref<2x1x32xf32, #tpu.memory_space<vmem>>, vector<1x1x32xf32>
    %1038 = vector.shape_cast %1037 : vector<1x1x32xf32> to vector<1x32xf32>
    %c0_391 = arith.constant 0 : index
    %c0_392 = arith.constant 0 : index
    %c0_393 = arith.constant 0 : index
    %1039 = vector.load %arg15[%c0_391, %c0_392, %c0_393] : memref<2x1x32xf32, #tpu.memory_space<vmem>>, vector<1x1x32xf32>
    %1040 = vector.shape_cast %1039 : vector<1x1x32xf32> to vector<1x32xf32>
    %cst_394 = arith.constant dense<0.000000e+00> : vector<16xf32>
    %1041 = vector.multi_reduction <add>, %1036, %cst_394 [1] : vector<16x32xf32> to vector<16xf32>
    %1042 = vector.shape_cast %1041 : vector<16xf32> to vector<16x1xf32>
    %cst_395 = arith.constant 3.200000e+01 : f32
    %1043 = vector.broadcast %cst_395 : f32 to vector<16x1xf32>
    %1044 = arith.divf %1042, %1043 : vector<16x1xf32>
    %1045 = vector.broadcast %1044 : vector<16x1xf32> to vector<16x32xf32>
    %1046 = arith.subf %1036, %1045 : vector<16x32xf32>
    %1047 = arith.mulf %1046, %1046 : vector<16x32xf32>
    %cst_396 = arith.constant dense<0.000000e+00> : vector<16xf32>
    %1048 = vector.multi_reduction <add>, %1047, %cst_396 [1] : vector<16x32xf32> to vector<16xf32>
    %1049 = vector.shape_cast %1048 : vector<16xf32> to vector<16x1xf32>
    %cst_397 = arith.constant 3.200000e+01 : f32
    %1050 = vector.broadcast %cst_397 : f32 to vector<16x1xf32>
    %1051 = arith.divf %1049, %1050 : vector<16x1xf32>
    %1052 = vector.broadcast %1044 : vector<16x1xf32> to vector<16x32xf32>
    %1053 = arith.subf %1036, %1052 : vector<16x32xf32>
    %cst_398 = arith.constant 9.99999997E-7 : f32
    %1054 = vector.broadcast %cst_398 : f32 to vector<16x1xf32>
    %1055 = arith.addf %1051, %1054 : vector<16x1xf32>
    %1056 = math.rsqrt %1055 : vector<16x1xf32>
    %1057 = vector.broadcast %1056 : vector<16x1xf32> to vector<16x32xf32>
    %1058 = arith.mulf %1053, %1057 : vector<16x32xf32>
    %1059 = vector.broadcast %1038 : vector<1x32xf32> to vector<16x32xf32>
    %1060 = arith.mulf %1058, %1059 : vector<16x32xf32>
    %1061 = vector.broadcast %1040 : vector<1x32xf32> to vector<16x32xf32>
    %1062 = arith.addf %1060, %1061 : vector<16x32xf32>
    %c0_399 = arith.constant 0 : index
    %c0_400 = arith.constant 0 : index
    %c0_401 = arith.constant 0 : index
    %1063 = vector.load %arg17[%c0_399, %c0_400, %c0_401] : memref<2x32x64xf32, #tpu.memory_space<vmem>>, vector<1x32x64xf32>
    %1064 = vector.shape_cast %1063 : vector<1x32x64xf32> to vector<32x64xf32>
    %c0_402 = arith.constant 0 : index
    %c0_403 = arith.constant 0 : index
    %c0_404 = arith.constant 0 : index
    %1065 = vector.load %arg4[%c0_402, %c0_403, %c0_404] : memref<2x1x64xf32, #tpu.memory_space<vmem>>, vector<1x1x64xf32>
    %1066 = vector.shape_cast %1065 : vector<1x1x64xf32> to vector<1x64xf32>
    %c0_405 = arith.constant 0 : index
    %c0_406 = arith.constant 0 : index
    %c0_407 = arith.constant 0 : index
    %1067 = vector.load %arg18[%c0_405, %c0_406, %c0_407] : memref<2x64x32xf32, #tpu.memory_space<vmem>>, vector<1x64x32xf32>
    %1068 = vector.shape_cast %1067 : vector<1x64x32xf32> to vector<64x32xf32>
    %c0_408 = arith.constant 0 : index
    %c0_409 = arith.constant 0 : index
    %c0_410 = arith.constant 0 : index
    %1069 = vector.load %arg5[%c0_408, %c0_409, %c0_410] : memref<2x1x32xf32, #tpu.memory_space<vmem>>, vector<1x1x32xf32>
    %1070 = vector.shape_cast %1069 : vector<1x1x32xf32> to vector<1x32xf32>
    %cst_411 = arith.constant dense<0.000000e+00> : vector<16x64xf32>
    %1071 = tpu.matmul %1062, %1064, %cst_411 {dimension_numbers = #tpu.dot_dimension_numbers<[1], [0], [0], [1], [0, 0, 1, 1], [], []>} : vector<16x32xf32>, vector<32x64xf32>, vector<16x64xf32> -> vector<16x64xf32>
    %1072 = vector.broadcast %1066 : vector<1x64xf32> to vector<16x64xf32>
    %1073 = arith.addf %1071, %1072 : vector<16x64xf32>
    %cst_412 = arith.constant 0.000000e+00 : f32
    %1074 = vector.broadcast %cst_412 : f32 to vector<16x64xf32>
    %1075 = arith.maximumf %1073, %1074 : vector<16x64xf32>
    %cst_413 = arith.constant dense<0.000000e+00> : vector<16x32xf32>
    %1076 = tpu.matmul %1075, %1068, %cst_413 {dimension_numbers = #tpu.dot_dimension_numbers<[1], [0], [0], [1], [0, 0, 1, 1], [], []>} : vector<16x64xf32>, vector<64x32xf32>, vector<16x32xf32> -> vector<16x32xf32>
    %1077 = vector.broadcast %1070 : vector<1x32xf32> to vector<16x32xf32>
    %1078 = arith.addf %1076, %1077 : vector<16x32xf32>
    %1079 = arith.addf %1036, %1078 : vector<16x32xf32>
    %c1_414 = arith.constant 1 : index
    %c0_415 = arith.constant 0 : index
    %c0_416 = arith.constant 0 : index
    %1080 = vector.load %arg12[%c1_414, %c0_415, %c0_416] : memref<2x1x32xf32, #tpu.memory_space<vmem>>, vector<1x1x32xf32>
    %1081 = vector.shape_cast %1080 : vector<1x1x32xf32> to vector<1x32xf32>
    %c1_417 = arith.constant 1 : index
    %c0_418 = arith.constant 0 : index
    %c0_419 = arith.constant 0 : index
    %1082 = vector.load %arg11[%c1_417, %c0_418, %c0_419] : memref<2x1x32xf32, #tpu.memory_space<vmem>>, vector<1x1x32xf32>
    %1083 = vector.shape_cast %1082 : vector<1x1x32xf32> to vector<1x32xf32>
    %cst_420 = arith.constant dense<0.000000e+00> : vector<16xf32>
    %1084 = vector.multi_reduction <add>, %1079, %cst_420 [1] : vector<16x32xf32> to vector<16xf32>
    %1085 = vector.shape_cast %1084 : vector<16xf32> to vector<16x1xf32>
    %cst_421 = arith.constant 3.200000e+01 : f32
    %1086 = vector.broadcast %cst_421 : f32 to vector<16x1xf32>
    %1087 = arith.divf %1085, %1086 : vector<16x1xf32>
    %1088 = vector.broadcast %1087 : vector<16x1xf32> to vector<16x32xf32>
    %1089 = arith.subf %1079, %1088 : vector<16x32xf32>
    %1090 = arith.mulf %1089, %1089 : vector<16x32xf32>
    %cst_422 = arith.constant dense<0.000000e+00> : vector<16xf32>
    %1091 = vector.multi_reduction <add>, %1090, %cst_422 [1] : vector<16x32xf32> to vector<16xf32>
    %1092 = vector.shape_cast %1091 : vector<16xf32> to vector<16x1xf32>
    %cst_423 = arith.constant 3.200000e+01 : f32
    %1093 = vector.broadcast %cst_423 : f32 to vector<16x1xf32>
    %1094 = arith.divf %1092, %1093 : vector<16x1xf32>
    %1095 = vector.broadcast %1087 : vector<16x1xf32> to vector<16x32xf32>
    %1096 = arith.subf %1079, %1095 : vector<16x32xf32>
    %cst_424 = arith.constant 9.99999997E-7 : f32
    %1097 = vector.broadcast %cst_424 : f32 to vector<16x1xf32>
    %1098 = arith.addf %1094, %1097 : vector<16x1xf32>
    %1099 = math.rsqrt %1098 : vector<16x1xf32>
    %1100 = vector.broadcast %1099 : vector<16x1xf32> to vector<16x32xf32>
    %1101 = arith.mulf %1096, %1100 : vector<16x32xf32>
    %1102 = vector.broadcast %1081 : vector<1x32xf32> to vector<16x32xf32>
    %1103 = arith.mulf %1101, %1102 : vector<16x32xf32>
    %1104 = vector.broadcast %1083 : vector<1x32xf32> to vector<16x32xf32>
    %1105 = arith.addf %1103, %1104 : vector<16x32xf32>
    %c1_425 = arith.constant 1 : index
    %c0_426 = arith.constant 0 : index
    %c0_427 = arith.constant 0 : index
    %1106 = vector.load %arg23[%c1_425, %c0_426, %c0_427] : memref<2x32x96xf32, #tpu.memory_space<vmem>>, vector<1x32x96xf32>
    %1107 = vector.shape_cast %1106 : vector<1x32x96xf32> to vector<32x96xf32>
    %c1_428 = arith.constant 1 : index
    %c0_429 = arith.constant 0 : index
    %c0_430 = arith.constant 0 : index
    %1108 = vector.load %arg10[%c1_428, %c0_429, %c0_430] : memref<2x1x96xf32, #tpu.memory_space<vmem>>, vector<1x1x96xf32>
    %1109 = vector.shape_cast %1108 : vector<1x1x96xf32> to vector<1x96xf32>
    %c1_431 = arith.constant 1 : index
    %c0_432 = arith.constant 0 : index
    %c0_433 = arith.constant 0 : index
    %1110 = vector.load %arg21[%c1_431, %c0_432, %c0_433] : memref<2x32x32xf32, #tpu.memory_space<vmem>>, vector<1x32x32xf32>
    %1111 = vector.shape_cast %1110 : vector<1x32x32xf32> to vector<32x32xf32>
    %c1_434 = arith.constant 1 : index
    %c0_435 = arith.constant 0 : index
    %c0_436 = arith.constant 0 : index
    %1112 = vector.load %arg8[%c1_434, %c0_435, %c0_436] : memref<2x1x32xf32, #tpu.memory_space<vmem>>, vector<1x1x32xf32>
    %1113 = vector.shape_cast %1112 : vector<1x1x32xf32> to vector<1x32xf32>
    %cst_437 = arith.constant dense<0.000000e+00> : vector<16x96xf32>
    %1114 = tpu.matmul %1105, %1107, %cst_437 {dimension_numbers = #tpu.dot_dimension_numbers<[1], [0], [0], [1], [0, 0, 1, 1], [], []>} : vector<16x32xf32>, vector<32x96xf32>, vector<16x96xf32> -> vector<16x96xf32>
    %1115 = vector.broadcast %1109 : vector<1x96xf32> to vector<16x96xf32>
    %1116 = arith.addf %1114, %1115 : vector<16x96xf32>
    %1117 = vector.extract_strided_slice %1116 {offsets = [0, 0], sizes = [8, 96], strides = [1, 1]} : vector<16x96xf32> to vector<8x96xf32>
    %1118 = vector.extract_strided_slice %1117 {offsets = [0, 0], sizes = [8, 32], strides = [1, 1]} : vector<8x96xf32> to vector<8x32xf32>
    %1119 = vector.extract_strided_slice %1117 {offsets = [0, 32], sizes = [8, 64], strides = [1, 1]} : vector<8x96xf32> to vector<8x64xf32>
    %cst_438 = arith.constant 0.000000e+00 : f32
    %1120 = vector.broadcast %cst_438 : f32 to vector<8x32xf32>
    %1121 = vector.extract_strided_slice %1118 {offsets = [0, 0], sizes = [8, 8], strides = [1, 1]} : vector<8x32xf32> to vector<8x8xf32>
    %1122 = vector.extract_strided_slice %1119 {offsets = [0, 0], sizes = [8, 8], strides = [1, 1]} : vector<8x64xf32> to vector<8x8xf32>
    %1123 = vector.extract_strided_slice %1119 {offsets = [0, 32], sizes = [8, 8], strides = [1, 1]} : vector<8x64xf32> to vector<8x8xf32>
    %cst_439 = arith.constant dense<0.000000e+00> : vector<8x8xf32>
    %1124 = tpu.matmul %1121, %1122, %cst_439 {dimension_numbers = #tpu.dot_dimension_numbers<[1], [1], [0], [0], [0, 0, 1, 0], [], []>} : vector<8x8xf32>, vector<8x8xf32>, vector<8x8xf32> -> vector<8x8xf32>
    %cst_440 = arith.constant 0.353553385 : f32
    %1125 = vector.broadcast %cst_440 : f32 to vector<8x8xf32>
    %1126 = arith.mulf %1124, %1125 : vector<8x8xf32>
    %1127 = arith.addf %1126, %22 : vector<8x8xf32>
    %cst_441 = arith.constant dense<0xFF800000> : vector<8xf32>
    %1128 = vector.multi_reduction <maximumf>, %1127, %cst_441 [1] : vector<8x8xf32> to vector<8xf32>
    %1129 = vector.shape_cast %1128 : vector<8xf32> to vector<8x1xf32>
    %1130 = vector.broadcast %1129 : vector<8x1xf32> to vector<8x8xf32>
    %1131 = arith.subf %1127, %1130 : vector<8x8xf32>
    %1132 = math.exp %1131 : vector<8x8xf32>
    %cst_442 = arith.constant dense<0.000000e+00> : vector<8xf32>
    %1133 = vector.multi_reduction <add>, %1132, %cst_442 [1] : vector<8x8xf32> to vector<8xf32>
    %1134 = vector.shape_cast %1133 : vector<8xf32> to vector<8x1xf32>
    %1135 = tpu.reciprocal %1134 {approx = true} : vector<8x1xf32> -> vector<8x1xf32>
    %1136 = vector.broadcast %1135 : vector<8x1xf32> to vector<8x8xf32>
    %1137 = arith.mulf %1132, %1136 : vector<8x8xf32>
    %cst_443 = arith.constant dense<0.000000e+00> : vector<8x8xf32>
    %1138 = tpu.matmul %1137, %1123, %cst_443 {dimension_numbers = #tpu.dot_dimension_numbers<[1], [0], [0], [1], [0, 0, 1, 1], [], []>} : vector<8x8xf32>, vector<8x8xf32>, vector<8x8xf32> -> vector<8x8xf32>
    %1139 = vector.extract_strided_slice %1111 {offsets = [0, 0], sizes = [8, 32], strides = [1, 1]} : vector<32x32xf32> to vector<8x32xf32>
    %cst_444 = arith.constant dense<0.000000e+00> : vector<8x32xf32>
    %1140 = tpu.matmul %1138, %1139, %cst_444 {dimension_numbers = #tpu.dot_dimension_numbers<[1], [0], [0], [1], [0, 0, 1, 1], [], []>} : vector<8x8xf32>, vector<8x32xf32>, vector<8x32xf32> -> vector<8x32xf32>
    %1141 = arith.addf %1120, %1140 : vector<8x32xf32>
    %1142 = vector.extract_strided_slice %1118 {offsets = [0, 8], sizes = [8, 8], strides = [1, 1]} : vector<8x32xf32> to vector<8x8xf32>
    %1143 = vector.extract_strided_slice %1119 {offsets = [0, 8], sizes = [8, 8], strides = [1, 1]} : vector<8x64xf32> to vector<8x8xf32>
    %1144 = vector.extract_strided_slice %1119 {offsets = [0, 40], sizes = [8, 8], strides = [1, 1]} : vector<8x64xf32> to vector<8x8xf32>
    %cst_445 = arith.constant dense<0.000000e+00> : vector<8x8xf32>
    %1145 = tpu.matmul %1142, %1143, %cst_445 {dimension_numbers = #tpu.dot_dimension_numbers<[1], [1], [0], [0], [0, 0, 1, 0], [], []>} : vector<8x8xf32>, vector<8x8xf32>, vector<8x8xf32> -> vector<8x8xf32>
    %cst_446 = arith.constant 0.353553385 : f32
    %1146 = vector.broadcast %cst_446 : f32 to vector<8x8xf32>
    %1147 = arith.mulf %1145, %1146 : vector<8x8xf32>
    %1148 = arith.addf %1147, %22 : vector<8x8xf32>
    %cst_447 = arith.constant dense<0xFF800000> : vector<8xf32>
    %1149 = vector.multi_reduction <maximumf>, %1148, %cst_447 [1] : vector<8x8xf32> to vector<8xf32>
    %1150 = vector.shape_cast %1149 : vector<8xf32> to vector<8x1xf32>
    %1151 = vector.broadcast %1150 : vector<8x1xf32> to vector<8x8xf32>
    %1152 = arith.subf %1148, %1151 : vector<8x8xf32>
    %1153 = math.exp %1152 : vector<8x8xf32>
    %cst_448 = arith.constant dense<0.000000e+00> : vector<8xf32>
    %1154 = vector.multi_reduction <add>, %1153, %cst_448 [1] : vector<8x8xf32> to vector<8xf32>
    %1155 = vector.shape_cast %1154 : vector<8xf32> to vector<8x1xf32>
    %1156 = tpu.reciprocal %1155 {approx = true} : vector<8x1xf32> -> vector<8x1xf32>
    %1157 = vector.broadcast %1156 : vector<8x1xf32> to vector<8x8xf32>
    %1158 = arith.mulf %1153, %1157 : vector<8x8xf32>
    %cst_449 = arith.constant dense<0.000000e+00> : vector<8x8xf32>
    %1159 = tpu.matmul %1158, %1144, %cst_449 {dimension_numbers = #tpu.dot_dimension_numbers<[1], [0], [0], [1], [0, 0, 1, 1], [], []>} : vector<8x8xf32>, vector<8x8xf32>, vector<8x8xf32> -> vector<8x8xf32>
    %1160 = vector.extract_strided_slice %1111 {offsets = [8, 0], sizes = [8, 32], strides = [1, 1]} : vector<32x32xf32> to vector<8x32xf32>
    %cst_450 = arith.constant dense<0.000000e+00> : vector<8x32xf32>
    %1161 = tpu.matmul %1159, %1160, %cst_450 {dimension_numbers = #tpu.dot_dimension_numbers<[1], [0], [0], [1], [0, 0, 1, 1], [], []>} : vector<8x8xf32>, vector<8x32xf32>, vector<8x32xf32> -> vector<8x32xf32>
    %1162 = arith.addf %1141, %1161 : vector<8x32xf32>
    %1163 = vector.extract_strided_slice %1118 {offsets = [0, 16], sizes = [8, 8], strides = [1, 1]} : vector<8x32xf32> to vector<8x8xf32>
    %1164 = vector.extract_strided_slice %1119 {offsets = [0, 16], sizes = [8, 8], strides = [1, 1]} : vector<8x64xf32> to vector<8x8xf32>
    %1165 = vector.extract_strided_slice %1119 {offsets = [0, 48], sizes = [8, 8], strides = [1, 1]} : vector<8x64xf32> to vector<8x8xf32>
    %cst_451 = arith.constant dense<0.000000e+00> : vector<8x8xf32>
    %1166 = tpu.matmul %1163, %1164, %cst_451 {dimension_numbers = #tpu.dot_dimension_numbers<[1], [1], [0], [0], [0, 0, 1, 0], [], []>} : vector<8x8xf32>, vector<8x8xf32>, vector<8x8xf32> -> vector<8x8xf32>
    %cst_452 = arith.constant 0.353553385 : f32
    %1167 = vector.broadcast %cst_452 : f32 to vector<8x8xf32>
    %1168 = arith.mulf %1166, %1167 : vector<8x8xf32>
    %1169 = arith.addf %1168, %22 : vector<8x8xf32>
    %cst_453 = arith.constant dense<0xFF800000> : vector<8xf32>
    %1170 = vector.multi_reduction <maximumf>, %1169, %cst_453 [1] : vector<8x8xf32> to vector<8xf32>
    %1171 = vector.shape_cast %1170 : vector<8xf32> to vector<8x1xf32>
    %1172 = vector.broadcast %1171 : vector<8x1xf32> to vector<8x8xf32>
    %1173 = arith.subf %1169, %1172 : vector<8x8xf32>
    %1174 = math.exp %1173 : vector<8x8xf32>
    %cst_454 = arith.constant dense<0.000000e+00> : vector<8xf32>
    %1175 = vector.multi_reduction <add>, %1174, %cst_454 [1] : vector<8x8xf32> to vector<8xf32>
    %1176 = vector.shape_cast %1175 : vector<8xf32> to vector<8x1xf32>
    %1177 = tpu.reciprocal %1176 {approx = true} : vector<8x1xf32> -> vector<8x1xf32>
    %1178 = vector.broadcast %1177 : vector<8x1xf32> to vector<8x8xf32>
    %1179 = arith.mulf %1174, %1178 : vector<8x8xf32>
    %cst_455 = arith.constant dense<0.000000e+00> : vector<8x8xf32>
    %1180 = tpu.matmul %1179, %1165, %cst_455 {dimension_numbers = #tpu.dot_dimension_numbers<[1], [0], [0], [1], [0, 0, 1, 1], [], []>} : vector<8x8xf32>, vector<8x8xf32>, vector<8x8xf32> -> vector<8x8xf32>
    %1181 = vector.extract_strided_slice %1111 {offsets = [16, 0], sizes = [8, 32], strides = [1, 1]} : vector<32x32xf32> to vector<8x32xf32>
    %cst_456 = arith.constant dense<0.000000e+00> : vector<8x32xf32>
    %1182 = tpu.matmul %1180, %1181, %cst_456 {dimension_numbers = #tpu.dot_dimension_numbers<[1], [0], [0], [1], [0, 0, 1, 1], [], []>} : vector<8x8xf32>, vector<8x32xf32>, vector<8x32xf32> -> vector<8x32xf32>
    %1183 = arith.addf %1162, %1182 : vector<8x32xf32>
    %1184 = vector.extract_strided_slice %1118 {offsets = [0, 24], sizes = [8, 8], strides = [1, 1]} : vector<8x32xf32> to vector<8x8xf32>
    %1185 = vector.extract_strided_slice %1119 {offsets = [0, 24], sizes = [8, 8], strides = [1, 1]} : vector<8x64xf32> to vector<8x8xf32>
    %1186 = vector.extract_strided_slice %1119 {offsets = [0, 56], sizes = [8, 8], strides = [1, 1]} : vector<8x64xf32> to vector<8x8xf32>
    %cst_457 = arith.constant dense<0.000000e+00> : vector<8x8xf32>
    %1187 = tpu.matmul %1184, %1185, %cst_457 {dimension_numbers = #tpu.dot_dimension_numbers<[1], [1], [0], [0], [0, 0, 1, 0], [], []>} : vector<8x8xf32>, vector<8x8xf32>, vector<8x8xf32> -> vector<8x8xf32>
    %cst_458 = arith.constant 0.353553385 : f32
    %1188 = vector.broadcast %cst_458 : f32 to vector<8x8xf32>
    %1189 = arith.mulf %1187, %1188 : vector<8x8xf32>
    %1190 = arith.addf %1189, %22 : vector<8x8xf32>
    %cst_459 = arith.constant dense<0xFF800000> : vector<8xf32>
    %1191 = vector.multi_reduction <maximumf>, %1190, %cst_459 [1] : vector<8x8xf32> to vector<8xf32>
    %1192 = vector.shape_cast %1191 : vector<8xf32> to vector<8x1xf32>
    %1193 = vector.broadcast %1192 : vector<8x1xf32> to vector<8x8xf32>
    %1194 = arith.subf %1190, %1193 : vector<8x8xf32>
    %1195 = math.exp %1194 : vector<8x8xf32>
    %cst_460 = arith.constant dense<0.000000e+00> : vector<8xf32>
    %1196 = vector.multi_reduction <add>, %1195, %cst_460 [1] : vector<8x8xf32> to vector<8xf32>
    %1197 = vector.shape_cast %1196 : vector<8xf32> to vector<8x1xf32>
    %1198 = tpu.reciprocal %1197 {approx = true} : vector<8x1xf32> -> vector<8x1xf32>
    %1199 = vector.broadcast %1198 : vector<8x1xf32> to vector<8x8xf32>
    %1200 = arith.mulf %1195, %1199 : vector<8x8xf32>
    %cst_461 = arith.constant dense<0.000000e+00> : vector<8x8xf32>
    %1201 = tpu.matmul %1200, %1186, %cst_461 {dimension_numbers = #tpu.dot_dimension_numbers<[1], [0], [0], [1], [0, 0, 1, 1], [], []>} : vector<8x8xf32>, vector<8x8xf32>, vector<8x8xf32> -> vector<8x8xf32>
    %1202 = vector.extract_strided_slice %1111 {offsets = [24, 0], sizes = [8, 32], strides = [1, 1]} : vector<32x32xf32> to vector<8x32xf32>
    %cst_462 = arith.constant dense<0.000000e+00> : vector<8x32xf32>
    %1203 = tpu.matmul %1201, %1202, %cst_462 {dimension_numbers = #tpu.dot_dimension_numbers<[1], [0], [0], [1], [0, 0, 1, 1], [], []>} : vector<8x8xf32>, vector<8x32xf32>, vector<8x32xf32> -> vector<8x32xf32>
    %1204 = arith.addf %1183, %1203 : vector<8x32xf32>
    %1205 = vector.extract_strided_slice %1116 {offsets = [8, 0], sizes = [8, 96], strides = [1, 1]} : vector<16x96xf32> to vector<8x96xf32>
    %1206 = vector.extract_strided_slice %1205 {offsets = [0, 0], sizes = [8, 32], strides = [1, 1]} : vector<8x96xf32> to vector<8x32xf32>
    %1207 = vector.extract_strided_slice %1205 {offsets = [0, 32], sizes = [8, 64], strides = [1, 1]} : vector<8x96xf32> to vector<8x64xf32>
    %cst_463 = arith.constant 0.000000e+00 : f32
    %1208 = vector.broadcast %cst_463 : f32 to vector<8x32xf32>
    %1209 = vector.extract_strided_slice %1206 {offsets = [0, 0], sizes = [8, 8], strides = [1, 1]} : vector<8x32xf32> to vector<8x8xf32>
    %1210 = vector.extract_strided_slice %1207 {offsets = [0, 0], sizes = [8, 8], strides = [1, 1]} : vector<8x64xf32> to vector<8x8xf32>
    %1211 = vector.extract_strided_slice %1207 {offsets = [0, 32], sizes = [8, 8], strides = [1, 1]} : vector<8x64xf32> to vector<8x8xf32>
    %cst_464 = arith.constant dense<0.000000e+00> : vector<8x8xf32>
    %1212 = tpu.matmul %1209, %1210, %cst_464 {dimension_numbers = #tpu.dot_dimension_numbers<[1], [1], [0], [0], [0, 0, 1, 0], [], []>} : vector<8x8xf32>, vector<8x8xf32>, vector<8x8xf32> -> vector<8x8xf32>
    %cst_465 = arith.constant 0.353553385 : f32
    %1213 = vector.broadcast %cst_465 : f32 to vector<8x8xf32>
    %1214 = arith.mulf %1212, %1213 : vector<8x8xf32>
    %1215 = arith.addf %1214, %29 : vector<8x8xf32>
    %cst_466 = arith.constant dense<0xFF800000> : vector<8xf32>
    %1216 = vector.multi_reduction <maximumf>, %1215, %cst_466 [1] : vector<8x8xf32> to vector<8xf32>
    %1217 = vector.shape_cast %1216 : vector<8xf32> to vector<8x1xf32>
    %1218 = vector.broadcast %1217 : vector<8x1xf32> to vector<8x8xf32>
    %1219 = arith.subf %1215, %1218 : vector<8x8xf32>
    %1220 = math.exp %1219 : vector<8x8xf32>
    %cst_467 = arith.constant dense<0.000000e+00> : vector<8xf32>
    %1221 = vector.multi_reduction <add>, %1220, %cst_467 [1] : vector<8x8xf32> to vector<8xf32>
    %1222 = vector.shape_cast %1221 : vector<8xf32> to vector<8x1xf32>
    %1223 = tpu.reciprocal %1222 {approx = true} : vector<8x1xf32> -> vector<8x1xf32>
    %1224 = vector.broadcast %1223 : vector<8x1xf32> to vector<8x8xf32>
    %1225 = arith.mulf %1220, %1224 : vector<8x8xf32>
    %cst_468 = arith.constant dense<0.000000e+00> : vector<8x8xf32>
    %1226 = tpu.matmul %1225, %1211, %cst_468 {dimension_numbers = #tpu.dot_dimension_numbers<[1], [0], [0], [1], [0, 0, 1, 1], [], []>} : vector<8x8xf32>, vector<8x8xf32>, vector<8x8xf32> -> vector<8x8xf32>
    %1227 = vector.extract_strided_slice %1111 {offsets = [0, 0], sizes = [8, 32], strides = [1, 1]} : vector<32x32xf32> to vector<8x32xf32>
    %cst_469 = arith.constant dense<0.000000e+00> : vector<8x32xf32>
    %1228 = tpu.matmul %1226, %1227, %cst_469 {dimension_numbers = #tpu.dot_dimension_numbers<[1], [0], [0], [1], [0, 0, 1, 1], [], []>} : vector<8x8xf32>, vector<8x32xf32>, vector<8x32xf32> -> vector<8x32xf32>
    %1229 = arith.addf %1208, %1228 : vector<8x32xf32>
    %1230 = vector.extract_strided_slice %1206 {offsets = [0, 8], sizes = [8, 8], strides = [1, 1]} : vector<8x32xf32> to vector<8x8xf32>
    %1231 = vector.extract_strided_slice %1207 {offsets = [0, 8], sizes = [8, 8], strides = [1, 1]} : vector<8x64xf32> to vector<8x8xf32>
    %1232 = vector.extract_strided_slice %1207 {offsets = [0, 40], sizes = [8, 8], strides = [1, 1]} : vector<8x64xf32> to vector<8x8xf32>
    %cst_470 = arith.constant dense<0.000000e+00> : vector<8x8xf32>
    %1233 = tpu.matmul %1230, %1231, %cst_470 {dimension_numbers = #tpu.dot_dimension_numbers<[1], [1], [0], [0], [0, 0, 1, 0], [], []>} : vector<8x8xf32>, vector<8x8xf32>, vector<8x8xf32> -> vector<8x8xf32>
    %cst_471 = arith.constant 0.353553385 : f32
    %1234 = vector.broadcast %cst_471 : f32 to vector<8x8xf32>
    %1235 = arith.mulf %1233, %1234 : vector<8x8xf32>
    %1236 = arith.addf %1235, %29 : vector<8x8xf32>
    %cst_472 = arith.constant dense<0xFF800000> : vector<8xf32>
    %1237 = vector.multi_reduction <maximumf>, %1236, %cst_472 [1] : vector<8x8xf32> to vector<8xf32>
    %1238 = vector.shape_cast %1237 : vector<8xf32> to vector<8x1xf32>
    %1239 = vector.broadcast %1238 : vector<8x1xf32> to vector<8x8xf32>
    %1240 = arith.subf %1236, %1239 : vector<8x8xf32>
    %1241 = math.exp %1240 : vector<8x8xf32>
    %cst_473 = arith.constant dense<0.000000e+00> : vector<8xf32>
    %1242 = vector.multi_reduction <add>, %1241, %cst_473 [1] : vector<8x8xf32> to vector<8xf32>
    %1243 = vector.shape_cast %1242 : vector<8xf32> to vector<8x1xf32>
    %1244 = tpu.reciprocal %1243 {approx = true} : vector<8x1xf32> -> vector<8x1xf32>
    %1245 = vector.broadcast %1244 : vector<8x1xf32> to vector<8x8xf32>
    %1246 = arith.mulf %1241, %1245 : vector<8x8xf32>
    %cst_474 = arith.constant dense<0.000000e+00> : vector<8x8xf32>
    %1247 = tpu.matmul %1246, %1232, %cst_474 {dimension_numbers = #tpu.dot_dimension_numbers<[1], [0], [0], [1], [0, 0, 1, 1], [], []>} : vector<8x8xf32>, vector<8x8xf32>, vector<8x8xf32> -> vector<8x8xf32>
    %1248 = vector.extract_strided_slice %1111 {offsets = [8, 0], sizes = [8, 32], strides = [1, 1]} : vector<32x32xf32> to vector<8x32xf32>
    %cst_475 = arith.constant dense<0.000000e+00> : vector<8x32xf32>
    %1249 = tpu.matmul %1247, %1248, %cst_475 {dimension_numbers = #tpu.dot_dimension_numbers<[1], [0], [0], [1], [0, 0, 1, 1], [], []>} : vector<8x8xf32>, vector<8x32xf32>, vector<8x32xf32> -> vector<8x32xf32>
    %1250 = arith.addf %1229, %1249 : vector<8x32xf32>
    %1251 = vector.extract_strided_slice %1206 {offsets = [0, 16], sizes = [8, 8], strides = [1, 1]} : vector<8x32xf32> to vector<8x8xf32>
    %1252 = vector.extract_strided_slice %1207 {offsets = [0, 16], sizes = [8, 8], strides = [1, 1]} : vector<8x64xf32> to vector<8x8xf32>
    %1253 = vector.extract_strided_slice %1207 {offsets = [0, 48], sizes = [8, 8], strides = [1, 1]} : vector<8x64xf32> to vector<8x8xf32>
    %cst_476 = arith.constant dense<0.000000e+00> : vector<8x8xf32>
    %1254 = tpu.matmul %1251, %1252, %cst_476 {dimension_numbers = #tpu.dot_dimension_numbers<[1], [1], [0], [0], [0, 0, 1, 0], [], []>} : vector<8x8xf32>, vector<8x8xf32>, vector<8x8xf32> -> vector<8x8xf32>
    %cst_477 = arith.constant 0.353553385 : f32
    %1255 = vector.broadcast %cst_477 : f32 to vector<8x8xf32>
    %1256 = arith.mulf %1254, %1255 : vector<8x8xf32>
    %1257 = arith.addf %1256, %29 : vector<8x8xf32>
    %cst_478 = arith.constant dense<0xFF800000> : vector<8xf32>
    %1258 = vector.multi_reduction <maximumf>, %1257, %cst_478 [1] : vector<8x8xf32> to vector<8xf32>
    %1259 = vector.shape_cast %1258 : vector<8xf32> to vector<8x1xf32>
    %1260 = vector.broadcast %1259 : vector<8x1xf32> to vector<8x8xf32>
    %1261 = arith.subf %1257, %1260 : vector<8x8xf32>
    %1262 = math.exp %1261 : vector<8x8xf32>
    %cst_479 = arith.constant dense<0.000000e+00> : vector<8xf32>
    %1263 = vector.multi_reduction <add>, %1262, %cst_479 [1] : vector<8x8xf32> to vector<8xf32>
    %1264 = vector.shape_cast %1263 : vector<8xf32> to vector<8x1xf32>
    %1265 = tpu.reciprocal %1264 {approx = true} : vector<8x1xf32> -> vector<8x1xf32>
    %1266 = vector.broadcast %1265 : vector<8x1xf32> to vector<8x8xf32>
    %1267 = arith.mulf %1262, %1266 : vector<8x8xf32>
    %cst_480 = arith.constant dense<0.000000e+00> : vector<8x8xf32>
    %1268 = tpu.matmul %1267, %1253, %cst_480 {dimension_numbers = #tpu.dot_dimension_numbers<[1], [0], [0], [1], [0, 0, 1, 1], [], []>} : vector<8x8xf32>, vector<8x8xf32>, vector<8x8xf32> -> vector<8x8xf32>
    %1269 = vector.extract_strided_slice %1111 {offsets = [16, 0], sizes = [8, 32], strides = [1, 1]} : vector<32x32xf32> to vector<8x32xf32>
    %cst_481 = arith.constant dense<0.000000e+00> : vector<8x32xf32>
    %1270 = tpu.matmul %1268, %1269, %cst_481 {dimension_numbers = #tpu.dot_dimension_numbers<[1], [0], [0], [1], [0, 0, 1, 1], [], []>} : vector<8x8xf32>, vector<8x32xf32>, vector<8x32xf32> -> vector<8x32xf32>
    %1271 = arith.addf %1250, %1270 : vector<8x32xf32>
    %1272 = vector.extract_strided_slice %1206 {offsets = [0, 24], sizes = [8, 8], strides = [1, 1]} : vector<8x32xf32> to vector<8x8xf32>
    %1273 = vector.extract_strided_slice %1207 {offsets = [0, 24], sizes = [8, 8], strides = [1, 1]} : vector<8x64xf32> to vector<8x8xf32>
    %1274 = vector.extract_strided_slice %1207 {offsets = [0, 56], sizes = [8, 8], strides = [1, 1]} : vector<8x64xf32> to vector<8x8xf32>
    %cst_482 = arith.constant dense<0.000000e+00> : vector<8x8xf32>
    %1275 = tpu.matmul %1272, %1273, %cst_482 {dimension_numbers = #tpu.dot_dimension_numbers<[1], [1], [0], [0], [0, 0, 1, 0], [], []>} : vector<8x8xf32>, vector<8x8xf32>, vector<8x8xf32> -> vector<8x8xf32>
    %cst_483 = arith.constant 0.353553385 : f32
    %1276 = vector.broadcast %cst_483 : f32 to vector<8x8xf32>
    %1277 = arith.mulf %1275, %1276 : vector<8x8xf32>
    %1278 = arith.addf %1277, %29 : vector<8x8xf32>
    %cst_484 = arith.constant dense<0xFF800000> : vector<8xf32>
    %1279 = vector.multi_reduction <maximumf>, %1278, %cst_484 [1] : vector<8x8xf32> to vector<8xf32>
    %1280 = vector.shape_cast %1279 : vector<8xf32> to vector<8x1xf32>
    %1281 = vector.broadcast %1280 : vector<8x1xf32> to vector<8x8xf32>
    %1282 = arith.subf %1278, %1281 : vector<8x8xf32>
    %1283 = math.exp %1282 : vector<8x8xf32>
    %cst_485 = arith.constant dense<0.000000e+00> : vector<8xf32>
    %1284 = vector.multi_reduction <add>, %1283, %cst_485 [1] : vector<8x8xf32> to vector<8xf32>
    %1285 = vector.shape_cast %1284 : vector<8xf32> to vector<8x1xf32>
    %1286 = tpu.reciprocal %1285 {approx = true} : vector<8x1xf32> -> vector<8x1xf32>
    %1287 = vector.broadcast %1286 : vector<8x1xf32> to vector<8x8xf32>
    %1288 = arith.mulf %1283, %1287 : vector<8x8xf32>
    %cst_486 = arith.constant dense<0.000000e+00> : vector<8x8xf32>
    %1289 = tpu.matmul %1288, %1274, %cst_486 {dimension_numbers = #tpu.dot_dimension_numbers<[1], [0], [0], [1], [0, 0, 1, 1], [], []>} : vector<8x8xf32>, vector<8x8xf32>, vector<8x8xf32> -> vector<8x8xf32>
    %1290 = vector.extract_strided_slice %1111 {offsets = [24, 0], sizes = [8, 32], strides = [1, 1]} : vector<32x32xf32> to vector<8x32xf32>
    %cst_487 = arith.constant dense<0.000000e+00> : vector<8x32xf32>
    %1291 = tpu.matmul %1289, %1290, %cst_487 {dimension_numbers = #tpu.dot_dimension_numbers<[1], [0], [0], [1], [0, 0, 1, 1], [], []>} : vector<8x8xf32>, vector<8x32xf32>, vector<8x32xf32> -> vector<8x32xf32>
    %1292 = arith.addf %1271, %1291 : vector<8x32xf32>
    %1293 = tpu.concatenate %1204, %1292 in 0 : vector<8x32xf32>, vector<8x32xf32> -> vector<16x32xf32>
    %1294 = vector.broadcast %1113 : vector<1x32xf32> to vector<16x32xf32>
    %1295 = arith.addf %1293, %1294 : vector<16x32xf32>
    %1296 = arith.addf %1079, %1295 : vector<16x32xf32>
    %c1_488 = arith.constant 1 : index
    %c0_489 = arith.constant 0 : index
    %c0_490 = arith.constant 0 : index
    %1297 = vector.load %arg14[%c1_488, %c0_489, %c0_490] : memref<2x1x32xf32, #tpu.memory_space<vmem>>, vector<1x1x32xf32>
    %1298 = vector.shape_cast %1297 : vector<1x1x32xf32> to vector<1x32xf32>
    %c1_491 = arith.constant 1 : index
    %c0_492 = arith.constant 0 : index
    %c0_493 = arith.constant 0 : index
    %1299 = vector.load %arg13[%c1_491, %c0_492, %c0_493] : memref<2x1x32xf32, #tpu.memory_space<vmem>>, vector<1x1x32xf32>
    %1300 = vector.shape_cast %1299 : vector<1x1x32xf32> to vector<1x32xf32>
    %cst_494 = arith.constant dense<0.000000e+00> : vector<16xf32>
    %1301 = vector.multi_reduction <add>, %1296, %cst_494 [1] : vector<16x32xf32> to vector<16xf32>
    %1302 = vector.shape_cast %1301 : vector<16xf32> to vector<16x1xf32>
    %cst_495 = arith.constant 3.200000e+01 : f32
    %1303 = vector.broadcast %cst_495 : f32 to vector<16x1xf32>
    %1304 = arith.divf %1302, %1303 : vector<16x1xf32>
    %1305 = vector.broadcast %1304 : vector<16x1xf32> to vector<16x32xf32>
    %1306 = arith.subf %1296, %1305 : vector<16x32xf32>
    %1307 = arith.mulf %1306, %1306 : vector<16x32xf32>
    %cst_496 = arith.constant dense<0.000000e+00> : vector<16xf32>
    %1308 = vector.multi_reduction <add>, %1307, %cst_496 [1] : vector<16x32xf32> to vector<16xf32>
    %1309 = vector.shape_cast %1308 : vector<16xf32> to vector<16x1xf32>
    %cst_497 = arith.constant 3.200000e+01 : f32
    %1310 = vector.broadcast %cst_497 : f32 to vector<16x1xf32>
    %1311 = arith.divf %1309, %1310 : vector<16x1xf32>
    %1312 = vector.broadcast %1304 : vector<16x1xf32> to vector<16x32xf32>
    %1313 = arith.subf %1296, %1312 : vector<16x32xf32>
    %cst_498 = arith.constant 9.99999997E-7 : f32
    %1314 = vector.broadcast %cst_498 : f32 to vector<16x1xf32>
    %1315 = arith.addf %1311, %1314 : vector<16x1xf32>
    %1316 = math.rsqrt %1315 : vector<16x1xf32>
    %1317 = vector.broadcast %1316 : vector<16x1xf32> to vector<16x32xf32>
    %1318 = arith.mulf %1313, %1317 : vector<16x32xf32>
    %1319 = vector.broadcast %1298 : vector<1x32xf32> to vector<16x32xf32>
    %1320 = arith.mulf %1318, %1319 : vector<16x32xf32>
    %1321 = vector.broadcast %1300 : vector<1x32xf32> to vector<16x32xf32>
    %1322 = arith.addf %1320, %1321 : vector<16x32xf32>
    %c1_499 = arith.constant 1 : index
    %c0_500 = arith.constant 0 : index
    %c0_501 = arith.constant 0 : index
    %1323 = vector.load %arg22[%c1_499, %c0_500, %c0_501] : memref<2x32x32xf32, #tpu.memory_space<vmem>>, vector<1x32x32xf32>
    %1324 = vector.shape_cast %1323 : vector<1x32x32xf32> to vector<32x32xf32>
    %c1_502 = arith.constant 1 : index
    %c0_503 = arith.constant 0 : index
    %c0_504 = arith.constant 0 : index
    %1325 = vector.load %arg9[%c1_502, %c0_503, %c0_504] : memref<2x1x32xf32, #tpu.memory_space<vmem>>, vector<1x1x32xf32>
    %1326 = vector.shape_cast %1325 : vector<1x1x32xf32> to vector<1x32xf32>
    %c1_505 = arith.constant 1 : index
    %c0_506 = arith.constant 0 : index
    %c0_507 = arith.constant 0 : index
    %1327 = vector.load %arg19[%c1_505, %c0_506, %c0_507] : memref<2x32x64xf32, #tpu.memory_space<vmem>>, vector<1x32x64xf32>
    %1328 = vector.shape_cast %1327 : vector<1x32x64xf32> to vector<32x64xf32>
    %c1_508 = arith.constant 1 : index
    %c0_509 = arith.constant 0 : index
    %c0_510 = arith.constant 0 : index
    %1329 = vector.load %arg6[%c1_508, %c0_509, %c0_510] : memref<2x1x64xf32, #tpu.memory_space<vmem>>, vector<1x1x64xf32>
    %1330 = vector.shape_cast %1329 : vector<1x1x64xf32> to vector<1x64xf32>
    %c1_511 = arith.constant 1 : index
    %c0_512 = arith.constant 0 : index
    %c0_513 = arith.constant 0 : index
    %1331 = vector.load %arg20[%c1_511, %c0_512, %c0_513] : memref<2x32x32xf32, #tpu.memory_space<vmem>>, vector<1x32x32xf32>
    %1332 = vector.shape_cast %1331 : vector<1x32x32xf32> to vector<32x32xf32>
    %c1_514 = arith.constant 1 : index
    %c0_515 = arith.constant 0 : index
    %c0_516 = arith.constant 0 : index
    %1333 = vector.load %arg7[%c1_514, %c0_515, %c0_516] : memref<2x1x32xf32, #tpu.memory_space<vmem>>, vector<1x1x32xf32>
    %1334 = vector.shape_cast %1333 : vector<1x1x32xf32> to vector<1x32xf32>
    %cst_517 = arith.constant dense<0.000000e+00> : vector<16x32xf32>
    %1335 = tpu.matmul %1322, %1324, %cst_517 {dimension_numbers = #tpu.dot_dimension_numbers<[1], [0], [0], [1], [0, 0, 1, 1], [], []>} : vector<16x32xf32>, vector<32x32xf32>, vector<16x32xf32> -> vector<16x32xf32>
    %1336 = vector.broadcast %1326 : vector<1x32xf32> to vector<16x32xf32>
    %1337 = arith.addf %1335, %1336 : vector<16x32xf32>
    %cst_518 = arith.constant dense<0.000000e+00> : vector<16x64xf32>
    %1338 = tpu.matmul %589, %1328, %cst_518 {dimension_numbers = #tpu.dot_dimension_numbers<[1], [0], [0], [1], [0, 0, 1, 1], [], []>} : vector<16x32xf32>, vector<32x64xf32>, vector<16x64xf32> -> vector<16x64xf32>
    %1339 = vector.broadcast %1330 : vector<1x64xf32> to vector<16x64xf32>
    %1340 = arith.addf %1338, %1339 : vector<16x64xf32>
    %1341 = vector.extract_strided_slice %1337 {offsets = [0, 0], sizes = [8, 32], strides = [1, 1]} : vector<16x32xf32> to vector<8x32xf32>
    %1342 = vector.extract_strided_slice %1340 {offsets = [0, 0], sizes = [8, 64], strides = [1, 1]} : vector<16x64xf32> to vector<8x64xf32>
    %cst_519 = arith.constant 0.000000e+00 : f32
    %1343 = vector.broadcast %cst_519 : f32 to vector<8x32xf32>
    %1344 = vector.extract_strided_slice %1341 {offsets = [0, 0], sizes = [8, 8], strides = [1, 1]} : vector<8x32xf32> to vector<8x8xf32>
    %1345 = vector.extract_strided_slice %1342 {offsets = [0, 0], sizes = [8, 8], strides = [1, 1]} : vector<8x64xf32> to vector<8x8xf32>
    %1346 = vector.extract_strided_slice %1342 {offsets = [0, 32], sizes = [8, 8], strides = [1, 1]} : vector<8x64xf32> to vector<8x8xf32>
    %cst_520 = arith.constant dense<0.000000e+00> : vector<8x8xf32>
    %1347 = tpu.matmul %1344, %1345, %cst_520 {dimension_numbers = #tpu.dot_dimension_numbers<[1], [1], [0], [0], [0, 0, 1, 0], [], []>} : vector<8x8xf32>, vector<8x8xf32>, vector<8x8xf32> -> vector<8x8xf32>
    %cst_521 = arith.constant 0.353553385 : f32
    %1348 = vector.broadcast %cst_521 : f32 to vector<8x8xf32>
    %1349 = arith.mulf %1347, %1348 : vector<8x8xf32>
    %1350 = vector.broadcast %8 : vector<1x8xf32> to vector<8x8xf32>
    %1351 = arith.addf %1349, %1350 : vector<8x8xf32>
    %cst_522 = arith.constant dense<0xFF800000> : vector<8xf32>
    %1352 = vector.multi_reduction <maximumf>, %1351, %cst_522 [1] : vector<8x8xf32> to vector<8xf32>
    %1353 = vector.shape_cast %1352 : vector<8xf32> to vector<8x1xf32>
    %1354 = vector.broadcast %1353 : vector<8x1xf32> to vector<8x8xf32>
    %1355 = arith.subf %1351, %1354 : vector<8x8xf32>
    %1356 = math.exp %1355 : vector<8x8xf32>
    %cst_523 = arith.constant dense<0.000000e+00> : vector<8xf32>
    %1357 = vector.multi_reduction <add>, %1356, %cst_523 [1] : vector<8x8xf32> to vector<8xf32>
    %1358 = vector.shape_cast %1357 : vector<8xf32> to vector<8x1xf32>
    %1359 = tpu.reciprocal %1358 {approx = true} : vector<8x1xf32> -> vector<8x1xf32>
    %1360 = vector.broadcast %1359 : vector<8x1xf32> to vector<8x8xf32>
    %1361 = arith.mulf %1356, %1360 : vector<8x8xf32>
    %cst_524 = arith.constant dense<0.000000e+00> : vector<8x8xf32>
    %1362 = tpu.matmul %1361, %1346, %cst_524 {dimension_numbers = #tpu.dot_dimension_numbers<[1], [0], [0], [1], [0, 0, 1, 1], [], []>} : vector<8x8xf32>, vector<8x8xf32>, vector<8x8xf32> -> vector<8x8xf32>
    %1363 = vector.extract_strided_slice %1332 {offsets = [0, 0], sizes = [8, 32], strides = [1, 1]} : vector<32x32xf32> to vector<8x32xf32>
    %cst_525 = arith.constant dense<0.000000e+00> : vector<8x32xf32>
    %1364 = tpu.matmul %1362, %1363, %cst_525 {dimension_numbers = #tpu.dot_dimension_numbers<[1], [0], [0], [1], [0, 0, 1, 1], [], []>} : vector<8x8xf32>, vector<8x32xf32>, vector<8x32xf32> -> vector<8x32xf32>
    %1365 = arith.addf %1343, %1364 : vector<8x32xf32>
    %1366 = vector.extract_strided_slice %1341 {offsets = [0, 8], sizes = [8, 8], strides = [1, 1]} : vector<8x32xf32> to vector<8x8xf32>
    %1367 = vector.extract_strided_slice %1342 {offsets = [0, 8], sizes = [8, 8], strides = [1, 1]} : vector<8x64xf32> to vector<8x8xf32>
    %1368 = vector.extract_strided_slice %1342 {offsets = [0, 40], sizes = [8, 8], strides = [1, 1]} : vector<8x64xf32> to vector<8x8xf32>
    %cst_526 = arith.constant dense<0.000000e+00> : vector<8x8xf32>
    %1369 = tpu.matmul %1366, %1367, %cst_526 {dimension_numbers = #tpu.dot_dimension_numbers<[1], [1], [0], [0], [0, 0, 1, 0], [], []>} : vector<8x8xf32>, vector<8x8xf32>, vector<8x8xf32> -> vector<8x8xf32>
    %cst_527 = arith.constant 0.353553385 : f32
    %1370 = vector.broadcast %cst_527 : f32 to vector<8x8xf32>
    %1371 = arith.mulf %1369, %1370 : vector<8x8xf32>
    %1372 = vector.broadcast %8 : vector<1x8xf32> to vector<8x8xf32>
    %1373 = arith.addf %1371, %1372 : vector<8x8xf32>
    %cst_528 = arith.constant dense<0xFF800000> : vector<8xf32>
    %1374 = vector.multi_reduction <maximumf>, %1373, %cst_528 [1] : vector<8x8xf32> to vector<8xf32>
    %1375 = vector.shape_cast %1374 : vector<8xf32> to vector<8x1xf32>
    %1376 = vector.broadcast %1375 : vector<8x1xf32> to vector<8x8xf32>
    %1377 = arith.subf %1373, %1376 : vector<8x8xf32>
    %1378 = math.exp %1377 : vector<8x8xf32>
    %cst_529 = arith.constant dense<0.000000e+00> : vector<8xf32>
    %1379 = vector.multi_reduction <add>, %1378, %cst_529 [1] : vector<8x8xf32> to vector<8xf32>
    %1380 = vector.shape_cast %1379 : vector<8xf32> to vector<8x1xf32>
    %1381 = tpu.reciprocal %1380 {approx = true} : vector<8x1xf32> -> vector<8x1xf32>
    %1382 = vector.broadcast %1381 : vector<8x1xf32> to vector<8x8xf32>
    %1383 = arith.mulf %1378, %1382 : vector<8x8xf32>
    %cst_530 = arith.constant dense<0.000000e+00> : vector<8x8xf32>
    %1384 = tpu.matmul %1383, %1368, %cst_530 {dimension_numbers = #tpu.dot_dimension_numbers<[1], [0], [0], [1], [0, 0, 1, 1], [], []>} : vector<8x8xf32>, vector<8x8xf32>, vector<8x8xf32> -> vector<8x8xf32>
    %1385 = vector.extract_strided_slice %1332 {offsets = [8, 0], sizes = [8, 32], strides = [1, 1]} : vector<32x32xf32> to vector<8x32xf32>
    %cst_531 = arith.constant dense<0.000000e+00> : vector<8x32xf32>
    %1386 = tpu.matmul %1384, %1385, %cst_531 {dimension_numbers = #tpu.dot_dimension_numbers<[1], [0], [0], [1], [0, 0, 1, 1], [], []>} : vector<8x8xf32>, vector<8x32xf32>, vector<8x32xf32> -> vector<8x32xf32>
    %1387 = arith.addf %1365, %1386 : vector<8x32xf32>
    %1388 = vector.extract_strided_slice %1341 {offsets = [0, 16], sizes = [8, 8], strides = [1, 1]} : vector<8x32xf32> to vector<8x8xf32>
    %1389 = vector.extract_strided_slice %1342 {offsets = [0, 16], sizes = [8, 8], strides = [1, 1]} : vector<8x64xf32> to vector<8x8xf32>
    %1390 = vector.extract_strided_slice %1342 {offsets = [0, 48], sizes = [8, 8], strides = [1, 1]} : vector<8x64xf32> to vector<8x8xf32>
    %cst_532 = arith.constant dense<0.000000e+00> : vector<8x8xf32>
    %1391 = tpu.matmul %1388, %1389, %cst_532 {dimension_numbers = #tpu.dot_dimension_numbers<[1], [1], [0], [0], [0, 0, 1, 0], [], []>} : vector<8x8xf32>, vector<8x8xf32>, vector<8x8xf32> -> vector<8x8xf32>
    %cst_533 = arith.constant 0.353553385 : f32
    %1392 = vector.broadcast %cst_533 : f32 to vector<8x8xf32>
    %1393 = arith.mulf %1391, %1392 : vector<8x8xf32>
    %1394 = vector.broadcast %8 : vector<1x8xf32> to vector<8x8xf32>
    %1395 = arith.addf %1393, %1394 : vector<8x8xf32>
    %cst_534 = arith.constant dense<0xFF800000> : vector<8xf32>
    %1396 = vector.multi_reduction <maximumf>, %1395, %cst_534 [1] : vector<8x8xf32> to vector<8xf32>
    %1397 = vector.shape_cast %1396 : vector<8xf32> to vector<8x1xf32>
    %1398 = vector.broadcast %1397 : vector<8x1xf32> to vector<8x8xf32>
    %1399 = arith.subf %1395, %1398 : vector<8x8xf32>
    %1400 = math.exp %1399 : vector<8x8xf32>
    %cst_535 = arith.constant dense<0.000000e+00> : vector<8xf32>
    %1401 = vector.multi_reduction <add>, %1400, %cst_535 [1] : vector<8x8xf32> to vector<8xf32>
    %1402 = vector.shape_cast %1401 : vector<8xf32> to vector<8x1xf32>
    %1403 = tpu.reciprocal %1402 {approx = true} : vector<8x1xf32> -> vector<8x1xf32>
    %1404 = vector.broadcast %1403 : vector<8x1xf32> to vector<8x8xf32>
    %1405 = arith.mulf %1400, %1404 : vector<8x8xf32>
    %cst_536 = arith.constant dense<0.000000e+00> : vector<8x8xf32>
    %1406 = tpu.matmul %1405, %1390, %cst_536 {dimension_numbers = #tpu.dot_dimension_numbers<[1], [0], [0], [1], [0, 0, 1, 1], [], []>} : vector<8x8xf32>, vector<8x8xf32>, vector<8x8xf32> -> vector<8x8xf32>
    %1407 = vector.extract_strided_slice %1332 {offsets = [16, 0], sizes = [8, 32], strides = [1, 1]} : vector<32x32xf32> to vector<8x32xf32>
    %cst_537 = arith.constant dense<0.000000e+00> : vector<8x32xf32>
    %1408 = tpu.matmul %1406, %1407, %cst_537 {dimension_numbers = #tpu.dot_dimension_numbers<[1], [0], [0], [1], [0, 0, 1, 1], [], []>} : vector<8x8xf32>, vector<8x32xf32>, vector<8x32xf32> -> vector<8x32xf32>
    %1409 = arith.addf %1387, %1408 : vector<8x32xf32>
    %1410 = vector.extract_strided_slice %1341 {offsets = [0, 24], sizes = [8, 8], strides = [1, 1]} : vector<8x32xf32> to vector<8x8xf32>
    %1411 = vector.extract_strided_slice %1342 {offsets = [0, 24], sizes = [8, 8], strides = [1, 1]} : vector<8x64xf32> to vector<8x8xf32>
    %1412 = vector.extract_strided_slice %1342 {offsets = [0, 56], sizes = [8, 8], strides = [1, 1]} : vector<8x64xf32> to vector<8x8xf32>
    %cst_538 = arith.constant dense<0.000000e+00> : vector<8x8xf32>
    %1413 = tpu.matmul %1410, %1411, %cst_538 {dimension_numbers = #tpu.dot_dimension_numbers<[1], [1], [0], [0], [0, 0, 1, 0], [], []>} : vector<8x8xf32>, vector<8x8xf32>, vector<8x8xf32> -> vector<8x8xf32>
    %cst_539 = arith.constant 0.353553385 : f32
    %1414 = vector.broadcast %cst_539 : f32 to vector<8x8xf32>
    %1415 = arith.mulf %1413, %1414 : vector<8x8xf32>
    %1416 = vector.broadcast %8 : vector<1x8xf32> to vector<8x8xf32>
    %1417 = arith.addf %1415, %1416 : vector<8x8xf32>
    %cst_540 = arith.constant dense<0xFF800000> : vector<8xf32>
    %1418 = vector.multi_reduction <maximumf>, %1417, %cst_540 [1] : vector<8x8xf32> to vector<8xf32>
    %1419 = vector.shape_cast %1418 : vector<8xf32> to vector<8x1xf32>
    %1420 = vector.broadcast %1419 : vector<8x1xf32> to vector<8x8xf32>
    %1421 = arith.subf %1417, %1420 : vector<8x8xf32>
    %1422 = math.exp %1421 : vector<8x8xf32>
    %cst_541 = arith.constant dense<0.000000e+00> : vector<8xf32>
    %1423 = vector.multi_reduction <add>, %1422, %cst_541 [1] : vector<8x8xf32> to vector<8xf32>
    %1424 = vector.shape_cast %1423 : vector<8xf32> to vector<8x1xf32>
    %1425 = tpu.reciprocal %1424 {approx = true} : vector<8x1xf32> -> vector<8x1xf32>
    %1426 = vector.broadcast %1425 : vector<8x1xf32> to vector<8x8xf32>
    %1427 = arith.mulf %1422, %1426 : vector<8x8xf32>
    %cst_542 = arith.constant dense<0.000000e+00> : vector<8x8xf32>
    %1428 = tpu.matmul %1427, %1412, %cst_542 {dimension_numbers = #tpu.dot_dimension_numbers<[1], [0], [0], [1], [0, 0, 1, 1], [], []>} : vector<8x8xf32>, vector<8x8xf32>, vector<8x8xf32> -> vector<8x8xf32>
    %1429 = vector.extract_strided_slice %1332 {offsets = [24, 0], sizes = [8, 32], strides = [1, 1]} : vector<32x32xf32> to vector<8x32xf32>
    %cst_543 = arith.constant dense<0.000000e+00> : vector<8x32xf32>
    %1430 = tpu.matmul %1428, %1429, %cst_543 {dimension_numbers = #tpu.dot_dimension_numbers<[1], [0], [0], [1], [0, 0, 1, 1], [], []>} : vector<8x8xf32>, vector<8x32xf32>, vector<8x32xf32> -> vector<8x32xf32>
    %1431 = arith.addf %1409, %1430 : vector<8x32xf32>
    %1432 = vector.extract_strided_slice %1337 {offsets = [8, 0], sizes = [8, 32], strides = [1, 1]} : vector<16x32xf32> to vector<8x32xf32>
    %1433 = vector.extract_strided_slice %1340 {offsets = [8, 0], sizes = [8, 64], strides = [1, 1]} : vector<16x64xf32> to vector<8x64xf32>
    %cst_544 = arith.constant 0.000000e+00 : f32
    %1434 = vector.broadcast %cst_544 : f32 to vector<8x32xf32>
    %1435 = vector.extract_strided_slice %1432 {offsets = [0, 0], sizes = [8, 8], strides = [1, 1]} : vector<8x32xf32> to vector<8x8xf32>
    %1436 = vector.extract_strided_slice %1433 {offsets = [0, 0], sizes = [8, 8], strides = [1, 1]} : vector<8x64xf32> to vector<8x8xf32>
    %1437 = vector.extract_strided_slice %1433 {offsets = [0, 32], sizes = [8, 8], strides = [1, 1]} : vector<8x64xf32> to vector<8x8xf32>
    %cst_545 = arith.constant dense<0.000000e+00> : vector<8x8xf32>
    %1438 = tpu.matmul %1435, %1436, %cst_545 {dimension_numbers = #tpu.dot_dimension_numbers<[1], [1], [0], [0], [0, 0, 1, 0], [], []>} : vector<8x8xf32>, vector<8x8xf32>, vector<8x8xf32> -> vector<8x8xf32>
    %cst_546 = arith.constant 0.353553385 : f32
    %1439 = vector.broadcast %cst_546 : f32 to vector<8x8xf32>
    %1440 = arith.mulf %1438, %1439 : vector<8x8xf32>
    %1441 = vector.broadcast %15 : vector<1x8xf32> to vector<8x8xf32>
    %1442 = arith.addf %1440, %1441 : vector<8x8xf32>
    %cst_547 = arith.constant dense<0xFF800000> : vector<8xf32>
    %1443 = vector.multi_reduction <maximumf>, %1442, %cst_547 [1] : vector<8x8xf32> to vector<8xf32>
    %1444 = vector.shape_cast %1443 : vector<8xf32> to vector<8x1xf32>
    %1445 = vector.broadcast %1444 : vector<8x1xf32> to vector<8x8xf32>
    %1446 = arith.subf %1442, %1445 : vector<8x8xf32>
    %1447 = math.exp %1446 : vector<8x8xf32>
    %cst_548 = arith.constant dense<0.000000e+00> : vector<8xf32>
    %1448 = vector.multi_reduction <add>, %1447, %cst_548 [1] : vector<8x8xf32> to vector<8xf32>
    %1449 = vector.shape_cast %1448 : vector<8xf32> to vector<8x1xf32>
    %1450 = tpu.reciprocal %1449 {approx = true} : vector<8x1xf32> -> vector<8x1xf32>
    %1451 = vector.broadcast %1450 : vector<8x1xf32> to vector<8x8xf32>
    %1452 = arith.mulf %1447, %1451 : vector<8x8xf32>
    %cst_549 = arith.constant dense<0.000000e+00> : vector<8x8xf32>
    %1453 = tpu.matmul %1452, %1437, %cst_549 {dimension_numbers = #tpu.dot_dimension_numbers<[1], [0], [0], [1], [0, 0, 1, 1], [], []>} : vector<8x8xf32>, vector<8x8xf32>, vector<8x8xf32> -> vector<8x8xf32>
    %1454 = vector.extract_strided_slice %1332 {offsets = [0, 0], sizes = [8, 32], strides = [1, 1]} : vector<32x32xf32> to vector<8x32xf32>
    %cst_550 = arith.constant dense<0.000000e+00> : vector<8x32xf32>
    %1455 = tpu.matmul %1453, %1454, %cst_550 {dimension_numbers = #tpu.dot_dimension_numbers<[1], [0], [0], [1], [0, 0, 1, 1], [], []>} : vector<8x8xf32>, vector<8x32xf32>, vector<8x32xf32> -> vector<8x32xf32>
    %1456 = arith.addf %1434, %1455 : vector<8x32xf32>
    %1457 = vector.extract_strided_slice %1432 {offsets = [0, 8], sizes = [8, 8], strides = [1, 1]} : vector<8x32xf32> to vector<8x8xf32>
    %1458 = vector.extract_strided_slice %1433 {offsets = [0, 8], sizes = [8, 8], strides = [1, 1]} : vector<8x64xf32> to vector<8x8xf32>
    %1459 = vector.extract_strided_slice %1433 {offsets = [0, 40], sizes = [8, 8], strides = [1, 1]} : vector<8x64xf32> to vector<8x8xf32>
    %cst_551 = arith.constant dense<0.000000e+00> : vector<8x8xf32>
    %1460 = tpu.matmul %1457, %1458, %cst_551 {dimension_numbers = #tpu.dot_dimension_numbers<[1], [1], [0], [0], [0, 0, 1, 0], [], []>} : vector<8x8xf32>, vector<8x8xf32>, vector<8x8xf32> -> vector<8x8xf32>
    %cst_552 = arith.constant 0.353553385 : f32
    %1461 = vector.broadcast %cst_552 : f32 to vector<8x8xf32>
    %1462 = arith.mulf %1460, %1461 : vector<8x8xf32>
    %1463 = vector.broadcast %15 : vector<1x8xf32> to vector<8x8xf32>
    %1464 = arith.addf %1462, %1463 : vector<8x8xf32>
    %cst_553 = arith.constant dense<0xFF800000> : vector<8xf32>
    %1465 = vector.multi_reduction <maximumf>, %1464, %cst_553 [1] : vector<8x8xf32> to vector<8xf32>
    %1466 = vector.shape_cast %1465 : vector<8xf32> to vector<8x1xf32>
    %1467 = vector.broadcast %1466 : vector<8x1xf32> to vector<8x8xf32>
    %1468 = arith.subf %1464, %1467 : vector<8x8xf32>
    %1469 = math.exp %1468 : vector<8x8xf32>
    %cst_554 = arith.constant dense<0.000000e+00> : vector<8xf32>
    %1470 = vector.multi_reduction <add>, %1469, %cst_554 [1] : vector<8x8xf32> to vector<8xf32>
    %1471 = vector.shape_cast %1470 : vector<8xf32> to vector<8x1xf32>
    %1472 = tpu.reciprocal %1471 {approx = true} : vector<8x1xf32> -> vector<8x1xf32>
    %1473 = vector.broadcast %1472 : vector<8x1xf32> to vector<8x8xf32>
    %1474 = arith.mulf %1469, %1473 : vector<8x8xf32>
    %cst_555 = arith.constant dense<0.000000e+00> : vector<8x8xf32>
    %1475 = tpu.matmul %1474, %1459, %cst_555 {dimension_numbers = #tpu.dot_dimension_numbers<[1], [0], [0], [1], [0, 0, 1, 1], [], []>} : vector<8x8xf32>, vector<8x8xf32>, vector<8x8xf32> -> vector<8x8xf32>
    %1476 = vector.extract_strided_slice %1332 {offsets = [8, 0], sizes = [8, 32], strides = [1, 1]} : vector<32x32xf32> to vector<8x32xf32>
    %cst_556 = arith.constant dense<0.000000e+00> : vector<8x32xf32>
    %1477 = tpu.matmul %1475, %1476, %cst_556 {dimension_numbers = #tpu.dot_dimension_numbers<[1], [0], [0], [1], [0, 0, 1, 1], [], []>} : vector<8x8xf32>, vector<8x32xf32>, vector<8x32xf32> -> vector<8x32xf32>
    %1478 = arith.addf %1456, %1477 : vector<8x32xf32>
    %1479 = vector.extract_strided_slice %1432 {offsets = [0, 16], sizes = [8, 8], strides = [1, 1]} : vector<8x32xf32> to vector<8x8xf32>
    %1480 = vector.extract_strided_slice %1433 {offsets = [0, 16], sizes = [8, 8], strides = [1, 1]} : vector<8x64xf32> to vector<8x8xf32>
    %1481 = vector.extract_strided_slice %1433 {offsets = [0, 48], sizes = [8, 8], strides = [1, 1]} : vector<8x64xf32> to vector<8x8xf32>
    %cst_557 = arith.constant dense<0.000000e+00> : vector<8x8xf32>
    %1482 = tpu.matmul %1479, %1480, %cst_557 {dimension_numbers = #tpu.dot_dimension_numbers<[1], [1], [0], [0], [0, 0, 1, 0], [], []>} : vector<8x8xf32>, vector<8x8xf32>, vector<8x8xf32> -> vector<8x8xf32>
    %cst_558 = arith.constant 0.353553385 : f32
    %1483 = vector.broadcast %cst_558 : f32 to vector<8x8xf32>
    %1484 = arith.mulf %1482, %1483 : vector<8x8xf32>
    %1485 = vector.broadcast %15 : vector<1x8xf32> to vector<8x8xf32>
    %1486 = arith.addf %1484, %1485 : vector<8x8xf32>
    %cst_559 = arith.constant dense<0xFF800000> : vector<8xf32>
    %1487 = vector.multi_reduction <maximumf>, %1486, %cst_559 [1] : vector<8x8xf32> to vector<8xf32>
    %1488 = vector.shape_cast %1487 : vector<8xf32> to vector<8x1xf32>
    %1489 = vector.broadcast %1488 : vector<8x1xf32> to vector<8x8xf32>
    %1490 = arith.subf %1486, %1489 : vector<8x8xf32>
    %1491 = math.exp %1490 : vector<8x8xf32>
    %cst_560 = arith.constant dense<0.000000e+00> : vector<8xf32>
    %1492 = vector.multi_reduction <add>, %1491, %cst_560 [1] : vector<8x8xf32> to vector<8xf32>
    %1493 = vector.shape_cast %1492 : vector<8xf32> to vector<8x1xf32>
    %1494 = tpu.reciprocal %1493 {approx = true} : vector<8x1xf32> -> vector<8x1xf32>
    %1495 = vector.broadcast %1494 : vector<8x1xf32> to vector<8x8xf32>
    %1496 = arith.mulf %1491, %1495 : vector<8x8xf32>
    %cst_561 = arith.constant dense<0.000000e+00> : vector<8x8xf32>
    %1497 = tpu.matmul %1496, %1481, %cst_561 {dimension_numbers = #tpu.dot_dimension_numbers<[1], [0], [0], [1], [0, 0, 1, 1], [], []>} : vector<8x8xf32>, vector<8x8xf32>, vector<8x8xf32> -> vector<8x8xf32>
    %1498 = vector.extract_strided_slice %1332 {offsets = [16, 0], sizes = [8, 32], strides = [1, 1]} : vector<32x32xf32> to vector<8x32xf32>
    %cst_562 = arith.constant dense<0.000000e+00> : vector<8x32xf32>
    %1499 = tpu.matmul %1497, %1498, %cst_562 {dimension_numbers = #tpu.dot_dimension_numbers<[1], [0], [0], [1], [0, 0, 1, 1], [], []>} : vector<8x8xf32>, vector<8x32xf32>, vector<8x32xf32> -> vector<8x32xf32>
    %1500 = arith.addf %1478, %1499 : vector<8x32xf32>
    %1501 = vector.extract_strided_slice %1432 {offsets = [0, 24], sizes = [8, 8], strides = [1, 1]} : vector<8x32xf32> to vector<8x8xf32>
    %1502 = vector.extract_strided_slice %1433 {offsets = [0, 24], sizes = [8, 8], strides = [1, 1]} : vector<8x64xf32> to vector<8x8xf32>
    %1503 = vector.extract_strided_slice %1433 {offsets = [0, 56], sizes = [8, 8], strides = [1, 1]} : vector<8x64xf32> to vector<8x8xf32>
    %cst_563 = arith.constant dense<0.000000e+00> : vector<8x8xf32>
    %1504 = tpu.matmul %1501, %1502, %cst_563 {dimension_numbers = #tpu.dot_dimension_numbers<[1], [1], [0], [0], [0, 0, 1, 0], [], []>} : vector<8x8xf32>, vector<8x8xf32>, vector<8x8xf32> -> vector<8x8xf32>
    %cst_564 = arith.constant 0.353553385 : f32
    %1505 = vector.broadcast %cst_564 : f32 to vector<8x8xf32>
    %1506 = arith.mulf %1504, %1505 : vector<8x8xf32>
    %1507 = vector.broadcast %15 : vector<1x8xf32> to vector<8x8xf32>
    %1508 = arith.addf %1506, %1507 : vector<8x8xf32>
    %cst_565 = arith.constant dense<0xFF800000> : vector<8xf32>
    %1509 = vector.multi_reduction <maximumf>, %1508, %cst_565 [1] : vector<8x8xf32> to vector<8xf32>
    %1510 = vector.shape_cast %1509 : vector<8xf32> to vector<8x1xf32>
    %1511 = vector.broadcast %1510 : vector<8x1xf32> to vector<8x8xf32>
    %1512 = arith.subf %1508, %1511 : vector<8x8xf32>
    %1513 = math.exp %1512 : vector<8x8xf32>
    %cst_566 = arith.constant dense<0.000000e+00> : vector<8xf32>
    %1514 = vector.multi_reduction <add>, %1513, %cst_566 [1] : vector<8x8xf32> to vector<8xf32>
    %1515 = vector.shape_cast %1514 : vector<8xf32> to vector<8x1xf32>
    %1516 = tpu.reciprocal %1515 {approx = true} : vector<8x1xf32> -> vector<8x1xf32>
    %1517 = vector.broadcast %1516 : vector<8x1xf32> to vector<8x8xf32>
    %1518 = arith.mulf %1513, %1517 : vector<8x8xf32>
    %cst_567 = arith.constant dense<0.000000e+00> : vector<8x8xf32>
    %1519 = tpu.matmul %1518, %1503, %cst_567 {dimension_numbers = #tpu.dot_dimension_numbers<[1], [0], [0], [1], [0, 0, 1, 1], [], []>} : vector<8x8xf32>, vector<8x8xf32>, vector<8x8xf32> -> vector<8x8xf32>
    %1520 = vector.extract_strided_slice %1332 {offsets = [24, 0], sizes = [8, 32], strides = [1, 1]} : vector<32x32xf32> to vector<8x32xf32>
    %cst_568 = arith.constant dense<0.000000e+00> : vector<8x32xf32>
    %1521 = tpu.matmul %1519, %1520, %cst_568 {dimension_numbers = #tpu.dot_dimension_numbers<[1], [0], [0], [1], [0, 0, 1, 1], [], []>} : vector<8x8xf32>, vector<8x32xf32>, vector<8x32xf32> -> vector<8x32xf32>
    %1522 = arith.addf %1500, %1521 : vector<8x32xf32>
    %1523 = tpu.concatenate %1431, %1522 in 0 : vector<8x32xf32>, vector<8x32xf32> -> vector<16x32xf32>
    %1524 = vector.broadcast %1334 : vector<1x32xf32> to vector<16x32xf32>
    %1525 = arith.addf %1523, %1524 : vector<16x32xf32>
    %1526 = arith.addf %1296, %1525 : vector<16x32xf32>
    %c1_569 = arith.constant 1 : index
    %c0_570 = arith.constant 0 : index
    %c0_571 = arith.constant 0 : index
    %1527 = vector.load %arg16[%c1_569, %c0_570, %c0_571] : memref<2x1x32xf32, #tpu.memory_space<vmem>>, vector<1x1x32xf32>
    %1528 = vector.shape_cast %1527 : vector<1x1x32xf32> to vector<1x32xf32>
    %c1_572 = arith.constant 1 : index
    %c0_573 = arith.constant 0 : index
    %c0_574 = arith.constant 0 : index
    %1529 = vector.load %arg15[%c1_572, %c0_573, %c0_574] : memref<2x1x32xf32, #tpu.memory_space<vmem>>, vector<1x1x32xf32>
    %1530 = vector.shape_cast %1529 : vector<1x1x32xf32> to vector<1x32xf32>
    %cst_575 = arith.constant dense<0.000000e+00> : vector<16xf32>
    %1531 = vector.multi_reduction <add>, %1526, %cst_575 [1] : vector<16x32xf32> to vector<16xf32>
    %1532 = vector.shape_cast %1531 : vector<16xf32> to vector<16x1xf32>
    %cst_576 = arith.constant 3.200000e+01 : f32
    %1533 = vector.broadcast %cst_576 : f32 to vector<16x1xf32>
    %1534 = arith.divf %1532, %1533 : vector<16x1xf32>
    %1535 = vector.broadcast %1534 : vector<16x1xf32> to vector<16x32xf32>
    %1536 = arith.subf %1526, %1535 : vector<16x32xf32>
    %1537 = arith.mulf %1536, %1536 : vector<16x32xf32>
    %cst_577 = arith.constant dense<0.000000e+00> : vector<16xf32>
    %1538 = vector.multi_reduction <add>, %1537, %cst_577 [1] : vector<16x32xf32> to vector<16xf32>
    %1539 = vector.shape_cast %1538 : vector<16xf32> to vector<16x1xf32>
    %cst_578 = arith.constant 3.200000e+01 : f32
    %1540 = vector.broadcast %cst_578 : f32 to vector<16x1xf32>
    %1541 = arith.divf %1539, %1540 : vector<16x1xf32>
    %1542 = vector.broadcast %1534 : vector<16x1xf32> to vector<16x32xf32>
    %1543 = arith.subf %1526, %1542 : vector<16x32xf32>
    %cst_579 = arith.constant 9.99999997E-7 : f32
    %1544 = vector.broadcast %cst_579 : f32 to vector<16x1xf32>
    %1545 = arith.addf %1541, %1544 : vector<16x1xf32>
    %1546 = math.rsqrt %1545 : vector<16x1xf32>
    %1547 = vector.broadcast %1546 : vector<16x1xf32> to vector<16x32xf32>
    %1548 = arith.mulf %1543, %1547 : vector<16x32xf32>
    %1549 = vector.broadcast %1528 : vector<1x32xf32> to vector<16x32xf32>
    %1550 = arith.mulf %1548, %1549 : vector<16x32xf32>
    %1551 = vector.broadcast %1530 : vector<1x32xf32> to vector<16x32xf32>
    %1552 = arith.addf %1550, %1551 : vector<16x32xf32>
    %c1_580 = arith.constant 1 : index
    %c0_581 = arith.constant 0 : index
    %c0_582 = arith.constant 0 : index
    %1553 = vector.load %arg17[%c1_580, %c0_581, %c0_582] : memref<2x32x64xf32, #tpu.memory_space<vmem>>, vector<1x32x64xf32>
    %1554 = vector.shape_cast %1553 : vector<1x32x64xf32> to vector<32x64xf32>
    %c1_583 = arith.constant 1 : index
    %c0_584 = arith.constant 0 : index
    %c0_585 = arith.constant 0 : index
    %1555 = vector.load %arg4[%c1_583, %c0_584, %c0_585] : memref<2x1x64xf32, #tpu.memory_space<vmem>>, vector<1x1x64xf32>
    %1556 = vector.shape_cast %1555 : vector<1x1x64xf32> to vector<1x64xf32>
    %c1_586 = arith.constant 1 : index
    %c0_587 = arith.constant 0 : index
    %c0_588 = arith.constant 0 : index
    %1557 = vector.load %arg18[%c1_586, %c0_587, %c0_588] : memref<2x64x32xf32, #tpu.memory_space<vmem>>, vector<1x64x32xf32>
    %1558 = vector.shape_cast %1557 : vector<1x64x32xf32> to vector<64x32xf32>
    %c1_589 = arith.constant 1 : index
    %c0_590 = arith.constant 0 : index
    %c0_591 = arith.constant 0 : index
    %1559 = vector.load %arg5[%c1_589, %c0_590, %c0_591] : memref<2x1x32xf32, #tpu.memory_space<vmem>>, vector<1x1x32xf32>
    %1560 = vector.shape_cast %1559 : vector<1x1x32xf32> to vector<1x32xf32>
    %cst_592 = arith.constant dense<0.000000e+00> : vector<16x64xf32>
    %1561 = tpu.matmul %1552, %1554, %cst_592 {dimension_numbers = #tpu.dot_dimension_numbers<[1], [0], [0], [1], [0, 0, 1, 1], [], []>} : vector<16x32xf32>, vector<32x64xf32>, vector<16x64xf32> -> vector<16x64xf32>
    %1562 = vector.broadcast %1556 : vector<1x64xf32> to vector<16x64xf32>
    %1563 = arith.addf %1561, %1562 : vector<16x64xf32>
    %cst_593 = arith.constant 0.000000e+00 : f32
    %1564 = vector.broadcast %cst_593 : f32 to vector<16x64xf32>
    %1565 = arith.maximumf %1563, %1564 : vector<16x64xf32>
    %cst_594 = arith.constant dense<0.000000e+00> : vector<16x32xf32>
    %1566 = tpu.matmul %1565, %1558, %cst_594 {dimension_numbers = #tpu.dot_dimension_numbers<[1], [0], [0], [1], [0, 0, 1, 1], [], []>} : vector<16x64xf32>, vector<64x32xf32>, vector<16x32xf32> -> vector<16x32xf32>
    %1567 = vector.broadcast %1560 : vector<1x32xf32> to vector<16x32xf32>
    %1568 = arith.addf %1566, %1567 : vector<16x32xf32>
    %1569 = arith.addf %1526, %1568 : vector<16x32xf32>
    %c0_595 = arith.constant 0 : index
    %c0_596 = arith.constant 0 : index
    %1570 = vector.load %arg25[%c0_595, %c0_596] : memref<1x32xf32, #tpu.memory_space<vmem>>, vector<1x32xf32>
    %c0_597 = arith.constant 0 : index
    %c0_598 = arith.constant 0 : index
    %1571 = vector.load %arg24[%c0_597, %c0_598] : memref<1x32xf32, #tpu.memory_space<vmem>>, vector<1x32xf32>
    %cst_599 = arith.constant dense<0.000000e+00> : vector<16xf32>
    %1572 = vector.multi_reduction <add>, %1569, %cst_599 [1] : vector<16x32xf32> to vector<16xf32>
    %1573 = vector.shape_cast %1572 : vector<16xf32> to vector<16x1xf32>
    %cst_600 = arith.constant 3.200000e+01 : f32
    %1574 = vector.broadcast %cst_600 : f32 to vector<16x1xf32>
    %1575 = arith.divf %1573, %1574 : vector<16x1xf32>
    %1576 = vector.broadcast %1575 : vector<16x1xf32> to vector<16x32xf32>
    %1577 = arith.subf %1569, %1576 : vector<16x32xf32>
    %1578 = arith.mulf %1577, %1577 : vector<16x32xf32>
    %cst_601 = arith.constant dense<0.000000e+00> : vector<16xf32>
    %1579 = vector.multi_reduction <add>, %1578, %cst_601 [1] : vector<16x32xf32> to vector<16xf32>
    %1580 = vector.shape_cast %1579 : vector<16xf32> to vector<16x1xf32>
    %cst_602 = arith.constant 3.200000e+01 : f32
    %1581 = vector.broadcast %cst_602 : f32 to vector<16x1xf32>
    %1582 = arith.divf %1580, %1581 : vector<16x1xf32>
    %1583 = vector.broadcast %1575 : vector<16x1xf32> to vector<16x32xf32>
    %1584 = arith.subf %1569, %1583 : vector<16x32xf32>
    %cst_603 = arith.constant 9.99999997E-7 : f32
    %1585 = vector.broadcast %cst_603 : f32 to vector<16x1xf32>
    %1586 = arith.addf %1582, %1585 : vector<16x1xf32>
    %1587 = math.rsqrt %1586 : vector<16x1xf32>
    %1588 = vector.broadcast %1587 : vector<16x1xf32> to vector<16x32xf32>
    %1589 = arith.mulf %1584, %1588 : vector<16x32xf32>
    %1590 = vector.broadcast %1570 : vector<1x32xf32> to vector<16x32xf32>
    %1591 = arith.mulf %1589, %1590 : vector<16x32xf32>
    %1592 = vector.broadcast %1571 : vector<1x32xf32> to vector<16x32xf32>
    %1593 = arith.addf %1591, %1592 : vector<16x32xf32>
    %c0_604 = arith.constant 0 : index
    %c0_605 = arith.constant 0 : index
    %1594 = vector.load %arg40[%c0_604, %c0_605] : memref<16x32xf32, #tpu.memory_space<vmem>>, vector<16x32xf32>
    tpu.vector_store %arg40[%c0_604, %c0_605], %1593 {strides = array<i32>} : memref<16x32xf32, #tpu.memory_space<vmem>>, vector<16x32xf32>,
    return
  }
}

</mosaic_0001>

<bundles_post_ra>
// kernel: encoder_decoder_forward.1
= control target key start
LH: loop header
LB: loop body
LE: loop exit
PB: predicated region body
PF: predicated region fallthrough
CT: control target
= control target key end

     0   :  { %s16199_s6 = smov 1   ;;  %s16200_s10 = smov 2   ;;  %s18068_s0 = inlined_call_operand.smem [shape: u32[41], index: -1, kind: input, shape index: {}] }
   0x1   :  { %s16267_s5 = sld [smem:[%s18068_s0]]   ;;  %s16201_s14 = smov 3  }
   0x2   :  { %s16272_s9 = sld [smem:[%s18068_s0 + %s16199_s6]]   ;;  %s16202_s18 = smov 4  }
   0x3   :  { %s16277_s13 = sld [smem:[%s18068_s0 + %s16200_s10]]   ;;  %s16203_s22 = smov 5  }
   0x4   :  { %s16282_s17 = sld [smem:[%s18068_s0 + %s16201_s14]]   ;;  %s16204_s26 = smov 6  }
   0x5   :  { %s16287_s21 = sld [smem:[%s18068_s0 + %s16202_s18]]   ;;  %s16205_s30 = smov 7  }
   0x6   :  { %s16292_s25 = sld [smem:[%s18068_s0 + %s16203_s22]]   ;;  %s16206_s4 = smov 8  }
   0x7   :  { %s16297_s29 = sld [smem:[%s18068_s0 + %s16204_s26]]   ;;  %s16207_s10 = smov 9  }
   0x8   :  { %18093 = sst [smem:[#allocation12_spill]] %s16272_s9  ;;  %s16208_s15 = smov 10  }
   0x9   :  { %s16302_s3 = sld [smem:[%s18068_s0 + %s16205_s30]]   ;;  %s16209_s20 = smov 11  }
   0xa   :  { %18094 = sst [smem:[#allocation13_spill]] %s16282_s17  ;;  %s16210_s26 = smov 12  }
   0xb   :  { %18095 = sst [smem:[#allocation14_spill]] %s16287_s21  ;;  %s16211_s1 = smov 13  }
   0xc   :  { %18096 = sst [smem:[#allocation15_spill]] %s16292_s25  ;;  %s16212_s7 = smov 14  }
   0xd   :  { %18097 = sst [smem:[#allocation16_spill]] %s16297_s29  ;;  %s16214_s22 = smov 16  }
   0xe   :  { %s16307_s8 = sld [smem:[%s18068_s0 + %s16206_s4]]   ;;  %s16215_s28 = smov 17  }
   0xf   :  { %18098 = sst [smem:[#allocation17_spill]] %s16302_s3  ;;  %s16237_s16 = smov 39  }
  0x10   :  { %s16312_s14 = sld [smem:[%s18068_s0 + %s16207_s10]]   ;;  %s16238_s23 = smov 40  }
  0x11   :  { %s16317_s19 = sld [smem:[%s18068_s0 + %s16208_s15]]   ;;  %s16213_s15 = smov 15  }
  0x12   :  { %s16322_s24 = sld [smem:[%s18068_s0 + %s16209_s20]]  }
  0x13   :  { %s16327_s30 = sld [smem:[%s18068_s0 + %s16210_s26]]  }
  0x14   :  { %18099 = sst [smem:[#allocation18_spill]] %s16307_s8 }
  0x15   :  { %s16332_s6 = sld [smem:[%s18068_s0 + %s16211_s1]]  }
  0x16   :  { %18100 = sst [smem:[#allocation19_spill]] %s16312_s14 }
  0x17   :  { %18101 = sst [smem:[#allocation20_spill]] %s16317_s19 }
  0x18   :  { %18102 = sst [smem:[#allocation21_spill]] %s16322_s24 }
  0x19   :  { %18103 = sst [smem:[#allocation22_spill]] %s16327_s30 }
  0x1a   :  { %s16337_s12 = sld [smem:[%s18068_s0 + %s16212_s7]]   ;;  %s16216_s7 = smov 18  }
  0x1b   :  { %18104 = sst [smem:[#allocation23_spill]] %s16332_s6 }
  0x1c   :  { %s16342_s20 = sld [smem:[%s18068_s0 + %s16213_s15]]   ;;  %s16217_s15 = smov 19  }
  0x1d   :  { %s16347_s27 = sld [smem:[%s18068_s0 + %s16214_s22]]   ;;  %s16218_s22 = smov 20  }
  0x1e   :  { %s16352_s4 = sld [smem:[%s18068_s0 + %s16215_s28]]   ;;  %s16219_s28 = smov 21  }
  0x1f   :  { %s16357_s25 = sld [smem:[%s18068_s0 + %s16216_s7]]   ;;  %s16220_s7 = smov 22  }
  0x20   :  { %18105 = sst [smem:[#allocation24_spill]] %s16337_s12 }
  0x21   :  { %s16362_s21 = sld [smem:[%s18068_s0 + %s16217_s15]]   ;;  %s16221_s15 = smov 23  }
  0x22   :  { %18106 = sst [smem:[#allocation25_spill]] %s16342_s20 }
  0x23   :  { %18107 = sst [smem:[#allocation26_spill]] %s16347_s27 }
  0x24   :  { %18108 = sst [smem:[#allocation27_spill]] %s16352_s4 }
  0x25   :  { %18109 = sst [smem:[#allocation28_spill]] %s16357_s25 }
  0x26   :  { %s16367_s20 = sld [smem:[%s18068_s0 + %s16218_s22]]   ;;  %s16222_s22 = smov 24  }
  0x27   :  { %18110 = sst [smem:[#allocation29_spill]] %s16362_s21 }
  0x28   :  { %s16372_s4 = sld [smem:[%s18068_s0 + %s16219_s28]]   ;;  %s16223_s28 = smov 25  }
  0x29   :  { %s16377_s25 = sld [smem:[%s18068_s0 + %s16220_s7]]   ;;  %s16224_s7 = smov 26  }
  0x2a   :  { %s16382_s27 = sld [smem:[%s18068_s0 + %s16221_s15]]   ;;  %s16225_s15 = smov 27  }
  0x2b   :  { %s16387_s3 = sld [smem:[%s18068_s0 + %s16222_s22]]   ;;  %s16226_s22 = smov 28  }
  0x2c   :  { %18111 = sst [smem:[#allocation30_spill]] %s16367_s20 }
  0x2d   :  { %s16392_s20 = sld [smem:[%s18068_s0 + %s16223_s28]]   ;;  %s16227_s28 = smov 29  }
  0x2e   :  { %18112 = sst [smem:[#allocation31_spill]] %s16372_s4 }
  0x2f   :  { %18113 = sst [smem:[#allocation32_spill]] %s16377_s25 }
  0x30   :  { %18114 = sst [smem:[#allocation33_spill]] %s16382_s27 }
  0x31   :  { %18115 = sst [smem:[#allocation34_spill]] %s16387_s3 }
  0x32   :  { %s16397_s14 = sld [smem:[%s18068_s0 + %s16224_s7]]   ;;  %s16228_s7 = smov 30  }
  0x33   :  { %s16402_s29 = sld [smem:[%s18068_s0 + %s16225_s15]]   ;;  %s16229_s15 = smov 31  }
  0x34   :  { %s16407_s3 = sld [smem:[%s18068_s0 + %s16226_s22]]   ;;  %s16230_s22 = smov 32  }
  0x35   :  { %s16412_s25 = sld [smem:[%s18068_s0 + %s16227_s28]]   ;;  %s16231_s28 = smov 33  }
  0x36   :  { %s16417_s6 = sld [smem:[%s18068_s0 + %s16228_s7]]   ;;  %s16232_s7 = smov 34  }
  0x37   :  { %s16422_s12 = sld [smem:[%s18068_s0 + %s16229_s15]]   ;;  %s16233_s15 = smov 35  }
  0x38   :  { %s16427_s21 = sld [smem:[%s18068_s0 + %s16230_s22]]   ;;  %s16234_s22 = smov 36  }
  0x39   :  { %s16432_s8 = sld [smem:[%s18068_s0 + %s16231_s28]]   ;;  %s16235_s28 = smov 37  }
  0x3a   :  { %s16437_s4 = sld [smem:[%s18068_s0 + %s16232_s7]]   ;;  %s16236_s7 = smov 38  }
  0x3b   :  { %s16442_s17 = sld [smem:[%s18068_s0 + %s16233_s15]]  }
  0x3c   :  { %s16447_s19 = sld [smem:[%s18068_s0 + %s16234_s22]]  }
  0x3d   :  { %s16452_s24 = sld [smem:[%s18068_s0 + %s16235_s28]]  }
  0x3e   :  { %s13969_s30 = sld [smem:[%s18068_s0 + %s16236_s7]]  }
  0x3f   :  { %s16460_s27 = sld [smem:[%s18068_s0 + %s16237_s16]]  }
  0x40   :  { %s16465_s9 = sld [smem:[%s18068_s0 + %s16238_s23]]  }
  0x41   :  { %86 = vsyncpa [#allocation3], 0 }
  0x42   :  { %87 = vsyncpa [#allocation6], 0 }
  0x43   :  { %88 = vsyncpa [#allocation4], 0  ;;  %s16239_s28 = smov [#allocation5]   ;;  %s16240_s2 = smov [#allocation2]  }
  0x44   :  { %s179_s1 = sshll.u32 %s16239_s28, 4  ;;  %s145_s10 = sshll.u32 %s16240_s2, 4  ;;  %s180_s1 = int_to_ptr.vmem [resolvable:$true] %s179_s1  ;;  %s146_s10 = int_to_ptr.vmem [resolvable:$true] %s145_s10 }
  0x45   :  { %s16105_s7 = scalar_lea.hbm %s13969_s30, 16 }
  0x46   :  { %p16106_p0 = scmp.ne.s32.totalorder %s13969_s30, %s16105_s7  ;;  %p16109_p1 = scmp.lt.u32.totalorder %s16105_s7, %s13969_s30 }
  0x48   :  { %p16111_p2 = pnand %p16109_p1, %p16106_p0 }
  0x4a   :  { %16114 = shalt.err (!%p16111_p2)
}
  0x4b   :  { %s16115_s11 = scalar_lea.vmem %s180_s1, 16  ;;  %s16119_s16 = scalar_lea.vmem %s180_s1, 32 }
  0x4c   :  { %p16116_p3 = scmp.ne.s32.totalorder %s180_s1, %s16115_s11  ;;  %p16120_p4 = scmp.lt.s32.totalorder %s180_s1, %s180_s1 }
  0x4d   :  { %p16121_p5 = scmp.lt.s32.totalorder %s16119_s16, %s16115_s11 }
  0x4f   :  { %p16122_p6 = por %p16121_p5, %p16120_p4 }
  0x51   :  { %p16123_p7 = pnand %p16122_p6, %p16116_p3 }
  0x53   :  { %16126 = shalt.err (!%p16123_p7)
}
  0x54   :  { %182 = dma.hbm_to_vmem [thread:$0]  %s13969_s30, 16, %s180_s1, [#allocation6]  }
  0x55   :  { %s16127_s0 = scalar_lea.hbm %s16392_s20, 16 }
  0x56   :  { %p16128_p8 = scmp.ne.s32.totalorder %s16392_s20, %s16127_s0  ;;  %p16131_p9 = scmp.lt.u32.totalorder %s16127_s0, %s16392_s20 }
  0x58   :  { %p16133_p10 = pnand %p16131_p9, %p16128_p8 }
  0x5a   :  { %16136 = shalt.err (!%p16133_p10)
}
  0x5b   :  { %s16137_s15 = scalar_lea.vmem %s146_s10, 16  ;;  %s16141_s18 = scalar_lea.vmem %s146_s10, 32 }
  0x5c   :  { %p16138_p11 = scmp.ne.s32.totalorder %s146_s10, %s16137_s15  ;;  %p16142_p12 = scmp.lt.s32.totalorder %s146_s10, %s146_s10 }
  0x5d   :  { %p16143_p13 = scmp.lt.s32.totalorder %s16141_s18, %s16137_s15 }
  0x5f   :  { %p16144_p0 = por %p16143_p13, %p16142_p12 }
  0x61   :  { %p16145_p1 = pnand %p16144_p0, %p16138_p11 }
  0x63   :  { %16148 = shalt.err (!%p16145_p1)
}
  0x64   :  { %148 = dma.hbm_to_vmem [thread:$0]  %s16392_s20, 16, %s146_s10, [#allocation3]  }
  0x65   :  { %s16241_s30 = smov [#allocation7]   ;;  %s16149_s22 = scalar_lea.hbm %s16460_s27, 16 }
  0x66   :  { %s189_s23 = sshll.u32 %s16241_s30, 4  ;;  %p16150_p2 = scmp.ne.s32.totalorder %s16460_s27, %s16149_s22  ;;  %s190_s23 = int_to_ptr.vmem [resolvable:$true] %s189_s23 }
  0x67   :  { %p16153_p3 = scmp.lt.u32.totalorder %s16149_s22, %s16460_s27 }
  0x69   :  { %p16155_p4 = pnand %p16153_p3, %p16150_p2 }
  0x6b   :  { %16158 = shalt.err (!%p16155_p4)
}
  0x6c   :  { %s16159_s26 = scalar_lea.vmem %s190_s23, 16  ;;  %s16163_s28 = scalar_lea.vmem %s190_s23, 32 }
  0x6d   :  { %p16160_p5 = scmp.ne.s32.totalorder %s190_s23, %s16159_s26  ;;  %p16164_p6 = scmp.lt.s32.totalorder %s190_s23, %s190_s23 }
  0x6e   :  { %p16165_p7 = scmp.lt.s32.totalorder %s16163_s28, %s16159_s26 }
  0x70   :  { %p16166_p8 = por %p16165_p7, %p16164_p6 }
  0x72   :  { %p16167_p9 = pnand %p16166_p8, %p16160_p5 }
  0x74   :  { %16170 = shalt.err (!%p16167_p9)
}
  0x75   :  { %192 = dma.hbm_to_vmem [thread:$0]  %s16460_s27, 16, %s190_s23, [#allocation6]  }
  0x76   :  { %16193 = dma.done.wait [#allocation3], 16  }
  0x77   :  { %16194 = vsyncadd [#allocation3], 4294967280 }
  0x78   :  { %16195 = dma.done.wait [#allocation6], 32  }
  0x79   :  { %16196 = vsyncadd [#allocation6], 4294967264  ;;  %vm222_vm0 = vcmask 261120   ;;  %v16476_v0 = vld [vmem:[%s16267_s5] sm:$0xff]  ;;  %v16479_v1 = vld [vmem:[%s16267_s5 + $0x8] sm:$0xff]  ;;  %v16242_v36 = vmov 0.0   ;;  %v443_v45 = vlaneseq }
  0x7a   :  { %v223_v2 = vsel %vm222_vm0, %v16476_v0, 0.0  ;;  %v226_v3 = vsel %vm222_vm0, %v16479_v1, 0.0  ;;  %v266_v14 = vld [vmem:[%s16452_s24] sm:$0xff]  ;;  %v267_v15 = vld [vmem:[%s16452_s24 + $0x8] sm:$0xff]  ;;  %v268_v16 = vld [vmem:[%s16452_s24 + $0x10] sm:$0xff]  ;;  %14733 = vmatprep.subr.mxu1 %v16242_v36  ;;  %vm16243_vm1 = vmmov 0  }
  0x7b   :  { %224 = vadd.xlane.f32.xlu0 %v223_v2  ;;  %v15645_v17 = vpack.c.bf16 %v267_v15, %v266_v14  ;;  %v269_v18 = vld [vmem:[%s16452_s24 + $0x18] sm:$0xff]  ;;  %v13974_v27 = vld [vmem:[%s16422_s12] ss:$0 sm:$0xff]  ;;  %14735 = vmatprep.mubr.msk.f32.mxu1 %vm16243_vm1, %v16242_v36  ;;  %s16244_s5 = smov 88   ;;  %s16245_s20 = smov 96   ;;  %vm366_vm2 = vcmask 64512  }
  0x7c   :  { %v15649_v19 = vpack.c.bf16 %v269_v18, %v268_v16  ;;  %v13975_v29 = vld [vmem:[%s16417_s6] ss:$0 sm:$0xff]  ;;  %s16246_s27 = smov 120   ;;  %v16526_v47 = vshrl.u32 %v443_v45, 7  ;;  %v16247_v49 = vmov -1e+09  }
  0x7d   :  { %15646 = vmatprep.subr.bf16.mxu0 %v15645_v17  ;;  %v13976_v37 = vld [vmem:[%s16412_s25] ss:$0 sm:$0xff]  ;;  %s16248_s1 = smov 64   ;;  %s16249_s2 = smov 80   ;;  %vm2461_vm5 = vcmask 523264  }
  0x7e   :  { %15648 = vmatpush3.bf16.msra.mxu0 %v15645_v17  ;;  %v206_v46 = vld [vmem:[%s16277_s13] sm:$0x1]  ;;  %v445_v48 = vsub.s32 0, %v16526_v47  ;;  %s16250_s10 = smov 112   ;;  %s16251_s7 = smov 56  }
  0x7f   :  { %227 = vadd.xlane.f32.xlu0 %v226_v3  ;;  %15650 = vmatprep.subr.bf16.mxu0 %v15649_v19  ;;  %vm207_vm3 = vcmp.gt.s32.totalorder %v206_v46, 0  ;;  %s16252_s11 = smov 72   ;;  %s16253_s16 = smov 104  }
  0x80   :  { %v208_v50 = vsel %vm207_vm3, 0.0, %v16247_v49  ;;  %s16254_s0 = smov 48   ;;  %s18091_s15 = smov 40  }
  0x81   :  { %v16532_v51 = vrot.slane %v208_v50, %v445_v48  ;;  %s18129_s18 = sld [smem:[#allocation19_spill]]  ;;  %s18130_s30 = sld [smem:[#allocation30_spill]] }
  0x82   :  { %15652 = vmatpush3.bf16.msra.mxu0 %v15649_v19  ;;  %v16562_v19 = vld [vmem:[%s16447_s19] sm:$0xff]  ;;  %s18131_s23 = sld [smem:[#allocation17_spill]]  ;;  %s18132_s22 = sld [smem:[#allocation26_spill]] }
  0x83   :  { %14728 = vmatprep.subr.mxu0 %v16242_v36  ;;  %s18133_s26 = sld [smem:[#allocation25_spill]]  ;;  %s18134_s28 = sld [smem:[#allocation27_spill]] }
 0x108   :  { %v225_v4 = vpop.xlane.xlu0 %224 }
 0x109   :  { %v230_v5 = vmul.f32 0.03125, %v225_v4 }
 0x10b   :  { %v232_v6 = vsub.f32 %v16476_v0, %v230_v5 }
 0x10c   :  { %v228_v7 = vpop.xlane.xlu0 %227 }
 0x10d   :  { %v231_v8 = vmul.f32 0.03125, %v228_v7  ;;  %v234_v9 = vmul.f32 %v232_v6, %v232_v6 }
 0x10f   :  { %v233_v10 = vsub.f32 %v16479_v1, %v231_v8  ;;  %v236_v11 = vsel %vm222_vm0, %v234_v9, 0.0 }
 0x110   :  { %237 = vadd.xlane.f32.xlu1 %v236_v11  ;;  %v16550_v11 = vld [vmem:[%s16447_s19 + $0x8] sm:$0xff] }
 0x111   :  { %v235_v12 = vmul.f32 %v233_v10, %v233_v10 }
 0x113   :  { %v239_v13 = vsel %vm222_vm0, %v235_v12, 0.0 }
 0x114   :  { %240 = vadd.xlane.f32.xlu1 %v239_v13 }
 0x19d   :  { %v238_v20 = vpop.xlane.xlu1 %237 }
 0x19e   :  { %v242_v21 = vmul.f32 0.03125, %v238_v20 }
 0x1a0   :  { %v244_v22 = vadd.f32 1e-06, %v242_v21 }
 0x1a1   :  { %v241_v23 = vpop.xlane.xlu1 %240 }
 0x1a2   :  { %15865 = vrsqrt.f32 %v244_v22  ;;  %v243_v24 = vmul.f32 0.03125, %v241_v23 }
 0x1a4   :  { %v245_v25 = vadd.f32 1e-06, %v243_v24 }
 0x1a6   :  { %15867 = vrsqrt.f32 %v245_v25 }
 0x1ac   :  { %v15866_v26 = vpop.eup %15865 }
 0x1ad   :  { %v248_v28 = vmul.f32 %v15866_v26, %v232_v6 }
 0x1af   :  { %v256_v30 = vmul.f32 %v13974_v27, %v248_v28 }
 0x1b0   :  { %v15868_v31 = vpop.eup %15867 }
 0x1b1   :  { %v249_v32 = vmul.f32 %v15868_v31, %v233_v10  ;;  %v264_v33 = vadd.f32 %v13975_v29, %v256_v30 }
 0x1b3   :  { %v257_v34 = vmul.f32 %v13974_v27, %v249_v32  ;;  %14725 = vmatprep.mubr.msk.f32.mxu0 %vm222_vm0, %v264_v33 }
 0x1b5   :  { %v265_v35 = vadd.f32 %v13975_v29, %v257_v34 }
 0x1b7   :  { %14726 = vmatmul.mubr.msk.f32.vlgmr.msra.gmra.mrb[0].mxu0 %vm222_vm0, %v265_v35 }
 0x1b8   :  { %14730 = vmatprep.mubr.msk.f32.mxu0 %vm16243_vm1, %v16242_v36 }
 0x28a   :  { %v14727_v38 = vpop.f32.mrb[0].mxu0 }
 0x28b   :  { %v16504_v39 = vadd.f32 %v14727_v38, %v13976_v37  ;;  %v354_v40 = vpop.f32.mrb[1].mxu0 }
 0x28c   :  { %v16506_v41 = vadd.f32 %v13976_v37, %v354_v40 }
 0x28e   :  { %538 = vrot.lane.b32.xlu1 %v16506_v41, %s16244_s5  ;;  %364 = vrot.lane.b32.xlu0 %v16506_v41, %s16245_s20 }
 0x292   :  { %536 = vrot.lane.b32.xlu1 %v16506_v41, %s16246_s27 }
 0x300   :  { %v365_v42 = vpop.permute.xlu0 %364  ;;  %v539_v43 = vpop.permute.xlu1 %538 }
 0x301   :  { %14729 = vmatpush3.xpose.msk.msra.mxu0 %vm366_vm2, %v365_v42 }
 0x302   :  { %14738 = vmatprep.subr.mxu0 %v16242_v36 }
 0x304   :  { %14731 = vmatmul.mubr.msk.f32.vlgmr.msra.gmra.mrb[2].mxu0 %vm366_vm2, %v16506_v41  ;;  %v537_v44 = vpop.permute.xlu1 %536 }
 0x305   :  { %14739 = vmatpush3.xpose.msk.msra.mxu0 %vm366_vm2, %v539_v43  ;;  %14740 = vmatprep.mubr.msk.f32.mxu0 %vm16243_vm1, %v16242_v36 }
 0x306   :  { %14748 = vmatprep.subr.mxu0 %v16242_v36 }
 0x308   :  { %14741 = vmatmul.mubr.msk.f32.vlgmr.msra.gmra.mrb[4].mxu0 %vm366_vm2, %v537_v44 }
 0x309   :  { %14750 = vmatprep.mubr.msk.f32.mxu0 %vm16243_vm1, %v16242_v36  ;;  %14749 = vmatpush3.msra.mxu0 %v16550_v11 }
 0x30a   :  { %14758 = vmatprep.subr.mxu0 %v16242_v36 }
 0x3d7   :  { %v437_v52 = vpop.f32.mrb[2].mxu0 }
 0x3d8   :  { %v441_v53 = vmul.f32 0.35355338, %v437_v52  ;;  %v14732_v54 = vpop.f32.mrb[3].mxu0 }
 0x3d9   :  { %v16600_v54 = vld [vmem:[%s16447_s19 + $0x10] sm:$0xff] }
 0x3da   :  { %v448_v55 = vadd.f32 %v16532_v51, %v441_v53 }
 0x3db   :  { %v610_v56 = vpop.f32.mrb[4].mxu0 }
 0x3dc   :  { %v614_v57 = vmul.f32 0.35355338, %v610_v56  ;;  %v14742_v58 = vpop.f32.mrb[5].mxu0  ;;  %v449_v59 = vsel %vm366_vm2, %v448_v55, -inf }
 0x3dd   :  { %450 = vmax.xlane.f32.xlu1 %v449_v59 }
 0x3de   :  { %v615_v60 = vadd.f32 %v614_v57, %v16532_v51 }
 0x3e0   :  { %v616_v61 = vsel %vm366_vm2, %v615_v60, -inf }
 0x3e1   :  { %617 = vmax.xlane.f32.xlu0 %v616_v61 }
 0x3ee   :  { %460 = vrot.lane.b32.xlu1 %v16506_v41, %s16248_s1 }
 0x3f2   :  { %851 = vrot.lane.b32.xlu1 %v16506_v41, %s16249_s2 }
 0x3f6   :  { %849 = vrot.lane.b32.xlu1 %v16506_v41, %s16250_s10 }
 0x46a   :  { %v451_v62 = vpop.xlane.xlu1 %450 }
 0x46b   :  { %v452_v63 = vsub.f32 %v448_v55, %v451_v62 }
 0x46d   :  { %v453_v2 = vmul.f32 1.442695, %v452_v63 }
 0x46e   :  { %v461_v3 = vpop.permute.xlu1 %460  ;;  %v618_v4 = vpop.xlane.xlu0 %617 }
 0x46f   :  { %15869 = vpow2.f32 %v453_v2  ;;  %v619_v5 = vsub.f32 %v615_v60, %v618_v4  ;;  %14734 = vmatpush3.msra.mxu1 %v461_v3 }
 0x470   :  { %14743 = vmatprep.subr.mxu1 %v16242_v36 }
 0x471   :  { %v620_v6 = vmul.f32 1.442695, %v619_v5 }
 0x472   :  { %v852_v22 = vpop.permute.xlu1 %851 }
 0x473   :  { %15871 = vpow2.f32 %v620_v6 }
 0x476   :  { %v850_v25 = vpop.permute.xlu1 %849 }
 0x479   :  { %v15870_v7 = vpop.eup %15869 }
 0x47a   :  { %v455_v8 = vsel %vm366_vm2, %v15870_v7, 0.0 }
 0x47b   :  { %456 = vadd.xlane.f32.xlu0 %v455_v8 }
 0x47d   :  { %v15872_v9 = vpop.eup %15871 }
 0x47e   :  { %v622_v10 = vsel %vm366_vm2, %v15872_v9, 0.0 }
 0x47f   :  { %623 = vadd.xlane.f32.xlu0 %v622_v10 }
 0x495   :  { %627 = vrot.lane.b32.xlu0 %v16506_v41, %s16251_s7 }
 0x508   :  { %v457_v12 = vpop.xlane.xlu0 %456 }
 0x509   :  { %15873 = vrcp.f32 %v457_v12 }
 0x50c   :  { %v624_v13 = vpop.xlane.xlu0 %623 }
 0x50d   :  { %15875 = vrcp.f32 %v624_v13 }
 0x510   :  { %v628_v16 = vpop.permute.xlu0 %627 }
 0x513   :  { %v15874_v14 = vpop.eup %15873 }
 0x514   :  { %v459_v15 = vmul.f32 %v15874_v14, %v15870_v7 }
 0x516   :  { %14736 = vmatmul.mubr.msk.f32.vlgmr.msra.gmra.mrb[0].mxu1 %vm366_vm2, %v459_v15  ;;  %v16637_v15 = vld [vmem:[%s16447_s19 + $0x18] sm:$0xff] }
 0x517   :  { %v15876_v17 = vpop.eup %15875  ;;  %14744 = vmatpush3.msra.mxu1 %v628_v16  ;;  %14745 = vmatprep.mubr.msk.f32.mxu1 %vm16243_vm1, %v16242_v36  ;;  %v13972_v16 = vld [vmem:[%s16277_s13 + $0x1] sm:$0x1]  ;;  %s18116_s13 = sld [smem:[#allocation12_spill]] }
 0x518   :  { %v626_v18 = vmul.f32 %v15876_v17, %v15872_v9  ;;  %14753 = vmatprep.subr.mxu1 %v16242_v36  ;;  %vm211_vm4 = vcmp.gt.s32.totalorder %v13972_v16, 0 }
 0x51a   :  { %14746 = vmatmul.mubr.msk.f32.vlgmr.msra.gmra.mrb[2].mxu1 %vm366_vm2, %v626_v18  ;;  %v212_v18 = vsel %vm211_vm4, 0.0, %v16247_v49 }
 0x51b   :  { %14755 = vmatprep.mubr.msk.f32.mxu1 %vm16243_vm1, %v16242_v36  ;;  %14754 = vmatpush3.msra.mxu1 %v16562_v19 }
 0x51c   :  { %14763 = vmatprep.subr.mxu1 %v16242_v36 }
 0x5e9   :  { %v532_v20 = vpop.f32.mrb[0].mxu1 }
 0x5ea   :  { %v14737_v21 = vpop.f32.mrb[1].mxu1  ;;  %14756 = vmatmul.mubr.msk.f32.vlgmr.msra.gmra.mrb[4].mxu1 %vm366_vm2, %v532_v20 }
 0x5eb   :  { %14765 = vmatprep.mubr.msk.f32.mxu1 %vm16243_vm1, %v16242_v36 }
 0x5ed   :  { %v699_v23 = vpop.f32.mrb[2].mxu1 }
 0x5ee   :  { %v14747_v24 = vpop.f32.mrb[3].mxu1  ;;  %14751 = vmatmul.mubr.msk.f32.vlgmr.msra.gmra.mrb[6].mxu0 %vm366_vm2, %v699_v23 }
 0x5ef   :  { %14759 = vmatpush3.xpose.msk.msra.mxu0 %vm366_vm2, %v852_v22  ;;  %14760 = vmatprep.mubr.msk.f32.mxu0 %vm16243_vm1, %v16242_v36 }
 0x5f0   :  { %14768 = vmatprep.subr.mxu0 %v16242_v36 }
 0x5f2   :  { %14761 = vmatmul.mubr.msk.f32.vlgmr.msra.gmra.mrb[8].mxu0 %vm366_vm2, %v850_v25 }
 0x5f3   :  { %14770 = vmatprep.mubr.msk.f32.mxu0 %vm16243_vm1, %v16242_v36  ;;  %14769 = vmatpush3.msra.mxu0 %v16600_v54 }
 0x5f4   :  { %14778 = vmatprep.subr.mxu0 %v16242_v36 }
 0x6bd   :  { %v845_v26 = vpop.f32.mrb[4].mxu1 }
 0x6be   :  { %v14757_v27 = vpop.f32.mrb[5].mxu1 }
 0x6c1   :  { %v772_v28 = vpop.f32.mrb[6].mxu0 }
 0x6c2   :  { %v16577_v29 = vadd.f32 %v845_v26, %v772_v28  ;;  %v14752_v30 = vpop.f32.mrb[7].mxu0 }
 0x6c5   :  { %v923_v31 = vpop.f32.mrb[8].mxu0 }
 0x6c6   :  { %v927_v32 = vmul.f32 0.35355338, %v923_v31  ;;  %v14762_v33 = vpop.f32.mrb[9].mxu0 }
 0x6c8   :  { %v928_v34 = vadd.f32 %v927_v32, %v16532_v51 }
 0x6ca   :  { %v929_v35 = vsel %vm366_vm2, %v928_v34, -inf }
 0x6cb   :  { %930 = vmax.xlane.f32.xlu1 %v929_v35 }
 0x6dc   :  { %1092 = vrot.lane.b32.xlu1 %v16506_v41, %s16252_s11 }
 0x6e0   :  { %1090 = vrot.lane.b32.xlu1 %v16506_v41, %s16253_s16 }
 0x6e4   :  { %1332 = vrot.lane.b32.xlu1 %v16504_v39, %s16245_s20 }
 0x758   :  { %v931_v37 = vpop.xlane.xlu1 %930 }
 0x759   :  { %v932_v38 = vsub.f32 %v928_v34, %v931_v37 }
 0x75b   :  { %v933_v40 = vmul.f32 1.442695, %v932_v38 }
 0x75c   :  { %v1093_v50 = vpop.permute.xlu1 %1092 }
 0x75d   :  { %15877 = vpow2.f32 %v933_v40 }
 0x760   :  { %v1091_v53 = vpop.permute.xlu1 %1090 }
 0x764   :  { %v1333_v8 = vpop.permute.xlu1 %1332 }
 0x767   :  { %v15878_v42 = vpop.eup %15877 }
 0x768   :  { %v935_v43 = vsel %vm366_vm2, %v15878_v42, 0.0 }
 0x769   :  { %936 = vadd.xlane.f32.xlu0 %v935_v43 }
 0x77f   :  { %940 = vrot.lane.b32.xlu0 %v16506_v41, %s16254_s0 }
 0x7f6   :  { %v937_v44 = vpop.xlane.xlu0 %936 }
 0x7f7   :  { %15879 = vrcp.f32 %v937_v44 }
 0x7fa   :  { %v941_v45 = vpop.permute.xlu0 %940 }
 0x7fb   :  { %14764 = vmatpush3.msra.mxu1 %v941_v45 }
 0x7fc   :  { %14773 = vmatprep.subr.mxu1 %v16242_v36 }
 0x801   :  { %v15880_v46 = vpop.eup %15879 }
 0x802   :  { %v939_v52 = vmul.f32 %v15880_v46, %v15878_v42 }
 0x804   :  { %14766 = vmatmul.mubr.msk.f32.vlgmr.msra.gmra.mrb[6].mxu1 %vm366_vm2, %v939_v52 }
 0x805   :  { %14774 = vmatpush3.xpose.msk.msra.mxu1 %vm366_vm2, %v1093_v50  ;;  %14775 = vmatprep.mubr.msk.f32.mxu1 %vm16243_vm1, %v16242_v36 }
 0x806   :  { %14783 = vmatprep.subr.mxu1 %v16242_v36 }
 0x808   :  { %14776 = vmatmul.mubr.msk.f32.vlgmr.msra.gmra.mrb[8].mxu1 %vm366_vm2, %v1091_v53 }
 0x809   :  { %14785 = vmatprep.mubr.msk.f32.mxu1 %vm16243_vm1, %v16242_v36  ;;  %14784 = vmatpush3.msra.mxu1 %v16637_v15 }
 0x80a   :  { %14793 = vmatprep.subr.mxu1 %v16242_v36 }
 0x8d7   :  { %v1012_v55 = vpop.f32.mrb[6].mxu1 }
 0x8d8   :  { %v14767_v56 = vpop.f32.mrb[7].mxu1  ;;  %14771 = vmatmul.mubr.msk.f32.vlgmr.msra.gmra.mrb[10].mxu0 %vm366_vm2, %v1012_v55 }
 0x8d9   :  { %14780 = vmatprep.mubr.msk.f32.mxu0 %vm16243_vm1, %v16242_v36 }
 0x8db   :  { %v1164_v57 = vpop.f32.mrb[8].mxu1 }
 0x8dc   :  { %v1168_v58 = vmul.f32 0.35355338, %v1164_v57  ;;  %v14777_v59 = vpop.f32.mrb[9].mxu1 }
 0x8de   :  { %v1169_v60 = vadd.f32 %v1168_v58, %v16532_v51 }
 0x8e0   :  { %v1170_v61 = vsel %vm366_vm2, %v1169_v60, -inf }
 0x8e1   :  { %1171 = vmax.xlane.f32.xlu0 %v1170_v61 }
 0x8f7   :  { %1181 = vrot.lane.b32.xlu0 %v16506_v41, %s18091_s15 }
 0x8fb   :  { %1505 = vrot.lane.b32.xlu0 %v16504_v39, %s16244_s5 }
 0x96e   :  { %v1172_v62 = vpop.xlane.xlu0 %1171 }
 0x96f   :  { %v1173_v63 = vsub.f32 %v1169_v60, %v1172_v62 }
 0x971   :  { %v1174_v2 = vmul.f32 1.442695, %v1173_v63 }
 0x972   :  { %v1182_v3 = vpop.permute.xlu0 %1181 }
 0x973   :  { %15881 = vpow2.f32 %v1174_v2  ;;  %14779 = vmatpush3.msra.mxu0 %v1182_v3 }
 0x974   :  { %14788 = vmatprep.subr.mxu0 %v16242_v36 }
 0x976   :  { %v1506_v13 = vpop.permute.xlu0 %1505 }
 0x97d   :  { %v15882_v4 = vpop.eup %15881 }
 0x97e   :  { %v1176_v5 = vsel %vm366_vm2, %v15882_v4, 0.0 }
 0x97f   :  { %1177 = vadd.xlane.f32.xlu1 %v1176_v5 }
 0x990   :  { %1503 = vrot.lane.b32.xlu1 %v16504_v39, %s16246_s27 }
 0x9ab   :  { %v1085_v6 = vpop.f32.mrb[10].mxu0 }
 0x9ac   :  { %v16618_v41 = vadd.f32 %v1085_v6, %v16577_v29  ;;  %v14772_v7 = vpop.f32.mrb[11].mxu0 }
 0xa0c   :  { %v1178_v9 = vpop.xlane.xlu1 %1177 }
 0xa0d   :  { %15883 = vrcp.f32 %v1178_v9 }
 0xa10   :  { %v1504_v14 = vpop.permute.xlu1 %1503 }
 0xa17   :  { %v15884_v10 = vpop.eup %15883 }
 0xa18   :  { %v1180_v12 = vmul.f32 %v15884_v10, %v15882_v4 }
 0xa1a   :  { %14781 = vmatmul.mubr.msk.f32.vlgmr.msra.gmra.mrb[12].mxu0 %vm366_vm2, %v1180_v12 }
 0xa1b   :  { %14789 = vmatpush3.xpose.msk.msra.mxu0 %vm366_vm2, %v1333_v8  ;;  %14790 = vmatprep.mubr.msk.f32.mxu0 %vm16243_vm1, %v16242_v36 }
 0xa1c   :  { %14798 = vmatprep.subr.mxu0 %v16242_v36 }
 0xa1e   :  { %14791 = vmatmul.mubr.msk.f32.vlgmr.msra.gmra.mrb[14].mxu0 %vm366_vm2, %v16504_v39 }
 0xa1f   :  { %14799 = vmatpush3.xpose.msk.msra.mxu0 %vm366_vm2, %v1506_v13  ;;  %14800 = vmatprep.mubr.msk.f32.mxu0 %vm16243_vm1, %v16242_v36 }
 0xa20   :  { %14808 = vmatprep.subr.mxu0 %v16242_v36 }
 0xa22   :  { %14801 = vmatmul.mubr.msk.f32.vlgmr.msra.gmra.mrb[16].mxu0 %vm366_vm2, %v1504_v14 }
 0xa23   :  { %14809 = vmatpush3.msra.mxu0 %v16550_v11  ;;  %14810 = vmatprep.mubr.msk.f32.mxu0 %vm16243_vm1, %v16242_v36  ;;  %v16648_v11 = vrot.slane %v212_v18, %v445_v48 }
 0xa24   :  { %14818 = vmatprep.subr.mxu0 %v16242_v36 }
 0xaed   :  { %v1253_v17 = vpop.f32.mrb[12].mxu0 }
 0xaee   :  { %v14782_v20 = vpop.f32.mrb[13].mxu0  ;;  %14786 = vmatmul.mubr.msk.f32.vlgmr.msra.gmra.mrb[10].mxu1 %vm366_vm2, %v1253_v17 }
 0xaef   :  { %14795 = vmatprep.mubr.msk.f32.mxu1 %vm16243_vm1, %v16242_v36 }
 0xaf1   :  { %v1404_v21 = vpop.f32.mrb[14].mxu0 }
 0xaf2   :  { %v1408_v22 = vmul.f32 0.35355338, %v1404_v21  ;;  %v14792_v23 = vpop.f32.mrb[15].mxu0 }
 0xaf4   :  { %v1415_v24 = vadd.f32 %v16648_v11, %v1408_v22 }
 0xaf5   :  { %v1577_v25 = vpop.f32.mrb[16].mxu0 }
 0xaf6   :  { %v1581_v26 = vmul.f32 0.35355338, %v1577_v25  ;;  %v14802_v27 = vpop.f32.mrb[17].mxu0  ;;  %v1416_v28 = vsel %vm366_vm2, %v1415_v24, -inf  ;;  %v14011_v25 = vld [vmem:[%s16407_s3] ss:$0 sm:$0xff] }
 0xaf7   :  { %1417 = vmax.xlane.f32.xlu0 %v1416_v28 }
 0xaf8   :  { %v1582_v29 = vadd.f32 %v1581_v26, %v16648_v11 }
 0xafa   :  { %v1583_v30 = vsel %vm366_vm2, %v1582_v29, -inf }
 0xafb   :  { %1584 = vmax.xlane.f32.xlu1 %v1583_v30 }
 0xb0c   :  { %1594 = vrot.lane.b32.xlu1 %v16504_v39, %s16251_s7 }
 0xb10   :  { %1818 = vrot.lane.b32.xlu1 %v16504_v39, %s16249_s2 }
 0xb14   :  { %1816 = vrot.lane.b32.xlu1 %v16504_v39, %s16250_s10 }
 0xb84   :  { %v1418_v47 = vpop.xlane.xlu0 %1417 }
 0xb85   :  { %v1419_v48 = vsub.f32 %v1415_v24, %v1418_v47 }
 0xb87   :  { %v1420_v31 = vmul.f32 1.442695, %v1419_v48 }
 0xb88   :  { %v1585_v32 = vpop.xlane.xlu1 %1584 }
 0xb89   :  { %15885 = vpow2.f32 %v1420_v31  ;;  %v1586_v33 = vsub.f32 %v1582_v29, %v1585_v32 }
 0xb8b   :  { %v1587_v34 = vmul.f32 1.442695, %v1586_v33 }
 0xb8c   :  { %v1595_v55 = vpop.permute.xlu1 %1594 }
 0xb8d   :  { %15887 = vpow2.f32 %v1587_v34 }
 0xb90   :  { %v1819_v60 = vpop.permute.xlu1 %1818 }
 0xb93   :  { %v15886_v35 = vpop.eup %15885 }
 0xb94   :  { %v1422_v37 = vsel %vm366_vm2, %v15886_v35, 0.0 }
 0xb95   :  { %1423 = vadd.xlane.f32.xlu0 %v1422_v37 }
 0xb97   :  { %v15888_v38 = vpop.eup %15887 }
 0xb98   :  { %v1589_v40 = vsel %vm366_vm2, %v15888_v38, 0.0 }
 0xb99   :  { %1590 = vadd.xlane.f32.xlu0 %v1589_v40 }
 0xbaf   :  { %1427 = vrot.lane.b32.xlu0 %v16504_v39, %s16248_s1 }
 0xbc1   :  { %v1326_v42 = vpop.f32.mrb[10].mxu1 }
 0xbc2   :  { %v16665_v43 = vadd.f32 %v1326_v42, %v16618_v41  ;;  %v14787_v44 = vpop.f32.mrb[11].mxu1 }
 0xbc4   :  { %v2304_v27 = vadd.f32 %v14011_v25, %v16665_v43 }
 0xc22   :  { %v1424_v45 = vpop.xlane.xlu0 %1423 }
 0xc23   :  { %15889 = vrcp.f32 %v1424_v45 }
 0xc26   :  { %v1591_v46 = vpop.xlane.xlu0 %1590 }
 0xc27   :  { %15891 = vrcp.f32 %v1591_v46 }
 0xc2a   :  { %v1428_v50 = vpop.permute.xlu0 %1427 }
 0xc2b   :  { %14794 = vmatpush3.msra.mxu1 %v1428_v50 }
 0xc2c   :  { %14803 = vmatprep.subr.mxu1 %v16242_v36 }
 0xc2d   :  { %v15890_v52 = vpop.eup %15889 }
 0xc2e   :  { %v1426_v53 = vmul.f32 %v15890_v52, %v15886_v35 }
 0xc30   :  { %14796 = vmatmul.mubr.msk.f32.vlgmr.msra.gmra.mrb[12].mxu1 %vm366_vm2, %v1426_v53 }
 0xc31   :  { %v15892_v56 = vpop.eup %15891  ;;  %14804 = vmatpush3.msra.mxu1 %v1595_v55  ;;  %14805 = vmatprep.mubr.msk.f32.mxu1 %vm16243_vm1, %v16242_v36 }
 0xc32   :  { %v1593_v57 = vmul.f32 %v15892_v56, %v15888_v38  ;;  %14813 = vmatprep.subr.mxu1 %v16242_v36 }
 0xc34   :  { %14806 = vmatmul.mubr.msk.f32.vlgmr.msra.gmra.mrb[14].mxu1 %vm366_vm2, %v1593_v57 }
 0xc35   :  { %14814 = vmatpush3.msra.mxu1 %v16562_v19  ;;  %14815 = vmatprep.mubr.msk.f32.mxu1 %vm16243_vm1, %v16242_v36  ;;  %v1817_v19 = vpop.permute.xlu1 %1816 }
 0xc36   :  { %14823 = vmatprep.subr.mxu1 %v16242_v36 }
 0xd03   :  { %v1499_v58 = vpop.f32.mrb[12].mxu1 }
 0xd04   :  { %v14797_v59 = vpop.f32.mrb[13].mxu1  ;;  %14816 = vmatmul.mubr.msk.f32.vlgmr.msra.gmra.mrb[16].mxu1 %vm366_vm2, %v1499_v58 }
 0xd05   :  { %14825 = vmatprep.mubr.msk.f32.mxu1 %vm16243_vm1, %v16242_v36 }
 0xd07   :  { %v1666_v61 = vpop.f32.mrb[14].mxu1 }
 0xd08   :  { %v14807_v62 = vpop.f32.mrb[15].mxu1  ;;  %14811 = vmatmul.mubr.msk.f32.vlgmr.msra.gmra.mrb[18].mxu0 %vm366_vm2, %v1666_v61 }
 0xd09   :  { %14819 = vmatpush3.xpose.msk.msra.mxu0 %vm366_vm2, %v1819_v60  ;;  %14820 = vmatprep.mubr.msk.f32.mxu0 %vm16243_vm1, %v16242_v36 }
 0xd0a   :  { %14828 = vmatprep.subr.mxu0 %v16242_v36 }
 0xd0c   :  { %14821 = vmatmul.mubr.msk.f32.vlgmr.msra.gmra.mrb[20].mxu0 %vm366_vm2, %v1817_v19 }
 0xd0d   :  { %14829 = vmatpush3.msra.mxu0 %v16600_v54  ;;  %14830 = vmatprep.mubr.msk.f32.mxu0 %vm16243_vm1, %v16242_v36 }
 0xd0e   :  { %14838 = vmatprep.subr.mxu0 %v16242_v36 }
 0xdd7   :  { %v1812_v63 = vpop.f32.mrb[16].mxu1 }
 0xdd8   :  { %v14817_v2 = vpop.f32.mrb[17].mxu1 }
 0xddb   :  { %v1739_v3 = vpop.f32.mrb[18].mxu0 }
 0xddc   :  { %v1813_v4 = vadd.f32 %v1812_v63, %v1739_v3  ;;  %v14812_v5 = vpop.f32.mrb[19].mxu0 }
 0xddf   :  { %v1890_v6 = vpop.f32.mrb[20].mxu0 }
 0xde0   :  { %v1894_v41 = vmul.f32 0.35355338, %v1890_v6  ;;  %v14822_v7 = vpop.f32.mrb[21].mxu0 }
 0xde2   :  { %v1895_v8 = vadd.f32 %v1894_v41, %v16648_v11  ;;  %v14012_v41 = vld [vmem:[%s16432_s8] ss:$0 sm:$0xff] }
 0xde4   :  { %v1896_v9 = vsel %vm366_vm2, %v1895_v8, -inf }
 0xde5   :  { %1897 = vmax.xlane.f32.xlu0 %v1896_v9 }
 0xdfb   :  { %1907 = vrot.lane.b32.xlu0 %v16504_v39, %s16254_s0 }
 0xdff   :  { %2057 = vrot.lane.b32.xlu0 %v16504_v39, %s16253_s16 }
 0xe72   :  { %v1898_v54 = vpop.xlane.xlu0 %1897 }
 0xe73   :  { %v1899_v10 = vsub.f32 %v1895_v8, %v1898_v54  ;;  %v14013_v8 = vld [vmem:[%s16427_s21] ss:$0 sm:$0xff] }
 0xe75   :  { %v1900_v12 = vmul.f32 1.442695, %v1899_v10  ;;  %v2352_v10 = vld [vmem:[%s16437_s4] sm:$0xff] }
 0xe76   :  { %v1908_v13 = vpop.permute.xlu0 %1907 }
 0xe77   :  { %15893 = vpow2.f32 %v1900_v12  ;;  %14824 = vmatpush3.msra.mxu1 %v1908_v13  ;;  %v2353_v12 = vld [vmem:[%s16437_s4 + $0x8] sm:$0xff] }
 0xe78   :  { %14833 = vmatprep.subr.mxu1 %v16242_v36  ;;  %v15653_v13 = vpack.c.bf16 %v2353_v12, %v2352_v10 }
 0xe7a   :  { %v2058_v22 = vpop.permute.xlu0 %2057 }
 0xe81   :  { %v15894_v14 = vpop.eup %15893 }
 0xe82   :  { %v1902_v16 = vsel %vm366_vm2, %v15894_v14, 0.0 }
 0xe83   :  { %1903 = vadd.xlane.f32.xlu1 %v1902_v16  ;;  %v2355_v16 = vld [vmem:[%s16437_s4 + $0x18] sm:$0xff] }
 0xe94   :  { %2059 = vrot.lane.b32.xlu1 %v16504_v39, %s16252_s11 }
 0xf10   :  { %v1904_v17 = vpop.xlane.xlu1 %1903 }
 0xf11   :  { %15895 = vrcp.f32 %v1904_v17 }
 0xf14   :  { %v2060_v21 = vpop.permute.xlu1 %2059 }
 0xf1b   :  { %v15896_v18 = vpop.eup %15895 }
 0xf1c   :  { %v1906_v20 = vmul.f32 %v15896_v18, %v15894_v14  ;;  %v2354_v14 = vld [vmem:[%s16437_s4 + $0x10] sm:$0xff]  ;;  %v2357_v18 = vld [vmem:[%s16442_s17] sm:$0xff] }
 0xf1d   :  { %v15657_v17 = vpack.c.bf16 %v2355_v16, %v2354_v14  ;;  %v14022_v16 = vld [vmem:[%s16422_s12 + $0x1] ss:$0 sm:$0xff]  ;;  %s18127_s12 = sld [smem:[#allocation32_spill]] }
 0xf1e   :  { %14826 = vmatmul.mubr.msk.f32.vlgmr.msra.gmra.mrb[18].mxu1 %vm366_vm2, %v1906_v20  ;;  %v2358_v20 = vld [vmem:[%s16442_s17 + $0x8] sm:$0xff] }
 0xf1f   :  { %14834 = vmatpush3.xpose.msk.msra.mxu1 %vm366_vm2, %v2060_v21  ;;  %14835 = vmatprep.mubr.msk.f32.mxu1 %vm16243_vm1, %v16242_v36  ;;  %v2359_v21 = vld [vmem:[%s16442_s17 + $0x10] sm:$0xff] }
 0xf20   :  { %14843 = vmatprep.subr.mxu1 %v16242_v36 }
 0xf22   :  { %14836 = vmatmul.mubr.msk.f32.vlgmr.msra.gmra.mrb[20].mxu1 %vm366_vm2, %v2058_v22  ;;  %v15661_v22 = vpack.c.bf16 %v2358_v20, %v2357_v18  ;;  %v14023_v18 = vld [vmem:[%s16417_s6 + $0x1] ss:$0 sm:$0xff]  ;;  %s18126_s6 = sld [smem:[#allocation23_spill]] }
 0xf23   :  { %14844 = vmatpush3.msra.mxu1 %v16637_v15  ;;  %14845 = vmatprep.mubr.msk.f32.mxu1 %vm16243_vm1, %v16242_v36  ;;  %v16716_v15 = vadd.f32 %v2304_v27, %v16476_v0 }
 0xf24   :  { %15662 = vmatprep.subr.bf16.mxu1 %v15661_v22 }
 0xf25   :  { %v2310_v48 = vsel %vm222_vm0, %v16716_v15, 0.0 }
 0xff1   :  { %v1979_v23 = vpop.f32.mrb[18].mxu1 }
 0xff2   :  { %v14827_v24 = vpop.f32.mrb[19].mxu1  ;;  %14831 = vmatmul.mubr.msk.f32.vlgmr.msra.gmra.mrb[22].mxu0 %vm366_vm2, %v1979_v23  ;;  %v2360_v23 = vld [vmem:[%s16442_s17 + $0x18] sm:$0xff] }
 0xff3   :  { %14840 = vmatprep.mubr.msk.f32.mxu0 %vm16243_vm1, %v16242_v36  ;;  %v15665_v24 = vpack.c.bf16 %v2360_v23, %v2359_v21 }
 0xff5   :  { %v2131_v26 = vpop.f32.mrb[20].mxu1 }
 0xff6   :  { %v2135_v28 = vmul.f32 0.35355338, %v2131_v26  ;;  %v14837_v29 = vpop.f32.mrb[21].mxu1  ;;  %v2362_v26 = vld [vmem:[%s16442_s17 + $0x28] sm:$0xff] }
 0xff8   :  { %v2136_v30 = vadd.f32 %v2135_v28, %v16648_v11 }
 0xffa   :  { %v2137_v47 = vsel %vm366_vm2, %v2136_v30, -inf }
 0xffb   :  { %2138 = vmax.xlane.f32.xlu1 %v2137_v47 }
 0xfff   :  { %2311 = vadd.xlane.f32.xlu1 %v2310_v48 }
0x1088   :  { %v2139_v31 = vpop.xlane.xlu1 %2138 }
0x1089   :  { %v2140_v32 = vsub.f32 %v2136_v30, %v2139_v31 }
0x108b   :  { %v2141_v33 = vmul.f32 1.442695, %v2140_v32 }
0x108c   :  { %v2312_v50 = vpop.xlane.xlu1 %2311 }
0x108d   :  { %15897 = vpow2.f32 %v2141_v33  ;;  %v2316_v52 = vmul.f32 0.03125, %v2312_v50  ;;  %v2363_v33 = vld [vmem:[%s16442_s17 + $0x30] sm:$0xff] }
0x108f   :  { %v2318_v56 = vsub.f32 %v16716_v15, %v2316_v52 }
0x1091   :  { %v2320_v60 = vmul.f32 %v2318_v56, %v2318_v56 }
0x1093   :  { %v2322_v61 = vsel %vm222_vm0, %v2320_v60, 0.0 }
0x1097   :  { %v15898_v34 = vpop.eup %15897 }
0x1098   :  { %v2143_v35 = vsel %vm366_vm2, %v15898_v34, 0.0 }
0x1099   :  { %2144 = vadd.xlane.f32.xlu0 %v2143_v35 }
0x10af   :  { %2148 = vrot.lane.b32.xlu0 %v16504_v39, %s18091_s15 }
0x10c5   :  { %v2052_v0 = vpop.f32.mrb[22].mxu0 }
0x10c6   :  { %v2056_v37 = vadd.f32 %v2052_v0, %v1813_v4  ;;  %v14832_v38 = vpop.f32.mrb[23].mxu0  ;;  %v14014_v0 = vld [vmem:[%s16397_s14] ss:$0 sm:$0xff] }
0x1126   :  { %v2145_v40 = vpop.xlane.xlu0 %2144 }
0x1127   :  { %15899 = vrcp.f32 %v2145_v40 }
0x112a   :  { %v2149_v42 = vpop.permute.xlu0 %2148 }
0x112b   :  { %14839 = vmatpush3.msra.mxu0 %v2149_v42 }
0x112c   :  { %15654 = vmatprep.subr.bf16.mxu0 %v15653_v13 }
0x1131   :  { %v15900_v43 = vpop.eup %15899 }
0x1132   :  { %v2147_v44 = vmul.f32 %v15900_v43, %v15898_v34  ;;  %v2364_v34 = vld [vmem:[%s16442_s17 + $0x38] sm:$0xff] }
0x1133   :  { %v15673_v35 = vpack.c.bf16 %v2364_v34, %v2363_v33 }
0x1134   :  { %14841 = vmatmul.mubr.msk.f32.vlgmr.msra.gmra.mrb[24].mxu0 %vm366_vm2, %v2147_v44 }
0x1135   :  { %15656 = vmatpush3.bf16.msra.mxu0 %v15653_v13 }
0x1136   :  { %15658 = vmatprep.subr.bf16.mxu0 %v15657_v17 }
0x1139   :  { %15660 = vmatpush3.bf16.msra.mxu0 %v15657_v17 }
0x1207   :  { %v2220_v45 = vpop.f32.mrb[24].mxu0 }
0x1208   :  { %v14842_v46 = vpop.f32.mrb[25].mxu0  ;;  %14846 = vmatmul.mubr.msk.f32.vlgmr.msra.gmra.mrb[22].mxu1 %vm366_vm2, %v2220_v45  ;;  %v14017_v45 = vld [vmem:[%s16402_s29] ss:$0 sm:$0xff] }
0x1209   :  { %15664 = vmatpush3.bf16.msra.mxu1 %v15661_v22 }
0x120a   :  { %15666 = vmatprep.subr.bf16.mxu1 %v15665_v24 }
0x120d   :  { %15668 = vmatpush3.bf16.msra.mxu1 %v15665_v24 }
0x12db   :  { %v2293_v53 = vpop.f32.mrb[22].mxu1 }
0x12dc   :  { %v2297_v55 = vadd.f32 %v2293_v53, %v2056_v37  ;;  %v14847_v39 = vpop.f32.mrb[23].mxu1 }
0x12de   :  { %v2305_v57 = vadd.f32 %v14011_v25, %v2297_v55  ;;  %v2361_v25 = vld [vmem:[%s16442_s17 + $0x20] sm:$0xff] }
0x12df   :  { %v15669_v27 = vpack.c.bf16 %v2362_v26, %v2361_v25  ;;  %v14034_v26 = vld [vmem:[%s16412_s25 + $0x1] ss:$0 sm:$0xff]  ;;  %s18118_s25 = sld [smem:[#allocation22_spill]] }
0x12e0   :  { %v16728_v58 = vadd.f32 %v2305_v57, %v16479_v1 }
0x12e1   :  { %15670 = vmatprep.subr.bf16.mxu1 %v15669_v27 }
0x12e2   :  { %v2313_v59 = vsel %vm222_vm0, %v16728_v58, 0.0  ;;  %15672 = vmatpush3.bf16.msra.mxu1 %v15669_v27 }
0x12e3   :  { %2314 = vadd.xlane.f32.xlu1 %v2313_v59  ;;  %15674 = vmatprep.subr.bf16.mxu1 %v15673_v35 }
0x12e6   :  { %15676 = vmatpush3.bf16.msra.mxu1 %v15673_v35 }
0x12e7   :  { %2323 = vadd.xlane.f32.xlu1 %v2322_v61  ;;  %14894 = vmatprep.subr.mxu1 %v16242_v36 }
0x1370   :  { %v2315_v62 = vpop.xlane.xlu1 %2314 }
0x1371   :  { %v2317_v19 = vmul.f32 0.03125, %v2315_v62 }
0x1373   :  { %v2319_v63 = vsub.f32 %v16728_v58, %v2317_v19 }
0x1374   :  { %v2324_v2 = vpop.xlane.xlu1 %2323 }
0x1375   :  { %v2328_v3 = vmul.f32 0.03125, %v2324_v2  ;;  %v2321_v1 = vmul.f32 %v2319_v63, %v2319_v63 }
0x1377   :  { %v2330_v4 = vadd.f32 1e-06, %v2328_v3  ;;  %v2325_v5 = vsel %vm222_vm0, %v2321_v1, 0.0  ;;  %v14024_v1 = vld [vmem:[%s16452_s24 + $0x20] sm:$0xff] }
0x1378   :  { %2326 = vadd.xlane.f32.xlu1 %v2325_v5  ;;  %v14026_v5 = vld [vmem:[%s16452_s24 + $0x30] sm:$0xff] }
0x1379   :  { %15901 = vrsqrt.f32 %v2330_v4  ;;  %v14025_v4 = vld [vmem:[%s16452_s24 + $0x28] sm:$0xff] }
0x1383   :  { %v15902_v6 = vpop.eup %15901 }
0x1384   :  { %v2334_v7 = vmul.f32 %v15902_v6, %v2318_v56  ;;  %v15677_v6 = vpack.c.bf16 %v14025_v4, %v14024_v1  ;;  %v16833_v4 = vld [vmem:[%s16447_s19 + $0x20] sm:$0xff] }
0x1386   :  { %v2342_v9 = vmul.f32 %v14012_v41, %v2334_v7  ;;  %15678 = vmatprep.subr.bf16.mxu0 %v15677_v6 }
0x1388   :  { %v2350_v54 = vadd.f32 %v14013_v8, %v2342_v9 }
0x138a   :  { %14856 = vmatprep.mubr.msk.f32.mxu0 %vm222_vm0, %v2350_v54 }
0x1405   :  { %v2327_v28 = vpop.xlane.xlu1 %2326 }
0x1406   :  { %v2329_v29 = vmul.f32 0.03125, %v2327_v28 }
0x1408   :  { %v2331_v30 = vadd.f32 1e-06, %v2329_v29 }
0x140a   :  { %15903 = vrsqrt.f32 %v2331_v30 }
0x1414   :  { %v15904_v47 = vpop.eup %15903 }
0x1415   :  { %v2335_v48 = vmul.f32 %v15904_v47, %v2319_v63 }
0x1417   :  { %v2343_v31 = vmul.f32 %v14012_v41, %v2335_v48  ;;  %v14027_v41 = vld [vmem:[%s16452_s24 + $0x38] sm:$0xff]  ;;  %s18125_s24 = sld [smem:[#allocation24_spill]] }
0x1418   :  { %v15681_v7 = vpack.c.bf16 %v14027_v41, %v14026_v5 }
0x1419   :  { %v2351_v32 = vadd.f32 %v14013_v8, %v2343_v31 }
0x141b   :  { %14857 = vmatmul.mubr.msk.f32.vlgmr.msra.gmra.mrb[26].mxu0 %vm222_vm0, %v2351_v32 }
0x141c   :  { %15680 = vmatpush3.bf16.msra.mxu0 %v15677_v6 }
0x141d   :  { %15682 = vmatprep.subr.bf16.mxu0 %v15681_v7 }
0x1420   :  { %15684 = vmatpush3.bf16.msra.mxu0 %v15681_v7 }
0x1421   :  { %14889 = vmatprep.subr.mxu0 %v16242_v36 }
0x14ee   :  { %v14858_v37 = vpop.f32.mrb[26].mxu0 }
0x14ef   :  { %v2450_v38 = vadd.f32 %v14858_v37, %v14014_v0  ;;  %v2444_v40 = vpop.f32.mrb[27].mxu0 }
0x14f0   :  { %v2445_v42 = vadd.f32 %v14014_v0, %v2444_v40 }
0x14f1   :  { %v2454_v44 = vmax.f32 %v2450_v38, 0.0 }
0x14f2   :  { %v2453_v43 = vmax.f32 %v2445_v42, 0.0 }
0x14f4   :  { %14875 = vmatprep.mubr.msk.f32.mxu1 %vm2461_vm5, %v2453_v43 }
0x14f5   :  { %14876 = vmatmul.mubr.msk.f32.vlgmr.msra.gmra.mrb[24].mxu1 %vm2461_vm5, %v2454_v44 }
0x14f6   :  { %14896 = vmatprep.mubr.msk.f32.mxu1 %vm16243_vm1, %v16242_v36 }
0x15c8   :  { %v14877_v46 = vpop.f32.mrb[24].mxu1 }
0x15c9   :  { %v2540_v50 = vadd.f32 %v14877_v46, %v14017_v45  ;;  %v2534_v52 = vpop.f32.mrb[25].mxu1 }
0x15ca   :  { %v2535_v53 = vadd.f32 %v14017_v45, %v2534_v52 }
0x15cb   :  { %v16759_v55 = vadd.f32 %v2540_v50, %v16728_v58 }
0x15cc   :  { %v16762_v39 = vadd.f32 %v2535_v53, %v16716_v15 }
0x15cd   :  { %v2552_v56 = vsel %vm222_vm0, %v16759_v55, 0.0 }
0x15ce   :  { %2553 = vadd.xlane.f32.xlu0 %v2552_v56  ;;  %v2549_v57 = vsel %vm222_vm0, %v16762_v39, 0.0 }
0x15cf   :  { %2550 = vadd.xlane.f32.xlu1 %v2549_v57 }
0x165b   :  { %v2554_v59 = vpop.xlane.xlu0 %2553 }
0x165c   :  { %v2556_v60 = vmul.f32 0.03125, %v2554_v59  ;;  %v2551_v61 = vpop.xlane.xlu1 %2550 }
0x165d   :  { %v2555_v58 = vmul.f32 0.03125, %v2551_v61  ;;  %v16820_v61 = vld [vmem:[%s16447_s19 + $0x28] sm:$0xff] }
0x165e   :  { %v2558_v62 = vsub.f32 %v16759_v55, %v2556_v60 }
0x165f   :  { %v2557_v15 = vsub.f32 %v16762_v39, %v2555_v58 }
0x1660   :  { %v2560_v2 = vmul.f32 %v2558_v62, %v2558_v62 }
0x1661   :  { %v2559_v19 = vmul.f32 %v2557_v15, %v2557_v15 }
0x1662   :  { %v2564_v3 = vsel %vm222_vm0, %v2560_v2, 0.0 }
0x1663   :  { %v2561_v63 = vsel %vm222_vm0, %v2559_v19, 0.0 }
0x1664   :  { %2562 = vadd.xlane.f32.xlu1 %v2561_v63 }
0x1668   :  { %2565 = vadd.xlane.f32.xlu1 %v2564_v3 }
0x16f1   :  { %v2563_v8 = vpop.xlane.xlu1 %2562 }
0x16f2   :  { %v2567_v9 = vmul.f32 0.03125, %v2563_v8 }
0x16f4   :  { %v2569_v54 = vadd.f32 1e-06, %v2567_v9 }
0x16f5   :  { %v2566_v10 = vpop.xlane.xlu1 %2565 }
0x16f6   :  { %15905 = vrsqrt.f32 %v2569_v54  ;;  %v2568_v12 = vmul.f32 0.03125, %v2566_v10 }
0x16f8   :  { %v2570_v13 = vadd.f32 1e-06, %v2568_v12 }
0x16fa   :  { %15907 = vrsqrt.f32 %v2570_v13 }
0x1700   :  { %v15906_v14 = vpop.eup %15905 }
0x1701   :  { %v2573_v17 = vmul.f32 %v15906_v14, %v2557_v15 }
0x1703   :  { %v2581_v20 = vmul.f32 %v14022_v16, %v2573_v17 }
0x1704   :  { %v15908_v21 = vpop.eup %15907 }
0x1705   :  { %v2574_v22 = vmul.f32 %v15908_v21, %v2558_v62  ;;  %v2589_v23 = vadd.f32 %v14023_v18, %v2581_v20 }
0x1707   :  { %v2582_v24 = vmul.f32 %v14022_v16, %v2574_v22  ;;  %14886 = vmatprep.mubr.msk.f32.mxu0 %vm222_vm0, %v2589_v23 }
0x1709   :  { %v2590_v25 = vadd.f32 %v14023_v18, %v2582_v24 }
0x170b   :  { %14887 = vmatmul.mubr.msk.f32.vlgmr.msra.gmra.mrb[28].mxu0 %vm222_vm0, %v2590_v25 }
0x170c   :  { %14891 = vmatprep.mubr.msk.f32.mxu0 %vm16243_vm1, %v16242_v36 }
0x17de   :  { %v14888_v27 = vpop.f32.mrb[28].mxu0 }
0x17df   :  { %v16784_v28 = vadd.f32 %v14888_v27, %v14034_v26  ;;  %v2683_v29 = vpop.f32.mrb[29].mxu0 }
0x17e0   :  { %v16786_v30 = vadd.f32 %v14034_v26, %v2683_v29 }
0x17e2   :  { %2858 = vrot.lane.b32.xlu0 %v16786_v30, %s16246_s27  ;;  %2693 = vrot.lane.b32.xlu1 %v16786_v30, %s16245_s20 }
0x17e6   :  { %2860 = vrot.lane.b32.xlu1 %v16786_v30, %s16244_s5 }
0x1854   :  { %v2694_v47 = vpop.permute.xlu1 %2693  ;;  %v2859_v31 = vpop.permute.xlu0 %2858 }
0x1855   :  { %14890 = vmatpush3.xpose.msk.msra.mxu0 %vm366_vm2, %v2694_v47 }
0x1856   :  { %14899 = vmatprep.subr.mxu0 %v16242_v36 }
0x1858   :  { %14892 = vmatmul.mubr.msk.f32.vlgmr.msra.gmra.mrb[30].mxu0 %vm366_vm2, %v16786_v30  ;;  %v2861_v48 = vpop.permute.xlu1 %2860 }
0x1859   :  { %14900 = vmatpush3.xpose.msk.msra.mxu0 %vm366_vm2, %v2861_v48  ;;  %14901 = vmatprep.mubr.msk.f32.mxu0 %vm16243_vm1, %v16242_v36 }
0x185a   :  { %14909 = vmatprep.subr.mxu0 %v16242_v36 }
0x185c   :  { %14902 = vmatmul.mubr.msk.f32.vlgmr.msra.gmra.mrb[32].mxu0 %vm366_vm2, %v2859_v31 }
0x185d   :  { %14911 = vmatprep.mubr.msk.f32.mxu0 %vm16243_vm1, %v16242_v36  ;;  %14910 = vmatpush3.msra.mxu0 %v16820_v61 }
0x185e   :  { %14919 = vmatprep.subr.mxu0 %v16242_v36 }
0x192b   :  { %v2765_v32 = vpop.f32.mrb[30].mxu0 }
0x192c   :  { %v2769_v33 = vmul.f32 0.35355338, %v2765_v32  ;;  %v14893_v34 = vpop.f32.mrb[31].mxu0 }
0x192e   :  { %v2770_v35 = vadd.f32 %v2769_v33, %v16532_v51  ;;  %v16867_v33 = vld [vmem:[%s16447_s19 + $0x30] sm:$0xff] }
0x192f   :  { %v2932_v0 = vpop.f32.mrb[32].mxu0 }
0x1930   :  { %v2936_v37 = vmul.f32 0.35355338, %v2932_v0  ;;  %v14903_v38 = vpop.f32.mrb[33].mxu0  ;;  %v2771_v40 = vsel %vm366_vm2, %v2770_v35, -inf }
0x1931   :  { %2772 = vmax.xlane.f32.xlu1 %v2771_v40 }
0x1932   :  { %v2937_v42 = vadd.f32 %v2936_v37, %v16532_v51 }
0x1934   :  { %v2938_v43 = vsel %vm366_vm2, %v2937_v42, -inf }
0x1935   :  { %2939 = vmax.xlane.f32.xlu0 %v2938_v43 }
0x194b   :  { %2949 = vrot.lane.b32.xlu0 %v16786_v30, %s16251_s7 }
0x19be   :  { %v2773_v44 = vpop.xlane.xlu1 %2772 }
0x19bf   :  { %v2774_v45 = vsub.f32 %v2770_v35, %v2773_v44 }
0x19c1   :  { %v2775_v46 = vmul.f32 1.442695, %v2774_v45 }
0x19c2   :  { %v2940_v50 = vpop.xlane.xlu0 %2939 }
0x19c3   :  { %15909 = vpow2.f32 %v2775_v46  ;;  %v2941_v52 = vsub.f32 %v2937_v42, %v2940_v50 }
0x19c5   :  { %v2942_v53 = vmul.f32 1.442695, %v2941_v52 }
0x19c6   :  { %v2950_v2 = vpop.permute.xlu0 %2949 }
0x19c7   :  { %15911 = vpow2.f32 %v2942_v53 }
0x19cd   :  { %v15910_v56 = vpop.eup %15909 }
0x19ce   :  { %v2777_v57 = vsel %vm366_vm2, %v15910_v56, 0.0 }
0x19cf   :  { %2778 = vadd.xlane.f32.xlu1 %v2777_v57 }
0x19d1   :  { %v15912_v59 = vpop.eup %15911 }
0x19d2   :  { %v2944_v60 = vsel %vm366_vm2, %v15912_v59, 0.0 }
0x19d3   :  { %2945 = vadd.xlane.f32.xlu1 %v2944_v60 }
0x19e4   :  { %2782 = vrot.lane.b32.xlu1 %v16786_v30, %s16248_s1 }
0x19e8   :  { %3173 = vrot.lane.b32.xlu1 %v16786_v30, %s16249_s2 }
0x19ec   :  { %3171 = vrot.lane.b32.xlu1 %v16786_v30, %s16250_s10 }
0x1a5c   :  { %v2779_v58 = vpop.xlane.xlu1 %2778 }
0x1a5d   :  { %15913 = vrcp.f32 %v2779_v58 }
0x1a60   :  { %v2946_v62 = vpop.xlane.xlu1 %2945 }
0x1a61   :  { %15915 = vrcp.f32 %v2946_v62 }
0x1a64   :  { %v2783_v15 = vpop.permute.xlu1 %2782 }
0x1a65   :  { %14895 = vmatpush3.msra.mxu1 %v2783_v15 }
0x1a66   :  { %14904 = vmatprep.subr.mxu1 %v16242_v36 }
0x1a67   :  { %v15914_v19 = vpop.eup %15913 }
0x1a68   :  { %v2781_v63 = vmul.f32 %v15914_v19, %v15910_v56  ;;  %v3174_v41 = vpop.permute.xlu1 %3173  ;;  %v16903_v19 = vld [vmem:[%s16447_s19 + $0x38] sm:$0xff]  ;;  %s18123_s19 = sld [smem:[#allocation18_spill]] }
0x1a6a   :  { %14897 = vmatmul.mubr.msk.f32.vlgmr.msra.gmra.mrb[26].mxu1 %vm366_vm2, %v2781_v63 }
0x1a6b   :  { %v15916_v3 = vpop.eup %15915  ;;  %14905 = vmatpush3.msra.mxu1 %v2950_v2  ;;  %14906 = vmatprep.mubr.msk.f32.mxu1 %vm16243_vm1, %v16242_v36 }
0x1a6c   :  { %v2948_v1 = vmul.f32 %v15916_v3, %v15912_v59  ;;  %14914 = vmatprep.subr.mxu1 %v16242_v36  ;;  %v3172_v9 = vpop.permute.xlu1 %3171 }
0x1a6e   :  { %14907 = vmatmul.mubr.msk.f32.vlgmr.msra.gmra.mrb[28].mxu1 %vm366_vm2, %v2948_v1 }
0x1a6f   :  { %14916 = vmatprep.mubr.msk.f32.mxu1 %vm16243_vm1, %v16242_v36  ;;  %14915 = vmatpush3.msra.mxu1 %v16833_v4 }
0x1a70   :  { %14924 = vmatprep.subr.mxu1 %v16242_v36 }
0x1b3d   :  { %v2854_v5 = vpop.f32.mrb[26].mxu1 }
0x1b3e   :  { %v14898_v6 = vpop.f32.mrb[27].mxu1  ;;  %14917 = vmatmul.mubr.msk.f32.vlgmr.msra.gmra.mrb[30].mxu1 %vm366_vm2, %v2854_v5 }
0x1b3f   :  { %14926 = vmatprep.mubr.msk.f32.mxu1 %vm16243_vm1, %v16242_v36 }
0x1b41   :  { %v3021_v7 = vpop.f32.mrb[28].mxu1 }
0x1b42   :  { %v14908_v8 = vpop.f32.mrb[29].mxu1  ;;  %14912 = vmatmul.mubr.msk.f32.vlgmr.msra.gmra.mrb[34].mxu0 %vm366_vm2, %v3021_v7 }
0x1b43   :  { %14920 = vmatpush3.xpose.msk.msra.mxu0 %vm366_vm2, %v3174_v41  ;;  %14921 = vmatprep.mubr.msk.f32.mxu0 %vm16243_vm1, %v16242_v36 }
0x1b44   :  { %14929 = vmatprep.subr.mxu0 %v16242_v36 }
0x1b46   :  { %14922 = vmatmul.mubr.msk.f32.vlgmr.msra.gmra.mrb[36].mxu0 %vm366_vm2, %v3172_v9 }
0x1b47   :  { %14931 = vmatprep.mubr.msk.f32.mxu0 %vm16243_vm1, %v16242_v36  ;;  %14930 = vmatpush3.msra.mxu0 %v16867_v33 }
0x1b48   :  { %14939 = vmatprep.subr.mxu0 %v16242_v36 }
0x1c11   :  { %v3167_v54 = vpop.f32.mrb[30].mxu1 }
0x1c12   :  { %v14918_v10 = vpop.f32.mrb[31].mxu1 }
0x1c15   :  { %v3094_v12 = vpop.f32.mrb[34].mxu0 }
0x1c16   :  { %v3168_v13 = vadd.f32 %v3167_v54, %v3094_v12  ;;  %v14913_v14 = vpop.f32.mrb[35].mxu0 }
0x1c19   :  { %v3245_v16 = vpop.f32.mrb[36].mxu0 }
0x1c1a   :  { %v3249_v17 = vmul.f32 0.35355338, %v3245_v16  ;;  %v14923_v18 = vpop.f32.mrb[37].mxu0 }
0x1c1c   :  { %v3250_v20 = vadd.f32 %v3249_v17, %v16532_v51 }
0x1c1e   :  { %v3251_v21 = vsel %vm366_vm2, %v3250_v20, -inf }
0x1c1f   :  { %3252 = vmax.xlane.f32.xlu1 %v3251_v21 }
0x1c30   :  { %3262 = vrot.lane.b32.xlu1 %v16786_v30, %s16254_s0 }
0x1c34   :  { %3412 = vrot.lane.b32.xlu1 %v16786_v30, %s16253_s16 }
0x1cac   :  { %v3253_v22 = vpop.xlane.xlu1 %3252 }
0x1cad   :  { %v3254_v23 = vsub.f32 %v3250_v20, %v3253_v22 }
0x1caf   :  { %v3255_v24 = vmul.f32 1.442695, %v3254_v23 }
0x1cb0   :  { %v3263_v25 = vpop.permute.xlu1 %3262 }
0x1cb1   :  { %15917 = vpow2.f32 %v3255_v24  ;;  %14925 = vmatpush3.msra.mxu1 %v3263_v25 }
0x1cb2   :  { %14934 = vmatprep.subr.mxu1 %v16242_v36 }
0x1cb4   :  { %v3413_v32 = vpop.permute.xlu1 %3412 }
0x1cbb   :  { %v15918_v26 = vpop.eup %15917 }
0x1cbc   :  { %v3257_v27 = vsel %vm366_vm2, %v15918_v26, 0.0 }
0x1cbd   :  { %3258 = vadd.xlane.f32.xlu0 %v3257_v27 }
0x1cd3   :  { %3414 = vrot.lane.b32.xlu0 %v16786_v30, %s16252_s11 }
0x1d4a   :  { %v3259_v29 = vpop.xlane.xlu0 %3258 }
0x1d4b   :  { %15919 = vrcp.f32 %v3259_v29 }
0x1d4e   :  { %v3415_v31 = vpop.permute.xlu0 %3414 }
0x1d55   :  { %v15920_v47 = vpop.eup %15919 }
0x1d56   :  { %v3261_v48 = vmul.f32 %v15920_v47, %v15918_v26 }
0x1d58   :  { %14927 = vmatmul.mubr.msk.f32.vlgmr.msra.gmra.mrb[32].mxu1 %vm366_vm2, %v3261_v48 }
0x1d59   :  { %14935 = vmatpush3.xpose.msk.msra.mxu1 %vm366_vm2, %v3415_v31  ;;  %14936 = vmatprep.mubr.msk.f32.mxu1 %vm16243_vm1, %v16242_v36 }
0x1d5a   :  { %14944 = vmatprep.subr.mxu1 %v16242_v36 }
0x1d5c   :  { %14937 = vmatmul.mubr.msk.f32.vlgmr.msra.gmra.mrb[34].mxu1 %vm366_vm2, %v3413_v32 }
0x1d5d   :  { %14946 = vmatprep.mubr.msk.f32.mxu1 %vm16243_vm1, %v16242_v36  ;;  %14945 = vmatpush3.msra.mxu1 %v16903_v19 }
0x1d5e   :  { %14954 = vmatprep.subr.mxu1 %v16242_v36 }
0x1e2b   :  { %v3334_v34 = vpop.f32.mrb[32].mxu1 }
0x1e2c   :  { %v14928_v35 = vpop.f32.mrb[33].mxu1  ;;  %14932 = vmatmul.mubr.msk.f32.vlgmr.msra.gmra.mrb[38].mxu0 %vm366_vm2, %v3334_v34 }
0x1e2d   :  { %14941 = vmatprep.mubr.msk.f32.mxu0 %vm16243_vm1, %v16242_v36 }
0x1e2f   :  { %v3486_v0 = vpop.f32.mrb[34].mxu1 }
0x1e30   :  { %v3490_v37 = vmul.f32 0.35355338, %v3486_v0  ;;  %v14938_v38 = vpop.f32.mrb[35].mxu1 }
0x1e32   :  { %v3491_v40 = vadd.f32 %v3490_v37, %v16532_v51 }
0x1e34   :  { %v3492_v42 = vsel %vm366_vm2, %v3491_v40, -inf }
0x1e35   :  { %3493 = vmax.xlane.f32.xlu1 %v3492_v42 }
0x1e46   :  { %3654 = vrot.lane.b32.xlu1 %v16784_v28, %s16245_s20 }
0x1e4a   :  { %3821 = vrot.lane.b32.xlu1 %v16784_v28, %s16244_s5 }
0x1ec2   :  { %v3494_v43 = vpop.xlane.xlu1 %3493 }
0x1ec3   :  { %v3495_v44 = vsub.f32 %v3491_v40, %v3494_v43 }
0x1ec5   :  { %v3496_v45 = vmul.f32 1.442695, %v3495_v44 }
0x1ec6   :  { %v3655_v58 = vpop.permute.xlu1 %3654 }
0x1ec7   :  { %15921 = vpow2.f32 %v3496_v45 }
0x1ed1   :  { %v15922_v46 = vpop.eup %15921 }
0x1ed2   :  { %v3498_v50 = vsel %vm366_vm2, %v15922_v46, 0.0 }
0x1ed3   :  { %3499 = vadd.xlane.f32.xlu0 %v3498_v50 }
0x1ee9   :  { %3503 = vrot.lane.b32.xlu0 %v16786_v30, %s18091_s15  ;;  %v3822_v30 = vpop.permute.xlu1 %3821 }
0x1eed   :  { %3819 = vrot.lane.b32.xlu0 %v16784_v28, %s16246_s27 }
0x1eff   :  { %v3407_v52 = vpop.f32.mrb[38].mxu0 }
0x1f00   :  { %v3411_v53 = vadd.f32 %v3407_v52, %v3168_v13  ;;  %v14933_v56 = vpop.f32.mrb[39].mxu0 }
0x1f60   :  { %v3500_v57 = vpop.xlane.xlu0 %3499 }
0x1f61   :  { %15923 = vrcp.f32 %v3500_v57 }
0x1f64   :  { %v3504_v59 = vpop.permute.xlu0 %3503 }
0x1f65   :  { %14940 = vmatpush3.msra.mxu0 %v3504_v59 }
0x1f66   :  { %14949 = vmatprep.subr.mxu0 %v16242_v36 }
0x1f68   :  { %v3820_v15 = vpop.permute.xlu0 %3819 }
0x1f6b   :  { %v15924_v60 = vpop.eup %15923 }
0x1f6c   :  { %v3502_v62 = vmul.f32 %v15924_v60, %v15922_v46 }
0x1f6e   :  { %14942 = vmatmul.mubr.msk.f32.vlgmr.msra.gmra.mrb[40].mxu0 %vm366_vm2, %v3502_v62 }
0x1f6f   :  { %14950 = vmatpush3.xpose.msk.msra.mxu0 %vm366_vm2, %v3655_v58  ;;  %14951 = vmatprep.mubr.msk.f32.mxu0 %vm16243_vm1, %v16242_v36 }
0x1f70   :  { %14959 = vmatprep.subr.mxu0 %v16242_v36 }
0x1f72   :  { %14952 = vmatmul.mubr.msk.f32.vlgmr.msra.gmra.mrb[42].mxu0 %vm366_vm2, %v16784_v28 }
0x1f73   :  { %14960 = vmatpush3.xpose.msk.msra.mxu0 %vm366_vm2, %v3822_v30  ;;  %14961 = vmatprep.mubr.msk.f32.mxu0 %vm16243_vm1, %v16242_v36 }
0x1f74   :  { %14969 = vmatprep.subr.mxu0 %v16242_v36 }
0x1f76   :  { %14962 = vmatmul.mubr.msk.f32.vlgmr.msra.gmra.mrb[44].mxu0 %vm366_vm2, %v3820_v15 }
0x1f77   :  { %14970 = vmatpush3.msra.mxu0 %v16820_v61  ;;  %14971 = vmatprep.mubr.msk.f32.mxu0 %vm16243_vm1, %v16242_v36 }
0x1f78   :  { %14979 = vmatprep.subr.mxu0 %v16242_v36 }
0x2041   :  { %v3575_v63 = vpop.f32.mrb[40].mxu0 }
0x2042   :  { %v14943_v2 = vpop.f32.mrb[41].mxu0  ;;  %14947 = vmatmul.mubr.msk.f32.vlgmr.msra.gmra.mrb[36].mxu1 %vm366_vm2, %v3575_v63 }
0x2043   :  { %14956 = vmatprep.mubr.msk.f32.mxu1 %vm16243_vm1, %v16242_v36 }
0x2045   :  { %v3726_v3 = vpop.f32.mrb[42].mxu0 }
0x2046   :  { %v3730_v61 = vmul.f32 0.35355338, %v3726_v3  ;;  %v14953_v1 = vpop.f32.mrb[43].mxu0 }
0x2048   :  { %v3731_v5 = vadd.f32 %v3730_v61, %v16648_v11 }
0x2049   :  { %v3893_v6 = vpop.f32.mrb[44].mxu0 }
0x204a   :  { %v3897_v41 = vmul.f32 0.35355338, %v3893_v6  ;;  %v14963_v7 = vpop.f32.mrb[45].mxu0  ;;  %v3732_v8 = vsel %vm366_vm2, %v3731_v5, -inf }
0x204b   :  { %3733 = vmax.xlane.f32.xlu1 %v3732_v8 }
0x204c   :  { %v3898_v9 = vadd.f32 %v3897_v41, %v16648_v11 }
0x204e   :  { %v3899_v54 = vsel %vm366_vm2, %v3898_v9, -inf }
0x204f   :  { %3900 = vmax.xlane.f32.xlu0 %v3899_v54 }
0x20d8   :  { %v3734_v10 = vpop.xlane.xlu1 %3733 }
0x20d9   :  { %v3735_v12 = vsub.f32 %v3731_v5, %v3734_v10 }
0x20db   :  { %v3736_v13 = vmul.f32 1.442695, %v3735_v12 }
0x20dc   :  { %v3901_v14 = vpop.xlane.xlu0 %3900 }
0x20dd   :  { %15925 = vpow2.f32 %v3736_v13  ;;  %v3902_v16 = vsub.f32 %v3898_v9, %v3901_v14  ;;  %v14069_v13 = vld [vmem:[%s16407_s3 + $0x1] ss:$0 sm:$0xff]  ;;  %s18119_s3 = sld [smem:[#allocation21_spill]] }
0x20df   :  { %v3903_v17 = vmul.f32 1.442695, %v3902_v16 }
0x20e1   :  { %15927 = vpow2.f32 %v3903_v17 }
0x20e7   :  { %v15926_v18 = vpop.eup %15925 }
0x20e8   :  { %v3738_v20 = vsel %vm366_vm2, %v15926_v18, 0.0 }
0x20e9   :  { %3739 = vadd.xlane.f32.xlu0 %v3738_v20 }
0x20eb   :  { %v15928_v21 = vpop.eup %15927 }
0x20ec   :  { %v3905_v22 = vsel %vm366_vm2, %v15928_v21, 0.0 }
0x20ed   :  { %3906 = vadd.xlane.f32.xlu1 %v3905_v22 }
0x20fe   :  { %3910 = vrot.lane.b32.xlu1 %v16784_v28, %s16251_s7 }
0x20ff   :  { %3743 = vrot.lane.b32.xlu0 %v16784_v28, %s16248_s1 }
0x2102   :  { %4134 = vrot.lane.b32.xlu1 %v16784_v28, %s16249_s2 }
0x2103   :  { %4132 = vrot.lane.b32.xlu0 %v16784_v28, %s16250_s10 }
0x2115   :  { %v3648_v23 = vpop.f32.mrb[36].mxu1 }
0x2116   :  { %v16924_v24 = vadd.f32 %v3648_v23, %v3411_v53  ;;  %v14948_v25 = vpop.f32.mrb[37].mxu1 }
0x2118   :  { %v4620_v14 = vadd.f32 %v14069_v13, %v16924_v24 }
0x211a   :  { %v16978_v17 = vadd.f32 %v4620_v14, %v16762_v39 }
0x211c   :  { %v4628_v20 = vsel %vm222_vm0, %v16978_v17, 0.0 }
0x2176   :  { %v3740_v26 = vpop.xlane.xlu0 %3739 }
0x2177   :  { %15929 = vrcp.f32 %v3740_v26 }
0x217a   :  { %v3907_v27 = vpop.xlane.xlu1 %3906  ;;  %v3744_v29 = vpop.permute.xlu0 %3743 }
0x217b   :  { %15931 = vrcp.f32 %v3907_v27  ;;  %14955 = vmatpush3.msra.mxu1 %v3744_v29 }
0x217c   :  { %14964 = vmatprep.subr.mxu1 %v16242_v36 }
0x217e   :  { %v3911_v31 = vpop.permute.xlu1 %3910 }
0x2181   :  { %v15930_v47 = vpop.eup %15929 }
0x2182   :  { %v3742_v48 = vmul.f32 %v15930_v47, %v15926_v18  ;;  %v4135_v38 = vpop.permute.xlu1 %4134 }
0x2184   :  { %14957 = vmatmul.mubr.msk.f32.vlgmr.msra.gmra.mrb[38].mxu1 %vm366_vm2, %v3742_v48 }
0x2185   :  { %v15932_v32 = vpop.eup %15931  ;;  %14965 = vmatpush3.msra.mxu1 %v3911_v31  ;;  %14966 = vmatprep.mubr.msk.f32.mxu1 %vm16243_vm1, %v16242_v36 }
0x2186   :  { %v3909_v34 = vmul.f32 %v15932_v32, %v15928_v21  ;;  %14974 = vmatprep.subr.mxu1 %v16242_v36 }
0x2188   :  { %14967 = vmatmul.mubr.msk.f32.vlgmr.msra.gmra.mrb[40].mxu1 %vm366_vm2, %v3909_v34 }
0x2189   :  { %14975 = vmatpush3.msra.mxu1 %v16833_v4  ;;  %14976 = vmatprep.mubr.msk.f32.mxu1 %vm16243_vm1, %v16242_v36  ;;  %v4133_v4 = vpop.permute.xlu0 %4132 }
0x218a   :  { %14984 = vmatprep.subr.mxu1 %v16242_v36 }
0x2257   :  { %v3815_v35 = vpop.f32.mrb[38].mxu1 }
0x2258   :  { %v14958_v0 = vpop.f32.mrb[39].mxu1  ;;  %14977 = vmatmul.mubr.msk.f32.vlgmr.msra.gmra.mrb[42].mxu1 %vm366_vm2, %v3815_v35  ;;  %v16987_v35 = vld [vmem:[%s16432_s8 + $0x1] ss:$0 sm:$0xff]  ;;  %s18120_s8 = sld [smem:[#allocation20_spill]] }
0x2259   :  { %14986 = vmatprep.mubr.msk.f32.mxu1 %vm16243_vm1, %v16242_v36 }
0x225b   :  { %v3982_v37 = vpop.f32.mrb[40].mxu1 }
0x225c   :  { %v14968_v40 = vpop.f32.mrb[41].mxu1  ;;  %14972 = vmatmul.mubr.msk.f32.vlgmr.msra.gmra.mrb[46].mxu0 %vm366_vm2, %v3982_v37  ;;  %v16990_v37 = vld [vmem:[%s16427_s21 + $0x1] ss:$0 sm:$0xff]  ;;  %s18117_s21 = sld [smem:[#allocation33_spill]] }
0x225d   :  { %14980 = vmatpush3.xpose.msk.msra.mxu0 %vm366_vm2, %v4135_v38  ;;  %14981 = vmatprep.mubr.msk.f32.mxu0 %vm16243_vm1, %v16242_v36 }
0x225e   :  { %14989 = vmatprep.subr.mxu0 %v16242_v36 }
0x2260   :  { %14982 = vmatmul.mubr.msk.f32.vlgmr.msra.gmra.mrb[48].mxu0 %vm366_vm2, %v4133_v4 }
0x2261   :  { %14990 = vmatpush3.msra.mxu0 %v16867_v33  ;;  %14991 = vmatprep.mubr.msk.f32.mxu0 %vm16243_vm1, %v16242_v36 }
0x2262   :  { %14999 = vmatprep.subr.mxu0 %v16242_v36 }
0x232b   :  { %v4128_v42 = vpop.f32.mrb[42].mxu1 }
0x232c   :  { %v14978_v43 = vpop.f32.mrb[43].mxu1 }
0x232f   :  { %v4055_v44 = vpop.f32.mrb[46].mxu0 }
0x2330   :  { %v4129_v45 = vadd.f32 %v4128_v42, %v4055_v44  ;;  %v14973_v46 = vpop.f32.mrb[47].mxu0 }
0x2333   :  { %v4206_v50 = vpop.f32.mrb[48].mxu0 }
0x2334   :  { %v4210_v52 = vmul.f32 0.35355338, %v4206_v50  ;;  %v14983_v53 = vpop.f32.mrb[49].mxu0 }
0x2336   :  { %v4211_v56 = vadd.f32 %v4210_v52, %v16648_v11  ;;  %v17000_v52 = vld [vmem:[%s18116_s13] sm:$0xff] }
0x2338   :  { %v4212_v57 = vsel %vm366_vm2, %v4211_v56, -inf }
0x2339   :  { %4213 = vmax.xlane.f32.xlu1 %v4212_v57  ;;  %v17007_v57 = vld [vmem:[%s18116_s13 + $0x8] sm:$0xff]  ;;  %s18135_s13 = sld [smem:[#allocation28_spill]] }
0x234a   :  { %4375 = vrot.lane.b32.xlu1 %v16784_v28, %s16252_s11 }
0x234e   :  { %4373 = vrot.lane.b32.xlu1 %v16784_v28, %s16253_s16 }
0x23c6   :  { %v4214_v33 = vpop.xlane.xlu1 %4213 }
0x23c7   :  { %v4215_v59 = vsub.f32 %v4211_v56, %v4214_v33  ;;  %v4912_v56 = vsel %vm222_vm0, %v17000_v52, 0.0  ;;  %v4915_v33 = vsel %vm222_vm0, %v17007_v57, 0.0 }
0x23c9   :  { %v4216_v60 = vmul.f32 1.442695, %v4215_v59 }
0x23ca   :  { %v4376_v2 = vpop.permute.xlu1 %4375 }
0x23cb   :  { %15933 = vpow2.f32 %v4216_v60 }
0x23ce   :  { %v4374_v61 = vpop.permute.xlu1 %4373 }
0x23d5   :  { %v15934_v58 = vpop.eup %15933 }
0x23d6   :  { %v4218_v62 = vsel %vm366_vm2, %v15934_v58, 0.0 }
0x23d7   :  { %4219 = vadd.xlane.f32.xlu0 %v4218_v62 }
0x23ed   :  { %4223 = vrot.lane.b32.xlu0 %v16784_v28, %s16254_s0 }
0x2464   :  { %v4220_v30 = vpop.xlane.xlu0 %4219 }
0x2465   :  { %15935 = vrcp.f32 %v4220_v30 }
0x2468   :  { %v4224_v15 = vpop.permute.xlu0 %4223 }
0x2469   :  { %14985 = vmatpush3.msra.mxu1 %v4224_v15 }
0x246a   :  { %14994 = vmatprep.subr.mxu1 %v16242_v36 }
0x246f   :  { %v15936_v63 = vpop.eup %15935 }
0x2470   :  { %v4222_v3 = vmul.f32 %v15936_v63, %v15934_v58 }
0x2472   :  { %14987 = vmatmul.mubr.msk.f32.vlgmr.msra.gmra.mrb[44].mxu1 %vm366_vm2, %v4222_v3 }
0x2473   :  { %14995 = vmatpush3.xpose.msk.msra.mxu1 %vm366_vm2, %v4376_v2  ;;  %14996 = vmatprep.mubr.msk.f32.mxu1 %vm16243_vm1, %v16242_v36 }
0x2474   :  { %15004 = vmatprep.subr.mxu1 %v16242_v36 }
0x2476   :  { %14997 = vmatmul.mubr.msk.f32.vlgmr.msra.gmra.mrb[46].mxu1 %vm366_vm2, %v4374_v61 }
0x2477   :  { %15005 = vmatpush3.msra.mxu1 %v16903_v19  ;;  %15006 = vmatprep.mubr.msk.f32.mxu1 %vm16243_vm1, %v16242_v36 }
0x2545   :  { %v4295_v1 = vpop.f32.mrb[44].mxu1 }
0x2546   :  { %v14988_v5 = vpop.f32.mrb[45].mxu1  ;;  %14992 = vmatmul.mubr.msk.f32.vlgmr.msra.gmra.mrb[50].mxu0 %vm366_vm2, %v4295_v1 }
0x2547   :  { %15001 = vmatprep.mubr.msk.f32.mxu0 %vm16243_vm1, %v16242_v36 }
0x2549   :  { %v4447_v6 = vpop.f32.mrb[46].mxu1 }
0x254a   :  { %v4451_v41 = vmul.f32 0.35355338, %v4447_v6  ;;  %v14998_v7 = vpop.f32.mrb[47].mxu1 }
0x254b   :  { %v14074_v7 = vld [vmem:[%s16437_s4 + $0x20] sm:$0xff] }
0x254c   :  { %v4452_v8 = vadd.f32 %v4451_v41, %v16648_v11 }
0x254e   :  { %v4453_v9 = vsel %vm366_vm2, %v4452_v8, -inf }
0x254f   :  { %4454 = vmax.xlane.f32.xlu0 %v4453_v9 }
0x2565   :  { %4464 = vrot.lane.b32.xlu0 %v16784_v28, %s18091_s15 }
0x25dc   :  { %v4455_v19 = vpop.xlane.xlu0 %4454 }
0x25dd   :  { %v4456_v54 = vsub.f32 %v4452_v8, %v4455_v19  ;;  %v14075_v8 = vld [vmem:[%s16437_s4 + $0x28] sm:$0xff]  ;;  %v14076_v19 = vld [vmem:[%s16437_s4 + $0x30] sm:$0xff] }
0x25de   :  { %v15685_v9 = vpack.c.bf16 %v14075_v8, %v14074_v7 }
0x25df   :  { %v4457_v10 = vmul.f32 1.442695, %v4456_v54  ;;  %v14077_v54 = vld [vmem:[%s16437_s4 + $0x38] sm:$0xff]  ;;  %s18128_s4 = sld [smem:[#allocation16_spill]] }
0x25e0   :  { %v4465_v12 = vpop.permute.xlu0 %4464 }
0x25e1   :  { %15937 = vpow2.f32 %v4457_v10  ;;  %15000 = vmatpush3.msra.mxu0 %v4465_v12  ;;  %v15689_v10 = vpack.c.bf16 %v14077_v54, %v14076_v19  ;;  %v4954_v12 = vld [vmem:[%s18117_s21] sm:$0xff] }
0x25e2   :  { %15686 = vmatprep.subr.bf16.mxu0 %v15685_v9 }
0x25eb   :  { %v15938_v16 = vpop.eup %15937 }
0x25ec   :  { %v4459_v18 = vsel %vm366_vm2, %v15938_v16, 0.0 }
0x25ed   :  { %4460 = vadd.xlane.f32.xlu1 %v4459_v18  ;;  %v14080_v18 = vld [vmem:[%s16442_s17 + $0x48] sm:$0xff] }
0x25f1   :  { %4629 = vadd.xlane.f32.xlu1 %v4628_v20  ;;  %v14081_v20 = vld [vmem:[%s16442_s17 + $0x50] sm:$0xff] }
0x2619   :  { %v4368_v28 = vpop.f32.mrb[50].mxu0 }
0x261a   :  { %v4372_v21 = vadd.f32 %v4368_v28, %v4129_v45  ;;  %v14993_v22 = vpop.f32.mrb[51].mxu0 }
0x267a   :  { %v4461_v23 = vpop.xlane.xlu1 %4460 }
0x267b   :  { %15939 = vrcp.f32 %v4461_v23  ;;  %v14083_v23 = vld [vmem:[%s16442_s17 + $0x60] sm:$0xff] }
0x267e   :  { %v4630_v25 = vpop.xlane.xlu1 %4629 }
0x267f   :  { %v4634_v24 = vmul.f32 0.03125, %v4630_v25  ;;  %v14084_v25 = vld [vmem:[%s16442_s17 + $0x68] sm:$0xff] }
0x2681   :  { %v4636_v26 = vsub.f32 %v16978_v17, %v4634_v24  ;;  %v15701_v24 = vpack.c.bf16 %v14084_v25, %v14083_v23 }
0x2683   :  { %v4638_v39 = vmul.f32 %v4636_v26, %v4636_v26 }
0x2685   :  { %v15940_v27 = vpop.eup %15939  ;;  %v4640_v29 = vsel %vm222_vm0, %v4638_v39, 0.0 }
0x2686   :  { %4641 = vadd.xlane.f32.xlu0 %v4640_v29  ;;  %v4463_v47 = vmul.f32 %v15940_v27, %v15938_v16  ;;  %v14079_v16 = vld [vmem:[%s16442_s17 + $0x40] sm:$0xff] }
0x2687   :  { %v15693_v28 = vpack.c.bf16 %v14080_v18, %v14079_v16 }
0x2688   :  { %15002 = vmatmul.mubr.msk.f32.vlgmr.msra.gmra.mrb[52].mxu0 %vm366_vm2, %v4463_v47 }
0x2689   :  { %15688 = vmatpush3.bf16.msra.mxu0 %v15685_v9  ;;  %15694 = vmatprep.subr.bf16.mxu1 %v15693_v28 }
0x268a   :  { %15690 = vmatprep.subr.bf16.mxu0 %v15689_v10 }
0x268d   :  { %15692 = vmatpush3.bf16.msra.mxu0 %v15689_v10 }
0x2713   :  { %v4642_v48 = vpop.xlane.xlu0 %4641 }
0x2714   :  { %v4646_v31 = vmul.f32 0.03125, %v4642_v48 }
0x2716   :  { %v4648_v32 = vadd.f32 1e-06, %v4646_v31 }
0x2718   :  { %15941 = vrsqrt.f32 %v4648_v32 }
0x2722   :  { %v15942_v34 = vpop.eup %15941 }
0x2723   :  { %v4652_v0 = vmul.f32 %v15942_v34, %v4636_v26 }
0x2725   :  { %v4660_v38 = vmul.f32 %v16987_v35, %v4652_v0 }
0x2727   :  { %v4668_v40 = vadd.f32 %v16990_v37, %v4660_v38 }
0x2729   :  { %15017 = vmatprep.mubr.msk.f32.mxu0 %vm222_vm0, %v4668_v40  ;;  %v4956_v40 = vld [vmem:[%s18117_s21 + $0x10] sm:$0xff] }
0x275b   :  { %v4536_v4 = vpop.f32.mrb[52].mxu0 }
0x275c   :  { %v15003_v42 = vpop.f32.mrb[53].mxu0  ;;  %15007 = vmatmul.mubr.msk.f32.vlgmr.msra.gmra.mrb[48].mxu1 %vm366_vm2, %v4536_v4  ;;  %v4957_v4 = vld [vmem:[%s18117_s21 + $0x18] sm:$0xff] }
0x275d   :  { %15696 = vmatpush3.bf16.msra.mxu1 %v15693_v28 }
0x282f   :  { %v4609_v43 = vpop.f32.mrb[48].mxu1 }
0x2830   :  { %v4613_v44 = vadd.f32 %v4609_v43, %v4372_v21  ;;  %v15008_v45 = vpop.f32.mrb[49].mxu1  ;;  %v14082_v21 = vld [vmem:[%s16442_s17 + $0x58] sm:$0xff] }
0x2831   :  { %v15697_v22 = vpack.c.bf16 %v14082_v21, %v14081_v20 }
0x2832   :  { %v4621_v46 = vadd.f32 %v14069_v13, %v4613_v44  ;;  %v4955_v13 = vld [vmem:[%s18117_s21 + $0x8] sm:$0xff]  ;;  %v14096_v44 = vld [vmem:[%s18118_s25] ss:$0 sm:$0xff] }
0x2833   :  { %v15709_v14 = vpack.c.bf16 %v4955_v13, %v4954_v12  ;;  %15698 = vmatprep.subr.bf16.mxu1 %v15697_v22 }
0x2834   :  { %v16997_v50 = vadd.f32 %v4621_v46, %v16759_v55  ;;  %15700 = vmatpush3.bf16.msra.mxu1 %v15697_v22  ;;  %v15713_v46 = vpack.c.bf16 %v4957_v4, %v4956_v40 }
0x2835   :  { %15710 = vmatprep.subr.bf16.mxu0 %v15709_v14  ;;  %15702 = vmatprep.subr.bf16.mxu1 %v15701_v24 }
0x2836   :  { %v4631_v53 = vsel %vm222_vm0, %v16997_v50, 0.0 }
0x2837   :  { %4632 = vadd.xlane.f32.xlu1 %v4631_v53 }
0x2838   :  { %15704 = vmatpush3.bf16.msra.mxu1 %v15701_v24 }
0x283b   :  { %4913 = vadd.xlane.f32.xlu1 %v4912_v56  ;;  %v14097_v56 = vld [vmem:[%s18119_s3] ss:$0 sm:$0xff] }
0x283f   :  { %4916 = vadd.xlane.f32.xlu1 %v4915_v33 }
0x28c4   :  { %v4633_v59 = vpop.xlane.xlu1 %4632 }
0x28c5   :  { %v4635_v60 = vmul.f32 0.03125, %v4633_v59 }
0x28c7   :  { %v4637_v55 = vsub.f32 %v16997_v50, %v4635_v60 }
0x28c8   :  { %v4914_v58 = vpop.xlane.xlu1 %4913 }
0x28c9   :  { %v4918_v62 = vmul.f32 0.03125, %v4914_v58  ;;  %v4639_v30 = vmul.f32 %v4637_v55, %v4637_v55  ;;  %v14085_v58 = vld [vmem:[%s16442_s17 + $0x70] sm:$0xff] }
0x28cb   :  { %v4920_v15 = vsub.f32 %v17000_v52, %v4918_v62  ;;  %v4643_v63 = vsel %vm222_vm0, %v4639_v30, 0.0  ;;  %v14086_v62 = vld [vmem:[%s16442_s17 + $0x78] sm:$0xff]  ;;  %s18121_s17 = sld [smem:[#allocation13_spill]] }
0x28cc   :  { %4644 = vadd.xlane.f32.xlu1 %v4643_v63  ;;  %v4917_v2 = vpop.xlane.xlu1 %4916  ;;  %v15705_v30 = vpack.c.bf16 %v14086_v62, %v14085_v58 }
0x28cd   :  { %v4919_v3 = vmul.f32 0.03125, %v4917_v2  ;;  %v4922_v61 = vmul.f32 %v4920_v15, %v4920_v15 }
0x28ce   :  { %15706 = vmatprep.subr.bf16.mxu1 %v15705_v30 }
0x28cf   :  { %v17015_v1 = vsub.f32 %v17007_v57, %v4919_v3  ;;  %v4924_v5 = vsel %vm222_vm0, %v4922_v61, 0.0  ;;  %15708 = vmatpush3.bf16.msra.mxu1 %v15705_v30 }
0x28d0   :  { %4925 = vadd.xlane.f32.xlu1 %v4924_v5  ;;  %15055 = vmatprep.subr.mxu1 %v16242_v36 }
0x28d1   :  { %v4923_v6 = vmul.f32 %v17015_v1, %v17015_v1 }
0x28d3   :  { %v4927_v41 = vsel %vm222_vm0, %v4923_v6, 0.0  ;;  %v14098_v6 = vld [vmem:[%s18120_s8] ss:$0 sm:$0xff] }
0x28d4   :  { %4928 = vadd.xlane.f32.xlu1 %v4927_v41 }
0x2959   :  { %v4645_v26 = vpop.xlane.xlu1 %4644 }
0x295a   :  { %v4647_v39 = vmul.f32 0.03125, %v4645_v26 }
0x295c   :  { %v4649_v27 = vadd.f32 1e-06, %v4647_v39 }
0x295d   :  { %v4926_v29 = vpop.xlane.xlu1 %4925 }
0x295e   :  { %15943 = vrsqrt.f32 %v4649_v27  ;;  %v4930_v47 = vmul.f32 0.03125, %v4926_v29 }
0x2960   :  { %v4932_v48 = vadd.f32 1e-06, %v4930_v47 }
0x2961   :  { %v4929_v31 = vpop.xlane.xlu1 %4928 }
0x2962   :  { %15945 = vrsqrt.f32 %v4932_v48  ;;  %v4931_v32 = vmul.f32 0.03125, %v4929_v31 }
0x2964   :  { %v4933_v34 = vadd.f32 1e-06, %v4931_v32 }
0x2966   :  { %15947 = vrsqrt.f32 %v4933_v34 }
0x2968   :  { %v15944_v0 = vpop.eup %15943 }
0x2969   :  { %v4653_v38 = vmul.f32 %v15944_v0, %v4637_v55 }
0x296b   :  { %v4661_v42 = vmul.f32 %v16987_v35, %v4653_v38 }
0x296c   :  { %v15946_v43 = vpop.eup %15945 }
0x296d   :  { %v4669_v45 = vadd.f32 %v16990_v37, %v4661_v42  ;;  %v4936_v53 = vmul.f32 %v15946_v43, %v4920_v15  ;;  %v14088_v15 = vld [vmem:[%s16397_s14 + $0x1] ss:$0 sm:$0xff]  ;;  %s18122_s14 = sld [smem:[#allocation31_spill]] }
0x296f   :  { %15018 = vmatmul.mubr.msk.f32.vlgmr.msra.gmra.mrb[54].mxu0 %vm222_vm0, %v4669_v45  ;;  %v4944_v33 = vmul.f32 %v14096_v44, %v4936_v53 }
0x2970   :  { %v15948_v59 = vpop.eup %15947  ;;  %15712 = vmatpush3.bf16.msra.mxu0 %v15709_v14  ;;  %v213_v14 = vld [vmem:[%s18121_s17] sm:$0xff] }
0x2971   :  { %15714 = vmatprep.subr.bf16.mxu0 %v15713_v46  ;;  %v4937_v60 = vmul.f32 %v15948_v59, %v17015_v1  ;;  %v4952_v55 = vadd.f32 %v14097_v56, %v4944_v33  ;;  %vm214_vm6 = vcmp.gt.s32.totalorder %v213_v14, 0 }
0x2972   :  { %v17082_v16 = vsel %vm214_vm6, 0.0, %v16247_v49 }
0x2973   :  { %v4945_v35 = vmul.f32 %v14096_v44, %v4937_v60  ;;  %15047 = vmatprep.mubr.msk.f32.mxu0 %vm222_vm0, %v4952_v55  ;;  %v17099_v4 = vld [vmem:[%s18122_s14 + $0x8] sm:$0xff]  ;;  %v17112_v59 = vld [vmem:[%s18122_s14] sm:$0xff] }
0x2974   :  { %15716 = vmatpush3.bf16.msra.mxu0 %v15713_v46 }
0x2975   :  { %v4953_v37 = vadd.f32 %v14097_v56, %v4945_v35  ;;  %15050 = vmatprep.subr.mxu0 %v16242_v36 }
0x2977   :  { %15048 = vmatmul.mubr.msk.f32.vlgmr.msra.gmra.mrb[56].mxu0 %vm222_vm0, %v4953_v37 }
0x2978   :  { %15052 = vmatprep.mubr.msk.f32.mxu0 %vm16243_vm1, %v16242_v36 }
0x2a42   :  { %v15019_v63 = vpop.f32.mrb[54].mxu0 }
0x2a43   :  { %v4772_v2 = vadd.f32 %v15019_v63, %v14088_v15  ;;  %v4766_v3 = vpop.f32.mrb[55].mxu0 }
0x2a44   :  { %v4767_v61 = vadd.f32 %v14088_v15, %v4766_v3 }
0x2a45   :  { %v4776_v5 = vmax.f32 %v4772_v2, 0.0 }
0x2a46   :  { %v4775_v1 = vmax.f32 %v4767_v61, 0.0 }
0x2a48   :  { %15036 = vmatprep.mubr.msk.f32.mxu1 %vm2461_vm5, %v4775_v1 }
0x2a49   :  { %15037 = vmatmul.mubr.msk.f32.vlgmr.msra.gmra.mrb[50].mxu1 %vm2461_vm5, %v4776_v5 }
0x2a4a   :  { %v15049_v41 = vpop.f32.mrb[56].mxu0  ;;  %15057 = vmatprep.mubr.msk.f32.mxu1 %vm16243_vm1, %v16242_v36 }
0x2a4b   :  { %v17055_v7 = vadd.f32 %v15049_v41, %v14098_v6  ;;  %v5042_v8 = vpop.f32.mrb[57].mxu0 }
0x2a4c   :  { %v17057_v9 = vadd.f32 %v14098_v6, %v5042_v8 }
0x2a4e   :  { %5217 = vrot.lane.b32.xlu0 %v17057_v9, %s16246_s27  ;;  %5052 = vrot.lane.b32.xlu1 %v17057_v9, %s16245_s20 }
0x2a52   :  { %5219 = vrot.lane.b32.xlu1 %v17057_v9, %s16244_s5 }
0x2ac0   :  { %v5053_v19 = vpop.permute.xlu1 %5052  ;;  %v5218_v10 = vpop.permute.xlu0 %5217 }
0x2ac1   :  { %15051 = vmatpush3.xpose.msk.msra.mxu0 %vm366_vm2, %v5053_v19 }
0x2ac2   :  { %15060 = vmatprep.subr.mxu0 %v16242_v36 }
0x2ac4   :  { %15053 = vmatmul.mubr.msk.f32.vlgmr.msra.gmra.mrb[58].mxu0 %vm366_vm2, %v17057_v9  ;;  %v5220_v54 = vpop.permute.xlu1 %5219 }
0x2ac5   :  { %15061 = vmatpush3.xpose.msk.msra.mxu0 %vm366_vm2, %v5220_v54  ;;  %15062 = vmatprep.mubr.msk.f32.mxu0 %vm16243_vm1, %v16242_v36 }
0x2ac6   :  { %15070 = vmatprep.subr.mxu0 %v16242_v36 }
0x2ac8   :  { %15063 = vmatmul.mubr.msk.f32.vlgmr.msra.gmra.mrb[60].mxu0 %vm366_vm2, %v5218_v10 }
0x2ac9   :  { %15072 = vmatprep.mubr.msk.f32.mxu0 %vm16243_vm1, %v16242_v36  ;;  %15071 = vmatpush3.msra.mxu0 %v17099_v4 }
0x2aca   :  { %15080 = vmatprep.subr.mxu0 %v16242_v36 }
0x2b1c   :  { %v17076_v12 = vpop.f32.mrb[50].mxu1 }
0x2b1d   :  { %v17078_v13 = vpop.f32.mrb[51].mxu1 }
0x2b97   :  { %v5124_v18 = vpop.f32.mrb[58].mxu0 }
0x2b98   :  { %v5128_v20 = vmul.f32 0.35355338, %v5124_v18  ;;  %v15054_v28 = vpop.f32.mrb[59].mxu0 }
0x2b9a   :  { %v5129_v21 = vadd.f32 %v5128_v20, %v17082_v16 }
0x2b9b   :  { %v5291_v22 = vpop.f32.mrb[60].mxu0 }
0x2b9c   :  { %v5295_v23 = vmul.f32 0.35355338, %v5291_v22  ;;  %v15064_v25 = vpop.f32.mrb[61].mxu0  ;;  %v5130_v24 = vsel %vm366_vm2, %v5129_v21, -inf }
0x2b9d   :  { %5131 = vmax.xlane.f32.xlu1 %v5130_v24  ;;  %v17148_v25 = vld [vmem:[%s18122_s14 + $0x10] sm:$0xff] }
0x2b9e   :  { %v5296_v26 = vadd.f32 %v5295_v23, %v17082_v16 }
0x2ba0   :  { %v5297_v39 = vsel %vm366_vm2, %v5296_v26, -inf }
0x2ba1   :  { %5298 = vmax.xlane.f32.xlu0 %v5297_v39 }
0x2bb7   :  { %5308 = vrot.lane.b32.xlu0 %v17057_v9, %s16251_s7 }
0x2c2a   :  { %v5132_v27 = vpop.xlane.xlu1 %5131 }
0x2c2b   :  { %v5133_v29 = vsub.f32 %v5129_v21, %v5132_v27 }
0x2c2d   :  { %v5134_v47 = vmul.f32 1.442695, %v5133_v29 }
0x2c2e   :  { %v5299_v48 = vpop.xlane.xlu0 %5298 }
0x2c2f   :  { %15949 = vpow2.f32 %v5134_v47  ;;  %v5300_v31 = vsub.f32 %v5296_v26, %v5299_v48 }
0x2c31   :  { %v5301_v32 = vmul.f32 1.442695, %v5300_v31 }
0x2c32   :  { %v5309_v53 = vpop.permute.xlu0 %5308 }
0x2c33   :  { %15951 = vpow2.f32 %v5301_v32 }
0x2c39   :  { %v15950_v34 = vpop.eup %15949 }
0x2c3a   :  { %v5136_v0 = vsel %vm366_vm2, %v15950_v34, 0.0 }
0x2c3b   :  { %5137 = vadd.xlane.f32.xlu1 %v5136_v0 }
0x2c3d   :  { %v15952_v38 = vpop.eup %15951 }
0x2c3e   :  { %v5303_v40 = vsel %vm366_vm2, %v15952_v38, 0.0 }
0x2c3f   :  { %5304 = vadd.xlane.f32.xlu1 %v5303_v40 }
0x2c50   :  { %5141 = vrot.lane.b32.xlu1 %v17057_v9, %s16248_s1 }
0x2c54   :  { %5532 = vrot.lane.b32.xlu1 %v17057_v9, %s16249_s2 }
0x2c58   :  { %5530 = vrot.lane.b32.xlu1 %v17057_v9, %s16250_s10 }
0x2cc8   :  { %v5138_v42 = vpop.xlane.xlu1 %5137 }
0x2cc9   :  { %15953 = vrcp.f32 %v5138_v42 }
0x2ccc   :  { %v5305_v43 = vpop.xlane.xlu1 %5304 }
0x2ccd   :  { %15955 = vrcp.f32 %v5305_v43 }
0x2cd0   :  { %v5142_v44 = vpop.permute.xlu1 %5141 }
0x2cd1   :  { %15056 = vmatpush3.msra.mxu1 %v5142_v44 }
0x2cd2   :  { %15065 = vmatprep.subr.mxu1 %v16242_v36 }
0x2cd3   :  { %v15954_v45 = vpop.eup %15953 }
0x2cd4   :  { %v5140_v46 = vmul.f32 %v15954_v45, %v15950_v34  ;;  %v5533_v35 = vpop.permute.xlu1 %5532 }
0x2cd6   :  { %15058 = vmatmul.mubr.msk.f32.vlgmr.msra.gmra.mrb[52].mxu1 %vm366_vm2, %v5140_v46 }
0x2cd7   :  { %v15956_v56 = vpop.eup %15955  ;;  %15066 = vmatpush3.msra.mxu1 %v5309_v53  ;;  %15067 = vmatprep.mubr.msk.f32.mxu1 %vm16243_vm1, %v16242_v36 }
0x2cd8   :  { %v5307_v33 = vmul.f32 %v15956_v56, %v15952_v38  ;;  %15075 = vmatprep.subr.mxu1 %v16242_v36  ;;  %v5531_v62 = vpop.permute.xlu1 %5530 }
0x2cda   :  { %15068 = vmatmul.mubr.msk.f32.vlgmr.msra.gmra.mrb[54].mxu1 %vm366_vm2, %v5307_v33 }
0x2cdb   :  { %15077 = vmatprep.mubr.msk.f32.mxu1 %vm16243_vm1, %v16242_v36  ;;  %15076 = vmatpush3.msra.mxu1 %v17112_v59 }
0x2cdc   :  { %15085 = vmatprep.subr.mxu1 %v16242_v36 }
0x2da9   :  { %v5213_v60 = vpop.f32.mrb[52].mxu1 }
0x2daa   :  { %v15059_v55 = vpop.f32.mrb[53].mxu1  ;;  %15078 = vmatmul.mubr.msk.f32.vlgmr.msra.gmra.mrb[56].mxu1 %vm366_vm2, %v5213_v60  ;;  %v17184_v60 = vld [vmem:[%s18122_s14 + $0x18] sm:$0xff] }
0x2dab   :  { %15087 = vmatprep.mubr.msk.f32.mxu1 %vm16243_vm1, %v16242_v36  ;;  %v13973_v55 = vld [vmem:[%s18121_s17 + $0x8] sm:$0xff]  ;;  %s18136_s17 = sld [smem:[#allocation14_spill]] }
0x2dac   :  { %vm218_vm7 = vcmp.gt.s32.totalorder %v13973_v55, 0 }
0x2dad   :  { %v5380_v37 = vpop.f32.mrb[54].mxu1 }
0x2dae   :  { %v15069_v58 = vpop.f32.mrb[55].mxu1  ;;  %15073 = vmatmul.mubr.msk.f32.vlgmr.msra.gmra.mrb[62].mxu0 %vm366_vm2, %v5380_v37 }
0x2daf   :  { %15081 = vmatpush3.xpose.msk.msra.mxu0 %vm366_vm2, %v5533_v35  ;;  %15082 = vmatprep.mubr.msk.f32.mxu0 %vm16243_vm1, %v16242_v36  ;;  %v17193_v58 = vsel %vm218_vm7, 0.0, %v16247_v49 }
0x2db0   :  { %15090 = vmatprep.subr.mxu0 %v16242_v36 }
0x2db2   :  { %15083 = vmatmul.mubr.msk.f32.vlgmr.msra.gmra.mrb[64].mxu0 %vm366_vm2, %v5531_v62 }
0x2db3   :  { %15092 = vmatprep.mubr.msk.f32.mxu0 %vm16243_vm1, %v16242_v36  ;;  %15091 = vmatpush3.msra.mxu0 %v17148_v25 }
0x2db4   :  { %15100 = vmatprep.subr.mxu0 %v16242_v36 }
0x2e7d   :  { %v5526_v30 = vpop.f32.mrb[56].mxu1 }
0x2e7e   :  { %v15079_v15 = vpop.f32.mrb[57].mxu1 }
0x2e81   :  { %v5453_v63 = vpop.f32.mrb[62].mxu0 }
0x2e82   :  { %v5527_v2 = vadd.f32 %v5526_v30, %v5453_v63  ;;  %v15074_v3 = vpop.f32.mrb[63].mxu0 }
0x2e85   :  { %v5604_v61 = vpop.f32.mrb[64].mxu0 }
0x2e86   :  { %v5608_v1 = vmul.f32 0.35355338, %v5604_v61  ;;  %v15084_v5 = vpop.f32.mrb[65].mxu0 }
0x2e88   :  { %v5609_v6 = vadd.f32 %v5608_v1, %v17082_v16 }
0x2e8a   :  { %v5610_v41 = vsel %vm366_vm2, %v5609_v6, -inf }
0x2e8b   :  { %5611 = vmax.xlane.f32.xlu1 %v5610_v41 }
0x2e9c   :  { %5773 = vrot.lane.b32.xlu1 %v17057_v9, %s16252_s11 }
0x2ea0   :  { %5771 = vrot.lane.b32.xlu1 %v17057_v9, %s16253_s16 }
0x2ea4   :  { %6013 = vrot.lane.b32.xlu1 %v17055_v7, %s16245_s20 }
0x2f18   :  { %v5612_v8 = vpop.xlane.xlu1 %5611 }
0x2f19   :  { %v5613_v19 = vsub.f32 %v5609_v6, %v5612_v8 }
0x2f1b   :  { %v5614_v54 = vmul.f32 1.442695, %v5613_v19 }
0x2f1c   :  { %v5774_v21 = vpop.permute.xlu1 %5773 }
0x2f1d   :  { %15957 = vpow2.f32 %v5614_v54 }
0x2f20   :  { %v5772_v23 = vpop.permute.xlu1 %5771 }
0x2f24   :  { %v6014_v44 = vpop.permute.xlu1 %6013 }
0x2f27   :  { %v15958_v10 = vpop.eup %15957 }
0x2f28   :  { %v5616_v14 = vsel %vm366_vm2, %v15958_v10, 0.0 }
0x2f29   :  { %5617 = vadd.xlane.f32.xlu0 %v5616_v14 }
0x2f3f   :  { %5621 = vrot.lane.b32.xlu0 %v17057_v9, %s16254_s0 }
0x2fb6   :  { %v5618_v18 = vpop.xlane.xlu0 %5617 }
0x2fb7   :  { %15959 = vrcp.f32 %v5618_v18 }
0x2fba   :  { %v5622_v20 = vpop.permute.xlu0 %5621 }
0x2fbb   :  { %15086 = vmatpush3.msra.mxu1 %v5622_v20 }
0x2fbc   :  { %15095 = vmatprep.subr.mxu1 %v16242_v36 }
0x2fc1   :  { %v15960_v28 = vpop.eup %15959 }
0x2fc2   :  { %v5620_v22 = vmul.f32 %v15960_v28, %v15958_v10 }
0x2fc4   :  { %15088 = vmatmul.mubr.msk.f32.vlgmr.msra.gmra.mrb[58].mxu1 %vm366_vm2, %v5620_v22 }
0x2fc5   :  { %15096 = vmatpush3.xpose.msk.msra.mxu1 %vm366_vm2, %v5774_v21  ;;  %15097 = vmatprep.mubr.msk.f32.mxu1 %vm16243_vm1, %v16242_v36 }
0x2fc6   :  { %15105 = vmatprep.subr.mxu1 %v16242_v36 }
0x2fc8   :  { %15098 = vmatmul.mubr.msk.f32.vlgmr.msra.gmra.mrb[60].mxu1 %vm366_vm2, %v5772_v23 }
0x2fc9   :  { %15107 = vmatprep.mubr.msk.f32.mxu1 %vm16243_vm1, %v16242_v36  ;;  %15106 = vmatpush3.msra.mxu1 %v17184_v60 }
0x2fca   :  { %15115 = vmatprep.subr.mxu1 %v16242_v36 }
0x3097   :  { %v5693_v24 = vpop.f32.mrb[58].mxu1 }
0x3098   :  { %v15089_v26 = vpop.f32.mrb[59].mxu1  ;;  %15093 = vmatmul.mubr.msk.f32.vlgmr.msra.gmra.mrb[66].mxu0 %vm366_vm2, %v5693_v24 }
0x3099   :  { %15102 = vmatprep.mubr.msk.f32.mxu0 %vm16243_vm1, %v16242_v36 }
0x309b   :  { %v5845_v39 = vpop.f32.mrb[60].mxu1 }
0x309c   :  { %v5849_v27 = vmul.f32 0.35355338, %v5845_v39  ;;  %v15099_v29 = vpop.f32.mrb[61].mxu1 }
0x309e   :  { %v5850_v47 = vadd.f32 %v5849_v27, %v17082_v16 }
0x30a0   :  { %v5851_v48 = vsel %vm366_vm2, %v5850_v47, -inf }
0x30a1   :  { %5852 = vmax.xlane.f32.xlu0 %v5851_v48 }
0x30b7   :  { %5862 = vrot.lane.b32.xlu0 %v17057_v9, %s18091_s15 }
0x30bb   :  { %6180 = vrot.lane.b32.xlu0 %v17055_v7, %s16244_s5 }
0x312e   :  { %v5853_v31 = vpop.xlane.xlu0 %5852 }
0x312f   :  { %v5854_v32 = vsub.f32 %v5850_v47, %v5853_v31 }
0x3131   :  { %v5855_v34 = vmul.f32 1.442695, %v5854_v32 }
0x3132   :  { %v5863_v0 = vpop.permute.xlu0 %5862 }
0x3133   :  { %15961 = vpow2.f32 %v5855_v34  ;;  %15101 = vmatpush3.msra.mxu0 %v5863_v0 }
0x3134   :  { %15110 = vmatprep.subr.mxu0 %v16242_v36 }
0x3136   :  { %v6181_v56 = vpop.permute.xlu0 %6180 }
0x313d   :  { %v15962_v38 = vpop.eup %15961 }
0x313e   :  { %v5857_v40 = vsel %vm366_vm2, %v15962_v38, 0.0 }
0x313f   :  { %5858 = vadd.xlane.f32.xlu1 %v5857_v40 }
0x3150   :  { %6178 = vrot.lane.b32.xlu1 %v17055_v7, %s16246_s27 }
0x316b   :  { %v5766_v42 = vpop.f32.mrb[66].mxu0 }
0x316c   :  { %v17165_v9 = vadd.f32 %v5766_v42, %v5527_v2  ;;  %v15094_v43 = vpop.f32.mrb[67].mxu0 }
0x31cc   :  { %v5859_v45 = vpop.xlane.xlu1 %5858 }
0x31cd   :  { %15963 = vrcp.f32 %v5859_v45 }
0x31d0   :  { %v6179_v33 = vpop.permute.xlu1 %6178 }
0x31d7   :  { %v15964_v46 = vpop.eup %15963 }
0x31d8   :  { %v5861_v53 = vmul.f32 %v15964_v46, %v15962_v38 }
0x31da   :  { %15103 = vmatmul.mubr.msk.f32.vlgmr.msra.gmra.mrb[68].mxu0 %vm366_vm2, %v5861_v53 }
0x31db   :  { %15111 = vmatpush3.xpose.msk.msra.mxu0 %vm366_vm2, %v6014_v44  ;;  %15112 = vmatprep.mubr.msk.f32.mxu0 %vm16243_vm1, %v16242_v36 }
0x31dc   :  { %15120 = vmatprep.subr.mxu0 %v16242_v36 }
0x31de   :  { %15113 = vmatmul.mubr.msk.f32.vlgmr.msra.gmra.mrb[70].mxu0 %vm366_vm2, %v17055_v7 }
0x31df   :  { %15121 = vmatpush3.xpose.msk.msra.mxu0 %vm366_vm2, %v6181_v56  ;;  %15122 = vmatprep.mubr.msk.f32.mxu0 %vm16243_vm1, %v16242_v36 }
0x31e0   :  { %15130 = vmatprep.subr.mxu0 %v16242_v36 }
0x31e2   :  { %15123 = vmatmul.mubr.msk.f32.vlgmr.msra.gmra.mrb[72].mxu0 %vm366_vm2, %v6179_v33 }
0x31e3   :  { %15131 = vmatpush3.msra.mxu0 %v17099_v4  ;;  %15132 = vmatprep.mubr.msk.f32.mxu0 %vm16243_vm1, %v16242_v36 }
0x31e4   :  { %15140 = vmatprep.subr.mxu0 %v16242_v36 }
0x32ad   :  { %v5934_v35 = vpop.f32.mrb[68].mxu0 }
0x32ae   :  { %v15104_v37 = vpop.f32.mrb[69].mxu0  ;;  %15108 = vmatmul.mubr.msk.f32.vlgmr.msra.gmra.mrb[62].mxu1 %vm366_vm2, %v5934_v35 }
0x32af   :  { %15117 = vmatprep.mubr.msk.f32.mxu1 %vm16243_vm1, %v16242_v36 }
0x32b1   :  { %v6085_v4 = vpop.f32.mrb[70].mxu0 }
0x32b2   :  { %v6089_v62 = vmul.f32 0.35355338, %v6085_v4  ;;  %v15114_v30 = vpop.f32.mrb[71].mxu0 }
0x32b4   :  { %v6090_v15 = vadd.f32 %v6089_v62, %v17193_v58 }
0x32b5   :  { %v6252_v63 = vpop.f32.mrb[72].mxu0 }
0x32b6   :  { %v6256_v2 = vmul.f32 0.35355338, %v6252_v63  ;;  %v15124_v3 = vpop.f32.mrb[73].mxu0  ;;  %v6091_v61 = vsel %vm366_vm2, %v6090_v15, -inf }
0x32b7   :  { %6092 = vmax.xlane.f32.xlu0 %v6091_v61 }
0x32b8   :  { %v6257_v1 = vadd.f32 %v6256_v2, %v17193_v58 }
0x32ba   :  { %v6258_v5 = vsel %vm366_vm2, %v6257_v1, -inf }
0x32bb   :  { %6259 = vmax.xlane.f32.xlu1 %v6258_v5  ;;  %v14091_v5 = vld [vmem:[%s16402_s29 + $0x1] ss:$0 sm:$0xff]  ;;  %s18124_s29 = sld [smem:[#allocation29_spill]] }
0x32cc   :  { %6102 = vrot.lane.b32.xlu1 %v17055_v7, %s16248_s1 }
0x32d0   :  { %6493 = vrot.lane.b32.xlu1 %v17055_v7, %s16249_s2 }
0x32d4   :  { %6491 = vrot.lane.b32.xlu1 %v17055_v7, %s16250_s10 }
0x3344   :  { %v6093_v49 = vpop.xlane.xlu0 %6092 }
0x3345   :  { %v6094_v6 = vsub.f32 %v6090_v15, %v6093_v49 }
0x3347   :  { %v6095_v41 = vmul.f32 1.442695, %v6094_v6  ;;  %v4856_v6 = vadd.f32 %v14091_v5, %v17078_v13 }
0x3348   :  { %v6260_v8 = vpop.xlane.xlu1 %6259 }
0x3349   :  { %15965 = vpow2.f32 %v6095_v41  ;;  %v6261_v19 = vsub.f32 %v6257_v1, %v6260_v8 }
0x334b   :  { %v6262_v54 = vmul.f32 1.442695, %v6261_v19 }
0x334c   :  { %v6103_v10 = vpop.permute.xlu1 %6102 }
0x334d   :  { %15967 = vpow2.f32 %v6262_v54  ;;  %15116 = vmatpush3.msra.mxu1 %v6103_v10  ;;  %v4864_v54 = vadd.f32 %v4856_v6, %v16978_v17 }
0x334e   :  { %15125 = vmatprep.subr.mxu1 %v16242_v36 }
0x3350   :  { %v6494_v34 = vpop.permute.xlu1 %6493 }
0x3353   :  { %v15966_v14 = vpop.eup %15965 }
0x3354   :  { %v6097_v18 = vsel %vm366_vm2, %v15966_v14, 0.0 }
0x3355   :  { %6098 = vadd.xlane.f32.xlu0 %v6097_v18 }
0x3357   :  { %v15968_v20 = vpop.eup %15967 }
0x3358   :  { %v6264_v28 = vsel %vm366_vm2, %v15968_v20, 0.0 }
0x3359   :  { %6265 = vadd.xlane.f32.xlu0 %v6264_v28  ;;  %v4868_v28 = vsel %vm222_vm0, %v4864_v54, 0.0 }
0x336f   :  { %6269 = vrot.lane.b32.xlu0 %v17055_v7, %s16251_s7 }
0x3381   :  { %v6007_v21 = vpop.f32.mrb[62].mxu1 }
0x3382   :  { %v17211_v22 = vadd.f32 %v6007_v21, %v17165_v9  ;;  %v15109_v23 = vpop.f32.mrb[63].mxu1 }
0x33e2   :  { %v6099_v24 = vpop.xlane.xlu0 %6098 }
0x33e3   :  { %15969 = vrcp.f32 %v6099_v24 }
0x33e6   :  { %v6266_v26 = vpop.xlane.xlu0 %6265 }
0x33e7   :  { %15971 = vrcp.f32 %v6266_v26 }
0x33ea   :  { %v6270_v29 = vpop.permute.xlu0 %6269 }
0x33ed   :  { %v15970_v39 = vpop.eup %15969 }
0x33ee   :  { %v6101_v27 = vmul.f32 %v15970_v39, %v15966_v14  ;;  %v14133_v14 = vld [vmem:[%s18123_s19] ss:$0 sm:$0xff] }
0x33f0   :  { %15118 = vmatmul.mubr.msk.f32.vlgmr.msra.gmra.mrb[64].mxu1 %vm366_vm2, %v6101_v27 }
0x33f1   :  { %v15972_v47 = vpop.eup %15971  ;;  %15126 = vmatpush3.msra.mxu1 %v6270_v29  ;;  %15127 = vmatprep.mubr.msk.f32.mxu1 %vm16243_vm1, %v16242_v36 }
0x33f2   :  { %v6268_v48 = vmul.f32 %v15972_v47, %v15968_v20  ;;  %15135 = vmatprep.subr.mxu1 %v16242_v36  ;;  %v6979_v20 = vadd.f32 %v14133_v14, %v17211_v22 }
0x33f4   :  { %15128 = vmatmul.mubr.msk.f32.vlgmr.msra.gmra.mrb[66].mxu1 %vm366_vm2, %v6268_v48  ;;  %v17270_v13 = vadd.f32 %v6979_v20, %v17000_v52 }
0x33f5   :  { %15136 = vmatpush3.msra.mxu1 %v17112_v59  ;;  %15137 = vmatprep.mubr.msk.f32.mxu1 %vm16243_vm1, %v16242_v36  ;;  %v6492_v59 = vpop.permute.xlu1 %6491 }
0x33f6   :  { %15145 = vmatprep.subr.mxu1 %v16242_v36  ;;  %v6985_v17 = vsel %vm222_vm0, %v17270_v13, 0.0 }
0x34c3   :  { %v6174_v31 = vpop.f32.mrb[64].mxu1 }
0x34c4   :  { %v15119_v32 = vpop.f32.mrb[65].mxu1  ;;  %15138 = vmatmul.mubr.msk.f32.vlgmr.msra.gmra.mrb[68].mxu1 %vm366_vm2, %v6174_v31 }
0x34c5   :  { %15147 = vmatprep.mubr.msk.f32.mxu1 %vm16243_vm1, %v16242_v36 }
0x34c7   :  { %v6341_v0 = vpop.f32.mrb[66].mxu1 }
0x34c8   :  { %v15129_v38 = vpop.f32.mrb[67].mxu1  ;;  %15133 = vmatmul.mubr.msk.f32.vlgmr.msra.gmra.mrb[74].mxu0 %vm366_vm2, %v6341_v0 }
0x34c9   :  { %15141 = vmatpush3.xpose.msk.msra.mxu0 %vm366_vm2, %v6494_v34  ;;  %15142 = vmatprep.mubr.msk.f32.mxu0 %vm16243_vm1, %v16242_v36 }
0x34ca   :  { %15150 = vmatprep.subr.mxu0 %v16242_v36 }
0x34cc   :  { %15143 = vmatmul.mubr.msk.f32.vlgmr.msra.gmra.mrb[76].mxu0 %vm366_vm2, %v6492_v59 }
0x34cd   :  { %15151 = vmatpush3.msra.mxu0 %v17148_v25  ;;  %15152 = vmatprep.mubr.msk.f32.mxu0 %vm16243_vm1, %v16242_v36 }
0x34ce   :  { %15160 = vmatprep.subr.mxu0 %v16242_v36 }
0x3597   :  { %v6487_v40 = vpop.f32.mrb[68].mxu1 }
0x3598   :  { %v15139_v42 = vpop.f32.mrb[69].mxu1 }
0x359b   :  { %v6414_v9 = vpop.f32.mrb[74].mxu0 }
0x359c   :  { %v17235_v43 = vadd.f32 %v6487_v40, %v6414_v9  ;;  %v15134_v44 = vpop.f32.mrb[75].mxu0 }
0x359f   :  { %v6565_v45 = vpop.f32.mrb[76].mxu0 }
0x35a0   :  { %v6569_v46 = vmul.f32 0.35355338, %v6565_v45  ;;  %v15144_v53 = vpop.f32.mrb[77].mxu0 }
0x35a2   :  { %v6570_v56 = vadd.f32 %v6569_v46, %v17193_v58 }
0x35a4   :  { %v6571_v33 = vsel %vm366_vm2, %v6570_v56, -inf }
0x35a5   :  { %6572 = vmax.xlane.f32.xlu0 %v6571_v33 }
0x35bb   :  { %6582 = vrot.lane.b32.xlu0 %v17055_v7, %s16254_s0 }
0x35bf   :  { %6732 = vrot.lane.b32.xlu0 %v17055_v7, %s16253_s16 }
0x3632   :  { %v6573_v25 = vpop.xlane.xlu0 %6572 }
0x3633   :  { %v6574_v55 = vsub.f32 %v6570_v56, %v6573_v25 }
0x3635   :  { %v6575_v35 = vmul.f32 1.442695, %v6574_v55 }
0x3636   :  { %v6583_v37 = vpop.permute.xlu0 %6582 }
0x3637   :  { %15973 = vpow2.f32 %v6575_v35  ;;  %15146 = vmatpush3.msra.mxu1 %v6583_v37 }
0x3638   :  { %15155 = vmatprep.subr.mxu1 %v16242_v36 }
0x363a   :  { %v6733_v3 = vpop.permute.xlu0 %6732 }
0x3641   :  { %v15974_v4 = vpop.eup %15973 }
0x3642   :  { %v6577_v62 = vsel %vm366_vm2, %v15974_v4, 0.0 }
0x3643   :  { %6578 = vadd.xlane.f32.xlu1 %v6577_v62 }
0x3654   :  { %6734 = vrot.lane.b32.xlu1 %v17055_v7, %s16252_s11 }
0x36d0   :  { %v6579_v30 = vpop.xlane.xlu1 %6578 }
0x36d1   :  { %15975 = vrcp.f32 %v6579_v30  ;;  %v7032_v30 = vld [vmem:[%s18124_s29] sm:$0xff] }
0x36d4   :  { %v6735_v2 = vpop.permute.xlu1 %6734 }
0x36db   :  { %v15976_v15 = vpop.eup %15975 }
0x36dc   :  { %v6581_v63 = vmul.f32 %v15976_v15, %v15974_v4  ;;  %v7033_v15 = vld [vmem:[%s18124_s29 + $0x8] sm:$0xff] }
0x36de   :  { %15148 = vmatmul.mubr.msk.f32.vlgmr.msra.gmra.mrb[70].mxu1 %vm366_vm2, %v6581_v63  ;;  %v7034_v63 = vld [vmem:[%s18124_s29 + $0x10] sm:$0xff] }
0x36df   :  { %15156 = vmatpush3.xpose.msk.msra.mxu1 %vm366_vm2, %v6735_v2  ;;  %15157 = vmatprep.mubr.msk.f32.mxu1 %vm16243_vm1, %v16242_v36  ;;  %v15725_v2 = vpack.c.bf16 %v7033_v15, %v7032_v30 }
0x36e0   :  { %15165 = vmatprep.subr.mxu1 %v16242_v36 }
0x36e2   :  { %15158 = vmatmul.mubr.msk.f32.vlgmr.msra.gmra.mrb[72].mxu1 %vm366_vm2, %v6733_v3 }
0x36e3   :  { %15166 = vmatpush3.msra.mxu1 %v17184_v60  ;;  %15167 = vmatprep.mubr.msk.f32.mxu1 %vm16243_vm1, %v16242_v36  ;;  %v4861_v60 = vadd.f32 %v17076_v12, %v14091_v5 }
0x36e4   :  { %15726 = vmatprep.subr.bf16.mxu1 %v15725_v2 }
0x36e5   :  { %v4865_v18 = vadd.f32 %v4861_v60, %v16997_v50 }
0x36e7   :  { %v4871_v21 = vsel %vm222_vm0, %v4865_v18, 0.0 }
0x37b1   :  { %v6654_v61 = vpop.f32.mrb[70].mxu1 }
0x37b2   :  { %v15149_v1 = vpop.f32.mrb[71].mxu1  ;;  %15153 = vmatmul.mubr.msk.f32.vlgmr.msra.gmra.mrb[78].mxu0 %vm366_vm2, %v6654_v61 }
0x37b3   :  { %15162 = vmatprep.mubr.msk.f32.mxu0 %vm16243_vm1, %v16242_v36 }
0x37b5   :  { %v6806_v49 = vpop.f32.mrb[72].mxu1 }
0x37b6   :  { %v6810_v41 = vmul.f32 0.35355338, %v6806_v49  ;;  %v15159_v8 = vpop.f32.mrb[73].mxu1 }
0x37b8   :  { %v6811_v19 = vadd.f32 %v6810_v41, %v17193_v58 }
0x37ba   :  { %v6812_v10 = vsel %vm366_vm2, %v6811_v19, -inf }
0x37bb   :  { %6813 = vmax.xlane.f32.xlu1 %v6812_v10 }
0x37bf   :  { %4869 = vadd.xlane.f32.xlu1 %v4868_v28 }
0x37c3   :  { %4872 = vadd.xlane.f32.xlu1 %v4871_v21 }
0x37c7   :  { %6986 = vadd.xlane.f32.xlu1 %v6985_v17  ;;  %v14094_v17 = vld [vmem:[#allocation7] ss:$0 sm:$0xff] }
0x3848   :  { %v6814_v12 = vpop.xlane.xlu1 %6813 }
0x3849   :  { %v6815_v23 = vsub.f32 %v6811_v19, %v6814_v12 }
0x384b   :  { %v6816_v24 = vmul.f32 1.442695, %v6815_v23 }
0x384c   :  { %v4870_v52 = vpop.xlane.xlu1 %4869 }
0x384d   :  { %15977 = vpow2.f32 %v6816_v24  ;;  %v4874_v42 = vmul.f32 0.03125, %v4870_v52 }
0x384f   :  { %v4876_v46 = vsub.f32 %v4864_v54, %v4874_v42 }
0x3850   :  { %v4873_v26 = vpop.xlane.xlu1 %4872 }
0x3851   :  { %v4875_v39 = vmul.f32 0.03125, %v4873_v26  ;;  %v4878_v35 = vmul.f32 %v4876_v46, %v4876_v46  ;;  %v14134_v26 = vld [vmem:[%s18125_s24] ss:$0 sm:$0xff] }
0x3853   :  { %v17278_v27 = vsub.f32 %v4865_v18, %v4875_v39  ;;  %v4880_v37 = vsel %vm222_vm0, %v4878_v35, 0.0 }
0x3854   :  { %v6987_v9 = vpop.xlane.xlu1 %6986 }
0x3855   :  { %v4879_v31 = vmul.f32 %v17278_v27, %v17278_v27  ;;  %v6991_v53 = vmul.f32 0.03125, %v6987_v9 }
0x3857   :  { %v15978_v50 = vpop.eup %15977  ;;  %v4883_v32 = vsel %vm222_vm0, %v4879_v31, 0.0  ;;  %v6993_v25 = vsub.f32 %v17270_v13, %v6991_v53  ;;  %v14139_v53 = vld [vmem:[%s18128_s4] ss:$0 sm:$0xff] }
0x3858   :  { %v6818_v22 = vsel %vm366_vm2, %v15978_v50, 0.0 }
0x3859   :  { %6819 = vadd.xlane.f32.xlu0 %v6818_v22  ;;  %v6995_v4 = vmul.f32 %v6993_v25, %v6993_v25 }
0x385b   :  { %v6997_v62 = vsel %vm222_vm0, %v6995_v4, 0.0 }
0x386f   :  { %6823 = vrot.lane.b32.xlu0 %v17055_v7, %s18091_s15  ;;  %s18137_s15 = sld [smem:[#allocation15_spill]] }
0x3885   :  { %v6727_v29 = vpop.f32.mrb[78].mxu0 }
0x3886   :  { %v6731_v47 = vadd.f32 %v6727_v29, %v17235_v43  ;;  %v15154_v48 = vpop.f32.mrb[79].mxu0 }
0x3887   :  { %v14135_v48 = vld [vmem:[%s18126_s6] ss:$0 sm:$0xff] }
0x388e   :  { %4884 = vadd.xlane.f32.xlu0 %v4883_v32  ;;  %v7027_v32 = vld [vmem:[%s18127_s12] sm:$0xff] }
0x38e6   :  { %v6820_v34 = vpop.xlane.xlu0 %6819 }
0x38e7   :  { %15979 = vrcp.f32 %v6820_v34  ;;  %v7028_v34 = vld [vmem:[%s18127_s12 + $0x8] sm:$0xff] }
0x38ea   :  { %v6824_v0 = vpop.permute.xlu0 %6823 }
0x38eb   :  { %15161 = vmatpush3.msra.mxu0 %v6824_v0  ;;  %v15717_v0 = vpack.c.bf16 %v7028_v34, %v7027_v32 }
0x38ed   :  { %15718 = vmatprep.subr.bf16.mxu0 %v15717_v0 }
0x38f1   :  { %v15980_v7 = vpop.eup %15979 }
0x38f2   :  { %v6822_v38 = vmul.f32 %v15980_v7, %v15978_v50  ;;  %v14095_v50 = vld [vmem:[#allocation5] ss:$0 sm:$0xff]  ;;  %v7029_v7 = vld [vmem:[%s18127_s12 + $0x10] sm:$0xff] }
0x38f4   :  { %15163 = vmatmul.mubr.msk.f32.vlgmr.msra.gmra.mrb[80].mxu0 %vm366_vm2, %v6822_v38  ;;  %v7030_v38 = vld [vmem:[%s18127_s12 + $0x18] sm:$0xff] }
0x38f5   :  { %15720 = vmatpush3.bf16.msra.mxu0 %v15717_v0 }
0x391b   :  { %v4885_v61 = vpop.xlane.xlu0 %4884 }
0x391c   :  { %v4887_v1 = vmul.f32 0.03125, %v4885_v61 }
0x391e   :  { %v4889_v5 = vadd.f32 1e-06, %v4887_v1 }
0x3920   :  { %15981 = vrsqrt.f32 %v4889_v5 }
0x392a   :  { %v15982_v28 = vpop.eup %15981 }
0x392b   :  { %v4893_v21 = vmul.f32 %v15982_v28, %v17278_v27 }
0x392d   :  { %v4901_v24 = vmul.f32 %v14094_v17, %v4893_v21 }
0x39c7   :  { %v6895_v59 = vpop.f32.mrb[80].mxu0 }
0x39c8   :  { %v15164_v40 = vpop.f32.mrb[81].mxu0  ;;  %15168 = vmatmul.mubr.msk.f32.vlgmr.msra.gmra.mrb[74].mxu1 %vm366_vm2, %v6895_v59  ;;  %v15721_v59 = vpack.c.bf16 %v7030_v38, %v7029_v7 }
0x39c9   :  { %15728 = vmatpush3.bf16.msra.mxu1 %v15725_v2 }
0x39ca   :  { %15722 = vmatprep.subr.bf16.mxu0 %v15721_v59 }
0x39cb   :  { %15724 = vmatpush3.bf16.msra.mxu0 %v15721_v59 }
0x39cc   :  { %15192 = vmatprep.subr.mxu0 %v16242_v36 }
0x3a9b   :  { %v6968_v43 = vpop.f32.mrb[74].mxu1 }
0x3a9c   :  { %v6972_v44 = vadd.f32 %v6968_v43, %v6731_v47  ;;  %v15169_v45 = vpop.f32.mrb[75].mxu1  ;;  %v17305_v47 = vadd.f32 %v14095_v50, %v4901_v24 }
0x3a9e   :  { %v6980_v56 = vadd.f32 %v14133_v14, %v6972_v44 }
0x3aa0   :  { %v17287_v33 = vadd.f32 %v6980_v56, %v17007_v57  ;;  %v7035_v57 = vld [vmem:[%s18124_s29 + $0x18] sm:$0xff] }
0x3aa1   :  { %v15729_v3 = vpack.c.bf16 %v7035_v57, %v7034_v63 }
0x3aa2   :  { %v6988_v55 = vsel %vm222_vm0, %v17287_v33, 0.0 }
0x3aa3   :  { %6989 = vadd.xlane.f32.xlu1 %v6988_v55  ;;  %15730 = vmatprep.subr.bf16.mxu1 %v15729_v3 }
0x3aa4   :  { %15732 = vmatpush3.bf16.msra.mxu1 %v15729_v3 }
0x3aa5   :  { %15197 = vmatprep.subr.mxu1 %v16242_v36 }
0x3aa7   :  { %4881 = vadd.xlane.f32.xlu1 %v4880_v37  ;;  %v14136_v37 = vld [vmem:[%s18129_s18] ss:$0 sm:$0xff] }
0x3aab   :  { %6998 = vadd.xlane.f32.xlu1 %v6997_v62 }
0x3b30   :  { %v6990_v49 = vpop.xlane.xlu1 %6989 }
0x3b31   :  { %v6992_v6 = vmul.f32 0.03125, %v6990_v49 }
0x3b33   :  { %v6994_v41 = vsub.f32 %v17287_v33, %v6992_v6 }
0x3b34   :  { %v4882_v8 = vpop.xlane.xlu1 %4881 }
0x3b35   :  { %v4886_v19 = vmul.f32 0.03125, %v4882_v8  ;;  %v6996_v60 = vmul.f32 %v6994_v41, %v6994_v41 }
0x3b37   :  { %v4888_v54 = vadd.f32 1e-06, %v4886_v19  ;;  %v7000_v10 = vsel %vm222_vm0, %v6996_v60, 0.0 }
0x3b38   :  { %7001 = vadd.xlane.f32.xlu1 %v7000_v10  ;;  %v6999_v14 = vpop.xlane.xlu1 %6998 }
0x3b39   :  { %15983 = vrsqrt.f32 %v4888_v54  ;;  %v7003_v18 = vmul.f32 0.03125, %v6999_v14 }
0x3b3b   :  { %v7005_v20 = vadd.f32 1e-06, %v7003_v18 }
0x3b3d   :  { %15985 = vrsqrt.f32 %v7005_v20 }
0x3b43   :  { %v15984_v12 = vpop.eup %15983 }
0x3b44   :  { %v4892_v23 = vmul.f32 %v15984_v12, %v4876_v46 }
0x3b46   :  { %v4900_v22 = vmul.f32 %v14094_v17, %v4892_v23 }
0x3b47   :  { %v15986_v52 = vpop.eup %15985 }
0x3b48   :  { %v17303_v39 = vadd.f32 %v14095_v50, %v4900_v22  ;;  %v7009_v29 = vmul.f32 %v15986_v52, %v6993_v25  ;;  %v17368_v52 = vld [vmem:[%s18130_s30 + $0x8] sm:$0xff] }
0x3b4a   :  { %15189 = vmatprep.mubr.msk.f32.mxu1 %vm222_vm0, %v17303_v39  ;;  %v7017_v27 = vmul.f32 %v14134_v26, %v7009_v29 }
0x3b4b   :  { %15190 = vmatmul.mubr.msk.f32.vlgmr.msra.gmra.mrb[76].mxu1 %vm222_vm0, %v17305_v47 }
0x3b4c   :  { %v7025_v31 = vadd.f32 %v14135_v48, %v7017_v27  ;;  %15199 = vmatprep.mubr.msk.f32.mxu1 %vm16243_vm1, %v16242_v36 }
0x3b4e   :  { %15178 = vmatprep.mubr.msk.f32.mxu0 %vm222_vm0, %v7025_v31  ;;  %v17374_v31 = vld [vmem:[%s18130_s30] sm:$0xff] }
0x3bc5   :  { %v7002_v40 = vpop.xlane.xlu1 %7001 }
0x3bc6   :  { %v7004_v42 = vmul.f32 0.03125, %v7002_v40 }
0x3bc8   :  { %v7006_v9 = vadd.f32 1e-06, %v7004_v42 }
0x3bca   :  { %15987 = vrsqrt.f32 %v7006_v9 }
0x3bd4   :  { %v15988_v43 = vpop.eup %15987 }
0x3bd5   :  { %v7010_v44 = vmul.f32 %v15988_v43, %v6994_v41 }
0x3bd7   :  { %v7018_v45 = vmul.f32 %v14134_v26, %v7010_v44 }
0x3bd9   :  { %v7026_v46 = vadd.f32 %v14135_v48, %v7018_v45 }
0x3bdb   :  { %15179 = vmatmul.mubr.msk.f32.vlgmr.msra.gmra.mrb[82].mxu0 %vm222_vm0, %v7026_v46 }
0x3bdc   :  { %15194 = vmatprep.mubr.msk.f32.mxu0 %vm16243_vm1, %v16242_v36 }
0x3c1e   :  { %v15191_v56 = vpop.f32.mrb[76].mxu1 }
0x3c1f   :  { %v17324_v25 = vadd.f32 %v15191_v56, %v14139_v53  ;;  %v7207_v55 = vpop.f32.mrb[77].mxu1 }
0x3c20   :  { %v17326_v35 = vadd.f32 %v14139_v53, %v7207_v55 }
0x3c22   :  { %7383 = vrot.lane.b32.xlu1 %v17326_v35, %s16246_s27  ;;  %15193 = vmatpush3.xpose.msk.msra.mxu0 %vm366_vm2, %v17326_v35 }
0x3c23   :  { %15202 = vmatprep.subr.mxu0 %v16242_v36 }
0x3c94   :  { %v7384_v63 = vpop.permute.xlu1 %7383 }
0x3cae   :  { %v15180_v4 = vpop.f32.mrb[82].mxu0 }
0x3caf   :  { %v17334_v62 = vadd.f32 %v15180_v4, %v14136_v37  ;;  %v7120_v30 = vpop.f32.mrb[83].mxu0 }
0x3cb0   :  { %v17336_v15 = vadd.f32 %v14136_v37, %v7120_v30 }
0x3cb2   :  { %7381 = vrot.lane.b32.xlu1 %v17336_v15, %s16246_s27  ;;  %15195 = vmatmul.mubr.msk.f32.vlgmr.msra.gmra.mrb[84].mxu0 %vm366_vm2, %v17336_v15 }
0x3cb3   :  { %15203 = vmatpush3.xpose.msk.msra.mxu0 %vm366_vm2, %v7384_v63  ;;  %15204 = vmatprep.mubr.msk.f32.mxu0 %vm16243_vm1, %v16242_v36 }
0x3cb4   :  { %15212 = vmatprep.subr.mxu0 %v16242_v36 }
0x3d24   :  { %v7382_v2 = vpop.permute.xlu1 %7381 }
0x3d25   :  { %15205 = vmatmul.mubr.msk.f32.vlgmr.msra.gmra.mrb[86].mxu0 %vm366_vm2, %v7382_v2 }
0x3d26   :  { %15214 = vmatprep.mubr.msk.f32.mxu0 %vm16243_vm1, %v16242_v36  ;;  %15213 = vmatpush3.msra.mxu0 %v17368_v52 }
0x3d27   :  { %15222 = vmatprep.subr.mxu0 %v16242_v36 }
0x3d85   :  { %v7288_v57 = vpop.f32.mrb[84].mxu0 }
0x3d86   :  { %v7292_v3 = vmul.f32 0.35355338, %v7288_v57  ;;  %v15196_v61 = vpop.f32.mrb[85].mxu0 }
0x3d88   :  { %v7293_v1 = vadd.f32 %v7292_v3, %v16532_v51 }
0x3d8a   :  { %v7294_v5 = vsel %vm366_vm2, %v7293_v1, -inf }
0x3d8b   :  { %7295 = vmax.xlane.f32.xlu1 %v7294_v5 }
0x3d9c   :  { %7696 = vrot.lane.b32.xlu1 %v17326_v35, %s16250_s10 }
0x3df8   :  { %v7455_v49 = vpop.f32.mrb[86].mxu0 }
0x3df9   :  { %v7459_v6 = vmul.f32 0.35355338, %v7455_v49  ;;  %v15206_v41 = vpop.f32.mrb[87].mxu0  ;;  %v17411_v49 = vld [vmem:[%s18130_s30 + $0x10] sm:$0xff] }
0x3dfb   :  { %v7460_v8 = vadd.f32 %v7459_v6, %v16532_v51 }
0x3dfd   :  { %v7461_v19 = vsel %vm366_vm2, %v7460_v8, -inf }
0x3dfe   :  { %7462 = vmax.xlane.f32.xlu0 %v7461_v19 }
0x3e14   :  { %7305 = vrot.lane.b32.xlu0 %v17326_v35, %s16245_s20 }
0x3e18   :  { %v7296_v60 = vpop.xlane.xlu1 %7295 }
0x3e19   :  { %v7297_v54 = vsub.f32 %v7293_v1, %v7296_v60 }
0x3e1b   :  { %v7298_v10 = vmul.f32 1.442695, %v7297_v54 }
0x3e1c   :  { %v7697_v7 = vpop.permute.xlu1 %7696 }
0x3e1d   :  { %15989 = vpow2.f32 %v7298_v10 }
0x3e27   :  { %v15990_v14 = vpop.eup %15989 }
0x3e28   :  { %v7300_v18 = vsel %vm366_vm2, %v15990_v14, 0.0 }
0x3e33   :  { %7301 = vadd.xlane.f32.xlu0 %v7300_v18 }
0x3e8b   :  { %v7463_v20 = vpop.xlane.xlu0 %7462 }
0x3e8c   :  { %v7464_v28 = vsub.f32 %v7460_v8, %v7463_v20 }
0x3e8e   :  { %v7465_v21 = vmul.f32 1.442695, %v7464_v28 }
0x3e8f   :  { %v7306_v17 = vpop.permute.xlu0 %7305 }
0x3e90   :  { %15991 = vpow2.f32 %v7465_v21  ;;  %15198 = vmatpush3.msra.mxu1 %v7306_v17 }
0x3e91   :  { %15207 = vmatprep.subr.mxu1 %v16242_v36 }
0x3e9a   :  { %v15992_v12 = vpop.eup %15991 }
0x3e9b   :  { %v7467_v23 = vsel %vm366_vm2, %v15992_v12, 0.0 }
0x3e9c   :  { %7468 = vadd.xlane.f32.xlu0 %v7467_v23 }
0x3eb2   :  { %7472 = vrot.lane.b32.xlu0 %v17326_v35, %s16244_s5 }
0x3eb6   :  { %7694 = vrot.lane.b32.xlu0 %v17336_v15, %s16250_s10 }
0x3ec0   :  { %v7302_v24 = vpop.xlane.xlu0 %7301 }
0x3ec1   :  { %15993 = vrcp.f32 %v7302_v24 }
0x3ecb   :  { %v15994_v50 = vpop.eup %15993 }
0x3ecc   :  { %v7304_v22 = vmul.f32 %v15994_v50, %v15990_v14 }
0x3ece   :  { %15200 = vmatmul.mubr.msk.f32.vlgmr.msra.gmra.mrb[78].mxu1 %vm366_vm2, %v7304_v22 }
0x3ecf   :  { %15209 = vmatprep.mubr.msk.f32.mxu1 %vm16243_vm1, %v16242_v36 }
0x3f29   :  { %v7469_v26 = vpop.xlane.xlu0 %7468 }
0x3f2a   :  { %15995 = vrcp.f32 %v7469_v26 }
0x3f2d   :  { %v7473_v29 = vpop.permute.xlu0 %7472 }
0x3f2e   :  { %15208 = vmatpush3.msra.mxu1 %v7473_v29 }
0x3f2f   :  { %15217 = vmatprep.subr.mxu1 %v16242_v36 }
0x3f31   :  { %v7695_v59 = vpop.permute.xlu0 %7694 }
0x3f34   :  { %v15996_v48 = vpop.eup %15995 }
0x3f35   :  { %v7471_v27 = vmul.f32 %v15996_v48, %v15992_v12  ;;  %v17446_v48 = vld [vmem:[%s18130_s30 + $0x18] sm:$0xff] }
0x3f37   :  { %15210 = vmatmul.mubr.msk.f32.vlgmr.msra.gmra.mrb[80].mxu1 %vm366_vm2, %v7471_v27 }
0x3f38   :  { %15218 = vmatpush3.msra.mxu1 %v17374_v31  ;;  %15219 = vmatprep.mubr.msk.f32.mxu1 %vm16243_vm1, %v16242_v36 }
0x3f39   :  { %15227 = vmatprep.subr.mxu1 %v16242_v36 }
0x3fa1   :  { %v7377_v32 = vpop.f32.mrb[78].mxu1 }
0x3fa2   :  { %v15201_v34 = vpop.f32.mrb[79].mxu1  ;;  %15220 = vmatmul.mubr.msk.f32.vlgmr.msra.gmra.mrb[82].mxu1 %vm366_vm2, %v7377_v32 }
0x3fa3   :  { %15229 = vmatprep.mubr.msk.f32.mxu1 %vm16243_vm1, %v16242_v36 }
0x400a   :  { %v7544_v0 = vpop.f32.mrb[80].mxu1 }
0x400b   :  { %v15211_v38 = vpop.f32.mrb[81].mxu1  ;;  %15215 = vmatmul.mubr.msk.f32.vlgmr.msra.gmra.mrb[88].mxu0 %vm366_vm2, %v7544_v0 }
0x400c   :  { %15223 = vmatpush3.xpose.msk.msra.mxu0 %vm366_vm2, %v7697_v7  ;;  %15224 = vmatprep.mubr.msk.f32.mxu0 %vm16243_vm1, %v16242_v36 }
0x400d   :  { %15232 = vmatprep.subr.mxu0 %v16242_v36 }
0x400f   :  { %15225 = vmatmul.mubr.msk.f32.vlgmr.msra.gmra.mrb[90].mxu0 %vm366_vm2, %v7695_v59 }
0x4010   :  { %15234 = vmatprep.mubr.msk.f32.mxu0 %vm16243_vm1, %v16242_v36  ;;  %15233 = vmatpush3.msra.mxu0 %v17411_v49 }
0x4011   :  { %15242 = vmatprep.subr.mxu0 %v16242_v36 }
0x4075   :  { %v7690_v40 = vpop.f32.mrb[82].mxu1 }
0x4076   :  { %v15221_v42 = vpop.f32.mrb[83].mxu1 }
0x40de   :  { %v7617_v9 = vpop.f32.mrb[88].mxu0 }
0x40df   :  { %v7691_v43 = vadd.f32 %v7690_v40, %v7617_v9  ;;  %v15216_v44 = vpop.f32.mrb[89].mxu0 }
0x40e2   :  { %v7768_v45 = vpop.f32.mrb[90].mxu0 }
0x40e3   :  { %v7772_v46 = vmul.f32 0.35355338, %v7768_v45  ;;  %v15226_v53 = vpop.f32.mrb[91].mxu0 }
0x40e5   :  { %v7773_v56 = vadd.f32 %v7772_v46, %v16532_v51 }
0x40e7   :  { %v7774_v55 = vsel %vm366_vm2, %v7773_v56, -inf }
0x40e8   :  { %7775 = vmax.xlane.f32.xlu0 %v7774_v55 }
0x40fe   :  { %7785 = vrot.lane.b32.xlu0 %v17326_v35, %s16249_s2 }
0x4102   :  { %7935 = vrot.lane.b32.xlu0 %v17336_v15, %s16253_s16 }
0x4175   :  { %v7776_v37 = vpop.xlane.xlu0 %7775 }
0x4176   :  { %v7777_v4 = vsub.f32 %v7773_v56, %v7776_v37 }
0x4178   :  { %v7778_v30 = vmul.f32 1.442695, %v7777_v4 }
0x4179   :  { %v7786_v63 = vpop.permute.xlu0 %7785 }
0x417a   :  { %15997 = vpow2.f32 %v7778_v30  ;;  %15228 = vmatpush3.msra.mxu1 %v7786_v63 }
0x417b   :  { %15237 = vmatprep.subr.mxu1 %v16242_v36 }
0x417d   :  { %v7936_v5 = vpop.permute.xlu0 %7935 }
0x4184   :  { %v15998_v2 = vpop.eup %15997 }
0x4185   :  { %v7780_v57 = vsel %vm366_vm2, %v15998_v2, 0.0 }
0x4186   :  { %7781 = vadd.xlane.f32.xlu1 %v7780_v57 }
0x4197   :  { %7937 = vrot.lane.b32.xlu1 %v17326_v35, %s16253_s16 }
0x4213   :  { %v7782_v3 = vpop.xlane.xlu1 %7781 }
0x4214   :  { %15999 = vrcp.f32 %v7782_v3 }
0x4217   :  { %v7938_v1 = vpop.permute.xlu1 %7937 }
0x421e   :  { %v16000_v61 = vpop.eup %15999 }
0x421f   :  { %v7784_v15 = vmul.f32 %v16000_v61, %v15998_v2 }
0x4221   :  { %15230 = vmatmul.mubr.msk.f32.vlgmr.msra.gmra.mrb[84].mxu1 %vm366_vm2, %v7784_v15 }
0x4222   :  { %15238 = vmatpush3.xpose.msk.msra.mxu1 %vm366_vm2, %v7938_v1  ;;  %15239 = vmatprep.mubr.msk.f32.mxu1 %vm16243_vm1, %v16242_v36 }
0x4223   :  { %15247 = vmatprep.subr.mxu1 %v16242_v36 }
0x4225   :  { %15240 = vmatmul.mubr.msk.f32.vlgmr.msra.gmra.mrb[86].mxu1 %vm366_vm2, %v7936_v5 }
0x4226   :  { %15249 = vmatprep.mubr.msk.f32.mxu1 %vm16243_vm1, %v16242_v36  ;;  %15248 = vmatpush3.msra.mxu1 %v17446_v48 }
0x4227   :  { %15257 = vmatprep.subr.mxu1 %v16242_v36 }
0x42f4   :  { %v7857_v6 = vpop.f32.mrb[84].mxu1 }
0x42f5   :  { %v15231_v41 = vpop.f32.mrb[85].mxu1  ;;  %15235 = vmatmul.mubr.msk.f32.vlgmr.msra.gmra.mrb[92].mxu0 %vm366_vm2, %v7857_v6 }
0x42f6   :  { %15244 = vmatprep.mubr.msk.f32.mxu0 %vm16243_vm1, %v16242_v36 }
0x42f8   :  { %v8009_v8 = vpop.f32.mrb[86].mxu1 }
0x42f9   :  { %v8013_v19 = vmul.f32 0.35355338, %v8009_v8  ;;  %v15241_v60 = vpop.f32.mrb[87].mxu1 }
0x42fb   :  { %v8014_v54 = vadd.f32 %v8013_v19, %v16532_v51 }
0x42fd   :  { %v8015_v10 = vsel %vm366_vm2, %v8014_v54, -inf }
0x42fe   :  { %8016 = vmax.xlane.f32.xlu0 %v8015_v10 }
0x4314   :  { %8026 = vrot.lane.b32.xlu0 %v17326_v35, %s16252_s11 }
0x4318   :  { %8341 = vrot.lane.b32.xlu0 %v17334_v62, %s16246_s27 }
0x438b   :  { %v8017_v14 = vpop.xlane.xlu0 %8016 }
0x438c   :  { %v8018_v18 = vsub.f32 %v8014_v54, %v8017_v14 }
0x438e   :  { %v8019_v20 = vmul.f32 1.442695, %v8018_v18 }
0x438f   :  { %v8027_v28 = vpop.permute.xlu0 %8026 }
0x4390   :  { %16001 = vpow2.f32 %v8019_v20  ;;  %15243 = vmatpush3.msra.mxu0 %v8027_v28 }
0x4391   :  { %15252 = vmatprep.subr.mxu0 %v16242_v36 }
0x4393   :  { %v8342_v29 = vpop.permute.xlu0 %8341 }
0x439a   :  { %v16002_v21 = vpop.eup %16001 }
0x439b   :  { %v8021_v17 = vsel %vm366_vm2, %v16002_v21, 0.0 }
0x439c   :  { %8022 = vadd.xlane.f32.xlu1 %v8021_v17 }
0x43ad   :  { %8343 = vrot.lane.b32.xlu1 %v17324_v25, %s16246_s27 }
0x43c8   :  { %v7930_v12 = vpop.f32.mrb[92].mxu0 }
0x43c9   :  { %v7934_v35 = vadd.f32 %v7930_v12, %v7691_v43  ;;  %v15236_v23 = vpop.f32.mrb[93].mxu0 }
0x4429   :  { %v8023_v24 = vpop.xlane.xlu1 %8022 }
0x442a   :  { %16003 = vrcp.f32 %v8023_v24 }
0x442d   :  { %v8344_v26 = vpop.permute.xlu1 %8343 }
0x4434   :  { %v16004_v50 = vpop.eup %16003 }
0x4435   :  { %v8025_v22 = vmul.f32 %v16004_v50, %v16002_v21 }
0x4437   :  { %15245 = vmatmul.mubr.msk.f32.vlgmr.msra.gmra.mrb[94].mxu0 %vm366_vm2, %v8025_v22 }
0x4438   :  { %15253 = vmatpush3.xpose.msk.msra.mxu0 %vm366_vm2, %v17324_v25  ;;  %15254 = vmatprep.mubr.msk.f32.mxu0 %vm16243_vm1, %v16242_v36 }
0x4439   :  { %15262 = vmatprep.subr.mxu0 %v16242_v36 }
0x443b   :  { %15255 = vmatmul.mubr.msk.f32.vlgmr.msra.gmra.mrb[96].mxu0 %vm366_vm2, %v17334_v62 }
0x443c   :  { %15263 = vmatpush3.xpose.msk.msra.mxu0 %vm366_vm2, %v8344_v26  ;;  %15264 = vmatprep.mubr.msk.f32.mxu0 %vm16243_vm1, %v16242_v36 }
0x443d   :  { %15272 = vmatprep.subr.mxu0 %v16242_v36 }
0x443f   :  { %15265 = vmatmul.mubr.msk.f32.vlgmr.msra.gmra.mrb[98].mxu0 %vm366_vm2, %v8342_v29 }
0x4440   :  { %15273 = vmatpush3.msra.mxu0 %v17368_v52  ;;  %15274 = vmatprep.mubr.msk.f32.mxu0 %vm16243_vm1, %v16242_v36 }
0x4441   :  { %15282 = vmatprep.subr.mxu0 %v16242_v36 }
0x450a   :  { %v8098_v27 = vpop.f32.mrb[94].mxu0 }
0x450b   :  { %v15246_v32 = vpop.f32.mrb[95].mxu0  ;;  %15250 = vmatmul.mubr.msk.f32.vlgmr.msra.gmra.mrb[88].mxu1 %vm366_vm2, %v8098_v27 }
0x450c   :  { %15259 = vmatprep.mubr.msk.f32.mxu1 %vm16243_vm1, %v16242_v36 }
0x450e   :  { %v8248_v34 = vpop.f32.mrb[96].mxu0 }
0x450f   :  { %v8252_v52 = vmul.f32 0.35355338, %v8248_v34  ;;  %v15256_v0 = vpop.f32.mrb[97].mxu0 }
0x4511   :  { %v8253_v7 = vadd.f32 %v8252_v52, %v16648_v11 }
0x4512   :  { %v8415_v38 = vpop.f32.mrb[98].mxu0 }
0x4513   :  { %v8419_v59 = vmul.f32 0.35355338, %v8415_v38  ;;  %v15266_v40 = vpop.f32.mrb[99].mxu0  ;;  %v8254_v42 = vsel %vm366_vm2, %v8253_v7, -inf }
0x4514   :  { %8255 = vmax.xlane.f32.xlu0 %v8254_v42  ;;  %v14174_v42 = vld [vmem:[%s18131_s23] ss:$0 sm:$0xff] }
0x4515   :  { %v8420_v9 = vadd.f32 %v8419_v59, %v16648_v11 }
0x4517   :  { %v8421_v43 = vsel %vm366_vm2, %v8420_v9, -inf }
0x4518   :  { %8422 = vmax.xlane.f32.xlu1 %v8421_v43 }
0x4529   :  { %8265 = vrot.lane.b32.xlu1 %v17324_v25, %s16245_s20 }
0x452d   :  { %8656 = vrot.lane.b32.xlu1 %v17324_v25, %s16250_s10 }
0x4531   :  { %8654 = vrot.lane.b32.xlu1 %v17334_v62, %s16250_s10 }
0x45a1   :  { %v8256_v44 = vpop.xlane.xlu0 %8255 }
0x45a2   :  { %v8257_v45 = vsub.f32 %v8253_v7, %v8256_v44 }
0x45a4   :  { %v8258_v46 = vmul.f32 1.442695, %v8257_v45 }
0x45a5   :  { %v8423_v53 = vpop.xlane.xlu1 %8422 }
0x45a6   :  { %16005 = vpow2.f32 %v8258_v46  ;;  %v8424_v56 = vsub.f32 %v8420_v9, %v8423_v53 }
0x45a8   :  { %v8425_v55 = vmul.f32 1.442695, %v8424_v56 }
0x45a9   :  { %v8266_v37 = vpop.permute.xlu1 %8265 }
0x45aa   :  { %16007 = vpow2.f32 %v8425_v55  ;;  %15258 = vmatpush3.msra.mxu1 %v8266_v37 }
0x45ab   :  { %15267 = vmatprep.subr.mxu1 %v16242_v36 }
0x45ad   :  { %v8657_v10 = vpop.permute.xlu1 %8656 }
0x45b0   :  { %v16006_v4 = vpop.eup %16005 }
0x45b1   :  { %v8260_v30 = vsel %vm366_vm2, %v16006_v4, 0.0 }
0x45b2   :  { %8261 = vadd.xlane.f32.xlu0 %v8260_v30 }
0x45b4   :  { %v16008_v63 = vpop.eup %16007 }
0x45b5   :  { %v8427_v2 = vsel %vm366_vm2, %v16008_v63, 0.0 }
0x45b6   :  { %8428 = vadd.xlane.f32.xlu0 %v8427_v2 }
0x45cc   :  { %8432 = vrot.lane.b32.xlu0 %v17324_v25, %s16244_s5 }
0x45de   :  { %v8171_v57 = vpop.f32.mrb[88].mxu1 }
0x45df   :  { %v17468_v3 = vadd.f32 %v8171_v57, %v7934_v35  ;;  %v15251_v61 = vpop.f32.mrb[89].mxu1 }
0x45e1   :  { %v9142_v43 = vadd.f32 %v14174_v42, %v17468_v3 }
0x463f   :  { %v8262_v15 = vpop.xlane.xlu0 %8261 }
0x4640   :  { %16009 = vrcp.f32 %v8262_v15 }
0x4643   :  { %v8429_v1 = vpop.xlane.xlu0 %8428 }
0x4644   :  { %16011 = vrcp.f32 %v8429_v1 }
0x4647   :  { %v8433_v41 = vpop.permute.xlu0 %8432 }
0x464a   :  { %v16010_v5 = vpop.eup %16009 }
0x464b   :  { %v8264_v6 = vmul.f32 %v16010_v5, %v16006_v4 }
0x464d   :  { %15260 = vmatmul.mubr.msk.f32.vlgmr.msra.gmra.mrb[90].mxu1 %vm366_vm2, %v8264_v6 }
0x464e   :  { %v16012_v8 = vpop.eup %16011  ;;  %15268 = vmatpush3.msra.mxu1 %v8433_v41  ;;  %15269 = vmatprep.mubr.msk.f32.mxu1 %vm16243_vm1, %v16242_v36 }
0x464f   :  { %v8431_v19 = vmul.f32 %v16012_v8, %v16008_v63  ;;  %15277 = vmatprep.subr.mxu1 %v16242_v36 }
0x4651   :  { %15270 = vmatmul.mubr.msk.f32.vlgmr.msra.gmra.mrb[92].mxu1 %vm366_vm2, %v8431_v19 }
0x4652   :  { %15278 = vmatpush3.msra.mxu1 %v17374_v31  ;;  %15279 = vmatprep.mubr.msk.f32.mxu1 %vm16243_vm1, %v16242_v36  ;;  %v8655_v31 = vpop.permute.xlu1 %8654 }
0x4653   :  { %15287 = vmatprep.subr.mxu1 %v16242_v36 }
0x4720   :  { %v8337_v60 = vpop.f32.mrb[90].mxu1 }
0x4721   :  { %v15261_v54 = vpop.f32.mrb[91].mxu1  ;;  %15280 = vmatmul.mubr.msk.f32.vlgmr.msra.gmra.mrb[94].mxu1 %vm366_vm2, %v8337_v60 }
0x4722   :  { %15289 = vmatprep.mubr.msk.f32.mxu1 %vm16243_vm1, %v16242_v36 }
0x4724   :  { %v8504_v14 = vpop.f32.mrb[92].mxu1 }
0x4725   :  { %v15271_v18 = vpop.f32.mrb[93].mxu1  ;;  %15275 = vmatmul.mubr.msk.f32.vlgmr.msra.gmra.mrb[100].mxu0 %vm366_vm2, %v8504_v14 }
0x4726   :  { %15283 = vmatpush3.xpose.msk.msra.mxu0 %vm366_vm2, %v8657_v10  ;;  %15284 = vmatprep.mubr.msk.f32.mxu0 %vm16243_vm1, %v16242_v36 }
0x4727   :  { %15292 = vmatprep.subr.mxu0 %v16242_v36 }
0x4729   :  { %15285 = vmatmul.mubr.msk.f32.vlgmr.msra.gmra.mrb[102].mxu0 %vm366_vm2, %v8655_v31 }
0x472a   :  { %15293 = vmatpush3.msra.mxu0 %v17411_v49  ;;  %15294 = vmatprep.mubr.msk.f32.mxu0 %vm16243_vm1, %v16242_v36 }
0x472b   :  { %15302 = vmatprep.subr.mxu0 %v16242_v36 }
0x47f4   :  { %v8650_v20 = vpop.f32.mrb[94].mxu1 }
0x47f5   :  { %v15281_v28 = vpop.f32.mrb[95].mxu1 }
0x47f8   :  { %v8577_v21 = vpop.f32.mrb[100].mxu0 }
0x47f9   :  { %v8651_v17 = vadd.f32 %v8650_v20, %v8577_v21  ;;  %v15276_v12 = vpop.f32.mrb[101].mxu0 }
0x47fc   :  { %v8728_v35 = vpop.f32.mrb[102].mxu0 }
0x47fd   :  { %v8732_v23 = vmul.f32 0.35355338, %v8728_v35  ;;  %v15286_v24 = vpop.f32.mrb[103].mxu0 }
0x47ff   :  { %v8733_v50 = vadd.f32 %v8732_v23, %v16648_v11 }
0x4801   :  { %v8734_v22 = vsel %vm366_vm2, %v8733_v50, -inf }
0x4802   :  { %8735 = vmax.xlane.f32.xlu0 %v8734_v22  ;;  %v14175_v22 = vld [vmem:[%s18132_s22] ss:$0 sm:$0xff] }
0x4818   :  { %8745 = vrot.lane.b32.xlu0 %v17324_v25, %s16249_s2 }
0x481c   :  { %8895 = vrot.lane.b32.xlu0 %v17334_v62, %s16253_s16 }
0x488f   :  { %v8736_v49 = vpop.xlane.xlu0 %8735 }
0x4890   :  { %v8737_v26 = vsub.f32 %v8733_v50, %v8736_v49 }
0x4892   :  { %v8738_v29 = vmul.f32 1.442695, %v8737_v26  ;;  %v14176_v26 = vld [vmem:[%s18133_s26] ss:$0 sm:$0xff] }
0x4893   :  { %v8746_v27 = vpop.permute.xlu0 %8745 }
0x4894   :  { %16013 = vpow2.f32 %v8738_v29  ;;  %15288 = vmatpush3.msra.mxu1 %v8746_v27 }
0x4895   :  { %15297 = vmatprep.subr.mxu1 %v16242_v36 }
0x4897   :  { %v8896_v38 = vpop.permute.xlu0 %8895 }
0x489e   :  { %v16014_v32 = vpop.eup %16013 }
0x489f   :  { %v8740_v34 = vsel %vm366_vm2, %v16014_v32, 0.0 }
0x48a0   :  { %8741 = vadd.xlane.f32.xlu1 %v8740_v34  ;;  %v9191_v34 = vld [vmem:[%s18134_s28 + $0x8] sm:$0xff] }
0x48b1   :  { %8897 = vrot.lane.b32.xlu1 %v17324_v25, %s16253_s16 }
0x492d   :  { %v8742_v52 = vpop.xlane.xlu1 %8741 }
0x492e   :  { %16015 = vrcp.f32 %v8742_v52 }
0x4931   :  { %v8898_v7 = vpop.permute.xlu1 %8897 }
0x4938   :  { %v16016_v0 = vpop.eup %16015 }
0x4939   :  { %v8744_v62 = vmul.f32 %v16016_v0, %v16014_v32  ;;  %v9190_v32 = vld [vmem:[%s18134_s28] sm:$0xff]  ;;  %v9192_v0 = vld [vmem:[%s18134_s28 + $0x10] sm:$0xff] }
0x493a   :  { %v15733_v52 = vpack.c.bf16 %v9191_v34, %v9190_v32 }
0x493b   :  { %15290 = vmatmul.mubr.msk.f32.vlgmr.msra.gmra.mrb[96].mxu1 %vm366_vm2, %v8744_v62  ;;  %v9193_v62 = vld [vmem:[%s18134_s28 + $0x18] sm:$0xff] }
0x493c   :  { %15298 = vmatpush3.xpose.msk.msra.mxu1 %vm366_vm2, %v8898_v7  ;;  %15299 = vmatprep.mubr.msk.f32.mxu1 %vm16243_vm1, %v16242_v36  ;;  %v15737_v7 = vpack.c.bf16 %v9193_v62, %v9192_v0 }
0x493d   :  { %15307 = vmatprep.subr.mxu1 %v16242_v36 }
0x493f   :  { %15300 = vmatmul.mubr.msk.f32.vlgmr.msra.gmra.mrb[98].mxu1 %vm366_vm2, %v8896_v38  ;;  %v9195_v38 = vld [vmem:[%s18135_s13] sm:$0xff] }
0x4940   :  { %15308 = vmatpush3.msra.mxu1 %v17446_v48  ;;  %15309 = vmatprep.mubr.msk.f32.mxu1 %vm16243_vm1, %v16242_v36  ;;  %v17518_v48 = vadd.f32 %v9142_v43, %v17270_v13 }
0x4942   :  { %v9148_v56 = vsel %vm222_vm0, %v17518_v48, 0.0 }
0x4a0e   :  { %v8817_v59 = vpop.f32.mrb[96].mxu1 }
0x4a0f   :  { %v15291_v40 = vpop.f32.mrb[97].mxu1  ;;  %15295 = vmatmul.mubr.msk.f32.vlgmr.msra.gmra.mrb[104].mxu0 %vm366_vm2, %v8817_v59  ;;  %v9196_v59 = vld [vmem:[%s18135_s13 + $0x8] sm:$0xff] }
0x4a10   :  { %15304 = vmatprep.mubr.msk.f32.mxu0 %vm16243_vm1, %v16242_v36  ;;  %v9197_v40 = vld [vmem:[%s18135_s13 + $0x10] sm:$0xff] }
0x4a12   :  { %v8969_v9 = vpop.f32.mrb[98].mxu1 }
0x4a13   :  { %v8973_v44 = vmul.f32 0.35355338, %v8969_v9  ;;  %v15301_v45 = vpop.f32.mrb[99].mxu1  ;;  %v9198_v9 = vld [vmem:[%s18135_s13 + $0x18] sm:$0xff] }
0x4a14   :  { %v15745_v43 = vpack.c.bf16 %v9198_v9, %v9197_v40  ;;  %v9200_v45 = vld [vmem:[%s18135_s13 + $0x28] sm:$0xff] }
0x4a15   :  { %v8974_v46 = vadd.f32 %v8973_v44, %v16648_v11  ;;  %v9199_v44 = vld [vmem:[%s18135_s13 + $0x20] sm:$0xff] }
0x4a17   :  { %v8975_v53 = vsel %vm366_vm2, %v8974_v46, -inf }
0x4a18   :  { %8976 = vmax.xlane.f32.xlu1 %v8975_v53 }
0x4a1c   :  { %9149 = vadd.xlane.f32.xlu1 %v9148_v56 }
0x4aa5   :  { %v8977_v55 = vpop.xlane.xlu1 %8976 }
0x4aa6   :  { %v8978_v37 = vsub.f32 %v8974_v46, %v8977_v55  ;;  %v15749_v46 = vpack.c.bf16 %v9200_v45, %v9199_v44 }
0x4aa8   :  { %v8979_v4 = vmul.f32 1.442695, %v8978_v37 }
0x4aa9   :  { %v9150_v41 = vpop.xlane.xlu1 %9149 }
0x4aaa   :  { %16017 = vpow2.f32 %v8979_v4  ;;  %v9154_v8 = vmul.f32 0.03125, %v9150_v41 }
0x4aac   :  { %v9156_v54 = vsub.f32 %v17518_v48, %v9154_v8  ;;  %v14180_v8 = vld [vmem:[%s18137_s15] ss:$0 sm:$0xff] }
0x4aae   :  { %v9158_v31 = vmul.f32 %v9156_v54, %v9156_v54 }
0x4ab0   :  { %v9160_v20 = vsel %vm222_vm0, %v9158_v31, 0.0 }
0x4ab4   :  { %v16018_v30 = vpop.eup %16017 }
0x4ab5   :  { %v8981_v63 = vsel %vm366_vm2, %v16018_v30, 0.0 }
0x4ab6   :  { %8982 = vadd.xlane.f32.xlu0 %v8981_v63 }
0x4acc   :  { %8986 = vrot.lane.b32.xlu0 %v17324_v25, %s16252_s11 }
0x4ae2   :  { %v8890_v13 = vpop.f32.mrb[104].mxu0 }
0x4ae3   :  { %v8894_v2 = vadd.f32 %v8890_v13, %v8651_v17  ;;  %v15296_v57 = vpop.f32.mrb[105].mxu0  ;;  %v9201_v13 = vld [vmem:[%s18135_s13 + $0x30] sm:$0xff] }
0x4b43   :  { %v8983_v3 = vpop.xlane.xlu0 %8982 }
0x4b44   :  { %16019 = vrcp.f32 %v8983_v3  ;;  %v14177_v3 = vld [vmem:[%s18136_s17] ss:$0 sm:$0xff] }
0x4b47   :  { %v8987_v61 = vpop.permute.xlu0 %8986 }
0x4b48   :  { %15303 = vmatpush3.msra.mxu0 %v8987_v61 }
0x4b49   :  { %15734 = vmatprep.subr.bf16.mxu0 %v15733_v52 }
0x4b4e   :  { %v16020_v15 = vpop.eup %16019 }
0x4b4f   :  { %v8985_v1 = vmul.f32 %v16020_v15, %v16018_v30 }
0x4b51   :  { %15305 = vmatmul.mubr.msk.f32.vlgmr.msra.gmra.mrb[106].mxu0 %vm366_vm2, %v8985_v1 }
0x4b52   :  { %15736 = vmatpush3.bf16.msra.mxu0 %v15733_v52 }
0x4b53   :  { %15738 = vmatprep.subr.bf16.mxu0 %v15737_v7 }
0x4b56   :  { %15740 = vmatpush3.bf16.msra.mxu0 %v15737_v7 }
0x4c24   :  { %v9058_v5 = vpop.f32.mrb[106].mxu0 }
0x4c25   :  { %v15306_v6 = vpop.f32.mrb[107].mxu0  ;;  %15310 = vmatmul.mubr.msk.f32.vlgmr.msra.gmra.mrb[100].mxu1 %vm366_vm2, %v9058_v5 }
0x4cf8   :  { %v9131_v19 = vpop.f32.mrb[100].mxu1 }
0x4cf9   :  { %v9135_v60 = vadd.f32 %v9131_v19, %v8894_v2  ;;  %v15311_v25 = vpop.f32.mrb[101].mxu1  ;;  %v9202_v2 = vld [vmem:[%s18135_s13 + $0x38] sm:$0xff] }
0x4cfa   :  { %v15753_v57 = vpack.c.bf16 %v9202_v2, %v9201_v13 }
0x4cfb   :  { %v9143_v10 = vadd.f32 %v14174_v42, %v9135_v60  ;;  %v15741_v42 = vpack.c.bf16 %v9196_v59, %v9195_v38  ;;  %v14185_v59 = vld [vmem:[%s18118_s25 + $0x1] ss:$0 sm:$0xff] }
0x4cfd   :  { %v17530_v14 = vadd.f32 %v9143_v10, %v17287_v33  ;;  %15742 = vmatprep.subr.bf16.mxu1 %v15741_v42 }
0x4cfe   :  { %15744 = vmatpush3.bf16.msra.mxu1 %v15741_v42  ;;  %v14186_v42 = vld [vmem:[%s18119_s3 + $0x1] ss:$0 sm:$0xff] }
0x4cff   :  { %v9151_v18 = vsel %vm222_vm0, %v17530_v14, 0.0  ;;  %15746 = vmatprep.subr.bf16.mxu1 %v15745_v43 }
0x4d00   :  { %9152 = vadd.xlane.f32.xlu1 %v9151_v18 }
0x4d02   :  { %15748 = vmatpush3.bf16.msra.mxu1 %v15745_v43 }
0x4d03   :  { %15750 = vmatprep.subr.bf16.mxu1 %v15749_v46 }
0x4d04   :  { %9161 = vadd.xlane.f32.xlu1 %v9160_v20 }
0x4d06   :  { %15752 = vmatpush3.bf16.msra.mxu1 %v15749_v46 }
0x4d07   :  { %15754 = vmatprep.subr.bf16.mxu1 %v15753_v57 }
0x4d0a   :  { %15756 = vmatpush3.bf16.msra.mxu1 %v15753_v57 }
0x4d0b   :  { %15358 = vmatprep.subr.mxu1 %v16242_v36 }
0x4d8d   :  { %v9153_v28 = vpop.xlane.xlu1 %9152 }
0x4d8e   :  { %v9155_v21 = vmul.f32 0.03125, %v9153_v28 }
0x4d90   :  { %v9157_v17 = vsub.f32 %v17530_v14, %v9155_v21 }
0x4d91   :  { %v9162_v12 = vpop.xlane.xlu1 %9161 }
0x4d92   :  { %v9166_v35 = vmul.f32 0.03125, %v9162_v12  ;;  %v9159_v33 = vmul.f32 %v9157_v17, %v9157_v17 }
0x4d94   :  { %v9168_v23 = vadd.f32 1e-06, %v9166_v35  ;;  %v9163_v24 = vsel %vm222_vm0, %v9159_v33, 0.0 }
0x4d95   :  { %9164 = vadd.xlane.f32.xlu1 %v9163_v24 }
0x4d96   :  { %16021 = vrsqrt.f32 %v9168_v23 }
0x4da0   :  { %v16022_v50 = vpop.eup %16021 }
0x4da1   :  { %v9172_v49 = vmul.f32 %v16022_v50, %v9156_v54  ;;  %v14187_v50 = vld [vmem:[%s18117_s21 + $0x20] sm:$0xff] }
0x4da3   :  { %v9180_v29 = vmul.f32 %v14175_v22, %v9172_v49 }
0x4da5   :  { %v9188_v27 = vadd.f32 %v14176_v26, %v9180_v29  ;;  %v14190_v29 = vld [vmem:[%s18117_s21 + $0x38] sm:$0xff] }
0x4da7   :  { %15320 = vmatprep.mubr.msk.f32.mxu0 %vm222_vm0, %v9188_v27 }
0x4e22   :  { %v9165_v53 = vpop.xlane.xlu1 %9164 }
0x4e23   :  { %v9167_v56 = vmul.f32 0.03125, %v9165_v53 }
0x4e25   :  { %v9169_v55 = vadd.f32 1e-06, %v9167_v56  ;;  %v14197_v56 = vld [vmem:[%s18120_s8 + $0x1] ss:$0 sm:$0xff] }
0x4e27   :  { %16023 = vrsqrt.f32 %v9169_v55 }
0x4e31   :  { %v16024_v37 = vpop.eup %16023 }
0x4e32   :  { %v9173_v4 = vmul.f32 %v16024_v37, %v9157_v17 }
0x4e34   :  { %v9181_v30 = vmul.f32 %v14175_v22, %v9173_v4  ;;  %v14188_v22 = vld [vmem:[%s18117_s21 + $0x28] sm:$0xff] }
0x4e35   :  { %v15757_v49 = vpack.c.bf16 %v14188_v22, %v14187_v50 }
0x4e36   :  { %v9189_v63 = vadd.f32 %v14176_v26, %v9181_v30  ;;  %v14189_v26 = vld [vmem:[%s18117_s21 + $0x30] sm:$0xff]  ;;  %s18138_s21 = smov 40  }
0x4e37   :  { %15758 = vmatprep.subr.bf16.mxu0 %v15757_v49  ;;  %v15761_v27 = vpack.c.bf16 %v14190_v29, %v14189_v26  ;;  %v17635_v29 = vld [vmem:[%s18122_s14 + $0x20] sm:$0xff] }
0x4e38   :  { %15321 = vmatmul.mubr.msk.f32.vlgmr.msra.gmra.mrb[108].mxu0 %vm222_vm0, %v9189_v63 }
0x4e39   :  { %15760 = vmatpush3.bf16.msra.mxu0 %v15757_v49 }
0x4e3a   :  { %15762 = vmatprep.subr.bf16.mxu0 %v15761_v27 }
0x4e3d   :  { %15764 = vmatpush3.bf16.msra.mxu0 %v15761_v27 }
0x4e3e   :  { %15353 = vmatprep.subr.mxu0 %v16242_v36 }
0x4f0b   :  { %v15322_v61 = vpop.f32.mrb[108].mxu0 }
0x4f0c   :  { %v9288_v15 = vadd.f32 %v15322_v61, %v14177_v3  ;;  %v9282_v1 = vpop.f32.mrb[109].mxu0 }
0x4f0d   :  { %v9283_v5 = vadd.f32 %v14177_v3, %v9282_v1 }
0x4f0e   :  { %v9292_v41 = vmax.f32 %v9288_v15, 0.0 }
0x4f0f   :  { %v9291_v6 = vmax.f32 %v9283_v5, 0.0 }
0x4f11   :  { %15339 = vmatprep.mubr.msk.f32.mxu1 %vm2461_vm5, %v9291_v6 }
0x4f12   :  { %15340 = vmatmul.mubr.msk.f32.vlgmr.msra.gmra.mrb[102].mxu1 %vm2461_vm5, %v9292_v41 }
0x4f13   :  { %15360 = vmatprep.mubr.msk.f32.mxu1 %vm16243_vm1, %v16242_v36 }
0x4fe5   :  { %v15341_v19 = vpop.f32.mrb[102].mxu1 }
0x4fe6   :  { %v9377_v60 = vadd.f32 %v15341_v19, %v14180_v8  ;;  %v9371_v25 = vpop.f32.mrb[103].mxu1 }
0x4fe7   :  { %v9372_v54 = vadd.f32 %v14180_v8, %v9371_v25 }
0x4fe8   :  { %v17561_v10 = vadd.f32 %v9377_v60, %v17530_v14 }
0x4fe9   :  { %v17564_v18 = vadd.f32 %v9372_v54, %v17518_v48 }
0x4fea   :  { %v9389_v31 = vsel %vm222_vm0, %v17561_v10, 0.0 }
0x4feb   :  { %9390 = vadd.xlane.f32.xlu0 %v9389_v31  ;;  %v9386_v20 = vsel %vm222_vm0, %v17564_v18, 0.0 }
0x4fec   :  { %9387 = vadd.xlane.f32.xlu1 %v9386_v20 }
0x5078   :  { %v9391_v28 = vpop.xlane.xlu0 %9390 }
0x5079   :  { %v9393_v21 = vmul.f32 0.03125, %v9391_v28  ;;  %v9388_v17 = vpop.xlane.xlu1 %9387 }
0x507a   :  { %v9392_v14 = vmul.f32 0.03125, %v9388_v17 }
0x507b   :  { %v9395_v12 = vsub.f32 %v17561_v10, %v9393_v21 }
0x507c   :  { %v9394_v48 = vsub.f32 %v17564_v18, %v9392_v14 }
0x507d   :  { %v9397_v23 = vmul.f32 %v9395_v12, %v9395_v12 }
0x507e   :  { %v9396_v35 = vmul.f32 %v9394_v48, %v9394_v48 }
0x507f   :  { %v9401_v24 = vsel %vm222_vm0, %v9397_v23, 0.0 }
0x5080   :  { %v9398_v33 = vsel %vm222_vm0, %v9396_v35, 0.0  ;;  %v17623_v35 = vld [vmem:[%s18122_s14 + $0x28] sm:$0xff] }
0x5081   :  { %9399 = vadd.xlane.f32.xlu1 %v9398_v33 }
0x5085   :  { %9402 = vadd.xlane.f32.xlu1 %v9401_v24 }
0x510e   :  { %v9400_v32 = vpop.xlane.xlu1 %9399 }
0x510f   :  { %v9404_v34 = vmul.f32 0.03125, %v9400_v32 }
0x5111   :  { %v9406_v52 = vadd.f32 1e-06, %v9404_v34 }
0x5112   :  { %v9403_v0 = vpop.xlane.xlu1 %9402 }
0x5113   :  { %16025 = vrsqrt.f32 %v9406_v52  ;;  %v9405_v62 = vmul.f32 0.03125, %v9403_v0 }
0x5115   :  { %v9407_v7 = vadd.f32 1e-06, %v9405_v62 }
0x5117   :  { %16027 = vrsqrt.f32 %v9407_v7 }
0x511d   :  { %v16026_v38 = vpop.eup %16025 }
0x511e   :  { %v9410_v40 = vmul.f32 %v16026_v38, %v9394_v48 }
0x5120   :  { %v9418_v9 = vmul.f32 %v14185_v59, %v9410_v40 }
0x5121   :  { %v16028_v43 = vpop.eup %16027 }
0x5122   :  { %v9411_v44 = vmul.f32 %v16028_v43, %v9395_v12  ;;  %v9426_v45 = vadd.f32 %v14186_v42, %v9418_v9 }
0x5124   :  { %v9419_v46 = vmul.f32 %v14185_v59, %v9411_v44  ;;  %15350 = vmatprep.mubr.msk.f32.mxu0 %vm222_vm0, %v9426_v45 }
0x5126   :  { %v9427_v53 = vadd.f32 %v14186_v42, %v9419_v46 }
0x5128   :  { %15351 = vmatmul.mubr.msk.f32.vlgmr.msra.gmra.mrb[110].mxu0 %vm222_vm0, %v9427_v53 }
0x5129   :  { %15355 = vmatprep.mubr.msk.f32.mxu0 %vm16243_vm1, %v16242_v36 }
0x51fb   :  { %v15352_v55 = vpop.f32.mrb[110].mxu0 }
0x51fc   :  { %v17586_v37 = vadd.f32 %v15352_v55, %v14197_v56  ;;  %v9520_v4 = vpop.f32.mrb[111].mxu0 }
0x51fd   :  { %v17588_v30 = vadd.f32 %v14197_v56, %v9520_v4 }
0x51ff   :  { %9530 = vrot.lane.b32.xlu1 %v17588_v30, %s16245_s20 }
0x5203   :  { %9697 = vrot.lane.b32.xlu1 %v17588_v30, %s16244_s5 }
0x5207   :  { %9695 = vrot.lane.b32.xlu1 %v17588_v30, %s16246_s27 }
0x5271   :  { %v9531_v63 = vpop.permute.xlu1 %9530 }
0x5272   :  { %15354 = vmatpush3.xpose.msk.msra.mxu0 %vm366_vm2, %v9531_v63 }
0x5273   :  { %15363 = vmatprep.subr.mxu0 %v16242_v36 }
0x5275   :  { %15356 = vmatmul.mubr.msk.f32.vlgmr.msra.gmra.mrb[112].mxu0 %vm366_vm2, %v17588_v30  ;;  %v9698_v13 = vpop.permute.xlu1 %9697 }
0x5276   :  { %15364 = vmatpush3.xpose.msk.msra.mxu0 %vm366_vm2, %v9698_v13  ;;  %15365 = vmatprep.mubr.msk.f32.mxu0 %vm16243_vm1, %v16242_v36 }
0x5277   :  { %15373 = vmatprep.subr.mxu0 %v16242_v36 }
0x5279   :  { %v9696_v2 = vpop.permute.xlu1 %9695 }
0x527a   :  { %15366 = vmatmul.mubr.msk.f32.vlgmr.msra.gmra.mrb[114].mxu0 %vm366_vm2, %v9696_v2 }
0x527b   :  { %15375 = vmatprep.mubr.msk.f32.mxu0 %vm16243_vm1, %v16242_v36  ;;  %15374 = vmatpush3.msra.mxu0 %v17623_v35 }
0x527c   :  { %15383 = vmatprep.subr.mxu0 %v16242_v36 }
0x5348   :  { %v9602_v57 = vpop.f32.mrb[112].mxu0 }
0x5349   :  { %v9606_v3 = vmul.f32 0.35355338, %v9602_v57  ;;  %v15357_v61 = vpop.f32.mrb[113].mxu0 }
0x534b   :  { %v9607_v15 = vadd.f32 %v9606_v3, %v17082_v16 }
0x534d   :  { %v9769_v1 = vpop.f32.mrb[114].mxu0  ;;  %v9608_v5 = vsel %vm366_vm2, %v9607_v15, -inf }
0x534e   :  { %v9773_v6 = vmul.f32 0.35355338, %v9769_v1  ;;  %9609 = vmax.xlane.f32.xlu0 %v9608_v5  ;;  %v15367_v41 = vpop.f32.mrb[115].mxu0  ;;  %v17669_v1 = vld [vmem:[%s18122_s14 + $0x30] sm:$0xff] }
0x5350   :  { %v9774_v8 = vadd.f32 %v9773_v6, %v17082_v16 }
0x5352   :  { %v9775_v19 = vsel %vm366_vm2, %v9774_v8, -inf }
0x5353   :  { %9776 = vmax.xlane.f32.xlu1 %v9775_v19 }
0x5364   :  { %9619 = vrot.lane.b32.xlu0 %v17588_v30, %s16248_s1  ;;  %10008 = vrot.lane.b32.xlu1 %v17588_v30, %s16250_s10 }
0x53db   :  { %v9610_v60 = vpop.xlane.xlu0 %9609 }
0x53dc   :  { %v9611_v25 = vsub.f32 %v9607_v15, %v9610_v60 }
0x53de   :  { %v9612_v54 = vmul.f32 1.442695, %v9611_v25 }
0x53df   :  { %v9620_v31 = vpop.permute.xlu0 %9619 }
0x53e0   :  { %16029 = vpow2.f32 %v9612_v54  ;;  %15359 = vmatpush3.msra.mxu1 %v9620_v31  ;;  %v9777_v20 = vpop.xlane.xlu1 %9776 }
0x53e1   :  { %v9778_v28 = vsub.f32 %v9774_v8, %v9777_v20  ;;  %15368 = vmatprep.subr.mxu1 %v16242_v36 }
0x53e3   :  { %v9779_v21 = vmul.f32 1.442695, %v9778_v28 }
0x53e4   :  { %v10009_v62 = vpop.permute.xlu1 %10008 }
0x53e5   :  { %16031 = vpow2.f32 %v9779_v21 }
0x53ea   :  { %v16030_v17 = vpop.eup %16029 }
0x53eb   :  { %v9614_v14 = vsel %vm366_vm2, %v16030_v17, 0.0 }
0x53ec   :  { %9615 = vadd.xlane.f32.xlu0 %v9614_v14 }
0x53ef   :  { %v16032_v12 = vpop.eup %16031 }
0x53f0   :  { %v9781_v48 = vsel %vm366_vm2, %v16032_v12, 0.0 }
0x53f1   :  { %9782 = vadd.xlane.f32.xlu0 %v9781_v48 }
0x5407   :  { %9786 = vrot.lane.b32.xlu0 %v17588_v30, %s16251_s7 }
0x540b   :  { %10010 = vrot.lane.b32.xlu0 %v17588_v30, %s16249_s2 }
0x5479   :  { %v9616_v33 = vpop.xlane.xlu0 %9615 }
0x547a   :  { %16033 = vrcp.f32 %v9616_v33 }
0x547e   :  { %v9783_v23 = vpop.xlane.xlu0 %9782 }
0x547f   :  { %16035 = vrcp.f32 %v9783_v23 }
0x5482   :  { %v9787_v22 = vpop.permute.xlu0 %9786 }
0x5484   :  { %v16034_v24 = vpop.eup %16033 }
0x5485   :  { %v9618_v50 = vmul.f32 %v16034_v24, %v16030_v17 }
0x5486   :  { %v10011_v52 = vpop.permute.xlu0 %10010 }
0x5487   :  { %15361 = vmatmul.mubr.msk.f32.vlgmr.msra.gmra.mrb[104].mxu1 %vm366_vm2, %v9618_v50 }
0x5488   :  { %15369 = vmatpush3.msra.mxu1 %v9787_v22  ;;  %15370 = vmatprep.mubr.msk.f32.mxu1 %vm16243_vm1, %v16242_v36  ;;  %v17705_v22 = vld [vmem:[%s18122_s14 + $0x38] sm:$0xff] }
0x5489   :  { %v16036_v49 = vpop.eup %16035  ;;  %15378 = vmatprep.subr.mxu1 %v16242_v36 }
0x548a   :  { %v9785_v26 = vmul.f32 %v16036_v49, %v16032_v12 }
0x548c   :  { %15371 = vmatmul.mubr.msk.f32.vlgmr.msra.gmra.mrb[106].mxu1 %vm366_vm2, %v9785_v26 }
0x548d   :  { %15380 = vmatprep.mubr.msk.f32.mxu1 %vm16243_vm1, %v16242_v36  ;;  %15379 = vmatpush3.msra.mxu1 %v17635_v29 }
0x548e   :  { %15388 = vmatprep.subr.mxu1 %v16242_v36 }
0x555a   :  { %v9691_v27 = vpop.f32.mrb[104].mxu1 }
0x555b   :  { %v15362_v32 = vpop.f32.mrb[105].mxu1  ;;  %15381 = vmatmul.mubr.msk.f32.vlgmr.msra.gmra.mrb[108].mxu1 %vm366_vm2, %v9691_v27 }
0x555c   :  { %15390 = vmatprep.mubr.msk.f32.mxu1 %vm16243_vm1, %v16242_v36 }
0x555f   :  { %v9858_v34 = vpop.f32.mrb[106].mxu1 }
0x5560   :  { %v15372_v0 = vpop.f32.mrb[107].mxu1  ;;  %15376 = vmatmul.mubr.msk.f32.vlgmr.msra.gmra.mrb[116].mxu0 %vm366_vm2, %v9858_v34 }
0x5561   :  { %15384 = vmatpush3.xpose.msk.msra.mxu0 %vm366_vm2, %v10011_v52  ;;  %15385 = vmatprep.mubr.msk.f32.mxu0 %vm16243_vm1, %v16242_v36 }
0x5562   :  { %15393 = vmatprep.subr.mxu0 %v16242_v36 }
0x5564   :  { %15386 = vmatmul.mubr.msk.f32.vlgmr.msra.gmra.mrb[118].mxu0 %vm366_vm2, %v10009_v62 }
0x5565   :  { %15395 = vmatprep.mubr.msk.f32.mxu0 %vm16243_vm1, %v16242_v36  ;;  %15394 = vmatpush3.msra.mxu0 %v17669_v1 }
0x5566   :  { %15403 = vmatprep.subr.mxu0 %v16242_v36 }
0x562e   :  { %v10004_v7 = vpop.f32.mrb[108].mxu1 }
0x562f   :  { %v15382_v38 = vpop.f32.mrb[109].mxu1 }
0x5633   :  { %v9931_v59 = vpop.f32.mrb[116].mxu0 }
0x5634   :  { %v10005_v40 = vadd.f32 %v10004_v7, %v9931_v59  ;;  %v15377_v42 = vpop.f32.mrb[117].mxu0 }
0x5637   :  { %v10082_v9 = vpop.f32.mrb[118].mxu0 }
0x5638   :  { %v10086_v43 = vmul.f32 0.35355338, %v10082_v9  ;;  %v15387_v44 = vpop.f32.mrb[119].mxu0 }
0x563a   :  { %v10087_v45 = vadd.f32 %v10086_v43, %v17082_v16 }
0x563c   :  { %v10088_v46 = vsel %vm366_vm2, %v10087_v45, -inf }
0x563d   :  { %10089 = vmax.xlane.f32.xlu0 %v10088_v46 }
0x5653   :  { %10099 = vrot.lane.b32.xlu0 %v17588_v30, %s16254_s0 }
0x5657   :  { %10249 = vrot.lane.b32.xlu0 %v17588_v30, %s16253_s16 }
0x56ca   :  { %v10090_v53 = vpop.xlane.xlu0 %10089 }
0x56cb   :  { %v10091_v56 = vsub.f32 %v10087_v45, %v10090_v53 }
0x56cd   :  { %v10092_v55 = vmul.f32 1.442695, %v10091_v56 }
0x56ce   :  { %v10100_v4 = vpop.permute.xlu0 %10099 }
0x56cf   :  { %16037 = vpow2.f32 %v10092_v55  ;;  %15389 = vmatpush3.msra.mxu1 %v10100_v4 }
0x56d0   :  { %15398 = vmatprep.subr.mxu1 %v16242_v36 }
0x56d2   :  { %v10250_v15 = vpop.permute.xlu0 %10249 }
0x56d9   :  { %v16038_v63 = vpop.eup %16037 }
0x56da   :  { %v10094_v13 = vsel %vm366_vm2, %v16038_v63, 0.0 }
0x56db   :  { %10095 = vadd.xlane.f32.xlu1 %v10094_v13 }
0x56ec   :  { %10251 = vrot.lane.b32.xlu1 %v17588_v30, %s16252_s11 }
0x5768   :  { %v10096_v2 = vpop.xlane.xlu1 %10095 }
0x5769   :  { %16039 = vrcp.f32 %v10096_v2 }
0x576c   :  { %v10252_v61 = vpop.permute.xlu1 %10251 }
0x5773   :  { %v16040_v57 = vpop.eup %16039 }
0x5774   :  { %v10098_v3 = vmul.f32 %v16040_v57, %v16038_v63 }
0x5776   :  { %15391 = vmatmul.mubr.msk.f32.vlgmr.msra.gmra.mrb[110].mxu1 %vm366_vm2, %v10098_v3 }
0x5777   :  { %15399 = vmatpush3.xpose.msk.msra.mxu1 %vm366_vm2, %v10252_v61  ;;  %15400 = vmatprep.mubr.msk.f32.mxu1 %vm16243_vm1, %v16242_v36 }
0x5778   :  { %15408 = vmatprep.subr.mxu1 %v16242_v36 }
0x577a   :  { %15401 = vmatmul.mubr.msk.f32.vlgmr.msra.gmra.mrb[112].mxu1 %vm366_vm2, %v10250_v15 }
0x577b   :  { %15410 = vmatprep.mubr.msk.f32.mxu1 %vm16243_vm1, %v16242_v36  ;;  %15409 = vmatpush3.msra.mxu1 %v17705_v22 }
0x577c   :  { %15418 = vmatprep.subr.mxu1 %v16242_v36 }
0x5849   :  { %v10171_v5 = vpop.f32.mrb[110].mxu1 }
0x584a   :  { %v15392_v6 = vpop.f32.mrb[111].mxu1  ;;  %15396 = vmatmul.mubr.msk.f32.vlgmr.msra.gmra.mrb[120].mxu0 %vm366_vm2, %v10171_v5 }
0x584b   :  { %15405 = vmatprep.mubr.msk.f32.mxu0 %vm16243_vm1, %v16242_v36 }
0x584d   :  { %v10323_v41 = vpop.f32.mrb[112].mxu1 }
0x584e   :  { %v10327_v8 = vmul.f32 0.35355338, %v10323_v41  ;;  %v15402_v19 = vpop.f32.mrb[113].mxu1 }
0x5850   :  { %v10328_v60 = vadd.f32 %v10327_v8, %v17082_v16 }
0x5852   :  { %v10329_v25 = vsel %vm366_vm2, %v10328_v60, -inf }
0x5853   :  { %10330 = vmax.xlane.f32.xlu0 %v10329_v25 }
0x5869   :  { %10340 = vrot.lane.b32.xlu0 %v17588_v30, %s18138_s21 }
0x586d   :  { %10658 = vrot.lane.b32.xlu0 %v17586_v37, %s16244_s5 }
0x5871   :  { %10656 = vrot.lane.b32.xlu0 %v17586_v37, %s16246_s27 }
0x58e0   :  { %v10331_v54 = vpop.xlane.xlu0 %10330 }
0x58e1   :  { %v10332_v31 = vsub.f32 %v10328_v60, %v10331_v54 }
0x58e3   :  { %v10333_v20 = vmul.f32 1.442695, %v10332_v31 }
0x58e4   :  { %v10341_v28 = vpop.permute.xlu0 %10340 }
0x58e5   :  { %16041 = vpow2.f32 %v10333_v20  ;;  %15404 = vmatpush3.msra.mxu0 %v10341_v28 }
0x58e6   :  { %15413 = vmatprep.subr.mxu0 %v16242_v36 }
0x58e8   :  { %v10659_v24 = vpop.permute.xlu0 %10658 }
0x58ec   :  { %v10657_v50 = vpop.permute.xlu0 %10656 }
0x58ef   :  { %v16042_v16 = vpop.eup %16041 }
0x58f0   :  { %v10335_v21 = vsel %vm366_vm2, %v16042_v16, 0.0 }
0x58f1   :  { %10336 = vadd.xlane.f32.xlu1 %v10335_v21 }
0x5902   :  { %10491 = vrot.lane.b32.xlu1 %v17586_v37, %s16245_s20 }
0x591d   :  { %v10244_v30 = vpop.f32.mrb[120].mxu0 }
0x591e   :  { %v10248_v17 = vadd.f32 %v10244_v30, %v10005_v40  ;;  %v15397_v14 = vpop.f32.mrb[121].mxu0 }
0x597e   :  { %v10337_v12 = vpop.xlane.xlu1 %10336 }
0x597f   :  { %16043 = vrcp.f32 %v10337_v12 }
0x5982   :  { %v10492_v23 = vpop.permute.xlu1 %10491 }
0x5989   :  { %v16044_v48 = vpop.eup %16043 }
0x598a   :  { %v10339_v33 = vmul.f32 %v16044_v48, %v16042_v16 }
0x598c   :  { %15406 = vmatmul.mubr.msk.f32.vlgmr.msra.gmra.mrb[122].mxu0 %vm366_vm2, %v10339_v33 }
0x598d   :  { %15414 = vmatpush3.xpose.msk.msra.mxu0 %vm366_vm2, %v10492_v23  ;;  %15415 = vmatprep.mubr.msk.f32.mxu0 %vm16243_vm1, %v16242_v36 }
0x598e   :  { %15423 = vmatprep.subr.mxu0 %v16242_v36 }
0x5990   :  { %15416 = vmatmul.mubr.msk.f32.vlgmr.msra.gmra.mrb[124].mxu0 %vm366_vm2, %v17586_v37 }
0x5991   :  { %15424 = vmatpush3.xpose.msk.msra.mxu0 %vm366_vm2, %v10659_v24  ;;  %15425 = vmatprep.mubr.msk.f32.mxu0 %vm16243_vm1, %v16242_v36 }
0x5992   :  { %15433 = vmatprep.subr.mxu0 %v16242_v36 }
0x5994   :  { %15426 = vmatmul.mubr.msk.f32.vlgmr.msra.gmra.mrb[126].mxu0 %vm366_vm2, %v10657_v50 }
0x5995   :  { %15434 = vmatpush3.msra.mxu0 %v17623_v35  ;;  %15435 = vmatprep.mubr.msk.f32.mxu0 %vm16243_vm1, %v16242_v36 }
0x5996   :  { %15443 = vmatprep.subr.mxu0 %v16242_v36 }
0x5a5f   :  { %v10412_v49 = vpop.f32.mrb[122].mxu0 }
0x5a60   :  { %v15407_v26 = vpop.f32.mrb[123].mxu0  ;;  %15411 = vmatmul.mubr.msk.f32.vlgmr.msra.gmra.mrb[114].mxu1 %vm366_vm2, %v10412_v49 }
0x5a61   :  { %15420 = vmatprep.mubr.msk.f32.mxu1 %vm16243_vm1, %v16242_v36 }
0x5a63   :  { %v10563_v27 = vpop.f32.mrb[124].mxu0 }
0x5a64   :  { %v10567_v35 = vmul.f32 0.35355338, %v10563_v27  ;;  %v15417_v32 = vpop.f32.mrb[125].mxu0 }
0x5a66   :  { %v10568_v34 = vadd.f32 %v10567_v35, %v17193_v58 }
0x5a67   :  { %v10730_v52 = vpop.f32.mrb[126].mxu0 }
0x5a68   :  { %v10734_v0 = vmul.f32 0.35355338, %v10730_v52  ;;  %v15427_v62 = vpop.f32.mrb[127].mxu0  ;;  %v10569_v7 = vsel %vm366_vm2, %v10568_v34, -inf }
0x5a69   :  { %10570 = vmax.xlane.f32.xlu0 %v10569_v7  ;;  %v14232_v62 = vld [vmem:[%s18123_s19 + $0x1] ss:$0 sm:$0xff] }
0x5a6a   :  { %v10735_v38 = vadd.f32 %v10734_v0, %v17193_v58 }
0x5a6c   :  { %v10736_v59 = vsel %vm366_vm2, %v10735_v38, -inf }
0x5a6d   :  { %10737 = vmax.xlane.f32.xlu1 %v10736_v59 }
0x5a7e   :  { %10580 = vrot.lane.b32.xlu1 %v17586_v37, %s16248_s1 }
0x5a82   :  { %10971 = vrot.lane.b32.xlu1 %v17586_v37, %s16249_s2 }
0x5a86   :  { %10969 = vrot.lane.b32.xlu1 %v17586_v37, %s16250_s10 }
0x5af6   :  { %v10571_v40 = vpop.xlane.xlu0 %10570 }
0x5af7   :  { %v10572_v42 = vsub.f32 %v10568_v34, %v10571_v40 }
0x5af9   :  { %v10573_v9 = vmul.f32 1.442695, %v10572_v42 }
0x5afa   :  { %v10738_v43 = vpop.xlane.xlu1 %10737 }
0x5afb   :  { %16045 = vpow2.f32 %v10573_v9  ;;  %v10739_v44 = vsub.f32 %v10735_v38, %v10738_v43 }
0x5afd   :  { %v10740_v45 = vmul.f32 1.442695, %v10739_v44 }
0x5afe   :  { %v10581_v46 = vpop.permute.xlu1 %10580 }
0x5aff   :  { %16047 = vpow2.f32 %v10740_v45  ;;  %15419 = vmatpush3.msra.mxu1 %v10581_v46 }
0x5b00   :  { %15428 = vmatprep.subr.mxu1 %v16242_v36 }
0x5b02   :  { %v10972_v60 = vpop.permute.xlu1 %10971 }
0x5b05   :  { %v16046_v53 = vpop.eup %16045 }
0x5b06   :  { %v10575_v56 = vsel %vm366_vm2, %v16046_v53, 0.0 }
0x5b07   :  { %10576 = vadd.xlane.f32.xlu0 %v10575_v56 }
0x5b09   :  { %v16048_v55 = vpop.eup %16047 }
0x5b0a   :  { %v10742_v4 = vsel %vm366_vm2, %v16048_v55, 0.0 }
0x5b0b   :  { %10743 = vadd.xlane.f32.xlu0 %v10742_v4 }
0x5b21   :  { %10747 = vrot.lane.b32.xlu0 %v17586_v37, %s16251_s7 }
0x5b33   :  { %v10485_v63 = vpop.f32.mrb[114].mxu1 }
0x5b34   :  { %v17727_v13 = vadd.f32 %v10485_v63, %v10248_v17  ;;  %v15412_v2 = vpop.f32.mrb[115].mxu1 }
0x5b36   :  { %v11457_v38 = vadd.f32 %v14232_v62, %v17727_v13 }
0x5b94   :  { %v10577_v57 = vpop.xlane.xlu0 %10576 }
0x5b95   :  { %16049 = vrcp.f32 %v10577_v57  ;;  %v14242_v57 = vld [vmem:[%s18124_s29 + $0x20] sm:$0xff] }
0x5b98   :  { %v10744_v3 = vpop.xlane.xlu0 %10743 }
0x5b99   :  { %16051 = vrcp.f32 %v10744_v3  ;;  %v14243_v3 = vld [vmem:[%s18124_s29 + $0x28] sm:$0xff] }
0x5b9c   :  { %v10748_v5 = vpop.permute.xlu0 %10747 }
0x5b9f   :  { %v16050_v61 = vpop.eup %16049 }
0x5ba0   :  { %v10579_v15 = vmul.f32 %v16050_v61, %v16046_v53  ;;  %v15773_v61 = vpack.c.bf16 %v14243_v3, %v14242_v57 }
0x5ba2   :  { %15421 = vmatmul.mubr.msk.f32.vlgmr.msra.gmra.mrb[116].mxu1 %vm366_vm2, %v10579_v15  ;;  %v14244_v15 = vld [vmem:[%s18124_s29 + $0x30] sm:$0xff] }
0x5ba3   :  { %v16052_v6 = vpop.eup %16051  ;;  %15429 = vmatpush3.msra.mxu1 %v10748_v5  ;;  %15430 = vmatprep.mubr.msk.f32.mxu1 %vm16243_vm1, %v16242_v36  ;;  %v14245_v5 = vld [vmem:[%s18124_s29 + $0x38] sm:$0xff] }
0x5ba4   :  { %v10746_v41 = vmul.f32 %v16052_v6, %v16048_v55  ;;  %15438 = vmatprep.subr.mxu1 %v16242_v36  ;;  %v15777_v6 = vpack.c.bf16 %v14245_v5, %v14244_v15 }
0x5ba6   :  { %15431 = vmatmul.mubr.msk.f32.vlgmr.msra.gmra.mrb[118].mxu1 %vm366_vm2, %v10746_v41 }
0x5ba7   :  { %15439 = vmatpush3.msra.mxu1 %v17635_v29  ;;  %15440 = vmatprep.mubr.msk.f32.mxu1 %vm16243_vm1, %v16242_v36  ;;  %v10970_v29 = vpop.permute.xlu1 %10969 }
0x5ba8   :  { %15448 = vmatprep.subr.mxu1 %v16242_v36 }
0x5c75   :  { %v10652_v8 = vpop.f32.mrb[116].mxu1 }
0x5c76   :  { %v15422_v19 = vpop.f32.mrb[117].mxu1  ;;  %15441 = vmatmul.mubr.msk.f32.vlgmr.msra.gmra.mrb[120].mxu1 %vm366_vm2, %v10652_v8 }
0x5c77   :  { %15450 = vmatprep.mubr.msk.f32.mxu1 %vm16243_vm1, %v16242_v36 }
0x5c79   :  { %v10819_v25 = vpop.f32.mrb[118].mxu1 }
0x5c7a   :  { %v15432_v54 = vpop.f32.mrb[119].mxu1  ;;  %15436 = vmatmul.mubr.msk.f32.vlgmr.msra.gmra.mrb[128].mxu0 %vm366_vm2, %v10819_v25 }
0x5c7b   :  { %15444 = vmatpush3.xpose.msk.msra.mxu0 %vm366_vm2, %v10972_v60  ;;  %15445 = vmatprep.mubr.msk.f32.mxu0 %vm16243_vm1, %v16242_v36 }
0x5c7c   :  { %15453 = vmatprep.subr.mxu0 %v16242_v36 }
0x5c7e   :  { %15446 = vmatmul.mubr.msk.f32.vlgmr.msra.gmra.mrb[130].mxu0 %vm366_vm2, %v10970_v29 }
0x5c7f   :  { %15454 = vmatpush3.msra.mxu0 %v17669_v1  ;;  %15455 = vmatprep.mubr.msk.f32.mxu0 %vm16243_vm1, %v16242_v36 }
0x5c80   :  { %15463 = vmatprep.subr.mxu0 %v16242_v36 }
0x5d49   :  { %v10965_v31 = vpop.f32.mrb[120].mxu1 }
0x5d4a   :  { %v15442_v20 = vpop.f32.mrb[121].mxu1 }
0x5d4b   :  { %v14255_v20 = vld [vmem:[%s18128_s4 + $0x1] ss:$0 sm:$0xff] }
0x5d4d   :  { %v10892_v28 = vpop.f32.mrb[128].mxu0 }
0x5d4e   :  { %v10966_v16 = vadd.f32 %v10965_v31, %v10892_v28  ;;  %v15437_v21 = vpop.f32.mrb[129].mxu0 }
0x5d51   :  { %v11043_v30 = vpop.f32.mrb[130].mxu0 }
0x5d52   :  { %v11047_v17 = vmul.f32 0.35355338, %v11043_v30  ;;  %v15447_v14 = vpop.f32.mrb[131].mxu0 }
0x5d54   :  { %v11048_v12 = vadd.f32 %v11047_v17, %v17193_v58 }
0x5d56   :  { %v11049_v48 = vsel %vm366_vm2, %v11048_v12, -inf }
0x5d57   :  { %11050 = vmax.xlane.f32.xlu0 %v11049_v48 }
0x5d6d   :  { %11060 = vrot.lane.b32.xlu0 %v17586_v37, %s16254_s0 }
0x5d71   :  { %11210 = vrot.lane.b32.xlu0 %v17586_v37, %s16253_s16 }
0x5de4   :  { %v11051_v1 = vpop.xlane.xlu0 %11050 }
0x5de5   :  { %v11052_v33 = vsub.f32 %v11048_v12, %v11051_v1 }
0x5de7   :  { %v11053_v23 = vmul.f32 1.442695, %v11052_v33 }
0x5de8   :  { %v11061_v24 = vpop.permute.xlu0 %11060 }
0x5de9   :  { %16053 = vpow2.f32 %v11053_v23  ;;  %15449 = vmatpush3.msra.mxu1 %v11061_v24 }
0x5dea   :  { %15458 = vmatprep.subr.mxu1 %v16242_v36 }
0x5dec   :  { %v11211_v34 = vpop.permute.xlu0 %11210 }
0x5df3   :  { %v16054_v50 = vpop.eup %16053 }
0x5df4   :  { %v11055_v49 = vsel %vm366_vm2, %v16054_v50, 0.0 }
0x5df5   :  { %11056 = vadd.xlane.f32.xlu1 %v11055_v49  ;;  %v14235_v49 = vld [vmem:[%s18125_s24 + $0x1] ss:$0 sm:$0xff] }
0x5e06   :  { %11212 = vrot.lane.b32.xlu1 %v17586_v37, %s16252_s11 }
0x5e82   :  { %v11057_v26 = vpop.xlane.xlu1 %11056 }
0x5e83   :  { %16055 = vrcp.f32 %v11057_v26 }
0x5e86   :  { %v11213_v32 = vpop.permute.xlu1 %11212 }
0x5e8d   :  { %v16056_v27 = vpop.eup %16055 }
0x5e8e   :  { %v11059_v35 = vmul.f32 %v16056_v27, %v16054_v50  ;;  %v14236_v27 = vld [vmem:[%s18126_s6 + $0x1] ss:$0 sm:$0xff] }
0x5e90   :  { %15451 = vmatmul.mubr.msk.f32.vlgmr.msra.gmra.mrb[122].mxu1 %vm366_vm2, %v11059_v35 }
0x5e91   :  { %15459 = vmatpush3.xpose.msk.msra.mxu1 %vm366_vm2, %v11213_v32  ;;  %15460 = vmatprep.mubr.msk.f32.mxu1 %vm16243_vm1, %v16242_v36 }
0x5e92   :  { %15468 = vmatprep.subr.mxu1 %v16242_v36 }
0x5e94   :  { %15461 = vmatmul.mubr.msk.f32.vlgmr.msra.gmra.mrb[124].mxu1 %vm366_vm2, %v11211_v34 }
0x5e95   :  { %15469 = vmatpush3.msra.mxu1 %v17705_v22  ;;  %15470 = vmatprep.mubr.msk.f32.mxu1 %vm16243_vm1, %v16242_v36  ;;  %v17777_v22 = vadd.f32 %v11457_v38, %v17564_v18  ;;  %v14240_v38 = vld [vmem:[%s18127_s12 + $0x38] sm:$0xff] }
0x5e96   :  { %15774 = vmatprep.subr.bf16.mxu1 %v15773_v61 }
0x5e97   :  { %v11465_v43 = vsel %vm222_vm0, %v17777_v22, 0.0 }
0x5f63   :  { %v11132_v52 = vpop.f32.mrb[122].mxu1 }
0x5f64   :  { %v15452_v0 = vpop.f32.mrb[123].mxu1  ;;  %15456 = vmatmul.mubr.msk.f32.vlgmr.msra.gmra.mrb[132].mxu0 %vm366_vm2, %v11132_v52  ;;  %v14237_v52 = vld [vmem:[%s18127_s12 + $0x20] sm:$0xff] }
0x5f65   :  { %15465 = vmatprep.mubr.msk.f32.mxu0 %vm16243_vm1, %v16242_v36  ;;  %v14238_v0 = vld [vmem:[%s18127_s12 + $0x28] sm:$0xff] }
0x5f67   :  { %v11284_v7 = vpop.f32.mrb[124].mxu1 }
0x5f68   :  { %v11288_v59 = vmul.f32 0.35355338, %v11284_v7  ;;  %v15462_v40 = vpop.f32.mrb[125].mxu1  ;;  %v14239_v7 = vld [vmem:[%s18127_s12 + $0x30] sm:$0xff] }
0x5f6a   :  { %v11289_v42 = vadd.f32 %v11288_v59, %v17193_v58  ;;  %v15769_v59 = vpack.c.bf16 %v14240_v38, %v14239_v7 }
0x5f6c   :  { %v11290_v9 = vsel %vm366_vm2, %v11289_v42, -inf }
0x5f6d   :  { %11291 = vmax.xlane.f32.xlu1 %v11290_v9 }
0x5f71   :  { %11466 = vadd.xlane.f32.xlu1 %v11465_v43 }
0x5ffa   :  { %v11292_v44 = vpop.xlane.xlu1 %11291 }
0x5ffb   :  { %v11293_v45 = vsub.f32 %v11289_v42, %v11292_v44 }
0x5ffd   :  { %v11294_v46 = vmul.f32 1.442695, %v11293_v45 }
0x5ffe   :  { %v11467_v8 = vpop.xlane.xlu1 %11466 }
0x5fff   :  { %16057 = vpow2.f32 %v11294_v46  ;;  %v11471_v19 = vmul.f32 0.03125, %v11467_v8 }
0x6001   :  { %v11473_v29 = vsub.f32 %v17777_v22, %v11471_v19 }
0x6009   :  { %v16058_v53 = vpop.eup %16057 }
0x600a   :  { %v11296_v56 = vsel %vm366_vm2, %v16058_v53, 0.0 }
0x600b   :  { %11297 = vadd.xlane.f32.xlu0 %v11296_v56 }
0x6021   :  { %11301 = vrot.lane.b32.xlu0 %v17586_v37, %s18138_s21 }
0x6037   :  { %v11205_v58 = vpop.f32.mrb[132].mxu0 }
0x6038   :  { %v11209_v18 = vadd.f32 %v11205_v58, %v10966_v16  ;;  %v15457_v55 = vpop.f32.mrb[133].mxu0  ;;  %v11475_v16 = vmul.f32 %v11473_v29, %v11473_v29 }
0x603a   :  { %v11477_v17 = vsel %vm222_vm0, %v11475_v16, 0.0 }
0x6098   :  { %v11298_v4 = vpop.xlane.xlu0 %11297 }
0x6099   :  { %16059 = vrcp.f32 %v11298_v4 }
0x609c   :  { %v11302_v63 = vpop.permute.xlu0 %11301 }
0x609d   :  { %15464 = vmatpush3.msra.mxu0 %v11302_v63 }
0x60a3   :  { %v16060_v13 = vpop.eup %16059 }
0x60a4   :  { %v11300_v2 = vmul.f32 %v16060_v13, %v16058_v53  ;;  %v14252_v53 = vld [vmem:[%s18129_s18 + $0x1] ss:$0 sm:$0xff] }
0x60a6   :  { %15466 = vmatmul.mubr.msk.f32.vlgmr.msra.gmra.mrb[134].mxu0 %vm366_vm2, %v11300_v2 }
0x6179   :  { %v11373_v37 = vpop.f32.mrb[134].mxu0 }
0x617a   :  { %v15467_v41 = vpop.f32.mrb[135].mxu0  ;;  %15471 = vmatmul.mubr.msk.f32.vlgmr.msra.gmra.mrb[126].mxu1 %vm366_vm2, %v11373_v37 }
0x617b   :  { %15776 = vmatpush3.bf16.msra.mxu1 %v15773_v61  ;;  %15492 = vmatprep.mubr.msk.f32.mxu1 %vm222_vm0, %v17303_v39 }
0x617c   :  { %15778 = vmatprep.subr.bf16.mxu1 %v15777_v6 }
0x617f   :  { %15780 = vmatpush3.bf16.msra.mxu1 %v15777_v6 }
0x6180   :  { %15500 = vmatprep.subr.mxu1 %v16242_v36 }
0x6182   :  { %15493 = vmatmul.mubr.msk.f32.vlgmr.msra.gmra.mrb[128].mxu1 %vm222_vm0, %v17305_v47 }
0x6183   :  { %15502 = vmatprep.mubr.msk.f32.mxu1 %vm16243_vm1, %v16242_v36 }
0x624d   :  { %v11446_v60 = vpop.f32.mrb[126].mxu1 }
0x624e   :  { %v11450_v25 = vadd.f32 %v11446_v60, %v11209_v18  ;;  %v15472_v54 = vpop.f32.mrb[127].mxu1 }
0x6250   :  { %v11458_v31 = vadd.f32 %v14232_v62, %v11450_v25  ;;  %v15765_v62 = vpack.c.bf16 %v14238_v0, %v14237_v52 }
0x6252   :  { %v17800_v39 = vadd.f32 %v11458_v31, %v17561_v10  ;;  %15766 = vmatprep.subr.bf16.mxu0 %v15765_v62 }
0x6253   :  { %15768 = vmatpush3.bf16.msra.mxu0 %v15765_v62 }
0x6254   :  { %v11468_v28 = vsel %vm222_vm0, %v17800_v39, 0.0  ;;  %15770 = vmatprep.subr.bf16.mxu0 %v15769_v59 }
0x6255   :  { %v15494_v47 = vpop.f32.mrb[128].mxu1  ;;  %11469 = vadd.xlane.f32.xlu1 %v11468_v28 }
0x6256   :  { %v17805_v21 = vadd.f32 %v15494_v47, %v14255_v20  ;;  %v11687_v30 = vpop.f32.mrb[129].mxu1 }
0x6257   :  { %v17812_v32 = vadd.f32 %v14255_v20, %v11687_v30  ;;  %15772 = vmatpush3.bf16.msra.mxu0 %v15769_v59 }
0x6258   :  { %15495 = vmatprep.subr.mxu0 %v16242_v36 }
0x6259   :  { %11478 = vadd.xlane.f32.xlu1 %v11477_v17 }
0x62e2   :  { %v11470_v14 = vpop.xlane.xlu1 %11469 }
0x62e3   :  { %v11472_v12 = vmul.f32 0.03125, %v11470_v14 }
0x62e5   :  { %v11474_v10 = vsub.f32 %v17800_v39, %v11472_v12 }
0x62e6   :  { %v11479_v48 = vpop.xlane.xlu1 %11478 }
0x62e7   :  { %v11483_v1 = vmul.f32 0.03125, %v11479_v48  ;;  %v11476_v33 = vmul.f32 %v11474_v10, %v11474_v10 }
0x62e9   :  { %v11485_v23 = vadd.f32 1e-06, %v11483_v1  ;;  %v11480_v24 = vsel %vm222_vm0, %v11476_v33, 0.0  ;;  %v17867_v33 = vld [vmem:[%s18130_s30 + $0x20] sm:$0xff] }
0x62ea   :  { %11481 = vadd.xlane.f32.xlu1 %v11480_v24 }
0x62eb   :  { %16061 = vrsqrt.f32 %v11485_v23  ;;  %v17871_v23 = vld [vmem:[%s18130_s30 + $0x28] sm:$0xff] }
0x62f5   :  { %v16062_v50 = vpop.eup %16061 }
0x62f6   :  { %v11489_v26 = vmul.f32 %v16062_v50, %v11473_v29 }
0x62f8   :  { %v11497_v35 = vmul.f32 %v14235_v49, %v11489_v26 }
0x62fa   :  { %v11505_v34 = vadd.f32 %v14236_v27, %v11497_v35 }
0x62fb   :  { %11863 = vrot.lane.b32.xlu1 %v17812_v32, %s16246_s27 }
0x62fc   :  { %15481 = vmatprep.mubr.msk.f32.mxu0 %vm222_vm0, %v11505_v34 }
0x6377   :  { %v11482_v40 = vpop.xlane.xlu1 %11481 }
0x6378   :  { %v11484_v42 = vmul.f32 0.03125, %v11482_v40 }
0x637a   :  { %v11486_v9 = vadd.f32 1e-06, %v11484_v42 }
0x637b   :  { %v11864_v4 = vpop.permute.xlu1 %11863 }
0x637c   :  { %16063 = vrsqrt.f32 %v11486_v9 }
0x6386   :  { %v16064_v43 = vpop.eup %16063 }
0x6387   :  { %v11490_v44 = vmul.f32 %v16064_v43, %v11474_v10 }
0x6389   :  { %v11498_v45 = vmul.f32 %v14235_v49, %v11490_v44 }
0x638b   :  { %v11506_v46 = vadd.f32 %v14236_v27, %v11498_v45 }
0x638d   :  { %15482 = vmatmul.mubr.msk.f32.vlgmr.msra.gmra.mrb[136].mxu0 %vm222_vm0, %v11506_v46 }
0x638e   :  { %15496 = vmatpush3.xpose.msk.msra.mxu0 %vm366_vm2, %v17812_v32  ;;  %15497 = vmatprep.mubr.msk.f32.mxu0 %vm16243_vm1, %v16242_v36 }
0x638f   :  { %15505 = vmatprep.subr.mxu0 %v16242_v36 }
0x6460   :  { %v15483_v56 = vpop.f32.mrb[136].mxu0 }
0x6461   :  { %v17829_v58 = vadd.f32 %v15483_v56, %v14252_v53  ;;  %v11606_v18 = vpop.f32.mrb[137].mxu0 }
0x6462   :  { %v17831_v55 = vadd.f32 %v14252_v53, %v11606_v18 }
0x6464   :  { %11861 = vrot.lane.b32.xlu0 %v17831_v55, %s16246_s27  ;;  %15498 = vmatmul.mubr.msk.f32.vlgmr.msra.gmra.mrb[138].mxu0 %vm366_vm2, %v17831_v55 }
0x6465   :  { %15506 = vmatpush3.xpose.msk.msra.mxu0 %vm366_vm2, %v11864_v4  ;;  %15507 = vmatprep.mubr.msk.f32.mxu0 %vm16243_vm1, %v16242_v36 }
0x6466   :  { %15515 = vmatprep.subr.mxu0 %v16242_v36 }
0x64d6   :  { %v11862_v63 = vpop.permute.xlu0 %11861 }
0x64d7   :  { %15508 = vmatmul.mubr.msk.f32.vlgmr.msra.gmra.mrb[140].mxu0 %vm366_vm2, %v11862_v63 }
0x64d8   :  { %15517 = vmatprep.mubr.msk.f32.mxu0 %vm16243_vm1, %v16242_v36  ;;  %15516 = vmatpush3.msra.mxu0 %v17871_v23 }
0x64d9   :  { %15525 = vmatprep.subr.mxu0 %v16242_v36 }
0x6537   :  { %v11768_v13 = vpop.f32.mrb[138].mxu0 }
0x6538   :  { %v11772_v2 = vmul.f32 0.35355338, %v11768_v13  ;;  %v15499_v57 = vpop.f32.mrb[139].mxu0 }
0x653a   :  { %v11773_v3 = vadd.f32 %v11772_v2, %v16532_v51  ;;  %v17906_v2 = vld [vmem:[%s18130_s30 + $0x30] sm:$0xff] }
0x653c   :  { %v11774_v61 = vsel %vm366_vm2, %v11773_v3, -inf }
0x653d   :  { %11775 = vmax.xlane.f32.xlu0 %v11774_v61 }
0x65aa   :  { %v11935_v15 = vpop.f32.mrb[140].mxu0 }
0x65ab   :  { %v11939_v5 = vmul.f32 0.35355338, %v11935_v15  ;;  %v15509_v6 = vpop.f32.mrb[141].mxu0 }
0x65ad   :  { %v11940_v37 = vadd.f32 %v11939_v5, %v16532_v51 }
0x65af   :  { %v11941_v41 = vsel %vm366_vm2, %v11940_v37, -inf }
0x65b0   :  { %11942 = vmax.xlane.f32.xlu1 %v11941_v41 }
0x65c1   :  { %11952 = vrot.lane.b32.xlu1 %v17812_v32, %s16244_s5 }
0x65c5   :  { %12174 = vrot.lane.b32.xlu1 %v17831_v55, %s16250_s10 }
0x65ca   :  { %v11776_v8 = vpop.xlane.xlu0 %11775 }
0x65cb   :  { %v11777_v19 = vsub.f32 %v11773_v3, %v11776_v8 }
0x65cd   :  { %v11778_v60 = vmul.f32 1.442695, %v11777_v19 }
0x65cf   :  { %16065 = vpow2.f32 %v11778_v60 }
0x65d9   :  { %v16066_v25 = vpop.eup %16065 }
0x65da   :  { %v11780_v54 = vsel %vm366_vm2, %v16066_v25, 0.0 }
0x65db   :  { %11781 = vadd.xlane.f32.xlu0 %v11780_v54 }
0x663d   :  { %v11943_v29 = vpop.xlane.xlu1 %11942 }
0x663e   :  { %v11944_v31 = vsub.f32 %v11940_v37, %v11943_v29 }
0x6640   :  { %v11945_v20 = vmul.f32 1.442695, %v11944_v31 }
0x6641   :  { %v11953_v10 = vpop.permute.xlu1 %11952 }
0x6642   :  { %16067 = vpow2.f32 %v11945_v20 }
0x6645   :  { %v12175_v35 = vpop.permute.xlu1 %12174 }
0x664c   :  { %v16068_v28 = vpop.eup %16067 }
0x664d   :  { %v11947_v16 = vsel %vm366_vm2, %v16068_v28, 0.0 }
0x664e   :  { %11948 = vadd.xlane.f32.xlu0 %v11947_v16 }
0x6664   :  { %11785 = vrot.lane.b32.xlu0 %v17812_v32, %s16245_s20 }
0x6668   :  { %12176 = vrot.lane.b32.xlu0 %v17812_v32, %s16250_s10  ;;  %v11782_v47 = vpop.xlane.xlu0 %11781 }
0x6669   :  { %16069 = vrcp.f32 %v11782_v47 }
0x6673   :  { %v16070_v17 = vpop.eup %16069 }
0x6674   :  { %v11784_v14 = vmul.f32 %v16070_v17, %v16066_v25 }
0x66db   :  { %v11949_v30 = vpop.xlane.xlu0 %11948 }
0x66dc   :  { %16071 = vrcp.f32 %v11949_v30  ;;  %v17943_v30 = vld [vmem:[%s18130_s30 + $0x38] sm:$0xff] }
0x66df   :  { %v11786_v12 = vpop.permute.xlu0 %11785 }
0x66e0   :  { %15501 = vmatpush3.msra.mxu1 %v11786_v12 }
0x66e1   :  { %15503 = vmatmul.mubr.msk.f32.vlgmr.msra.gmra.mrb[130].mxu1 %vm366_vm2, %v11784_v14  ;;  %15510 = vmatprep.subr.mxu1 %v16242_v36 }
0x66e2   :  { %15511 = vmatpush3.msra.mxu1 %v11953_v10  ;;  %15512 = vmatprep.mubr.msk.f32.mxu1 %vm16243_vm1, %v16242_v36 }
0x66e3   :  { %15520 = vmatprep.subr.mxu1 %v16242_v36  ;;  %v12177_v26 = vpop.permute.xlu0 %12176 }
0x66e6   :  { %v16072_v48 = vpop.eup %16071 }
0x66e7   :  { %v11951_v1 = vmul.f32 %v16072_v48, %v16068_v28 }
0x66e9   :  { %15513 = vmatmul.mubr.msk.f32.vlgmr.msra.gmra.mrb[132].mxu1 %vm366_vm2, %v11951_v1 }
0x66ea   :  { %15522 = vmatprep.mubr.msk.f32.mxu1 %vm16243_vm1, %v16242_v36  ;;  %15521 = vmatpush3.msra.mxu1 %v17867_v33 }
0x66eb   :  { %15530 = vmatprep.subr.mxu1 %v16242_v36 }
0x67b4   :  { %v11857_v24 = vpop.f32.mrb[130].mxu1 }
0x67b5   :  { %v15504_v50 = vpop.f32.mrb[131].mxu1  ;;  %15523 = vmatmul.mubr.msk.f32.vlgmr.msra.gmra.mrb[134].mxu1 %vm366_vm2, %v11857_v24 }
0x67b6   :  { %15532 = vmatprep.mubr.msk.f32.mxu1 %vm16243_vm1, %v16242_v36 }
0x67bc   :  { %v12024_v49 = vpop.f32.mrb[132].mxu1 }
0x67bd   :  { %v15514_v27 = vpop.f32.mrb[133].mxu1  ;;  %15518 = vmatmul.mubr.msk.f32.vlgmr.msra.gmra.mrb[142].mxu0 %vm366_vm2, %v12024_v49 }
0x67be   :  { %15526 = vmatpush3.xpose.msk.msra.mxu0 %vm366_vm2, %v12177_v26  ;;  %15527 = vmatprep.mubr.msk.f32.mxu0 %vm16243_vm1, %v16242_v36 }
0x67bf   :  { %15535 = vmatprep.subr.mxu0 %v16242_v36 }
0x67c1   :  { %15528 = vmatmul.mubr.msk.f32.vlgmr.msra.gmra.mrb[144].mxu0 %vm366_vm2, %v12175_v35 }
0x67c2   :  { %15537 = vmatprep.mubr.msk.f32.mxu0 %vm16243_vm1, %v16242_v36  ;;  %15536 = vmatpush3.msra.mxu0 %v17906_v2 }
0x67c3   :  { %15545 = vmatprep.subr.mxu0 %v16242_v36 }
0x6888   :  { %v12170_v34 = vpop.f32.mrb[134].mxu1 }
0x6889   :  { %v15524_v52 = vpop.f32.mrb[135].mxu1 }
0x6890   :  { %v12097_v0 = vpop.f32.mrb[142].mxu0 }
0x6891   :  { %v12171_v62 = vadd.f32 %v12170_v34, %v12097_v0  ;;  %v15519_v7 = vpop.f32.mrb[143].mxu0 }
0x6894   :  { %v12248_v38 = vpop.f32.mrb[144].mxu0 }
0x6895   :  { %v12252_v59 = vmul.f32 0.35355338, %v12248_v38  ;;  %v15529_v40 = vpop.f32.mrb[145].mxu0 }
0x6897   :  { %v12253_v42 = vadd.f32 %v12252_v59, %v16532_v51 }
0x6899   :  { %v12254_v9 = vsel %vm366_vm2, %v12253_v42, -inf }
0x689a   :  { %12255 = vmax.xlane.f32.xlu0 %v12254_v9 }
0x68b0   :  { %12265 = vrot.lane.b32.xlu0 %v17812_v32, %s16249_s2 }
0x68b4   :  { %12415 = vrot.lane.b32.xlu0 %v17831_v55, %s16253_s16 }
0x6927   :  { %v12256_v43 = vpop.xlane.xlu0 %12255 }
0x6928   :  { %v12257_v44 = vsub.f32 %v12253_v42, %v12256_v43 }
0x692a   :  { %v12258_v45 = vmul.f32 1.442695, %v12257_v44 }
0x692b   :  { %v12266_v46 = vpop.permute.xlu0 %12265 }
0x692c   :  { %16073 = vpow2.f32 %v12258_v45  ;;  %15531 = vmatpush3.msra.mxu1 %v12266_v46 }
0x692d   :  { %15540 = vmatprep.subr.mxu1 %v16242_v36 }
0x692f   :  { %v12416_v13 = vpop.permute.xlu0 %12415 }
0x6936   :  { %v16074_v53 = vpop.eup %16073 }
0x6937   :  { %v12260_v56 = vsel %vm366_vm2, %v16074_v53, 0.0 }
0x6938   :  { %12261 = vadd.xlane.f32.xlu1 %v12260_v56 }
0x6949   :  { %12417 = vrot.lane.b32.xlu1 %v17812_v32, %s16253_s16 }
0x69c5   :  { %v12262_v18 = vpop.xlane.xlu1 %12261 }
0x69c6   :  { %16075 = vrcp.f32 %v12262_v18 }
0x69c9   :  { %v12418_v63 = vpop.permute.xlu1 %12417 }
0x69d0   :  { %v16076_v4 = vpop.eup %16075 }
0x69d1   :  { %v12264_v55 = vmul.f32 %v16076_v4, %v16074_v53 }
0x69d3   :  { %15533 = vmatmul.mubr.msk.f32.vlgmr.msra.gmra.mrb[136].mxu1 %vm366_vm2, %v12264_v55 }
0x69d4   :  { %15541 = vmatpush3.xpose.msk.msra.mxu1 %vm366_vm2, %v12418_v63  ;;  %15542 = vmatprep.mubr.msk.f32.mxu1 %vm16243_vm1, %v16242_v36 }
0x69d5   :  { %15550 = vmatprep.subr.mxu1 %v16242_v36 }
0x69d7   :  { %15543 = vmatmul.mubr.msk.f32.vlgmr.msra.gmra.mrb[138].mxu1 %vm366_vm2, %v12416_v13 }
0x69d8   :  { %15552 = vmatprep.mubr.msk.f32.mxu1 %vm16243_vm1, %v16242_v36  ;;  %15551 = vmatpush3.msra.mxu1 %v17943_v30 }
0x69d9   :  { %15560 = vmatprep.subr.mxu1 %v16242_v36 }
0x6aa6   :  { %v12337_v57 = vpop.f32.mrb[136].mxu1 }
0x6aa7   :  { %v15534_v3 = vpop.f32.mrb[137].mxu1  ;;  %15538 = vmatmul.mubr.msk.f32.vlgmr.msra.gmra.mrb[146].mxu0 %vm366_vm2, %v12337_v57 }
0x6aa8   :  { %15547 = vmatprep.mubr.msk.f32.mxu0 %vm16243_vm1, %v16242_v36 }
0x6aaa   :  { %v12489_v61 = vpop.f32.mrb[138].mxu1 }
0x6aab   :  { %v12493_v15 = vmul.f32 0.35355338, %v12489_v61  ;;  %v15544_v5 = vpop.f32.mrb[139].mxu1 }
0x6aad   :  { %v12494_v6 = vadd.f32 %v12493_v15, %v16532_v51 }
0x6aaf   :  { %v12495_v37 = vsel %vm366_vm2, %v12494_v6, -inf }
0x6ab0   :  { %12496 = vmax.xlane.f32.xlu1 %v12495_v37 }
0x6ac1   :  { %12823 = vrot.lane.b32.xlu1 %v17805_v21, %s16246_s27 }
0x6ac5   :  { %12821 = vrot.lane.b32.xlu1 %v17829_v58, %s16246_s27 }
0x6b3d   :  { %v12497_v41 = vpop.xlane.xlu1 %12496 }
0x6b3e   :  { %v12498_v8 = vsub.f32 %v12494_v6, %v12497_v41 }
0x6b40   :  { %v12499_v19 = vmul.f32 1.442695, %v12498_v8 }
0x6b41   :  { %v12824_v47 = vpop.permute.xlu1 %12823 }
0x6b42   :  { %16077 = vpow2.f32 %v12499_v19 }
0x6b4c   :  { %v16078_v60 = vpop.eup %16077 }
0x6b4d   :  { %v12501_v25 = vsel %vm366_vm2, %v16078_v60, 0.0 }
0x6b4e   :  { %12502 = vadd.xlane.f32.xlu0 %v12501_v25 }
0x6b64   :  { %12506 = vrot.lane.b32.xlu0 %v17812_v32, %s16252_s11  ;;  %v12822_v32 = vpop.permute.xlu1 %12821 }
0x6b7a   :  { %v12410_v51 = vpop.f32.mrb[146].mxu0 }
0x6b7b   :  { %v17922_v54 = vadd.f32 %v12410_v51, %v12171_v62  ;;  %v15539_v29 = vpop.f32.mrb[147].mxu0 }
0x6bdb   :  { %v12503_v31 = vpop.xlane.xlu0 %12502 }
0x6bdc   :  { %16079 = vrcp.f32 %v12503_v31 }
0x6bdf   :  { %v12507_v20 = vpop.permute.xlu0 %12506 }
0x6be0   :  { %15546 = vmatpush3.msra.mxu0 %v12507_v20 }
0x6be1   :  { %15555 = vmatprep.subr.mxu0 %v16242_v36 }
0x6be6   :  { %v16080_v28 = vpop.eup %16079 }
0x6be7   :  { %v12505_v16 = vmul.f32 %v16080_v28, %v16078_v60 }
0x6be9   :  { %15548 = vmatmul.mubr.msk.f32.vlgmr.msra.gmra.mrb[148].mxu0 %vm366_vm2, %v12505_v16 }
0x6bea   :  { %15556 = vmatpush3.xpose.msk.msra.mxu0 %vm366_vm2, %v17805_v21  ;;  %15557 = vmatprep.mubr.msk.f32.mxu0 %vm16243_vm1, %v16242_v36 }
0x6beb   :  { %15565 = vmatprep.subr.mxu0 %v16242_v36 }
0x6bed   :  { %15558 = vmatmul.mubr.msk.f32.vlgmr.msra.gmra.mrb[150].mxu0 %vm366_vm2, %v17829_v58 }
0x6bee   :  { %15566 = vmatpush3.xpose.msk.msra.mxu0 %vm366_vm2, %v12824_v47  ;;  %15567 = vmatprep.mubr.msk.f32.mxu0 %vm16243_vm1, %v16242_v36 }
0x6bef   :  { %15575 = vmatprep.subr.mxu0 %v16242_v36 }
0x6bf1   :  { %15568 = vmatmul.mubr.msk.f32.vlgmr.msra.gmra.mrb[152].mxu0 %vm366_vm2, %v12822_v32 }
0x6bf2   :  { %15576 = vmatpush3.msra.mxu0 %v17871_v23  ;;  %15577 = vmatprep.mubr.msk.f32.mxu0 %vm16243_vm1, %v16242_v36 }
0x6bf3   :  { %15585 = vmatprep.subr.mxu0 %v16242_v36 }
0x6cbc   :  { %v12578_v17 = vpop.f32.mrb[148].mxu0 }
0x6cbd   :  { %v15549_v14 = vpop.f32.mrb[149].mxu0  ;;  %15553 = vmatmul.mubr.msk.f32.vlgmr.msra.gmra.mrb[140].mxu1 %vm366_vm2, %v12578_v17 }
0x6cbe   :  { %15562 = vmatprep.mubr.msk.f32.mxu1 %vm16243_vm1, %v16242_v36 }
0x6cc0   :  { %v12728_v12 = vpop.f32.mrb[150].mxu0 }
0x6cc1   :  { %v12732_v10 = vmul.f32 0.35355338, %v12728_v12  ;;  %v15559_v48 = vpop.f32.mrb[151].mxu0 }
0x6cc2   :  { %v14290_v48 = vld [vmem:[%s18131_s23 + $0x1] ss:$0 sm:$0xff] }
0x6cc3   :  { %v12733_v1 = vadd.f32 %v12732_v10, %v16648_v11 }
0x6cc4   :  { %v12895_v23 = vpop.f32.mrb[152].mxu0 }
0x6cc5   :  { %v12899_v24 = vmul.f32 0.35355338, %v12895_v23  ;;  %v15569_v50 = vpop.f32.mrb[153].mxu0  ;;  %v12734_v49 = vsel %vm366_vm2, %v12733_v1, -inf }
0x6cc6   :  { %12735 = vmax.xlane.f32.xlu0 %v12734_v49 }
0x6cc7   :  { %v12900_v26 = vadd.f32 %v12899_v24, %v16648_v11 }
0x6cc9   :  { %v12901_v27 = vsel %vm366_vm2, %v12900_v26, -inf }
0x6cca   :  { %12902 = vmax.xlane.f32.xlu1 %v12901_v27 }
0x6cdb   :  { %12745 = vrot.lane.b32.xlu1 %v17805_v21, %s16245_s20  ;;  %s16256_s20 = smov [#allocation8]  }
0x6cdc   :  { %s13919_s27 = sshll.u32 %s16256_s20, 4  ;;  %s13920_s27 = int_to_ptr.vmem [resolvable:$true] %s13919_s27 }
0x6cdd   :  { %s16171_s1 = scalar_lea.vmem %s13920_s27, 256  ;;  %p16176_p11 = scmp.lt.s32.totalorder %s13920_s27, %s13920_s27 }
0x6cde   :  { %p16172_p10 = scmp.ne.s32.totalorder %s13920_s27, %s16171_s1  ;;  %p16177_p12 = scmp.lt.s32.totalorder %s16171_s1, %s16171_s1 }
0x6cdf   :  { %13136 = vrot.lane.b32.xlu1 %v17805_v21, %s16250_s10 }
0x6ce0   :  { %p16178_p13 = por %p16177_p12, %p16176_p11 }
0x6ce2   :  { %p16179_p0 = pnand %p16178_p13, %p16172_p10 }
0x6ce3   :  { %13134 = vrot.lane.b32.xlu1 %v17829_v58, %s16250_s10 }
0x6d53   :  { %v12736_v35 = vpop.xlane.xlu0 %12735 }
0x6d54   :  { %v12737_v34 = vsub.f32 %v12733_v1, %v12736_v35 }
0x6d56   :  { %v12738_v52 = vmul.f32 1.442695, %v12737_v34 }
0x6d57   :  { %v12903_v0 = vpop.xlane.xlu1 %12902 }
0x6d58   :  { %16081 = vpow2.f32 %v12738_v52  ;;  %v12904_v62 = vsub.f32 %v12900_v26, %v12903_v0 }
0x6d5a   :  { %v12905_v7 = vmul.f32 1.442695, %v12904_v62 }
0x6d5b   :  { %v12746_v38 = vpop.permute.xlu1 %12745 }
0x6d5c   :  { %16083 = vpow2.f32 %v12905_v7  ;;  %15561 = vmatpush3.msra.mxu1 %v12746_v38 }
0x6d5d   :  { %15570 = vmatprep.subr.mxu1 %v16242_v36 }
0x6d5f   :  { %v13137_v3 = vpop.permute.xlu1 %13136 }
0x6d62   :  { %v16082_v59 = vpop.eup %16081 }
0x6d63   :  { %v12740_v40 = vsel %vm366_vm2, %v16082_v59, 0.0 }
0x6d64   :  { %12741 = vadd.xlane.f32.xlu0 %v12740_v40 }
0x6d66   :  { %v16084_v42 = vpop.eup %16083 }
0x6d67   :  { %v12907_v9 = vsel %vm366_vm2, %v16084_v42, 0.0 }
0x6d68   :  { %12908 = vadd.xlane.f32.xlu0 %v12907_v9 }
0x6d7e   :  { %12912 = vrot.lane.b32.xlu0 %v17805_v21, %s16244_s5  ;;  %s18139_s5 = sld [smem:[#allocation34_spill]] }
0x6d90   :  { %v12651_v43 = vpop.f32.mrb[140].mxu1 }
0x6d91   :  { %v17966_v44 = vadd.f32 %v12651_v43, %v17922_v54  ;;  %v15554_v45 = vpop.f32.mrb[141].mxu1 }
0x6d93   :  { %v13622_v23 = vadd.f32 %v14290_v48, %v17966_v44 }
0x6df1   :  { %v12742_v46 = vpop.xlane.xlu0 %12741 }
0x6df2   :  { %16085 = vrcp.f32 %v12742_v46 }
0x6df5   :  { %v12909_v53 = vpop.xlane.xlu0 %12908 }
0x6df6   :  { %16087 = vrcp.f32 %v12909_v53 }
0x6df9   :  { %v12913_v4 = vpop.permute.xlu0 %12912 }
0x6dfc   :  { %v16086_v56 = vpop.eup %16085 }
0x6dfd   :  { %v12744_v18 = vmul.f32 %v16086_v56, %v16082_v59 }
0x6dff   :  { %15563 = vmatmul.mubr.msk.f32.vlgmr.msra.gmra.mrb[142].mxu1 %vm366_vm2, %v12744_v18 }
0x6e00   :  { %v16088_v55 = vpop.eup %16087  ;;  %15571 = vmatpush3.msra.mxu1 %v12913_v4  ;;  %15572 = vmatprep.mubr.msk.f32.mxu1 %vm16243_vm1, %v16242_v36 }
0x6e01   :  { %v12911_v63 = vmul.f32 %v16088_v55, %v16084_v42  ;;  %15580 = vmatprep.subr.mxu1 %v16242_v36 }
0x6e03   :  { %15573 = vmatmul.mubr.msk.f32.vlgmr.msra.gmra.mrb[144].mxu1 %vm366_vm2, %v12911_v63 }
0x6e04   :  { %15581 = vmatpush3.msra.mxu1 %v17867_v33  ;;  %15582 = vmatprep.mubr.msk.f32.mxu1 %vm16243_vm1, %v16242_v36  ;;  %v13135_v33 = vpop.permute.xlu1 %13134 }
0x6e05   :  { %15590 = vmatprep.subr.mxu1 %v16242_v36 }
0x6ed2   :  { %v12817_v13 = vpop.f32.mrb[142].mxu1 }
0x6ed3   :  { %v15564_v57 = vpop.f32.mrb[143].mxu1  ;;  %15583 = vmatmul.mubr.msk.f32.vlgmr.msra.gmra.mrb[146].mxu1 %vm366_vm2, %v12817_v13 }
0x6ed4   :  { %15592 = vmatprep.mubr.msk.f32.mxu1 %vm16243_vm1, %v16242_v36 }
0x6ed6   :  { %v12984_v61 = vpop.f32.mrb[144].mxu1 }
0x6ed7   :  { %v15574_v15 = vpop.f32.mrb[145].mxu1  ;;  %15578 = vmatmul.mubr.msk.f32.vlgmr.msra.gmra.mrb[154].mxu0 %vm366_vm2, %v12984_v61 }
0x6ed8   :  { %15586 = vmatpush3.xpose.msk.msra.mxu0 %vm366_vm2, %v13137_v3  ;;  %15587 = vmatprep.mubr.msk.f32.mxu0 %vm16243_vm1, %v16242_v36 }
0x6ed9   :  { %15595 = vmatprep.subr.mxu0 %v16242_v36 }
0x6edb   :  { %15588 = vmatmul.mubr.msk.f32.vlgmr.msra.gmra.mrb[156].mxu0 %vm366_vm2, %v13135_v33 }
0x6edc   :  { %15596 = vmatpush3.msra.mxu0 %v17906_v2  ;;  %15597 = vmatprep.mubr.msk.f32.mxu0 %vm16243_vm1, %v16242_v36 }
0x6edd   :  { %15605 = vmatprep.subr.mxu0 %v16242_v36 }
0x6fa6   :  { %v13130_v5 = vpop.f32.mrb[146].mxu1 }
0x6fa7   :  { %v15584_v6 = vpop.f32.mrb[147].mxu1 }
0x6faa   :  { %v13057_v37 = vpop.f32.mrb[154].mxu0 }
0x6fab   :  { %v13131_v41 = vadd.f32 %v13130_v5, %v13057_v37  ;;  %v15579_v8 = vpop.f32.mrb[155].mxu0  ;;  %v14293_v37 = vld [vmem:[%s18132_s22 + $0x1] ss:$0 sm:$0xff] }
0x6fac   :  { %v14294_v8 = vld [vmem:[%s18133_s26 + $0x1] ss:$0 sm:$0xff] }
0x6fae   :  { %v13208_v19 = vpop.f32.mrb[156].mxu0 }
0x6faf   :  { %v13212_v60 = vmul.f32 0.35355338, %v13208_v19  ;;  %v15589_v25 = vpop.f32.mrb[157].mxu0 }
0x6fb0   :  { %v14295_v25 = vld [vmem:[%s18134_s28 + $0x20] sm:$0xff] }
0x6fb1   :  { %v13213_v51 = vadd.f32 %v13212_v60, %v16648_v11 }
0x6fb3   :  { %v13214_v54 = vsel %vm366_vm2, %v13213_v51, -inf }
0x6fb4   :  { %13215 = vmax.xlane.f32.xlu0 %v13214_v54 }
0x6fca   :  { %13225 = vrot.lane.b32.xlu0 %v17805_v21, %s16249_s2 }
0x6fce   :  { %13375 = vrot.lane.b32.xlu0 %v17829_v58, %s16253_s16 }
0x7041   :  { %v13216_v2 = vpop.xlane.xlu0 %13215 }
0x7042   :  { %v13217_v29 = vsub.f32 %v13213_v51, %v13216_v2  ;;  %v14296_v51 = vld [vmem:[%s18134_s28 + $0x28] sm:$0xff]  ;;  %v14297_v2 = vld [vmem:[%s18134_s28 + $0x30] sm:$0xff] }
0x7043   :  { %v15781_v54 = vpack.c.bf16 %v14296_v51, %v14295_v25 }
0x7044   :  { %v13218_v31 = vmul.f32 1.442695, %v13217_v29  ;;  %v14298_v29 = vld [vmem:[%s18134_s28 + $0x38] sm:$0xff] }
0x7045   :  { %v13226_v20 = vpop.permute.xlu0 %13225 }
0x7046   :  { %16089 = vpow2.f32 %v13218_v31  ;;  %15591 = vmatpush3.msra.mxu1 %v13226_v20  ;;  %v15785_v31 = vpack.c.bf16 %v14298_v29, %v14297_v2  ;;  %v14300_v20 = vld [vmem:[%s18135_s13 + $0x40] sm:$0xff] }
0x7047   :  { %15600 = vmatprep.subr.mxu1 %v16242_v36 }
0x7049   :  { %v13376_v14 = vpop.permute.xlu0 %13375 }
0x7050   :  { %v16090_v28 = vpop.eup %16089 }
0x7051   :  { %v13220_v16 = vsel %vm366_vm2, %v16090_v28, 0.0 }
0x7052   :  { %13221 = vadd.xlane.f32.xlu1 %v13220_v16  ;;  %v14302_v16 = vld [vmem:[%s18135_s13 + $0x50] sm:$0xff] }
0x7063   :  { %13377 = vrot.lane.b32.xlu1 %v17805_v21, %s16253_s16 }
0x70df   :  { %v13222_v47 = vpop.xlane.xlu1 %13221 }
0x70e0   :  { %16091 = vrcp.f32 %v13222_v47 }
0x70e3   :  { %v13378_v17 = vpop.permute.xlu1 %13377 }
0x70ea   :  { %v16092_v32 = vpop.eup %16091 }
0x70eb   :  { %v13224_v58 = vmul.f32 %v16092_v32, %v16090_v28  ;;  %v14301_v28 = vld [vmem:[%s18135_s13 + $0x48] sm:$0xff]  ;;  %v14303_v32 = vld [vmem:[%s18135_s13 + $0x58] sm:$0xff] }
0x70ec   :  { %v15789_v47 = vpack.c.bf16 %v14301_v28, %v14300_v20 }
0x70ed   :  { %15593 = vmatmul.mubr.msk.f32.vlgmr.msra.gmra.mrb[148].mxu1 %vm366_vm2, %v13224_v58  ;;  %v15793_v58 = vpack.c.bf16 %v14303_v32, %v14302_v16 }
0x70ee   :  { %15601 = vmatpush3.xpose.msk.msra.mxu1 %vm366_vm2, %v13378_v17  ;;  %15602 = vmatprep.mubr.msk.f32.mxu1 %vm16243_vm1, %v16242_v36  ;;  %v14304_v17 = vld [vmem:[%s18135_s13 + $0x60] sm:$0xff] }
0x70ef   :  { %15610 = vmatprep.subr.mxu1 %v16242_v36 }
0x70f1   :  { %15603 = vmatmul.mubr.msk.f32.vlgmr.msra.gmra.mrb[150].mxu1 %vm366_vm2, %v13376_v14  ;;  %v14305_v14 = vld [vmem:[%s18135_s13 + $0x68] sm:$0xff] }
0x70f2   :  { %15611 = vmatpush3.msra.mxu1 %v17943_v30  ;;  %15612 = vmatprep.mubr.msk.f32.mxu1 %vm16243_vm1, %v16242_v36  ;;  %v18016_v30 = vadd.f32 %v13622_v23, %v17777_v22 }
0x70f3   :  { %15790 = vmatprep.subr.bf16.mxu1 %v15789_v47 }
0x70f4   :  { %v13630_v27 = vsel %vm222_vm0, %v18016_v30, 0.0 }
0x71c0   :  { %v13297_v12 = vpop.f32.mrb[148].mxu1 }
0x71c1   :  { %v15594_v10 = vpop.f32.mrb[149].mxu1  ;;  %15598 = vmatmul.mubr.msk.f32.vlgmr.msra.gmra.mrb[158].mxu0 %vm366_vm2, %v13297_v12  ;;  %v15797_v12 = vpack.c.bf16 %v14305_v14, %v14304_v17 }
0x71c2   :  { %15607 = vmatprep.mubr.msk.f32.mxu0 %vm16243_vm1, %v16242_v36 }
0x71c4   :  { %v13449_v1 = vpop.f32.mrb[150].mxu1 }
0x71c5   :  { %v13453_v24 = vmul.f32 0.35355338, %v13449_v1  ;;  %v15604_v50 = vpop.f32.mrb[151].mxu1 }
0x71c7   :  { %v13454_v49 = vadd.f32 %v13453_v24, %v16648_v11 }
0x71c9   :  { %v13455_v26 = vsel %vm366_vm2, %v13454_v49, -inf }
0x71ca   :  { %13456 = vmax.xlane.f32.xlu1 %v13455_v26  ;;  %v14306_v26 = vld [vmem:[%s18135_s13 + $0x70] sm:$0xff] }
0x71ce   :  { %13631 = vadd.xlane.f32.xlu1 %v13630_v27  ;;  %v14307_v27 = vld [vmem:[%s18135_s13 + $0x78] sm:$0xff] }
0x7257   :  { %v13457_v35 = vpop.xlane.xlu1 %13456 }
0x7258   :  { %v13458_v34 = vsub.f32 %v13454_v49, %v13457_v35  ;;  %v15801_v35 = vpack.c.bf16 %v14307_v27, %v14306_v26 }
0x725a   :  { %v13459_v36 = vmul.f32 1.442695, %v13458_v34  ;;  %v14309_v34 = vld [vmem:[%s18136_s17 + $0x1] ss:$0 sm:$0xff] }
0x725b   :  { %v13632_v43 = vpop.xlane.xlu1 %13631 }
0x725c   :  { %16093 = vpow2.f32 %v13459_v36  ;;  %v13636_v44 = vmul.f32 0.03125, %v13632_v43 }
0x725e   :  { %v13638_v53 = vsub.f32 %v18016_v30, %v13636_v44 }
0x7260   :  { %v13640_v55 = vmul.f32 %v13638_v53, %v13638_v53 }
0x7262   :  { %v13642_v63 = vsel %vm222_vm0, %v13640_v55, 0.0 }
0x7266   :  { %v16094_v52 = vpop.eup %16093 }
0x7267   :  { %v13461_v0 = vsel %vm366_vm2, %v16094_v52, 0.0 }
0x7268   :  { %13462 = vadd.xlane.f32.xlu0 %v13461_v0 }
0x727e   :  { %13466 = vrot.lane.b32.xlu0 %v17805_v21, %s16252_s11 }
0x7294   :  { %v13370_v11 = vpop.f32.mrb[158].mxu0 }
0x7295   :  { %v13374_v22 = vadd.f32 %v13370_v11, %v13131_v41  ;;  %v15599_v62 = vpop.f32.mrb[159].mxu0 }
0x72f5   :  { %v13463_v7 = vpop.xlane.xlu0 %13462 }
0x72f6   :  { %16095 = vrcp.f32 %v13463_v7  ;;  %v14312_v7 = vld [vmem:[%s18137_s15 + $0x1] ss:$0 sm:$0xff] }
0x72f9   :  { %v13467_v38 = vpop.permute.xlu0 %13466 }
0x72fa   :  { %15606 = vmatpush3.msra.mxu0 %v13467_v38 }
0x72fb   :  { %15782 = vmatprep.subr.bf16.mxu0 %v15781_v54 }
0x7300   :  { %v16096_v59 = vpop.eup %16095 }
0x7301   :  { %v13465_v40 = vmul.f32 %v16096_v59, %v16094_v52 }
0x7303   :  { %15608 = vmatmul.mubr.msk.f32.vlgmr.msra.gmra.mrb[160].mxu0 %vm366_vm2, %v13465_v40 }
0x7304   :  { %15784 = vmatpush3.bf16.msra.mxu0 %v15781_v54 }
0x7305   :  { %15786 = vmatprep.subr.bf16.mxu0 %v15785_v31 }
0x7308   :  { %15788 = vmatpush3.bf16.msra.mxu0 %v15785_v31 }
0x73d6   :  { %v13538_v42 = vpop.f32.mrb[160].mxu0 }
0x73d7   :  { %v15609_v9 = vpop.f32.mrb[161].mxu0  ;;  %15613 = vmatmul.mubr.msk.f32.vlgmr.msra.gmra.mrb[152].mxu1 %vm366_vm2, %v13538_v42 }
0x73d8   :  { %15792 = vmatpush3.bf16.msra.mxu1 %v15789_v47 }
0x73d9   :  { %15794 = vmatprep.subr.bf16.mxu1 %v15793_v58 }
0x73dc   :  { %15796 = vmatpush3.bf16.msra.mxu1 %v15793_v58 }
0x73dd   :  { %15798 = vmatprep.subr.bf16.mxu1 %v15797_v12 }
0x73e0   :  { %15800 = vmatpush3.bf16.msra.mxu1 %v15797_v12 }
0x73e1   :  { %15802 = vmatprep.subr.bf16.mxu1 %v15801_v35 }
0x73e4   :  { %15804 = vmatpush3.bf16.msra.mxu1 %v15801_v35 }
0x74aa   :  { %v13611_v45 = vpop.f32.mrb[152].mxu1 }
0x74ab   :  { %v13615_v46 = vadd.f32 %v13611_v45, %v13374_v22  ;;  %v15614_v21 = vpop.f32.mrb[153].mxu1 }
0x74ad   :  { %v13623_v56 = vadd.f32 %v14290_v48, %v13615_v46 }
0x74af   :  { %v18028_v18 = vadd.f32 %v13623_v56, %v17800_v39 }
0x74b1   :  { %v13633_v4 = vsel %vm222_vm0, %v18028_v18, 0.0 }
0x74b2   :  { %13634 = vadd.xlane.f32.xlu1 %v13633_v4 }
0x74b6   :  { %13643 = vadd.xlane.f32.xlu1 %v13642_v63 }
0x753f   :  { %v13635_v13 = vpop.xlane.xlu1 %13634 }
0x7540   :  { %v13637_v57 = vmul.f32 0.03125, %v13635_v13 }
0x7542   :  { %v13639_v3 = vsub.f32 %v18028_v18, %v13637_v57 }
0x7543   :  { %v13644_v61 = vpop.xlane.xlu1 %13643 }
0x7544   :  { %v13648_v15 = vmul.f32 0.03125, %v13644_v61  ;;  %v13641_v39 = vmul.f32 %v13639_v3, %v13639_v3 }
0x7546   :  { %v13650_v33 = vadd.f32 1e-06, %v13648_v15  ;;  %v13645_v5 = vsel %vm222_vm0, %v13641_v39, 0.0 }
0x7547   :  { %13646 = vadd.xlane.f32.xlu1 %v13645_v5 }
0x7548   :  { %16097 = vrsqrt.f32 %v13650_v33 }
0x7552   :  { %v16098_v6 = vpop.eup %16097 }
0x7553   :  { %v13654_v41 = vmul.f32 %v16098_v6, %v13638_v53  ;;  %v14315_v6 = vld [vmem:[#allocation2] ss:$0 sm:$0xff] }
0x7555   :  { %v13662_v19 = vmul.f32 %v14293_v37, %v13654_v41  ;;  %v14316_v41 = vld [vmem:[%s18139_s5] ss:$0 sm:$0xff] }
0x7557   :  { %v13670_v60 = vadd.f32 %v14294_v8, %v13662_v19 }
0x7559   :  { %15623 = vmatprep.mubr.msk.f32.mxu0 %vm222_vm0, %v13670_v60 }
0x75d4   :  { %v13647_v10 = vpop.xlane.xlu1 %13646 }
0x75d5   :  { %v13649_v48 = vmul.f32 0.03125, %v13647_v10 }
0x75d7   :  { %v13651_v1 = vadd.f32 1e-06, %v13649_v48 }
0x75d9   :  { %16099 = vrsqrt.f32 %v13651_v1 }
0x75e3   :  { %v16100_v23 = vpop.eup %16099 }
0x75e4   :  { %v13655_v24 = vmul.f32 %v16100_v23, %v13639_v3 }
0x75e6   :  { %v13663_v50 = vmul.f32 %v14293_v37, %v13655_v24 }
0x75e8   :  { %v13671_v49 = vadd.f32 %v14294_v8, %v13663_v50 }
0x75ea   :  { %15624 = vmatmul.mubr.msk.f32.vlgmr.msra.gmra.mrb[162].mxu0 %vm222_vm0, %v13671_v49 }
0x76bd   :  { %v15625_v36 = vpop.f32.mrb[162].mxu0 }
0x76be   :  { %v13774_v52 = vadd.f32 %v15625_v36, %v14309_v34  ;;  %v13768_v0 = vpop.f32.mrb[163].mxu0 }
0x76bf   :  { %v13769_v11 = vadd.f32 %v14309_v34, %v13768_v0 }
0x76c0   :  { %v13778_v62 = vmax.f32 %v13774_v52, 0.0 }
0x76c1   :  { %v13777_v22 = vmax.f32 %v13769_v11, 0.0 }
0x76c3   :  { %15642 = vmatprep.mubr.msk.f32.mxu1 %vm2461_vm5, %v13777_v22 }
0x76c4   :  { %15643 = vmatmul.mubr.msk.f32.vlgmr.msra.gmra.mrb[154].mxu1 %vm2461_vm5, %v13778_v62 }
0x7797   :  { %v15644_v38 = vpop.f32.mrb[154].mxu1 }
0x7798   :  { %v13863_v59 = vadd.f32 %v15644_v38, %v14312_v7  ;;  %v13857_v40 = vpop.f32.mrb[155].mxu1 }
0x7799   :  { %v13858_v42 = vadd.f32 %v14312_v7, %v13857_v40 }
0x779a   :  { %v13867_v9 = vadd.f32 %v13863_v59, %v18028_v18 }
0x779b   :  { %v13866_v43 = vadd.f32 %v13858_v42, %v18016_v30 }
0x779c   :  { %v13873_v44 = vsel %vm222_vm0, %v13867_v9, 0.0 }
0x779d   :  { %13874 = vadd.xlane.f32.xlu0 %v13873_v44  ;;  %v13870_v45 = vsel %vm222_vm0, %v13866_v43, 0.0 }
0x779e   :  { %13871 = vadd.xlane.f32.xlu1 %v13870_v45 }
0x782a   :  { %v13875_v46 = vpop.xlane.xlu0 %13874 }
0x782b   :  { %v13877_v21 = vmul.f32 0.03125, %v13875_v46  ;;  %v13872_v53 = vpop.xlane.xlu1 %13871 }
0x782c   :  { %v13876_v56 = vmul.f32 0.03125, %v13872_v53 }
0x782d   :  { %v13879_v4 = vsub.f32 %v13867_v9, %v13877_v21 }
0x782e   :  { %v13878_v55 = vsub.f32 %v13866_v43, %v13876_v56 }
0x782f   :  { %v13881_v57 = vmul.f32 %v13879_v4, %v13879_v4 }
0x7830   :  { %v13880_v63 = vmul.f32 %v13878_v55, %v13878_v55 }
0x7831   :  { %v13885_v30 = vsel %vm222_vm0, %v13881_v57, 0.0 }
0x7832   :  { %v13882_v13 = vsel %vm222_vm0, %v13880_v63, 0.0 }
0x7833   :  { %13883 = vadd.xlane.f32.xlu1 %v13882_v13 }
0x7837   :  { %13886 = vadd.xlane.f32.xlu1 %v13885_v30 }
0x78c0   :  { %v13884_v18 = vpop.xlane.xlu1 %13883 }
0x78c1   :  { %v13888_v3 = vmul.f32 0.03125, %v13884_v18 }
0x78c3   :  { %v13890_v61 = vadd.f32 1e-06, %v13888_v3 }
0x78c4   :  { %v13887_v15 = vpop.xlane.xlu1 %13886 }
0x78c5   :  { %16101 = vrsqrt.f32 %v13890_v61  ;;  %v13889_v39 = vmul.f32 0.03125, %v13887_v15 }
0x78c7   :  { %v13891_v33 = vadd.f32 1e-06, %v13889_v39 }
0x78c9   :  { %16103 = vrsqrt.f32 %v13891_v33 }
0x78cf   :  { %v16102_v5 = vpop.eup %16101 }
0x78d0   :  { %v13894_v37 = vmul.f32 %v16102_v5, %v13878_v55 }
0x78d2   :  { %v13902_v8 = vmul.f32 %v14315_v6, %v13894_v37 }
0x78d3   :  { %v16104_v19 = vpop.eup %16103 }
0x78d4   :  { %v13895_v60 = vmul.f32 %v16104_v19, %v13879_v4  ;;  %v13910_v25 = vadd.f32 %v14316_v41, %v13902_v8 }
0x78d6   :  { %v13903_v51 = vmul.f32 %v14315_v6, %v13895_v60  ;;  %13912 = vst.msk [vmem:[#allocation8] sm:$0xff] %vm222_vm0, %v13910_v25 }
0x78d8   :  { %v13911_v54 = vadd.f32 %v14316_v41, %v13903_v51 }
0x78da   :  { %13913 = vst.msk [vmem:[#allocation8 + $0x8] sm:$0xff] %vm222_vm0, %v13911_v54 }
0x78db   :  { %16182 = shalt.err (!%p16179_p0)
}
0x78dc   :  { %s16183_s2 = scalar_lea.hbm %s16465_s9, 256 }
0x78dd   :  { %p16184_p1 = scmp.ne.s32.totalorder %s16465_s9, %s16183_s2  ;;  %p16187_p2 = scmp.lt.u32.totalorder %s16183_s2, %s16465_s9 }
0x78df   :  { %p16189_p3 = pnand %p16187_p2, %p16184_p1 }
0x78e1   :  { %16192 = shalt.err (!%p16189_p3)
}
0x78e2   :  { %s16257_s10 = smov 128   ;;  %s16258_s7 = smov 8  }
0x78e3   :  { %13925 = dma.vmem_to_hbm [thread:$0]  %s13920_s27, 256, %s16465_s9, [#allocation4], %s16257_s10, %s16257_s10, %s16258_s7  }
0x78e4   :  { %16197 = dma.done.wait [#allocation4], 256  }
0x78e5   :  { %16198 = vsyncadd [#allocation4], 4294967040 }
0x78e6   :  { %13929 = vsyncpa [#allocation3], 1 }
0x78e7   :  { %13930 = vsyncpa [#allocation6], 1 }
0x78e8   :  { %13931 = vsyncpa [#allocation4], 1 }

</bundles_post_ra>
